<compile_context>
chip_gen: v7x
topology: tpu7x:2x2x1
jax: 0.10.0
libtpu: 0.0.40
codegen_flags: <defaults>
</compile_context>

<pallas_src>
import math
import jax
import jax.numpy as jnp
from jax.experimental import pallas as pl
from jax.experimental.pallas import tpu as pltpu

# ---------------- model constants (scaled-down MAFM) ----------------
B = 2                 # batch
DIM = 32              # C (256 in the original)
NUM_PATCHES = 128     # N (384 in the original)
NUM_HEADS = 4         # 16 in the original
HEAD_DIM = DIM // NUM_HEADS
MLP_HIDDEN = 4 * DIM
SCALE = HEAD_DIM ** (-0.5)   # MAFM passes qk_scale=None -> head_dim ** -0.5
LN_EPS = 1e-5


# ---------------- in-kernel helpers (pure 2-D ops) ----------------
def _layernorm2d(x, w, b):
    """LayerNorm over the whole (C, N) slab (normalized_shape=[C, N])."""
    cnt = x.shape[0] * x.shape[1]
    s = jnp.sum(x, axis=1, keepdims=True)
    mu = jnp.sum(s, axis=0, keepdims=True) / cnt          # (1, 1)
    d = x - mu
    s2 = jnp.sum(d * d, axis=1, keepdims=True)
    var = jnp.sum(s2, axis=0, keepdims=True) / cnt        # (1, 1)
    inv = jax.lax.rsqrt(var + LN_EPS)
    return d * inv * w + b


def _softmax_lanes(x):
    """Softmax over the last (lane) axis."""
    m = jnp.max(x, axis=-1, keepdims=True)
    e = jnp.exp(x - m)
    return e / jnp.sum(e, axis=-1, keepdims=True)


def _softmax_sublanes(x):
    """Softmax over axis 0 (head_dim sits on sublanes in channel-major layout)."""
    m = jnp.max(x, axis=0, keepdims=True)
    e = jnp.exp(x - m)
    return e / jnp.sum(e, axis=0, keepdims=True)


def _fuse(a, b):
    """MF stream fusion: 0.5*(a*softmax(b) + b*softmax(a)), softmax over head_dim."""
    return 0.5 * (a * _softmax_sublanes(b) + b * _softmax_sublanes(a))


def _gelu_tanh(x):
    # tanh-approximate GELU; tanh lowers to the EUP (otherwise idle VLIW slot).
    c = 0.7978845608028654  # sqrt(2/pi)
    return 0.5 * x * (1.0 + jnp.tanh(c * (x + 0.044715 * x * x * x)))


# ---------------- fused kernel: norm1 + MF attention + residual + norm2 + MLP ----------------
def mafm_fused_kernel(j_ref, v_ref, b_ref,
                      n1w_ref, n1b_ref, n2w_ref, n2b_ref,
                      pej_ref, pev_ref, peb_ref,
                      wjt_ref, wbt_ref, wvt_ref,
                      wproj_ref, bproj_ref,
                      w1_ref, b1_ref, w2_ref, b2_ref,
                      out_ref):
    f32 = jnp.float32
    bf16 = jnp.bfloat16

    def mm(a, b):
        # bf16 operands, f32 accumulation on the MXU.
        return jnp.dot(a.astype(bf16), b.astype(bf16), preferred_element_type=f32)

    xj = j_ref[0]   # (C, N) raw joints
    xv = v_ref[0]   # (C, N) raw velocities
    xb = b_ref[0]   # (C, N) raw bones
    n1w = n1w_ref[...]
    n1b = n1b_ref[...]

    sj = _layernorm2d(xj, n1w, n1b)
    sv = _layernorm2d(xv, n1w, n1b)
    sb = _layernorm2d(xb, n1w, n1b)

    # MAFM calls MF(joints=norm(j), bones=norm(v), velocity=norm(b)); pos-embeds
    # follow MF's internal argument names.  Everything stays channel-major (C, N).
    jt = sj + pej_ref[...]     # "joints"  stream -> pos_embed_j
    bt = sv + peb_ref[...]     # "bones"   stream (velocities) -> pos_embed_b
    vt = sb + pev_ref[...]     # "velocity" stream (bones)     -> pos_embed_v

    # Host-stacked, host-transposed QKV projections: (out, C) @ (C, N) -> (out, N).
    qkv_jt = mm(wjt_ref[...], jt)   # (6C, N): [q_jb; q_jv; k_jb; v_jb; k_jv; v_jv]
    qkv_bt = mm(wbt_ref[...], bt)   # (2C, N): [k_jb; v_jb] on the bones-stream tokens
    qkv_vt = mm(wvt_ref[...], vt)   # (2C, N): [k_jv; v_jv] on the velocity-stream tokens

    C, hd = DIM, HEAD_DIM
    o_heads = []
    # Per-head loop, unrolled (4 heads).  head_dim=8 rows per head fall on natural
    # sublane (8-row) boundaries; K of the score matmul is inherently 8-deep.
    for h in range(NUM_HEADS):
        r = h * hd
        q = _fuse(qkv_jt[0 * C + r:0 * C + r + hd],
                  qkv_jt[1 * C + r:1 * C + r + hd])                       # (hd, N)
        k1 = _fuse(qkv_jt[2 * C + r:2 * C + r + hd],
                   qkv_jt[4 * C + r:4 * C + r + hd])                      # joint-token keys
        v1 = _fuse(qkv_jt[3 * C + r:3 * C + r + hd],
                   qkv_jt[5 * C + r:5 * C + r + hd])
        k2 = _fuse(qkv_bt[0 * C + r:0 * C + r + hd],
                   qkv_vt[0 * C + r:0 * C + r + hd])                      # 2nd-half-token keys
        v2 = _fuse(qkv_bt[1 * C + r:1 * C + r + hd],
                   qkv_vt[1 * C + r:1 * C + r + hd])
        k = jnp.concatenate([k1, k2], axis=1)                             # (hd, 2N)
        v = jnp.concatenate([v1, v2], axis=1)                             # (hd, 2N)

        # scores (N, 2N): contract head_dim on the sublane axis; 2N stays on lanes.
        s = jax.lax.dot_general(q.astype(bf16), k.astype(bf16),
                                (((0,), (0,)), ((), ())),
                                preferred_element_type=f32) * SCALE
        a = _softmax_lanes(s)                                             # (N, 2N)
        # o_h (hd, N) = v @ a^T  -- output already channel-major, no transpose.
        o_heads.append(jax.lax.dot_general(v.astype(bf16), a.astype(bf16),
                                           (((1,), (1,)), ((), ())),
                                           preferred_element_type=f32))
    o = jnp.concatenate(o_heads, axis=0)                                  # (C, N)

    attn_out = mm(wproj_ref[...], o) + bproj_ref[...]                     # (C, N)
    x = (xj + xv + xb) * (1.0 / 3.0) + attn_out

    # norm2 + MLP + residual
    y = _layernorm2d(x, n2w_ref[...], n2b_ref[...])
    hdn = mm(w1_ref[...], y) + b1_ref[...]                                # (4C, N)
    hdn = _gelu_tanh(hdn)
    z = mm(w2_ref[...], hdn) + b2_ref[...]                                # (C, N)
    out_ref[0] = x + z


# ---------------- host-side parameter packing (transpose / stack once) ----------------
def pack_params(p):
    t = lambda w: jnp.asarray(w).T
    return {
        "n1_w": p["n1_w"], "n1_b": p["n1_b"],
        "n2_w": p["n2_w"], "n2_b": p["n2_b"],
        "pe_j": t(p["pe_j"]), "pe_v": t(p["pe_v"]), "pe_b": t(p["pe_b"]),   # (C, N)
        # stacked transposed weights: rows = [q_jb; q_jv; k_jb; v_jb; k_jv; v_jv]
        "w_jt": jnp.concatenate([t(p["wq_jb"]), t(p["wq_jv"]),
                                 t(p["wk_jb"]), t(p["wv_jb"]),
                                 t(p["wk_jv"]), t(p["wv_jv"])], axis=0),    # (6C, C)
        "w_bt": jnp.concatenate([t(p["wk_jb"]), t(p["wv_jb"])], axis=0),    # (2C, C)
        "w_vt": jnp.concatenate([t(p["wk_jv"]), t(p["wv_jv"])], axis=0),    # (2C, C)
        "w_proj": t(p["w_proj"]), "b_proj": t(p["b_proj"]),                 # (C,C), (C,1)
        "w1": t(p["w1"]), "b1": t(p["b1"]),                                 # (4C,C), (4C,1)
        "w2": t(p["w2"]), "b2": t(p["b2"]),                                 # (C,4C), (C,1)
    }


# ---------------- wrapper ----------------
def mafm_forward(joints, velocities, bones, p):
    Bb, C, N = joints.shape
    kp = pack_params(p)   # tiny host/XLA-side transposes & concats, outside the kernel
    full = lambda shape: pl.BlockSpec(shape, lambda i: (0, 0))
    batch3d = pl.BlockSpec((1, C, N), lambda i: (i, 0, 0))

    return pl.pallas_call(
        mafm_fused_kernel,
        out_shape=jax.ShapeDtypeStruct((Bb, C, N), jnp.float32),
        grid=(Bb,),
        in_specs=[
            batch3d, batch3d, batch3d,
            full((C, N)), full((C, N)), full((C, N)), full((C, N)),
            full((C, N)), full((C, N)), full((C, N)),
            full((6 * C, C)), full((2 * C, C)), full((2 * C, C)),
            full((C, C)), full((C, 1)),
            full((MLP_HIDDEN, C)), full((MLP_HIDDEN, 1)),
            full((C, MLP_HIDDEN)), full((C, 1)),
        ],
        out_specs=batch3d,
        compiler_params=pltpu.CompilerParams(dimension_semantics=("parallel",)),
    )(joints, velocities, bones,
      kp["n1_w"], kp["n1_b"], kp["n2_w"], kp["n2_b"],
      kp["pe_j"], kp["pe_v"], kp["pe_b"],
      kp["w_jt"], kp["w_bt"], kp["w_vt"],
      kp["w_proj"], kp["b_proj"],
      kp["w1"], kp["b1"], kp["w2"], kp["b2"])


# ---------------- pure-JAX reference for verification ----------------
def _layernorm_ref(x, w, b):
    mu = jnp.mean(x, axis=(1, 2), keepdims=True)
    var = jnp.mean(jnp.square(x - mu), axis=(1, 2), keepdims=True)
    return (x - mu) / jnp.sqrt(var + LN_EPS) * w + b


def mafm_reference(joints, velocities, bones, p):
    P = jax.lax.Precision.HIGHEST
    mm = lambda a, b: jnp.matmul(a, b, precision=P)
    nj = _layernorm_ref(joints, p["n1_w"], p["n1_b"])
    nv = _layernorm_ref(velocities, p["n1_w"], p["n1_b"])
    nb = _layernorm_ref(bones, p["n1_w"], p["n1_b"])
    # MF(joints=nj, bones=nv, velocity=nb)
    jt = jnp.transpose(nj, (0, 2, 1)) + p["pe_j"]
    bt = jnp.transpose(nv, (0, 2, 1)) + p["pe_b"]
    vt = jnp.transpose(nb, (0, 2, 1)) + p["pe_v"]
    Bb, N, C = jt.shape
    heads = lambda x: x.reshape(Bb, x.shape[1], NUM_HEADS, HEAD_DIM).transpose(0, 2, 1, 3)
    cat_jb = jnp.concatenate([jt, bt], axis=1)
    cat_jv = jnp.concatenate([jt, vt], axis=1)
    q_jb, q_jv = heads(mm(jt, p["wq_jb"])), heads(mm(jt, p["wq_jv"]))
    k_jb, k_jv = heads(mm(cat_jb, p["wk_jb"])), heads(mm(cat_jv, p["wk_jv"]))
    v_jb, v_jv = heads(mm(cat_jb, p["wv_jb"])), heads(mm(cat_jv, p["wv_jv"]))
    sm = lambda x: jax.nn.softmax(x, axis=-1)
    fuse = lambda a, b: 0.5 * (a * sm(b) + b * sm(a))
    q, k, v = fuse(q_jb, q_jv), fuse(k_jb, k_jv), fuse(v_jb, v_jv)
    attn = sm(jnp.einsum("bhnd,bhmd->bhnm", q, k, precision=P) * SCALE)
    o = jnp.einsum("bhnm,bhmd->bhnd", attn, v, precision=P)
    o = o.transpose(0, 2, 1, 3).reshape(Bb, N, C)
    o = mm(o, p["w_proj"]) + p["b_proj"]
    x = (joints + velocities + bones) / 3.0 + jnp.transpose(o, (0, 2, 1))
    y = _layernorm_ref(x, p["n2_w"], p["n2_b"])
    yt = jnp.transpose(y, (0, 2, 1))
    h = mm(yt, p["w1"]) + p["b1"]
    h = 0.5 * h * (1.0 + jax.scipy.special.erf(h / jnp.sqrt(2.0)))
    z = mm(h, p["w2"]) + p["b2"]
    return x + jnp.transpose(z, (0, 2, 1))


# ---------------- deterministic parameter init (canonical PyTorch-like layout) ----------------
def init_params(key):
    keys = jax.random.split(key, 16)
    it = iter(keys)

    def lin_w(k, fan_in, fan_out):
        bound = 1.0 / math.sqrt(fan_in)
        # stored as (in, out); kernel uses host-transposed copies
        return jax.random.uniform(k, (fan_in, fan_out), jnp.float32, -bound, bound)

    def lin_b(k, fan_in, fan_out):
        bound = 1.0 / math.sqrt(fan_in)
        return jax.random.uniform(k, (1, fan_out), jnp.float32, -bound, bound)

    p = {
        "n1_w": jnp.ones((DIM, NUM_PATCHES), jnp.float32),
        "n1_b": jnp.zeros((DIM, NUM_PATCHES), jnp.float32),
        "n2_w": jnp.ones((DIM, NUM_PATCHES), jnp.float32),
        "n2_b": jnp.zeros((DIM, NUM_PATCHES), jnp.float32),
        "pe_j": jax.random.normal(next(it), (NUM_PATCHES, DIM), jnp.float32) * 0.02,
        "pe_v": jax.random.normal(next(it), (NUM_PATCHES, DIM), jnp.float32) * 0.02,
        "pe_b": jax.random.normal(next(it), (NUM_PATCHES, DIM), jnp.float32) * 0.02,
        # qkv_bias=False in MAFM -> no biases on wq/wk/wv
        "wq_jb": lin_w(next(it), DIM, DIM),
        "wk_jb": lin_w(next(it), DIM, DIM),
        "wv_jb": lin_w(next(it), DIM, DIM),
        "wq_jv": lin_w(next(it), DIM, DIM),
        "wk_jv": lin_w(next(it), DIM, DIM),
        "wv_jv": lin_w(next(it), DIM, DIM),
        "w_proj": lin_w(next(it), DIM, DIM),
        "b_proj": lin_b(next(it), DIM, DIM),
        "w1": lin_w(next(it), DIM, MLP_HIDDEN),
        "b1": lin_b(next(it), DIM, MLP_HIDDEN),
        "w2": lin_w(next(it), MLP_HIDDEN, DIM),
        "b2": lin_b(next(it), MLP_HIDDEN, DIM),
    }
    return p


if __name__ == "__main__":
    key = jax.random.PRNGKey(0)
    kj, kv, kb, kp = jax.random.split(key, 4)
    joints = jax.random.normal(kj, (B, DIM, NUM_PATCHES), jnp.float32)
    velocities = jax.random.normal(kv, (B, DIM, NUM_PATCHES), jnp.float32)
    bones = jax.random.normal(kb, (B, DIM, NUM_PATCHES), jnp.float32)
    params = init_params(kp)

    out = jax.jit(mafm_forward)(joints, velocities, bones, params)
    out = jax.block_until_ready(out)
    assert out.shape == (B, DIM, NUM_PATCHES)

    ref = mafm_reference(joints, velocities, bones, params)
    err = float(jnp.max(jnp.abs(out - ref)))
    assert err < 5e-2, f"max abs err {err}"
    print("KERNEL_OK")
</pallas_src>

<mosaic_0001>
module attributes {stable_mosaic.version = 11 : i64} {
  func.func @mafm_fused_kernel(%arg0: i32, %arg1: memref<1x32x128xf32, #tpu.memory_space<vmem>>, %arg2: memref<1x32x128xf32, #tpu.memory_space<vmem>>, %arg3: memref<1x32x128xf32, #tpu.memory_space<vmem>>, %arg4: memref<32x128xf32, #tpu.memory_space<vmem>>, %arg5: memref<32x128xf32, #tpu.memory_space<vmem>>, %arg6: memref<32x128xf32, #tpu.memory_space<vmem>>, %arg7: memref<32x128xf32, #tpu.memory_space<vmem>>, %arg8: memref<32x128xf32, #tpu.memory_space<vmem>>, %arg9: memref<32x128xf32, #tpu.memory_space<vmem>>, %arg10: memref<32x128xf32, #tpu.memory_space<vmem>>, %arg11: memref<192x32xf32, #tpu.memory_space<vmem>>, %arg12: memref<64x32xf32, #tpu.memory_space<vmem>>, %arg13: memref<64x32xf32, #tpu.memory_space<vmem>>, %arg14: memref<32x32xf32, #tpu.memory_space<vmem>>, %arg15: memref<32x1xf32, #tpu.memory_space<vmem>>, %arg16: memref<128x32xf32, #tpu.memory_space<vmem>>, %arg17: memref<128x1xf32, #tpu.memory_space<vmem>>, %arg18: memref<32x128xf32, #tpu.memory_space<vmem>>, %arg19: memref<32x1xf32, #tpu.memory_space<vmem>>, %arg20: memref<1x32x128xf32, #tpu.memory_space<vmem>>) attributes {dimension_semantics = [#tpu.dimension_semantics<parallel>], iteration_bounds = array<i64: 2>, scalar_prefetch = 0 : i64, scratch_operands = 0 : i64, tpu.core_type = #tpu.core_type<tc>, window_params = [{transform_indices = @transform_0, window_bounds = array<i64: 1, 32, 128>}, {transform_indices = @transform_1, window_bounds = array<i64: 1, 32, 128>}, {transform_indices = @transform_2, window_bounds = array<i64: 1, 32, 128>}, {pipeline_mode = #tpu.pipeline_mode<synchronous>, transform_indices = @transform_3, window_bounds = array<i64: 32, 128>}, {pipeline_mode = #tpu.pipeline_mode<synchronous>, transform_indices = @transform_4, window_bounds = array<i64: 32, 128>}, {pipeline_mode = #tpu.pipeline_mode<synchronous>, transform_indices = @transform_5, window_bounds = array<i64: 32, 128>}, {pipeline_mode = #tpu.pipeline_mode<synchronous>, transform_indices = @transform_6, window_bounds = array<i64: 32, 128>}, {pipeline_mode = #tpu.pipeline_mode<synchronous>, transform_indices = @transform_7, window_bounds = array<i64: 32, 128>}, {pipeline_mode = #tpu.pipeline_mode<synchronous>, transform_indices = @transform_8, window_bounds = array<i64: 32, 128>}, {pipeline_mode = #tpu.pipeline_mode<synchronous>, transform_indices = @transform_9, window_bounds = array<i64: 32, 128>}, {pipeline_mode = #tpu.pipeline_mode<synchronous>, transform_indices = @transform_10, window_bounds = array<i64: 192, 32>}, {pipeline_mode = #tpu.pipeline_mode<synchronous>, transform_indices = @transform_11, window_bounds = array<i64: 64, 32>}, {pipeline_mode = #tpu.pipeline_mode<synchronous>, transform_indices = @transform_12, window_bounds = array<i64: 64, 32>}, {pipeline_mode = #tpu.pipeline_mode<synchronous>, transform_indices = @transform_13, window_bounds = array<i64: 32, 32>}, {pipeline_mode = #tpu.pipeline_mode<synchronous>, transform_indices = @transform_14, window_bounds = array<i64: 32, 1>}, {pipeline_mode = #tpu.pipeline_mode<synchronous>, transform_indices = @transform_15, window_bounds = array<i64: 128, 32>}, {pipeline_mode = #tpu.pipeline_mode<synchronous>, transform_indices = @transform_16, window_bounds = array<i64: 128, 1>}, {pipeline_mode = #tpu.pipeline_mode<synchronous>, transform_indices = @transform_17, window_bounds = array<i64: 32, 128>}, {pipeline_mode = #tpu.pipeline_mode<synchronous>, transform_indices = @transform_18, window_bounds = array<i64: 32, 1>}, {transform_indices = @transform_19, window_bounds = array<i64: 1, 32, 128>}]} {
    %c0 = arith.constant 0 : index
    %c0_0 = arith.constant 0 : index
    %c0_1 = arith.constant 0 : index
    %0 = vector.load %arg1[%c0, %c0_0, %c0_1] : memref<1x32x128xf32, #tpu.memory_space<vmem>>, vector<1x32x128xf32>
    %1 = vector.shape_cast %0 : vector<1x32x128xf32> to vector<32x128xf32>
    %c0_2 = arith.constant 0 : index
    %c0_3 = arith.constant 0 : index
    %c0_4 = arith.constant 0 : index
    %2 = vector.load %arg2[%c0_2, %c0_3, %c0_4] : memref<1x32x128xf32, #tpu.memory_space<vmem>>, vector<1x32x128xf32>
    %3 = vector.shape_cast %2 : vector<1x32x128xf32> to vector<32x128xf32>
    %c0_5 = arith.constant 0 : index
    %c0_6 = arith.constant 0 : index
    %c0_7 = arith.constant 0 : index
    %4 = vector.load %arg3[%c0_5, %c0_6, %c0_7] : memref<1x32x128xf32, #tpu.memory_space<vmem>>, vector<1x32x128xf32>
    %5 = vector.shape_cast %4 : vector<1x32x128xf32> to vector<32x128xf32>
    %c0_8 = arith.constant 0 : index
    %c0_9 = arith.constant 0 : index
    %6 = vector.load %arg4[%c0_8, %c0_9] : memref<32x128xf32, #tpu.memory_space<vmem>>, vector<32x128xf32>
    %c0_10 = arith.constant 0 : index
    %c0_11 = arith.constant 0 : index
    %7 = vector.load %arg5[%c0_10, %c0_11] : memref<32x128xf32, #tpu.memory_space<vmem>>, vector<32x128xf32>
    %cst = arith.constant dense<0.000000e+00> : vector<32xf32>
    %8 = vector.multi_reduction <add>, %1, %cst [1] : vector<32x128xf32> to vector<32xf32>
    %9 = vector.shape_cast %8 : vector<32xf32> to vector<32x1xf32>
    %cst_12 = arith.constant dense<0.000000e+00> : vector<1xf32>
    %10 = vector.multi_reduction <add>, %9, %cst_12 [0] : vector<32x1xf32> to vector<1xf32>
    %11 = vector.shape_cast %10 : vector<1xf32> to vector<1x1xf32>
    %cst_13 = arith.constant 4.096000e+03 : f32
    %12 = vector.broadcast %cst_13 : f32 to vector<1x1xf32>
    %13 = arith.divf %11, %12 : vector<1x1xf32>
    %14 = vector.broadcast %13 : vector<1x1xf32> to vector<32x128xf32>
    %15 = arith.subf %1, %14 : vector<32x128xf32>
    %16 = arith.mulf %15, %15 : vector<32x128xf32>
    %cst_14 = arith.constant dense<0.000000e+00> : vector<32xf32>
    %17 = vector.multi_reduction <add>, %16, %cst_14 [1] : vector<32x128xf32> to vector<32xf32>
    %18 = vector.shape_cast %17 : vector<32xf32> to vector<32x1xf32>
    %cst_15 = arith.constant dense<0.000000e+00> : vector<1xf32>
    %19 = vector.multi_reduction <add>, %18, %cst_15 [0] : vector<32x1xf32> to vector<1xf32>
    %20 = vector.shape_cast %19 : vector<1xf32> to vector<1x1xf32>
    %cst_16 = arith.constant 4.096000e+03 : f32
    %21 = vector.broadcast %cst_16 : f32 to vector<1x1xf32>
    %22 = arith.divf %20, %21 : vector<1x1xf32>
    %cst_17 = arith.constant 9.99999974E-6 : f32
    %23 = vector.broadcast %cst_17 : f32 to vector<1x1xf32>
    %24 = arith.addf %22, %23 : vector<1x1xf32>
    %25 = math.rsqrt %24 : vector<1x1xf32>
    %26 = vector.broadcast %25 : vector<1x1xf32> to vector<32x128xf32>
    %27 = arith.mulf %15, %26 : vector<32x128xf32>
    %28 = arith.mulf %27, %6 : vector<32x128xf32>
    %29 = arith.addf %28, %7 : vector<32x128xf32>
    %cst_18 = arith.constant dense<0.000000e+00> : vector<32xf32>
    %30 = vector.multi_reduction <add>, %3, %cst_18 [1] : vector<32x128xf32> to vector<32xf32>
    %31 = vector.shape_cast %30 : vector<32xf32> to vector<32x1xf32>
    %cst_19 = arith.constant dense<0.000000e+00> : vector<1xf32>
    %32 = vector.multi_reduction <add>, %31, %cst_19 [0] : vector<32x1xf32> to vector<1xf32>
    %33 = vector.shape_cast %32 : vector<1xf32> to vector<1x1xf32>
    %cst_20 = arith.constant 4.096000e+03 : f32
    %34 = vector.broadcast %cst_20 : f32 to vector<1x1xf32>
    %35 = arith.divf %33, %34 : vector<1x1xf32>
    %36 = vector.broadcast %35 : vector<1x1xf32> to vector<32x128xf32>
    %37 = arith.subf %3, %36 : vector<32x128xf32>
    %38 = arith.mulf %37, %37 : vector<32x128xf32>
    %cst_21 = arith.constant dense<0.000000e+00> : vector<32xf32>
    %39 = vector.multi_reduction <add>, %38, %cst_21 [1] : vector<32x128xf32> to vector<32xf32>
    %40 = vector.shape_cast %39 : vector<32xf32> to vector<32x1xf32>
    %cst_22 = arith.constant dense<0.000000e+00> : vector<1xf32>
    %41 = vector.multi_reduction <add>, %40, %cst_22 [0] : vector<32x1xf32> to vector<1xf32>
    %42 = vector.shape_cast %41 : vector<1xf32> to vector<1x1xf32>
    %cst_23 = arith.constant 4.096000e+03 : f32
    %43 = vector.broadcast %cst_23 : f32 to vector<1x1xf32>
    %44 = arith.divf %42, %43 : vector<1x1xf32>
    %cst_24 = arith.constant 9.99999974E-6 : f32
    %45 = vector.broadcast %cst_24 : f32 to vector<1x1xf32>
    %46 = arith.addf %44, %45 : vector<1x1xf32>
    %47 = math.rsqrt %46 : vector<1x1xf32>
    %48 = vector.broadcast %47 : vector<1x1xf32> to vector<32x128xf32>
    %49 = arith.mulf %37, %48 : vector<32x128xf32>
    %50 = arith.mulf %49, %6 : vector<32x128xf32>
    %51 = arith.addf %50, %7 : vector<32x128xf32>
    %cst_25 = arith.constant dense<0.000000e+00> : vector<32xf32>
    %52 = vector.multi_reduction <add>, %5, %cst_25 [1] : vector<32x128xf32> to vector<32xf32>
    %53 = vector.shape_cast %52 : vector<32xf32> to vector<32x1xf32>
    %cst_26 = arith.constant dense<0.000000e+00> : vector<1xf32>
    %54 = vector.multi_reduction <add>, %53, %cst_26 [0] : vector<32x1xf32> to vector<1xf32>
    %55 = vector.shape_cast %54 : vector<1xf32> to vector<1x1xf32>
    %cst_27 = arith.constant 4.096000e+03 : f32
    %56 = vector.broadcast %cst_27 : f32 to vector<1x1xf32>
    %57 = arith.divf %55, %56 : vector<1x1xf32>
    %58 = vector.broadcast %57 : vector<1x1xf32> to vector<32x128xf32>
    %59 = arith.subf %5, %58 : vector<32x128xf32>
    %60 = arith.mulf %59, %59 : vector<32x128xf32>
    %cst_28 = arith.constant dense<0.000000e+00> : vector<32xf32>
    %61 = vector.multi_reduction <add>, %60, %cst_28 [1] : vector<32x128xf32> to vector<32xf32>
    %62 = vector.shape_cast %61 : vector<32xf32> to vector<32x1xf32>
    %cst_29 = arith.constant dense<0.000000e+00> : vector<1xf32>
    %63 = vector.multi_reduction <add>, %62, %cst_29 [0] : vector<32x1xf32> to vector<1xf32>
    %64 = vector.shape_cast %63 : vector<1xf32> to vector<1x1xf32>
    %cst_30 = arith.constant 4.096000e+03 : f32
    %65 = vector.broadcast %cst_30 : f32 to vector<1x1xf32>
    %66 = arith.divf %64, %65 : vector<1x1xf32>
    %cst_31 = arith.constant 9.99999974E-6 : f32
    %67 = vector.broadcast %cst_31 : f32 to vector<1x1xf32>
    %68 = arith.addf %66, %67 : vector<1x1xf32>
    %69 = math.rsqrt %68 : vector<1x1xf32>
    %70 = vector.broadcast %69 : vector<1x1xf32> to vector<32x128xf32>
    %71 = arith.mulf %59, %70 : vector<32x128xf32>
    %72 = arith.mulf %71, %6 : vector<32x128xf32>
    %73 = arith.addf %72, %7 : vector<32x128xf32>
    %c0_32 = arith.constant 0 : index
    %c0_33 = arith.constant 0 : index
    %74 = vector.load %arg8[%c0_32, %c0_33] : memref<32x128xf32, #tpu.memory_space<vmem>>, vector<32x128xf32>
    %75 = arith.addf %29, %74 : vector<32x128xf32>
    %c0_34 = arith.constant 0 : index
    %c0_35 = arith.constant 0 : index
    %76 = vector.load %arg10[%c0_34, %c0_35] : memref<32x128xf32, #tpu.memory_space<vmem>>, vector<32x128xf32>
    %77 = arith.addf %51, %76 : vector<32x128xf32>
    %c0_36 = arith.constant 0 : index
    %c0_37 = arith.constant 0 : index
    %78 = vector.load %arg9[%c0_36, %c0_37] : memref<32x128xf32, #tpu.memory_space<vmem>>, vector<32x128xf32>
    %79 = arith.addf %73, %78 : vector<32x128xf32>
    %c0_38 = arith.constant 0 : index
    %c0_39 = arith.constant 0 : index
    %80 = vector.load %arg11[%c0_38, %c0_39] : memref<192x32xf32, #tpu.memory_space<vmem>>, vector<192x32xf32>
    %81 = arith.truncf %80 : vector<192x32xf32> to vector<192x32xbf16>
    %82 = arith.truncf %75 : vector<32x128xf32> to vector<32x128xbf16>
    %cst_40 = arith.constant dense<0.000000e+00> : vector<192x128xf32>
    %83 = tpu.matmul %81, %82, %cst_40 {dimension_numbers = #tpu.dot_dimension_numbers<[1], [0], [0], [1], [0, 0, 1, 1], [], []>} : vector<192x32xbf16>, vector<32x128xbf16>, vector<192x128xf32> -> vector<192x128xf32>
    %c0_41 = arith.constant 0 : index
    %c0_42 = arith.constant 0 : index
    %84 = vector.load %arg12[%c0_41, %c0_42] : memref<64x32xf32, #tpu.memory_space<vmem>>, vector<64x32xf32>
    %85 = arith.truncf %84 : vector<64x32xf32> to vector<64x32xbf16>
    %86 = arith.truncf %77 : vector<32x128xf32> to vector<32x128xbf16>
    %cst_43 = arith.constant dense<0.000000e+00> : vector<64x128xf32>
    %87 = tpu.matmul %85, %86, %cst_43 {dimension_numbers = #tpu.dot_dimension_numbers<[1], [0], [0], [1], [0, 0, 1, 1], [], []>} : vector<64x32xbf16>, vector<32x128xbf16>, vector<64x128xf32> -> vector<64x128xf32>
    %c0_44 = arith.constant 0 : index
    %c0_45 = arith.constant 0 : index
    %88 = vector.load %arg13[%c0_44, %c0_45] : memref<64x32xf32, #tpu.memory_space<vmem>>, vector<64x32xf32>
    %89 = arith.truncf %88 : vector<64x32xf32> to vector<64x32xbf16>
    %90 = arith.truncf %79 : vector<32x128xf32> to vector<32x128xbf16>
    %cst_46 = arith.constant dense<0.000000e+00> : vector<64x128xf32>
    %91 = tpu.matmul %89, %90, %cst_46 {dimension_numbers = #tpu.dot_dimension_numbers<[1], [0], [0], [1], [0, 0, 1, 1], [], []>} : vector<64x32xbf16>, vector<32x128xbf16>, vector<64x128xf32> -> vector<64x128xf32>
    %92 = vector.extract_strided_slice %83 {offsets = [0, 0], sizes = [8, 128], strides = [1, 1]} : vector<192x128xf32> to vector<8x128xf32>
    %93 = vector.extract_strided_slice %83 {offsets = [32, 0], sizes = [8, 128], strides = [1, 1]} : vector<192x128xf32> to vector<8x128xf32>
    %cst_47 = arith.constant dense<0xFF800000> : vector<128xf32>
    %94 = vector.multi_reduction <maximumf>, %93, %cst_47 [0] : vector<8x128xf32> to vector<128xf32>
    %95 = vector.shape_cast %94 : vector<128xf32> to vector<1x128xf32>
    %96 = vector.broadcast %95 : vector<1x128xf32> to vector<8x128xf32>
    %97 = arith.subf %93, %96 : vector<8x128xf32>
    %98 = math.exp %97 : vector<8x128xf32>
    %cst_48 = arith.constant dense<0.000000e+00> : vector<128xf32>
    %99 = vector.multi_reduction <add>, %98, %cst_48 [0] : vector<8x128xf32> to vector<128xf32>
    %100 = vector.shape_cast %99 : vector<128xf32> to vector<1x128xf32>
    %101 = vector.broadcast %100 : vector<1x128xf32> to vector<8x128xf32>
    %102 = arith.divf %98, %101 : vector<8x128xf32>
    %103 = arith.mulf %92, %102 : vector<8x128xf32>
    %cst_49 = arith.constant dense<0xFF800000> : vector<128xf32>
    %104 = vector.multi_reduction <maximumf>, %92, %cst_49 [0] : vector<8x128xf32> to vector<128xf32>
    %105 = vector.shape_cast %104 : vector<128xf32> to vector<1x128xf32>
    %106 = vector.broadcast %105 : vector<1x128xf32> to vector<8x128xf32>
    %107 = arith.subf %92, %106 : vector<8x128xf32>
    %108 = math.exp %107 : vector<8x128xf32>
    %cst_50 = arith.constant dense<0.000000e+00> : vector<128xf32>
    %109 = vector.multi_reduction <add>, %108, %cst_50 [0] : vector<8x128xf32> to vector<128xf32>
    %110 = vector.shape_cast %109 : vector<128xf32> to vector<1x128xf32>
    %111 = vector.broadcast %110 : vector<1x128xf32> to vector<8x128xf32>
    %112 = arith.divf %108, %111 : vector<8x128xf32>
    %113 = arith.mulf %93, %112 : vector<8x128xf32>
    %114 = arith.addf %103, %113 : vector<8x128xf32>
    %cst_51 = arith.constant 5.000000e-01 : f32
    %115 = vector.broadcast %cst_51 : f32 to vector<8x128xf32>
    %116 = arith.mulf %115, %114 : vector<8x128xf32>
    %117 = vector.extract_strided_slice %83 {offsets = [64, 0], sizes = [8, 128], strides = [1, 1]} : vector<192x128xf32> to vector<8x128xf32>
    %118 = vector.extract_strided_slice %83 {offsets = [128, 0], sizes = [8, 128], strides = [1, 1]} : vector<192x128xf32> to vector<8x128xf32>
    %cst_52 = arith.constant dense<0xFF800000> : vector<128xf32>
    %119 = vector.multi_reduction <maximumf>, %118, %cst_52 [0] : vector<8x128xf32> to vector<128xf32>
    %120 = vector.shape_cast %119 : vector<128xf32> to vector<1x128xf32>
    %121 = vector.broadcast %120 : vector<1x128xf32> to vector<8x128xf32>
    %122 = arith.subf %118, %121 : vector<8x128xf32>
    %123 = math.exp %122 : vector<8x128xf32>
    %cst_53 = arith.constant dense<0.000000e+00> : vector<128xf32>
    %124 = vector.multi_reduction <add>, %123, %cst_53 [0] : vector<8x128xf32> to vector<128xf32>
    %125 = vector.shape_cast %124 : vector<128xf32> to vector<1x128xf32>
    %126 = vector.broadcast %125 : vector<1x128xf32> to vector<8x128xf32>
    %127 = arith.divf %123, %126 : vector<8x128xf32>
    %128 = arith.mulf %117, %127 : vector<8x128xf32>
    %cst_54 = arith.constant dense<0xFF800000> : vector<128xf32>
    %129 = vector.multi_reduction <maximumf>, %117, %cst_54 [0] : vector<8x128xf32> to vector<128xf32>
    %130 = vector.shape_cast %129 : vector<128xf32> to vector<1x128xf32>
    %131 = vector.broadcast %130 : vector<1x128xf32> to vector<8x128xf32>
    %132 = arith.subf %117, %131 : vector<8x128xf32>
    %133 = math.exp %132 : vector<8x128xf32>
    %cst_55 = arith.constant dense<0.000000e+00> : vector<128xf32>
    %134 = vector.multi_reduction <add>, %133, %cst_55 [0] : vector<8x128xf32> to vector<128xf32>
    %135 = vector.shape_cast %134 : vector<128xf32> to vector<1x128xf32>
    %136 = vector.broadcast %135 : vector<1x128xf32> to vector<8x128xf32>
    %137 = arith.divf %133, %136 : vector<8x128xf32>
    %138 = arith.mulf %118, %137 : vector<8x128xf32>
    %139 = arith.addf %128, %138 : vector<8x128xf32>
    %cst_56 = arith.constant 5.000000e-01 : f32
    %140 = vector.broadcast %cst_56 : f32 to vector<8x128xf32>
    %141 = arith.mulf %140, %139 : vector<8x128xf32>
    %142 = vector.extract_strided_slice %83 {offsets = [96, 0], sizes = [8, 128], strides = [1, 1]} : vector<192x128xf32> to vector<8x128xf32>
    %143 = vector.extract_strided_slice %83 {offsets = [160, 0], sizes = [8, 128], strides = [1, 1]} : vector<192x128xf32> to vector<8x128xf32>
    %cst_57 = arith.constant dense<0xFF800000> : vector<128xf32>
    %144 = vector.multi_reduction <maximumf>, %143, %cst_57 [0] : vector<8x128xf32> to vector<128xf32>
    %145 = vector.shape_cast %144 : vector<128xf32> to vector<1x128xf32>
    %146 = vector.broadcast %145 : vector<1x128xf32> to vector<8x128xf32>
    %147 = arith.subf %143, %146 : vector<8x128xf32>
    %148 = math.exp %147 : vector<8x128xf32>
    %cst_58 = arith.constant dense<0.000000e+00> : vector<128xf32>
    %149 = vector.multi_reduction <add>, %148, %cst_58 [0] : vector<8x128xf32> to vector<128xf32>
    %150 = vector.shape_cast %149 : vector<128xf32> to vector<1x128xf32>
    %151 = vector.broadcast %150 : vector<1x128xf32> to vector<8x128xf32>
    %152 = arith.divf %148, %151 : vector<8x128xf32>
    %153 = arith.mulf %142, %152 : vector<8x128xf32>
    %cst_59 = arith.constant dense<0xFF800000> : vector<128xf32>
    %154 = vector.multi_reduction <maximumf>, %142, %cst_59 [0] : vector<8x128xf32> to vector<128xf32>
    %155 = vector.shape_cast %154 : vector<128xf32> to vector<1x128xf32>
    %156 = vector.broadcast %155 : vector<1x128xf32> to vector<8x128xf32>
    %157 = arith.subf %142, %156 : vector<8x128xf32>
    %158 = math.exp %157 : vector<8x128xf32>
    %cst_60 = arith.constant dense<0.000000e+00> : vector<128xf32>
    %159 = vector.multi_reduction <add>, %158, %cst_60 [0] : vector<8x128xf32> to vector<128xf32>
    %160 = vector.shape_cast %159 : vector<128xf32> to vector<1x128xf32>
    %161 = vector.broadcast %160 : vector<1x128xf32> to vector<8x128xf32>
    %162 = arith.divf %158, %161 : vector<8x128xf32>
    %163 = arith.mulf %143, %162 : vector<8x128xf32>
    %164 = arith.addf %153, %163 : vector<8x128xf32>
    %cst_61 = arith.constant 5.000000e-01 : f32
    %165 = vector.broadcast %cst_61 : f32 to vector<8x128xf32>
    %166 = arith.mulf %165, %164 : vector<8x128xf32>
    %167 = vector.extract_strided_slice %87 {offsets = [0, 0], sizes = [8, 128], strides = [1, 1]} : vector<64x128xf32> to vector<8x128xf32>
    %168 = vector.extract_strided_slice %91 {offsets = [0, 0], sizes = [8, 128], strides = [1, 1]} : vector<64x128xf32> to vector<8x128xf32>
    %cst_62 = arith.constant dense<0xFF800000> : vector<128xf32>
    %169 = vector.multi_reduction <maximumf>, %168, %cst_62 [0] : vector<8x128xf32> to vector<128xf32>
    %170 = vector.shape_cast %169 : vector<128xf32> to vector<1x128xf32>
    %171 = vector.broadcast %170 : vector<1x128xf32> to vector<8x128xf32>
    %172 = arith.subf %168, %171 : vector<8x128xf32>
    %173 = math.exp %172 : vector<8x128xf32>
    %cst_63 = arith.constant dense<0.000000e+00> : vector<128xf32>
    %174 = vector.multi_reduction <add>, %173, %cst_63 [0] : vector<8x128xf32> to vector<128xf32>
    %175 = vector.shape_cast %174 : vector<128xf32> to vector<1x128xf32>
    %176 = vector.broadcast %175 : vector<1x128xf32> to vector<8x128xf32>
    %177 = arith.divf %173, %176 : vector<8x128xf32>
    %178 = arith.mulf %167, %177 : vector<8x128xf32>
    %cst_64 = arith.constant dense<0xFF800000> : vector<128xf32>
    %179 = vector.multi_reduction <maximumf>, %167, %cst_64 [0] : vector<8x128xf32> to vector<128xf32>
    %180 = vector.shape_cast %179 : vector<128xf32> to vector<1x128xf32>
    %181 = vector.broadcast %180 : vector<1x128xf32> to vector<8x128xf32>
    %182 = arith.subf %167, %181 : vector<8x128xf32>
    %183 = math.exp %182 : vector<8x128xf32>
    %cst_65 = arith.constant dense<0.000000e+00> : vector<128xf32>
    %184 = vector.multi_reduction <add>, %183, %cst_65 [0] : vector<8x128xf32> to vector<128xf32>
    %185 = vector.shape_cast %184 : vector<128xf32> to vector<1x128xf32>
    %186 = vector.broadcast %185 : vector<1x128xf32> to vector<8x128xf32>
    %187 = arith.divf %183, %186 : vector<8x128xf32>
    %188 = arith.mulf %168, %187 : vector<8x128xf32>
    %189 = arith.addf %178, %188 : vector<8x128xf32>
    %cst_66 = arith.constant 5.000000e-01 : f32
    %190 = vector.broadcast %cst_66 : f32 to vector<8x128xf32>
    %191 = arith.mulf %190, %189 : vector<8x128xf32>
    %192 = vector.extract_strided_slice %87 {offsets = [32, 0], sizes = [8, 128], strides = [1, 1]} : vector<64x128xf32> to vector<8x128xf32>
    %193 = vector.extract_strided_slice %91 {offsets = [32, 0], sizes = [8, 128], strides = [1, 1]} : vector<64x128xf32> to vector<8x128xf32>
    %cst_67 = arith.constant dense<0xFF800000> : vector<128xf32>
    %194 = vector.multi_reduction <maximumf>, %193, %cst_67 [0] : vector<8x128xf32> to vector<128xf32>
    %195 = vector.shape_cast %194 : vector<128xf32> to vector<1x128xf32>
    %196 = vector.broadcast %195 : vector<1x128xf32> to vector<8x128xf32>
    %197 = arith.subf %193, %196 : vector<8x128xf32>
    %198 = math.exp %197 : vector<8x128xf32>
    %cst_68 = arith.constant dense<0.000000e+00> : vector<128xf32>
    %199 = vector.multi_reduction <add>, %198, %cst_68 [0] : vector<8x128xf32> to vector<128xf32>
    %200 = vector.shape_cast %199 : vector<128xf32> to vector<1x128xf32>
    %201 = vector.broadcast %200 : vector<1x128xf32> to vector<8x128xf32>
    %202 = arith.divf %198, %201 : vector<8x128xf32>
    %203 = arith.mulf %192, %202 : vector<8x128xf32>
    %cst_69 = arith.constant dense<0xFF800000> : vector<128xf32>
    %204 = vector.multi_reduction <maximumf>, %192, %cst_69 [0] : vector<8x128xf32> to vector<128xf32>
    %205 = vector.shape_cast %204 : vector<128xf32> to vector<1x128xf32>
    %206 = vector.broadcast %205 : vector<1x128xf32> to vector<8x128xf32>
    %207 = arith.subf %192, %206 : vector<8x128xf32>
    %208 = math.exp %207 : vector<8x128xf32>
    %cst_70 = arith.constant dense<0.000000e+00> : vector<128xf32>
    %209 = vector.multi_reduction <add>, %208, %cst_70 [0] : vector<8x128xf32> to vector<128xf32>
    %210 = vector.shape_cast %209 : vector<128xf32> to vector<1x128xf32>
    %211 = vector.broadcast %210 : vector<1x128xf32> to vector<8x128xf32>
    %212 = arith.divf %208, %211 : vector<8x128xf32>
    %213 = arith.mulf %193, %212 : vector<8x128xf32>
    %214 = arith.addf %203, %213 : vector<8x128xf32>
    %cst_71 = arith.constant 5.000000e-01 : f32
    %215 = vector.broadcast %cst_71 : f32 to vector<8x128xf32>
    %216 = arith.mulf %215, %214 : vector<8x128xf32>
    %217 = tpu.concatenate %141, %191 in 1 : vector<8x128xf32>, vector<8x128xf32> -> vector<8x256xf32>
    %218 = tpu.concatenate %166, %216 in 1 : vector<8x128xf32>, vector<8x128xf32> -> vector<8x256xf32>
    %219 = arith.truncf %116 : vector<8x128xf32> to vector<8x128xbf16>
    %220 = arith.truncf %217 : vector<8x256xf32> to vector<8x256xbf16>
    %cst_72 = arith.constant dense<0.000000e+00> : vector<128x256xf32>
    %221 = tpu.matmul %219, %220, %cst_72 {dimension_numbers = #tpu.dot_dimension_numbers<[0], [0], [1], [1], [0, 1, 1, 1], [], []>} : vector<8x128xbf16>, vector<8x256xbf16>, vector<128x256xf32> -> vector<128x256xf32>
    %cst_73 = arith.constant 0.353553385 : f32
    %222 = vector.broadcast %cst_73 : f32 to vector<128x256xf32>
    %223 = arith.mulf %221, %222 : vector<128x256xf32>
    %cst_74 = arith.constant dense<0xFF800000> : vector<128xf32>
    %224 = vector.multi_reduction <maximumf>, %223, %cst_74 [1] : vector<128x256xf32> to vector<128xf32>
    %225 = vector.shape_cast %224 : vector<128xf32> to vector<128x1xf32>
    %226 = vector.broadcast %225 : vector<128x1xf32> to vector<128x256xf32>
    %227 = arith.subf %223, %226 : vector<128x256xf32>
    %228 = math.exp %227 : vector<128x256xf32>
    %cst_75 = arith.constant dense<0.000000e+00> : vector<128xf32>
    %229 = vector.multi_reduction <add>, %228, %cst_75 [1] : vector<128x256xf32> to vector<128xf32>
    %230 = vector.shape_cast %229 : vector<128xf32> to vector<128x1xf32>
    %231 = vector.broadcast %230 : vector<128x1xf32> to vector<128x256xf32>
    %232 = arith.divf %228, %231 : vector<128x256xf32>
    %233 = arith.truncf %218 : vector<8x256xf32> to vector<8x256xbf16>
    %234 = arith.truncf %232 : vector<128x256xf32> to vector<128x256xbf16>
    %cst_76 = arith.constant dense<0.000000e+00> : vector<8x128xf32>
    %235 = tpu.matmul %233, %234, %cst_76 {dimension_numbers = #tpu.dot_dimension_numbers<[1], [1], [0], [0], [0, 0, 1, 0], [], []>} : vector<8x256xbf16>, vector<128x256xbf16>, vector<8x128xf32> -> vector<8x128xf32>
    %236 = vector.extract_strided_slice %83 {offsets = [8, 0], sizes = [8, 128], strides = [1, 1]} : vector<192x128xf32> to vector<8x128xf32>
    %237 = vector.extract_strided_slice %83 {offsets = [40, 0], sizes = [8, 128], strides = [1, 1]} : vector<192x128xf32> to vector<8x128xf32>
    %cst_77 = arith.constant dense<0xFF800000> : vector<128xf32>
    %238 = vector.multi_reduction <maximumf>, %237, %cst_77 [0] : vector<8x128xf32> to vector<128xf32>
    %239 = vector.shape_cast %238 : vector<128xf32> to vector<1x128xf32>
    %240 = vector.broadcast %239 : vector<1x128xf32> to vector<8x128xf32>
    %241 = arith.subf %237, %240 : vector<8x128xf32>
    %242 = math.exp %241 : vector<8x128xf32>
    %cst_78 = arith.constant dense<0.000000e+00> : vector<128xf32>
    %243 = vector.multi_reduction <add>, %242, %cst_78 [0] : vector<8x128xf32> to vector<128xf32>
    %244 = vector.shape_cast %243 : vector<128xf32> to vector<1x128xf32>
    %245 = vector.broadcast %244 : vector<1x128xf32> to vector<8x128xf32>
    %246 = arith.divf %242, %245 : vector<8x128xf32>
    %247 = arith.mulf %236, %246 : vector<8x128xf32>
    %cst_79 = arith.constant dense<0xFF800000> : vector<128xf32>
    %248 = vector.multi_reduction <maximumf>, %236, %cst_79 [0] : vector<8x128xf32> to vector<128xf32>
    %249 = vector.shape_cast %248 : vector<128xf32> to vector<1x128xf32>
    %250 = vector.broadcast %249 : vector<1x128xf32> to vector<8x128xf32>
    %251 = arith.subf %236, %250 : vector<8x128xf32>
    %252 = math.exp %251 : vector<8x128xf32>
    %cst_80 = arith.constant dense<0.000000e+00> : vector<128xf32>
    %253 = vector.multi_reduction <add>, %252, %cst_80 [0] : vector<8x128xf32> to vector<128xf32>
    %254 = vector.shape_cast %253 : vector<128xf32> to vector<1x128xf32>
    %255 = vector.broadcast %254 : vector<1x128xf32> to vector<8x128xf32>
    %256 = arith.divf %252, %255 : vector<8x128xf32>
    %257 = arith.mulf %237, %256 : vector<8x128xf32>
    %258 = arith.addf %247, %257 : vector<8x128xf32>
    %cst_81 = arith.constant 5.000000e-01 : f32
    %259 = vector.broadcast %cst_81 : f32 to vector<8x128xf32>
    %260 = arith.mulf %259, %258 : vector<8x128xf32>
    %261 = vector.extract_strided_slice %83 {offsets = [72, 0], sizes = [8, 128], strides = [1, 1]} : vector<192x128xf32> to vector<8x128xf32>
    %262 = vector.extract_strided_slice %83 {offsets = [136, 0], sizes = [8, 128], strides = [1, 1]} : vector<192x128xf32> to vector<8x128xf32>
    %cst_82 = arith.constant dense<0xFF800000> : vector<128xf32>
    %263 = vector.multi_reduction <maximumf>, %262, %cst_82 [0] : vector<8x128xf32> to vector<128xf32>
    %264 = vector.shape_cast %263 : vector<128xf32> to vector<1x128xf32>
    %265 = vector.broadcast %264 : vector<1x128xf32> to vector<8x128xf32>
    %266 = arith.subf %262, %265 : vector<8x128xf32>
    %267 = math.exp %266 : vector<8x128xf32>
    %cst_83 = arith.constant dense<0.000000e+00> : vector<128xf32>
    %268 = vector.multi_reduction <add>, %267, %cst_83 [0] : vector<8x128xf32> to vector<128xf32>
    %269 = vector.shape_cast %268 : vector<128xf32> to vector<1x128xf32>
    %270 = vector.broadcast %269 : vector<1x128xf32> to vector<8x128xf32>
    %271 = arith.divf %267, %270 : vector<8x128xf32>
    %272 = arith.mulf %261, %271 : vector<8x128xf32>
    %cst_84 = arith.constant dense<0xFF800000> : vector<128xf32>
    %273 = vector.multi_reduction <maximumf>, %261, %cst_84 [0] : vector<8x128xf32> to vector<128xf32>
    %274 = vector.shape_cast %273 : vector<128xf32> to vector<1x128xf32>
    %275 = vector.broadcast %274 : vector<1x128xf32> to vector<8x128xf32>
    %276 = arith.subf %261, %275 : vector<8x128xf32>
    %277 = math.exp %276 : vector<8x128xf32>
    %cst_85 = arith.constant dense<0.000000e+00> : vector<128xf32>
    %278 = vector.multi_reduction <add>, %277, %cst_85 [0] : vector<8x128xf32> to vector<128xf32>
    %279 = vector.shape_cast %278 : vector<128xf32> to vector<1x128xf32>
    %280 = vector.broadcast %279 : vector<1x128xf32> to vector<8x128xf32>
    %281 = arith.divf %277, %280 : vector<8x128xf32>
    %282 = arith.mulf %262, %281 : vector<8x128xf32>
    %283 = arith.addf %272, %282 : vector<8x128xf32>
    %cst_86 = arith.constant 5.000000e-01 : f32
    %284 = vector.broadcast %cst_86 : f32 to vector<8x128xf32>
    %285 = arith.mulf %284, %283 : vector<8x128xf32>
    %286 = vector.extract_strided_slice %83 {offsets = [104, 0], sizes = [8, 128], strides = [1, 1]} : vector<192x128xf32> to vector<8x128xf32>
    %287 = vector.extract_strided_slice %83 {offsets = [168, 0], sizes = [8, 128], strides = [1, 1]} : vector<192x128xf32> to vector<8x128xf32>
    %cst_87 = arith.constant dense<0xFF800000> : vector<128xf32>
    %288 = vector.multi_reduction <maximumf>, %287, %cst_87 [0] : vector<8x128xf32> to vector<128xf32>
    %289 = vector.shape_cast %288 : vector<128xf32> to vector<1x128xf32>
    %290 = vector.broadcast %289 : vector<1x128xf32> to vector<8x128xf32>
    %291 = arith.subf %287, %290 : vector<8x128xf32>
    %292 = math.exp %291 : vector<8x128xf32>
    %cst_88 = arith.constant dense<0.000000e+00> : vector<128xf32>
    %293 = vector.multi_reduction <add>, %292, %cst_88 [0] : vector<8x128xf32> to vector<128xf32>
    %294 = vector.shape_cast %293 : vector<128xf32> to vector<1x128xf32>
    %295 = vector.broadcast %294 : vector<1x128xf32> to vector<8x128xf32>
    %296 = arith.divf %292, %295 : vector<8x128xf32>
    %297 = arith.mulf %286, %296 : vector<8x128xf32>
    %cst_89 = arith.constant dense<0xFF800000> : vector<128xf32>
    %298 = vector.multi_reduction <maximumf>, %286, %cst_89 [0] : vector<8x128xf32> to vector<128xf32>
    %299 = vector.shape_cast %298 : vector<128xf32> to vector<1x128xf32>
    %300 = vector.broadcast %299 : vector<1x128xf32> to vector<8x128xf32>
    %301 = arith.subf %286, %300 : vector<8x128xf32>
    %302 = math.exp %301 : vector<8x128xf32>
    %cst_90 = arith.constant dense<0.000000e+00> : vector<128xf32>
    %303 = vector.multi_reduction <add>, %302, %cst_90 [0] : vector<8x128xf32> to vector<128xf32>
    %304 = vector.shape_cast %303 : vector<128xf32> to vector<1x128xf32>
    %305 = vector.broadcast %304 : vector<1x128xf32> to vector<8x128xf32>
    %306 = arith.divf %302, %305 : vector<8x128xf32>
    %307 = arith.mulf %287, %306 : vector<8x128xf32>
    %308 = arith.addf %297, %307 : vector<8x128xf32>
    %cst_91 = arith.constant 5.000000e-01 : f32
    %309 = vector.broadcast %cst_91 : f32 to vector<8x128xf32>
    %310 = arith.mulf %309, %308 : vector<8x128xf32>
    %311 = vector.extract_strided_slice %87 {offsets = [8, 0], sizes = [8, 128], strides = [1, 1]} : vector<64x128xf32> to vector<8x128xf32>
    %312 = vector.extract_strided_slice %91 {offsets = [8, 0], sizes = [8, 128], strides = [1, 1]} : vector<64x128xf32> to vector<8x128xf32>
    %cst_92 = arith.constant dense<0xFF800000> : vector<128xf32>
    %313 = vector.multi_reduction <maximumf>, %312, %cst_92 [0] : vector<8x128xf32> to vector<128xf32>
    %314 = vector.shape_cast %313 : vector<128xf32> to vector<1x128xf32>
    %315 = vector.broadcast %314 : vector<1x128xf32> to vector<8x128xf32>
    %316 = arith.subf %312, %315 : vector<8x128xf32>
    %317 = math.exp %316 : vector<8x128xf32>
    %cst_93 = arith.constant dense<0.000000e+00> : vector<128xf32>
    %318 = vector.multi_reduction <add>, %317, %cst_93 [0] : vector<8x128xf32> to vector<128xf32>
    %319 = vector.shape_cast %318 : vector<128xf32> to vector<1x128xf32>
    %320 = vector.broadcast %319 : vector<1x128xf32> to vector<8x128xf32>
    %321 = arith.divf %317, %320 : vector<8x128xf32>
    %322 = arith.mulf %311, %321 : vector<8x128xf32>
    %cst_94 = arith.constant dense<0xFF800000> : vector<128xf32>
    %323 = vector.multi_reduction <maximumf>, %311, %cst_94 [0] : vector<8x128xf32> to vector<128xf32>
    %324 = vector.shape_cast %323 : vector<128xf32> to vector<1x128xf32>
    %325 = vector.broadcast %324 : vector<1x128xf32> to vector<8x128xf32>
    %326 = arith.subf %311, %325 : vector<8x128xf32>
    %327 = math.exp %326 : vector<8x128xf32>
    %cst_95 = arith.constant dense<0.000000e+00> : vector<128xf32>
    %328 = vector.multi_reduction <add>, %327, %cst_95 [0] : vector<8x128xf32> to vector<128xf32>
    %329 = vector.shape_cast %328 : vector<128xf32> to vector<1x128xf32>
    %330 = vector.broadcast %329 : vector<1x128xf32> to vector<8x128xf32>
    %331 = arith.divf %327, %330 : vector<8x128xf32>
    %332 = arith.mulf %312, %331 : vector<8x128xf32>
    %333 = arith.addf %322, %332 : vector<8x128xf32>
    %cst_96 = arith.constant 5.000000e-01 : f32
    %334 = vector.broadcast %cst_96 : f32 to vector<8x128xf32>
    %335 = arith.mulf %334, %333 : vector<8x128xf32>
    %336 = vector.extract_strided_slice %87 {offsets = [40, 0], sizes = [8, 128], strides = [1, 1]} : vector<64x128xf32> to vector<8x128xf32>
    %337 = vector.extract_strided_slice %91 {offsets = [40, 0], sizes = [8, 128], strides = [1, 1]} : vector<64x128xf32> to vector<8x128xf32>
    %cst_97 = arith.constant dense<0xFF800000> : vector<128xf32>
    %338 = vector.multi_reduction <maximumf>, %337, %cst_97 [0] : vector<8x128xf32> to vector<128xf32>
    %339 = vector.shape_cast %338 : vector<128xf32> to vector<1x128xf32>
    %340 = vector.broadcast %339 : vector<1x128xf32> to vector<8x128xf32>
    %341 = arith.subf %337, %340 : vector<8x128xf32>
    %342 = math.exp %341 : vector<8x128xf32>
    %cst_98 = arith.constant dense<0.000000e+00> : vector<128xf32>
    %343 = vector.multi_reduction <add>, %342, %cst_98 [0] : vector<8x128xf32> to vector<128xf32>
    %344 = vector.shape_cast %343 : vector<128xf32> to vector<1x128xf32>
    %345 = vector.broadcast %344 : vector<1x128xf32> to vector<8x128xf32>
    %346 = arith.divf %342, %345 : vector<8x128xf32>
    %347 = arith.mulf %336, %346 : vector<8x128xf32>
    %cst_99 = arith.constant dense<0xFF800000> : vector<128xf32>
    %348 = vector.multi_reduction <maximumf>, %336, %cst_99 [0] : vector<8x128xf32> to vector<128xf32>
    %349 = vector.shape_cast %348 : vector<128xf32> to vector<1x128xf32>
    %350 = vector.broadcast %349 : vector<1x128xf32> to vector<8x128xf32>
    %351 = arith.subf %336, %350 : vector<8x128xf32>
    %352 = math.exp %351 : vector<8x128xf32>
    %cst_100 = arith.constant dense<0.000000e+00> : vector<128xf32>
    %353 = vector.multi_reduction <add>, %352, %cst_100 [0] : vector<8x128xf32> to vector<128xf32>
    %354 = vector.shape_cast %353 : vector<128xf32> to vector<1x128xf32>
    %355 = vector.broadcast %354 : vector<1x128xf32> to vector<8x128xf32>
    %356 = arith.divf %352, %355 : vector<8x128xf32>
    %357 = arith.mulf %337, %356 : vector<8x128xf32>
    %358 = arith.addf %347, %357 : vector<8x128xf32>
    %cst_101 = arith.constant 5.000000e-01 : f32
    %359 = vector.broadcast %cst_101 : f32 to vector<8x128xf32>
    %360 = arith.mulf %359, %358 : vector<8x128xf32>
    %361 = tpu.concatenate %285, %335 in 1 : vector<8x128xf32>, vector<8x128xf32> -> vector<8x256xf32>
    %362 = tpu.concatenate %310, %360 in 1 : vector<8x128xf32>, vector<8x128xf32> -> vector<8x256xf32>
    %363 = arith.truncf %260 : vector<8x128xf32> to vector<8x128xbf16>
    %364 = arith.truncf %361 : vector<8x256xf32> to vector<8x256xbf16>
    %cst_102 = arith.constant dense<0.000000e+00> : vector<128x256xf32>
    %365 = tpu.matmul %363, %364, %cst_102 {dimension_numbers = #tpu.dot_dimension_numbers<[0], [0], [1], [1], [0, 1, 1, 1], [], []>} : vector<8x128xbf16>, vector<8x256xbf16>, vector<128x256xf32> -> vector<128x256xf32>
    %cst_103 = arith.constant 0.353553385 : f32
    %366 = vector.broadcast %cst_103 : f32 to vector<128x256xf32>
    %367 = arith.mulf %365, %366 : vector<128x256xf32>
    %cst_104 = arith.constant dense<0xFF800000> : vector<128xf32>
    %368 = vector.multi_reduction <maximumf>, %367, %cst_104 [1] : vector<128x256xf32> to vector<128xf32>
    %369 = vector.shape_cast %368 : vector<128xf32> to vector<128x1xf32>
    %370 = vector.broadcast %369 : vector<128x1xf32> to vector<128x256xf32>
    %371 = arith.subf %367, %370 : vector<128x256xf32>
    %372 = math.exp %371 : vector<128x256xf32>
    %cst_105 = arith.constant dense<0.000000e+00> : vector<128xf32>
    %373 = vector.multi_reduction <add>, %372, %cst_105 [1] : vector<128x256xf32> to vector<128xf32>
    %374 = vector.shape_cast %373 : vector<128xf32> to vector<128x1xf32>
    %375 = vector.broadcast %374 : vector<128x1xf32> to vector<128x256xf32>
    %376 = arith.divf %372, %375 : vector<128x256xf32>
    %377 = arith.truncf %362 : vector<8x256xf32> to vector<8x256xbf16>
    %378 = arith.truncf %376 : vector<128x256xf32> to vector<128x256xbf16>
    %cst_106 = arith.constant dense<0.000000e+00> : vector<8x128xf32>
    %379 = tpu.matmul %377, %378, %cst_106 {dimension_numbers = #tpu.dot_dimension_numbers<[1], [1], [0], [0], [0, 0, 1, 0], [], []>} : vector<8x256xbf16>, vector<128x256xbf16>, vector<8x128xf32> -> vector<8x128xf32>
    %380 = vector.extract_strided_slice %83 {offsets = [16, 0], sizes = [8, 128], strides = [1, 1]} : vector<192x128xf32> to vector<8x128xf32>
    %381 = vector.extract_strided_slice %83 {offsets = [48, 0], sizes = [8, 128], strides = [1, 1]} : vector<192x128xf32> to vector<8x128xf32>
    %cst_107 = arith.constant dense<0xFF800000> : vector<128xf32>
    %382 = vector.multi_reduction <maximumf>, %381, %cst_107 [0] : vector<8x128xf32> to vector<128xf32>
    %383 = vector.shape_cast %382 : vector<128xf32> to vector<1x128xf32>
    %384 = vector.broadcast %383 : vector<1x128xf32> to vector<8x128xf32>
    %385 = arith.subf %381, %384 : vector<8x128xf32>
    %386 = math.exp %385 : vector<8x128xf32>
    %cst_108 = arith.constant dense<0.000000e+00> : vector<128xf32>
    %387 = vector.multi_reduction <add>, %386, %cst_108 [0] : vector<8x128xf32> to vector<128xf32>
    %388 = vector.shape_cast %387 : vector<128xf32> to vector<1x128xf32>
    %389 = vector.broadcast %388 : vector<1x128xf32> to vector<8x128xf32>
    %390 = arith.divf %386, %389 : vector<8x128xf32>
    %391 = arith.mulf %380, %390 : vector<8x128xf32>
    %cst_109 = arith.constant dense<0xFF800000> : vector<128xf32>
    %392 = vector.multi_reduction <maximumf>, %380, %cst_109 [0] : vector<8x128xf32> to vector<128xf32>
    %393 = vector.shape_cast %392 : vector<128xf32> to vector<1x128xf32>
    %394 = vector.broadcast %393 : vector<1x128xf32> to vector<8x128xf32>
    %395 = arith.subf %380, %394 : vector<8x128xf32>
    %396 = math.exp %395 : vector<8x128xf32>
    %cst_110 = arith.constant dense<0.000000e+00> : vector<128xf32>
    %397 = vector.multi_reduction <add>, %396, %cst_110 [0] : vector<8x128xf32> to vector<128xf32>
    %398 = vector.shape_cast %397 : vector<128xf32> to vector<1x128xf32>
    %399 = vector.broadcast %398 : vector<1x128xf32> to vector<8x128xf32>
    %400 = arith.divf %396, %399 : vector<8x128xf32>
    %401 = arith.mulf %381, %400 : vector<8x128xf32>
    %402 = arith.addf %391, %401 : vector<8x128xf32>
    %cst_111 = arith.constant 5.000000e-01 : f32
    %403 = vector.broadcast %cst_111 : f32 to vector<8x128xf32>
    %404 = arith.mulf %403, %402 : vector<8x128xf32>
    %405 = vector.extract_strided_slice %83 {offsets = [80, 0], sizes = [8, 128], strides = [1, 1]} : vector<192x128xf32> to vector<8x128xf32>
    %406 = vector.extract_strided_slice %83 {offsets = [144, 0], sizes = [8, 128], strides = [1, 1]} : vector<192x128xf32> to vector<8x128xf32>
    %cst_112 = arith.constant dense<0xFF800000> : vector<128xf32>
    %407 = vector.multi_reduction <maximumf>, %406, %cst_112 [0] : vector<8x128xf32> to vector<128xf32>
    %408 = vector.shape_cast %407 : vector<128xf32> to vector<1x128xf32>
    %409 = vector.broadcast %408 : vector<1x128xf32> to vector<8x128xf32>
    %410 = arith.subf %406, %409 : vector<8x128xf32>
    %411 = math.exp %410 : vector<8x128xf32>
    %cst_113 = arith.constant dense<0.000000e+00> : vector<128xf32>
    %412 = vector.multi_reduction <add>, %411, %cst_113 [0] : vector<8x128xf32> to vector<128xf32>
    %413 = vector.shape_cast %412 : vector<128xf32> to vector<1x128xf32>
    %414 = vector.broadcast %413 : vector<1x128xf32> to vector<8x128xf32>
    %415 = arith.divf %411, %414 : vector<8x128xf32>
    %416 = arith.mulf %405, %415 : vector<8x128xf32>
    %cst_114 = arith.constant dense<0xFF800000> : vector<128xf32>
    %417 = vector.multi_reduction <maximumf>, %405, %cst_114 [0] : vector<8x128xf32> to vector<128xf32>
    %418 = vector.shape_cast %417 : vector<128xf32> to vector<1x128xf32>
    %419 = vector.broadcast %418 : vector<1x128xf32> to vector<8x128xf32>
    %420 = arith.subf %405, %419 : vector<8x128xf32>
    %421 = math.exp %420 : vector<8x128xf32>
    %cst_115 = arith.constant dense<0.000000e+00> : vector<128xf32>
    %422 = vector.multi_reduction <add>, %421, %cst_115 [0] : vector<8x128xf32> to vector<128xf32>
    %423 = vector.shape_cast %422 : vector<128xf32> to vector<1x128xf32>
    %424 = vector.broadcast %423 : vector<1x128xf32> to vector<8x128xf32>
    %425 = arith.divf %421, %424 : vector<8x128xf32>
    %426 = arith.mulf %406, %425 : vector<8x128xf32>
    %427 = arith.addf %416, %426 : vector<8x128xf32>
    %cst_116 = arith.constant 5.000000e-01 : f32
    %428 = vector.broadcast %cst_116 : f32 to vector<8x128xf32>
    %429 = arith.mulf %428, %427 : vector<8x128xf32>
    %430 = vector.extract_strided_slice %83 {offsets = [112, 0], sizes = [8, 128], strides = [1, 1]} : vector<192x128xf32> to vector<8x128xf32>
    %431 = vector.extract_strided_slice %83 {offsets = [176, 0], sizes = [8, 128], strides = [1, 1]} : vector<192x128xf32> to vector<8x128xf32>
    %cst_117 = arith.constant dense<0xFF800000> : vector<128xf32>
    %432 = vector.multi_reduction <maximumf>, %431, %cst_117 [0] : vector<8x128xf32> to vector<128xf32>
    %433 = vector.shape_cast %432 : vector<128xf32> to vector<1x128xf32>
    %434 = vector.broadcast %433 : vector<1x128xf32> to vector<8x128xf32>
    %435 = arith.subf %431, %434 : vector<8x128xf32>
    %436 = math.exp %435 : vector<8x128xf32>
    %cst_118 = arith.constant dense<0.000000e+00> : vector<128xf32>
    %437 = vector.multi_reduction <add>, %436, %cst_118 [0] : vector<8x128xf32> to vector<128xf32>
    %438 = vector.shape_cast %437 : vector<128xf32> to vector<1x128xf32>
    %439 = vector.broadcast %438 : vector<1x128xf32> to vector<8x128xf32>
    %440 = arith.divf %436, %439 : vector<8x128xf32>
    %441 = arith.mulf %430, %440 : vector<8x128xf32>
    %cst_119 = arith.constant dense<0xFF800000> : vector<128xf32>
    %442 = vector.multi_reduction <maximumf>, %430, %cst_119 [0] : vector<8x128xf32> to vector<128xf32>
    %443 = vector.shape_cast %442 : vector<128xf32> to vector<1x128xf32>
    %444 = vector.broadcast %443 : vector<1x128xf32> to vector<8x128xf32>
    %445 = arith.subf %430, %444 : vector<8x128xf32>
    %446 = math.exp %445 : vector<8x128xf32>
    %cst_120 = arith.constant dense<0.000000e+00> : vector<128xf32>
    %447 = vector.multi_reduction <add>, %446, %cst_120 [0] : vector<8x128xf32> to vector<128xf32>
    %448 = vector.shape_cast %447 : vector<128xf32> to vector<1x128xf32>
    %449 = vector.broadcast %448 : vector<1x128xf32> to vector<8x128xf32>
    %450 = arith.divf %446, %449 : vector<8x128xf32>
    %451 = arith.mulf %431, %450 : vector<8x128xf32>
    %452 = arith.addf %441, %451 : vector<8x128xf32>
    %cst_121 = arith.constant 5.000000e-01 : f32
    %453 = vector.broadcast %cst_121 : f32 to vector<8x128xf32>
    %454 = arith.mulf %453, %452 : vector<8x128xf32>
    %455 = vector.extract_strided_slice %87 {offsets = [16, 0], sizes = [8, 128], strides = [1, 1]} : vector<64x128xf32> to vector<8x128xf32>
    %456 = vector.extract_strided_slice %91 {offsets = [16, 0], sizes = [8, 128], strides = [1, 1]} : vector<64x128xf32> to vector<8x128xf32>
    %cst_122 = arith.constant dense<0xFF800000> : vector<128xf32>
    %457 = vector.multi_reduction <maximumf>, %456, %cst_122 [0] : vector<8x128xf32> to vector<128xf32>
    %458 = vector.shape_cast %457 : vector<128xf32> to vector<1x128xf32>
    %459 = vector.broadcast %458 : vector<1x128xf32> to vector<8x128xf32>
    %460 = arith.subf %456, %459 : vector<8x128xf32>
    %461 = math.exp %460 : vector<8x128xf32>
    %cst_123 = arith.constant dense<0.000000e+00> : vector<128xf32>
    %462 = vector.multi_reduction <add>, %461, %cst_123 [0] : vector<8x128xf32> to vector<128xf32>
    %463 = vector.shape_cast %462 : vector<128xf32> to vector<1x128xf32>
    %464 = vector.broadcast %463 : vector<1x128xf32> to vector<8x128xf32>
    %465 = arith.divf %461, %464 : vector<8x128xf32>
    %466 = arith.mulf %455, %465 : vector<8x128xf32>
    %cst_124 = arith.constant dense<0xFF800000> : vector<128xf32>
    %467 = vector.multi_reduction <maximumf>, %455, %cst_124 [0] : vector<8x128xf32> to vector<128xf32>
    %468 = vector.shape_cast %467 : vector<128xf32> to vector<1x128xf32>
    %469 = vector.broadcast %468 : vector<1x128xf32> to vector<8x128xf32>
    %470 = arith.subf %455, %469 : vector<8x128xf32>
    %471 = math.exp %470 : vector<8x128xf32>
    %cst_125 = arith.constant dense<0.000000e+00> : vector<128xf32>
    %472 = vector.multi_reduction <add>, %471, %cst_125 [0] : vector<8x128xf32> to vector<128xf32>
    %473 = vector.shape_cast %472 : vector<128xf32> to vector<1x128xf32>
    %474 = vector.broadcast %473 : vector<1x128xf32> to vector<8x128xf32>
    %475 = arith.divf %471, %474 : vector<8x128xf32>
    %476 = arith.mulf %456, %475 : vector<8x128xf32>
    %477 = arith.addf %466, %476 : vector<8x128xf32>
    %cst_126 = arith.constant 5.000000e-01 : f32
    %478 = vector.broadcast %cst_126 : f32 to vector<8x128xf32>
    %479 = arith.mulf %478, %477 : vector<8x128xf32>
    %480 = vector.extract_strided_slice %87 {offsets = [48, 0], sizes = [8, 128], strides = [1, 1]} : vector<64x128xf32> to vector<8x128xf32>
    %481 = vector.extract_strided_slice %91 {offsets = [48, 0], sizes = [8, 128], strides = [1, 1]} : vector<64x128xf32> to vector<8x128xf32>
    %cst_127 = arith.constant dense<0xFF800000> : vector<128xf32>
    %482 = vector.multi_reduction <maximumf>, %481, %cst_127 [0] : vector<8x128xf32> to vector<128xf32>
    %483 = vector.shape_cast %482 : vector<128xf32> to vector<1x128xf32>
    %484 = vector.broadcast %483 : vector<1x128xf32> to vector<8x128xf32>
    %485 = arith.subf %481, %484 : vector<8x128xf32>
    %486 = math.exp %485 : vector<8x128xf32>
    %cst_128 = arith.constant dense<0.000000e+00> : vector<128xf32>
    %487 = vector.multi_reduction <add>, %486, %cst_128 [0] : vector<8x128xf32> to vector<128xf32>
    %488 = vector.shape_cast %487 : vector<128xf32> to vector<1x128xf32>
    %489 = vector.broadcast %488 : vector<1x128xf32> to vector<8x128xf32>
    %490 = arith.divf %486, %489 : vector<8x128xf32>
    %491 = arith.mulf %480, %490 : vector<8x128xf32>
    %cst_129 = arith.constant dense<0xFF800000> : vector<128xf32>
    %492 = vector.multi_reduction <maximumf>, %480, %cst_129 [0] : vector<8x128xf32> to vector<128xf32>
    %493 = vector.shape_cast %492 : vector<128xf32> to vector<1x128xf32>
    %494 = vector.broadcast %493 : vector<1x128xf32> to vector<8x128xf32>
    %495 = arith.subf %480, %494 : vector<8x128xf32>
    %496 = math.exp %495 : vector<8x128xf32>
    %cst_130 = arith.constant dense<0.000000e+00> : vector<128xf32>
    %497 = vector.multi_reduction <add>, %496, %cst_130 [0] : vector<8x128xf32> to vector<128xf32>
    %498 = vector.shape_cast %497 : vector<128xf32> to vector<1x128xf32>
    %499 = vector.broadcast %498 : vector<1x128xf32> to vector<8x128xf32>
    %500 = arith.divf %496, %499 : vector<8x128xf32>
    %501 = arith.mulf %481, %500 : vector<8x128xf32>
    %502 = arith.addf %491, %501 : vector<8x128xf32>
    %cst_131 = arith.constant 5.000000e-01 : f32
    %503 = vector.broadcast %cst_131 : f32 to vector<8x128xf32>
    %504 = arith.mulf %503, %502 : vector<8x128xf32>
    %505 = tpu.concatenate %429, %479 in 1 : vector<8x128xf32>, vector<8x128xf32> -> vector<8x256xf32>
    %506 = tpu.concatenate %454, %504 in 1 : vector<8x128xf32>, vector<8x128xf32> -> vector<8x256xf32>
    %507 = arith.truncf %404 : vector<8x128xf32> to vector<8x128xbf16>
    %508 = arith.truncf %505 : vector<8x256xf32> to vector<8x256xbf16>
    %cst_132 = arith.constant dense<0.000000e+00> : vector<128x256xf32>
    %509 = tpu.matmul %507, %508, %cst_132 {dimension_numbers = #tpu.dot_dimension_numbers<[0], [0], [1], [1], [0, 1, 1, 1], [], []>} : vector<8x128xbf16>, vector<8x256xbf16>, vector<128x256xf32> -> vector<128x256xf32>
    %cst_133 = arith.constant 0.353553385 : f32
    %510 = vector.broadcast %cst_133 : f32 to vector<128x256xf32>
    %511 = arith.mulf %509, %510 : vector<128x256xf32>
    %cst_134 = arith.constant dense<0xFF800000> : vector<128xf32>
    %512 = vector.multi_reduction <maximumf>, %511, %cst_134 [1] : vector<128x256xf32> to vector<128xf32>
    %513 = vector.shape_cast %512 : vector<128xf32> to vector<128x1xf32>
    %514 = vector.broadcast %513 : vector<128x1xf32> to vector<128x256xf32>
    %515 = arith.subf %511, %514 : vector<128x256xf32>
    %516 = math.exp %515 : vector<128x256xf32>
    %cst_135 = arith.constant dense<0.000000e+00> : vector<128xf32>
    %517 = vector.multi_reduction <add>, %516, %cst_135 [1] : vector<128x256xf32> to vector<128xf32>
    %518 = vector.shape_cast %517 : vector<128xf32> to vector<128x1xf32>
    %519 = vector.broadcast %518 : vector<128x1xf32> to vector<128x256xf32>
    %520 = arith.divf %516, %519 : vector<128x256xf32>
    %521 = arith.truncf %506 : vector<8x256xf32> to vector<8x256xbf16>
    %522 = arith.truncf %520 : vector<128x256xf32> to vector<128x256xbf16>
    %cst_136 = arith.constant dense<0.000000e+00> : vector<8x128xf32>
    %523 = tpu.matmul %521, %522, %cst_136 {dimension_numbers = #tpu.dot_dimension_numbers<[1], [1], [0], [0], [0, 0, 1, 0], [], []>} : vector<8x256xbf16>, vector<128x256xbf16>, vector<8x128xf32> -> vector<8x128xf32>
    %524 = vector.extract_strided_slice %83 {offsets = [24, 0], sizes = [8, 128], strides = [1, 1]} : vector<192x128xf32> to vector<8x128xf32>
    %525 = vector.extract_strided_slice %83 {offsets = [56, 0], sizes = [8, 128], strides = [1, 1]} : vector<192x128xf32> to vector<8x128xf32>
    %cst_137 = arith.constant dense<0xFF800000> : vector<128xf32>
    %526 = vector.multi_reduction <maximumf>, %525, %cst_137 [0] : vector<8x128xf32> to vector<128xf32>
    %527 = vector.shape_cast %526 : vector<128xf32> to vector<1x128xf32>
    %528 = vector.broadcast %527 : vector<1x128xf32> to vector<8x128xf32>
    %529 = arith.subf %525, %528 : vector<8x128xf32>
    %530 = math.exp %529 : vector<8x128xf32>
    %cst_138 = arith.constant dense<0.000000e+00> : vector<128xf32>
    %531 = vector.multi_reduction <add>, %530, %cst_138 [0] : vector<8x128xf32> to vector<128xf32>
    %532 = vector.shape_cast %531 : vector<128xf32> to vector<1x128xf32>
    %533 = vector.broadcast %532 : vector<1x128xf32> to vector<8x128xf32>
    %534 = arith.divf %530, %533 : vector<8x128xf32>
    %535 = arith.mulf %524, %534 : vector<8x128xf32>
    %cst_139 = arith.constant dense<0xFF800000> : vector<128xf32>
    %536 = vector.multi_reduction <maximumf>, %524, %cst_139 [0] : vector<8x128xf32> to vector<128xf32>
    %537 = vector.shape_cast %536 : vector<128xf32> to vector<1x128xf32>
    %538 = vector.broadcast %537 : vector<1x128xf32> to vector<8x128xf32>
    %539 = arith.subf %524, %538 : vector<8x128xf32>
    %540 = math.exp %539 : vector<8x128xf32>
    %cst_140 = arith.constant dense<0.000000e+00> : vector<128xf32>
    %541 = vector.multi_reduction <add>, %540, %cst_140 [0] : vector<8x128xf32> to vector<128xf32>
    %542 = vector.shape_cast %541 : vector<128xf32> to vector<1x128xf32>
    %543 = vector.broadcast %542 : vector<1x128xf32> to vector<8x128xf32>
    %544 = arith.divf %540, %543 : vector<8x128xf32>
    %545 = arith.mulf %525, %544 : vector<8x128xf32>
    %546 = arith.addf %535, %545 : vector<8x128xf32>
    %cst_141 = arith.constant 5.000000e-01 : f32
    %547 = vector.broadcast %cst_141 : f32 to vector<8x128xf32>
    %548 = arith.mulf %547, %546 : vector<8x128xf32>
    %549 = vector.extract_strided_slice %83 {offsets = [88, 0], sizes = [8, 128], strides = [1, 1]} : vector<192x128xf32> to vector<8x128xf32>
    %550 = vector.extract_strided_slice %83 {offsets = [152, 0], sizes = [8, 128], strides = [1, 1]} : vector<192x128xf32> to vector<8x128xf32>
    %cst_142 = arith.constant dense<0xFF800000> : vector<128xf32>
    %551 = vector.multi_reduction <maximumf>, %550, %cst_142 [0] : vector<8x128xf32> to vector<128xf32>
    %552 = vector.shape_cast %551 : vector<128xf32> to vector<1x128xf32>
    %553 = vector.broadcast %552 : vector<1x128xf32> to vector<8x128xf32>
    %554 = arith.subf %550, %553 : vector<8x128xf32>
    %555 = math.exp %554 : vector<8x128xf32>
    %cst_143 = arith.constant dense<0.000000e+00> : vector<128xf32>
    %556 = vector.multi_reduction <add>, %555, %cst_143 [0] : vector<8x128xf32> to vector<128xf32>
    %557 = vector.shape_cast %556 : vector<128xf32> to vector<1x128xf32>
    %558 = vector.broadcast %557 : vector<1x128xf32> to vector<8x128xf32>
    %559 = arith.divf %555, %558 : vector<8x128xf32>
    %560 = arith.mulf %549, %559 : vector<8x128xf32>
    %cst_144 = arith.constant dense<0xFF800000> : vector<128xf32>
    %561 = vector.multi_reduction <maximumf>, %549, %cst_144 [0] : vector<8x128xf32> to vector<128xf32>
    %562 = vector.shape_cast %561 : vector<128xf32> to vector<1x128xf32>
    %563 = vector.broadcast %562 : vector<1x128xf32> to vector<8x128xf32>
    %564 = arith.subf %549, %563 : vector<8x128xf32>
    %565 = math.exp %564 : vector<8x128xf32>
    %cst_145 = arith.constant dense<0.000000e+00> : vector<128xf32>
    %566 = vector.multi_reduction <add>, %565, %cst_145 [0] : vector<8x128xf32> to vector<128xf32>
    %567 = vector.shape_cast %566 : vector<128xf32> to vector<1x128xf32>
    %568 = vector.broadcast %567 : vector<1x128xf32> to vector<8x128xf32>
    %569 = arith.divf %565, %568 : vector<8x128xf32>
    %570 = arith.mulf %550, %569 : vector<8x128xf32>
    %571 = arith.addf %560, %570 : vector<8x128xf32>
    %cst_146 = arith.constant 5.000000e-01 : f32
    %572 = vector.broadcast %cst_146 : f32 to vector<8x128xf32>
    %573 = arith.mulf %572, %571 : vector<8x128xf32>
    %574 = vector.extract_strided_slice %83 {offsets = [120, 0], sizes = [8, 128], strides = [1, 1]} : vector<192x128xf32> to vector<8x128xf32>
    %575 = vector.extract_strided_slice %83 {offsets = [184, 0], sizes = [8, 128], strides = [1, 1]} : vector<192x128xf32> to vector<8x128xf32>
    %cst_147 = arith.constant dense<0xFF800000> : vector<128xf32>
    %576 = vector.multi_reduction <maximumf>, %575, %cst_147 [0] : vector<8x128xf32> to vector<128xf32>
    %577 = vector.shape_cast %576 : vector<128xf32> to vector<1x128xf32>
    %578 = vector.broadcast %577 : vector<1x128xf32> to vector<8x128xf32>
    %579 = arith.subf %575, %578 : vector<8x128xf32>
    %580 = math.exp %579 : vector<8x128xf32>
    %cst_148 = arith.constant dense<0.000000e+00> : vector<128xf32>
    %581 = vector.multi_reduction <add>, %580, %cst_148 [0] : vector<8x128xf32> to vector<128xf32>
    %582 = vector.shape_cast %581 : vector<128xf32> to vector<1x128xf32>
    %583 = vector.broadcast %582 : vector<1x128xf32> to vector<8x128xf32>
    %584 = arith.divf %580, %583 : vector<8x128xf32>
    %585 = arith.mulf %574, %584 : vector<8x128xf32>
    %cst_149 = arith.constant dense<0xFF800000> : vector<128xf32>
    %586 = vector.multi_reduction <maximumf>, %574, %cst_149 [0] : vector<8x128xf32> to vector<128xf32>
    %587 = vector.shape_cast %586 : vector<128xf32> to vector<1x128xf32>
    %588 = vector.broadcast %587 : vector<1x128xf32> to vector<8x128xf32>
    %589 = arith.subf %574, %588 : vector<8x128xf32>
    %590 = math.exp %589 : vector<8x128xf32>
    %cst_150 = arith.constant dense<0.000000e+00> : vector<128xf32>
    %591 = vector.multi_reduction <add>, %590, %cst_150 [0] : vector<8x128xf32> to vector<128xf32>
    %592 = vector.shape_cast %591 : vector<128xf32> to vector<1x128xf32>
    %593 = vector.broadcast %592 : vector<1x128xf32> to vector<8x128xf32>
    %594 = arith.divf %590, %593 : vector<8x128xf32>
    %595 = arith.mulf %575, %594 : vector<8x128xf32>
    %596 = arith.addf %585, %595 : vector<8x128xf32>
    %cst_151 = arith.constant 5.000000e-01 : f32
    %597 = vector.broadcast %cst_151 : f32 to vector<8x128xf32>
    %598 = arith.mulf %597, %596 : vector<8x128xf32>
    %599 = vector.extract_strided_slice %87 {offsets = [24, 0], sizes = [8, 128], strides = [1, 1]} : vector<64x128xf32> to vector<8x128xf32>
    %600 = vector.extract_strided_slice %91 {offsets = [24, 0], sizes = [8, 128], strides = [1, 1]} : vector<64x128xf32> to vector<8x128xf32>
    %cst_152 = arith.constant dense<0xFF800000> : vector<128xf32>
    %601 = vector.multi_reduction <maximumf>, %600, %cst_152 [0] : vector<8x128xf32> to vector<128xf32>
    %602 = vector.shape_cast %601 : vector<128xf32> to vector<1x128xf32>
    %603 = vector.broadcast %602 : vector<1x128xf32> to vector<8x128xf32>
    %604 = arith.subf %600, %603 : vector<8x128xf32>
    %605 = math.exp %604 : vector<8x128xf32>
    %cst_153 = arith.constant dense<0.000000e+00> : vector<128xf32>
    %606 = vector.multi_reduction <add>, %605, %cst_153 [0] : vector<8x128xf32> to vector<128xf32>
    %607 = vector.shape_cast %606 : vector<128xf32> to vector<1x128xf32>
    %608 = vector.broadcast %607 : vector<1x128xf32> to vector<8x128xf32>
    %609 = arith.divf %605, %608 : vector<8x128xf32>
    %610 = arith.mulf %599, %609 : vector<8x128xf32>
    %cst_154 = arith.constant dense<0xFF800000> : vector<128xf32>
    %611 = vector.multi_reduction <maximumf>, %599, %cst_154 [0] : vector<8x128xf32> to vector<128xf32>
    %612 = vector.shape_cast %611 : vector<128xf32> to vector<1x128xf32>
    %613 = vector.broadcast %612 : vector<1x128xf32> to vector<8x128xf32>
    %614 = arith.subf %599, %613 : vector<8x128xf32>
    %615 = math.exp %614 : vector<8x128xf32>
    %cst_155 = arith.constant dense<0.000000e+00> : vector<128xf32>
    %616 = vector.multi_reduction <add>, %615, %cst_155 [0] : vector<8x128xf32> to vector<128xf32>
    %617 = vector.shape_cast %616 : vector<128xf32> to vector<1x128xf32>
    %618 = vector.broadcast %617 : vector<1x128xf32> to vector<8x128xf32>
    %619 = arith.divf %615, %618 : vector<8x128xf32>
    %620 = arith.mulf %600, %619 : vector<8x128xf32>
    %621 = arith.addf %610, %620 : vector<8x128xf32>
    %cst_156 = arith.constant 5.000000e-01 : f32
    %622 = vector.broadcast %cst_156 : f32 to vector<8x128xf32>
    %623 = arith.mulf %622, %621 : vector<8x128xf32>
    %624 = vector.extract_strided_slice %87 {offsets = [56, 0], sizes = [8, 128], strides = [1, 1]} : vector<64x128xf32> to vector<8x128xf32>
    %625 = vector.extract_strided_slice %91 {offsets = [56, 0], sizes = [8, 128], strides = [1, 1]} : vector<64x128xf32> to vector<8x128xf32>
    %cst_157 = arith.constant dense<0xFF800000> : vector<128xf32>
    %626 = vector.multi_reduction <maximumf>, %625, %cst_157 [0] : vector<8x128xf32> to vector<128xf32>
    %627 = vector.shape_cast %626 : vector<128xf32> to vector<1x128xf32>
    %628 = vector.broadcast %627 : vector<1x128xf32> to vector<8x128xf32>
    %629 = arith.subf %625, %628 : vector<8x128xf32>
    %630 = math.exp %629 : vector<8x128xf32>
    %cst_158 = arith.constant dense<0.000000e+00> : vector<128xf32>
    %631 = vector.multi_reduction <add>, %630, %cst_158 [0] : vector<8x128xf32> to vector<128xf32>
    %632 = vector.shape_cast %631 : vector<128xf32> to vector<1x128xf32>
    %633 = vector.broadcast %632 : vector<1x128xf32> to vector<8x128xf32>
    %634 = arith.divf %630, %633 : vector<8x128xf32>
    %635 = arith.mulf %624, %634 : vector<8x128xf32>
    %cst_159 = arith.constant dense<0xFF800000> : vector<128xf32>
    %636 = vector.multi_reduction <maximumf>, %624, %cst_159 [0] : vector<8x128xf32> to vector<128xf32>
    %637 = vector.shape_cast %636 : vector<128xf32> to vector<1x128xf32>
    %638 = vector.broadcast %637 : vector<1x128xf32> to vector<8x128xf32>
    %639 = arith.subf %624, %638 : vector<8x128xf32>
    %640 = math.exp %639 : vector<8x128xf32>
    %cst_160 = arith.constant dense<0.000000e+00> : vector<128xf32>
    %641 = vector.multi_reduction <add>, %640, %cst_160 [0] : vector<8x128xf32> to vector<128xf32>
    %642 = vector.shape_cast %641 : vector<128xf32> to vector<1x128xf32>
    %643 = vector.broadcast %642 : vector<1x128xf32> to vector<8x128xf32>
    %644 = arith.divf %640, %643 : vector<8x128xf32>
    %645 = arith.mulf %625, %644 : vector<8x128xf32>
    %646 = arith.addf %635, %645 : vector<8x128xf32>
    %cst_161 = arith.constant 5.000000e-01 : f32
    %647 = vector.broadcast %cst_161 : f32 to vector<8x128xf32>
    %648 = arith.mulf %647, %646 : vector<8x128xf32>
    %649 = tpu.concatenate %573, %623 in 1 : vector<8x128xf32>, vector<8x128xf32> -> vector<8x256xf32>
    %650 = tpu.concatenate %598, %648 in 1 : vector<8x128xf32>, vector<8x128xf32> -> vector<8x256xf32>
    %651 = arith.truncf %548 : vector<8x128xf32> to vector<8x128xbf16>
    %652 = arith.truncf %649 : vector<8x256xf32> to vector<8x256xbf16>
    %cst_162 = arith.constant dense<0.000000e+00> : vector<128x256xf32>
    %653 = tpu.matmul %651, %652, %cst_162 {dimension_numbers = #tpu.dot_dimension_numbers<[0], [0], [1], [1], [0, 1, 1, 1], [], []>} : vector<8x128xbf16>, vector<8x256xbf16>, vector<128x256xf32> -> vector<128x256xf32>
    %cst_163 = arith.constant 0.353553385 : f32
    %654 = vector.broadcast %cst_163 : f32 to vector<128x256xf32>
    %655 = arith.mulf %653, %654 : vector<128x256xf32>
    %cst_164 = arith.constant dense<0xFF800000> : vector<128xf32>
    %656 = vector.multi_reduction <maximumf>, %655, %cst_164 [1] : vector<128x256xf32> to vector<128xf32>
    %657 = vector.shape_cast %656 : vector<128xf32> to vector<128x1xf32>
    %658 = vector.broadcast %657 : vector<128x1xf32> to vector<128x256xf32>
    %659 = arith.subf %655, %658 : vector<128x256xf32>
    %660 = math.exp %659 : vector<128x256xf32>
    %cst_165 = arith.constant dense<0.000000e+00> : vector<128xf32>
    %661 = vector.multi_reduction <add>, %660, %cst_165 [1] : vector<128x256xf32> to vector<128xf32>
    %662 = vector.shape_cast %661 : vector<128xf32> to vector<128x1xf32>
    %663 = vector.broadcast %662 : vector<128x1xf32> to vector<128x256xf32>
    %664 = arith.divf %660, %663 : vector<128x256xf32>
    %665 = arith.truncf %650 : vector<8x256xf32> to vector<8x256xbf16>
    %666 = arith.truncf %664 : vector<128x256xf32> to vector<128x256xbf16>
    %cst_166 = arith.constant dense<0.000000e+00> : vector<8x128xf32>
    %667 = tpu.matmul %665, %666, %cst_166 {dimension_numbers = #tpu.dot_dimension_numbers<[1], [1], [0], [0], [0, 0, 1, 0], [], []>} : vector<8x256xbf16>, vector<128x256xbf16>, vector<8x128xf32> -> vector<8x128xf32>
    %668 = tpu.concatenate %235, %379, %523, %667 in 0 : vector<8x128xf32>, vector<8x128xf32>, vector<8x128xf32>, vector<8x128xf32> -> vector<32x128xf32>
    %c0_167 = arith.constant 0 : index
    %c0_168 = arith.constant 0 : index
    %669 = vector.load %arg14[%c0_167, %c0_168] : memref<32x32xf32, #tpu.memory_space<vmem>>, vector<32x32xf32>
    %670 = arith.truncf %669 : vector<32x32xf32> to vector<32x32xbf16>
    %671 = arith.truncf %668 : vector<32x128xf32> to vector<32x128xbf16>
    %cst_169 = arith.constant dense<0.000000e+00> : vector<32x128xf32>
    %672 = tpu.matmul %670, %671, %cst_169 {dimension_numbers = #tpu.dot_dimension_numbers<[1], [0], [0], [1], [0, 0, 1, 1], [], []>} : vector<32x32xbf16>, vector<32x128xbf16>, vector<32x128xf32> -> vector<32x128xf32>
    %c0_170 = arith.constant 0 : index
    %c0_171 = arith.constant 0 : index
    %673 = vector.load %arg15[%c0_170, %c0_171] : memref<32x1xf32, #tpu.memory_space<vmem>>, vector<32x1xf32>
    %674 = vector.broadcast %673 : vector<32x1xf32> to vector<32x128xf32>
    %675 = arith.addf %672, %674 : vector<32x128xf32>
    %676 = arith.addf %1, %3 : vector<32x128xf32>
    %677 = arith.addf %676, %5 : vector<32x128xf32>
    %cst_172 = arith.constant 0.333333343 : f32
    %678 = vector.broadcast %cst_172 : f32 to vector<32x128xf32>
    %679 = arith.mulf %677, %678 : vector<32x128xf32>
    %680 = arith.addf %679, %675 : vector<32x128xf32>
    %c0_173 = arith.constant 0 : index
    %c0_174 = arith.constant 0 : index
    %681 = vector.load %arg6[%c0_173, %c0_174] : memref<32x128xf32, #tpu.memory_space<vmem>>, vector<32x128xf32>
    %c0_175 = arith.constant 0 : index
    %c0_176 = arith.constant 0 : index
    %682 = vector.load %arg7[%c0_175, %c0_176] : memref<32x128xf32, #tpu.memory_space<vmem>>, vector<32x128xf32>
    %cst_177 = arith.constant dense<0.000000e+00> : vector<32xf32>
    %683 = vector.multi_reduction <add>, %680, %cst_177 [1] : vector<32x128xf32> to vector<32xf32>
    %684 = vector.shape_cast %683 : vector<32xf32> to vector<32x1xf32>
    %cst_178 = arith.constant dense<0.000000e+00> : vector<1xf32>
    %685 = vector.multi_reduction <add>, %684, %cst_178 [0] : vector<32x1xf32> to vector<1xf32>
    %686 = vector.shape_cast %685 : vector<1xf32> to vector<1x1xf32>
    %cst_179 = arith.constant 4.096000e+03 : f32
    %687 = vector.broadcast %cst_179 : f32 to vector<1x1xf32>
    %688 = arith.divf %686, %687 : vector<1x1xf32>
    %689 = vector.broadcast %688 : vector<1x1xf32> to vector<32x128xf32>
    %690 = arith.subf %680, %689 : vector<32x128xf32>
    %691 = arith.mulf %690, %690 : vector<32x128xf32>
    %cst_180 = arith.constant dense<0.000000e+00> : vector<32xf32>
    %692 = vector.multi_reduction <add>, %691, %cst_180 [1] : vector<32x128xf32> to vector<32xf32>
    %693 = vector.shape_cast %692 : vector<32xf32> to vector<32x1xf32>
    %cst_181 = arith.constant dense<0.000000e+00> : vector<1xf32>
    %694 = vector.multi_reduction <add>, %693, %cst_181 [0] : vector<32x1xf32> to vector<1xf32>
    %695 = vector.shape_cast %694 : vector<1xf32> to vector<1x1xf32>
    %cst_182 = arith.constant 4.096000e+03 : f32
    %696 = vector.broadcast %cst_182 : f32 to vector<1x1xf32>
    %697 = arith.divf %695, %696 : vector<1x1xf32>
    %cst_183 = arith.constant 9.99999974E-6 : f32
    %698 = vector.broadcast %cst_183 : f32 to vector<1x1xf32>
    %699 = arith.addf %697, %698 : vector<1x1xf32>
    %700 = math.rsqrt %699 : vector<1x1xf32>
    %701 = vector.broadcast %700 : vector<1x1xf32> to vector<32x128xf32>
    %702 = arith.mulf %690, %701 : vector<32x128xf32>
    %703 = arith.mulf %702, %681 : vector<32x128xf32>
    %704 = arith.addf %703, %682 : vector<32x128xf32>
    %c0_184 = arith.constant 0 : index
    %c0_185 = arith.constant 0 : index
    %705 = vector.load %arg16[%c0_184, %c0_185] : memref<128x32xf32, #tpu.memory_space<vmem>>, vector<128x32xf32>
    %706 = arith.truncf %705 : vector<128x32xf32> to vector<128x32xbf16>
    %707 = arith.truncf %704 : vector<32x128xf32> to vector<32x128xbf16>
    %cst_186 = arith.constant dense<0.000000e+00> : vector<128x128xf32>
    %708 = tpu.matmul %706, %707, %cst_186 {dimension_numbers = #tpu.dot_dimension_numbers<[1], [0], [0], [1], [0, 0, 1, 1], [], []>} : vector<128x32xbf16>, vector<32x128xbf16>, vector<128x128xf32> -> vector<128x128xf32>
    %c0_187 = arith.constant 0 : index
    %c0_188 = arith.constant 0 : index
    %709 = vector.load %arg17[%c0_187, %c0_188] : memref<128x1xf32, #tpu.memory_space<vmem>>, vector<128x1xf32>
    %710 = vector.broadcast %709 : vector<128x1xf32> to vector<128x128xf32>
    %711 = arith.addf %708, %710 : vector<128x128xf32>
    %cst_189 = arith.constant 5.000000e-01 : f32
    %712 = vector.broadcast %cst_189 : f32 to vector<128x128xf32>
    %713 = arith.mulf %712, %711 : vector<128x128xf32>
    %cst_190 = arith.constant 4.471500e-02 : f32
    %714 = vector.broadcast %cst_190 : f32 to vector<128x128xf32>
    %715 = arith.mulf %714, %711 : vector<128x128xf32>
    %716 = arith.mulf %715, %711 : vector<128x128xf32>
    %717 = arith.mulf %716, %711 : vector<128x128xf32>
    %718 = arith.addf %711, %717 : vector<128x128xf32>
    %cst_191 = arith.constant 0.797884583 : f32
    %719 = vector.broadcast %cst_191 : f32 to vector<128x128xf32>
    %720 = arith.mulf %719, %718 : vector<128x128xf32>
    %721 = math.tanh %720 : vector<128x128xf32>
    %cst_192 = arith.constant 1.000000e+00 : f32
    %722 = vector.broadcast %cst_192 : f32 to vector<128x128xf32>
    %723 = arith.addf %722, %721 : vector<128x128xf32>
    %724 = arith.mulf %713, %723 : vector<128x128xf32>
    %c0_193 = arith.constant 0 : index
    %c0_194 = arith.constant 0 : index
    %725 = vector.load %arg18[%c0_193, %c0_194] : memref<32x128xf32, #tpu.memory_space<vmem>>, vector<32x128xf32>
    %726 = arith.truncf %725 : vector<32x128xf32> to vector<32x128xbf16>
    %727 = arith.truncf %724 : vector<128x128xf32> to vector<128x128xbf16>
    %cst_195 = arith.constant dense<0.000000e+00> : vector<32x128xf32>
    %728 = tpu.matmul %726, %727, %cst_195 {dimension_numbers = #tpu.dot_dimension_numbers<[1], [0], [0], [1], [0, 0, 1, 1], [], []>} : vector<32x128xbf16>, vector<128x128xbf16>, vector<32x128xf32> -> vector<32x128xf32>
    %c0_196 = arith.constant 0 : index
    %c0_197 = arith.constant 0 : index
    %729 = vector.load %arg19[%c0_196, %c0_197] : memref<32x1xf32, #tpu.memory_space<vmem>>, vector<32x1xf32>
    %730 = vector.broadcast %729 : vector<32x1xf32> to vector<32x128xf32>
    %731 = arith.addf %728, %730 : vector<32x128xf32>
    %732 = arith.addf %680, %731 : vector<32x128xf32>
    %c0_198 = arith.constant 0 : index
    %c0_199 = arith.constant 0 : index
    %c0_200 = arith.constant 0 : index
    %733 = vector.load %arg20[%c0_198, %c0_199, %c0_200] : memref<1x32x128xf32, #tpu.memory_space<vmem>>, vector<1x32x128xf32>
    %734 = vector.shape_cast %733 : vector<1x32x128xf32> to vector<32x128xf32>
    %735 = vector.shape_cast %732 : vector<32x128xf32> to vector<1x32x128xf32>
    tpu.vector_store %arg20[%c0_198, %c0_199, %c0_200], %735 {strides = array<i32>} : memref<1x32x128xf32, #tpu.memory_space<vmem>>, vector<1x32x128xf32>,
    return
  }
  func.func @transform_0(%arg0: i32) -> (i32, i32, i32) {
    %c0_i32 = arith.constant 0 : i32
    %c0_i32_0 = arith.constant 0 : i32
    %c0_i32_1 = arith.constant 0 : i32
    return %arg0, %c0_i32, %c0_i32_0 : i32, i32, i32
  }
  func.func @transform_1(%arg0: i32) -> (i32, i32, i32) {
    %c0_i32 = arith.constant 0 : i32
    %c0_i32_0 = arith.constant 0 : i32
    %c0_i32_1 = arith.constant 0 : i32
    return %arg0, %c0_i32, %c0_i32_0 : i32, i32, i32
  }
  func.func @transform_2(%arg0: i32) -> (i32, i32, i32) {
    %c0_i32 = arith.constant 0 : i32
    %c0_i32_0 = arith.constant 0 : i32
    %c0_i32_1 = arith.constant 0 : i32
    return %arg0, %c0_i32, %c0_i32_0 : i32, i32, i32
  }
  func.func @transform_3(%arg0: i32) -> (i32, i32) {
    %c0_i32 = arith.constant 0 : i32
    %c0_i32_0 = arith.constant 0 : i32
    %c0_i32_1 = arith.constant 0 : i32
    return %c0_i32, %c0_i32_0 : i32, i32
  }
  func.func @transform_4(%arg0: i32) -> (i32, i32) {
    %c0_i32 = arith.constant 0 : i32
    %c0_i32_0 = arith.constant 0 : i32
    %c0_i32_1 = arith.constant 0 : i32
    return %c0_i32, %c0_i32_0 : i32, i32
  }
  func.func @transform_5(%arg0: i32) -> (i32, i32) {
    %c0_i32 = arith.constant 0 : i32
    %c0_i32_0 = arith.constant 0 : i32
    %c0_i32_1 = arith.constant 0 : i32
    return %c0_i32, %c0_i32_0 : i32, i32
  }
  func.func @transform_6(%arg0: i32) -> (i32, i32) {
    %c0_i32 = arith.constant 0 : i32
    %c0_i32_0 = arith.constant 0 : i32
    %c0_i32_1 = arith.constant 0 : i32
    return %c0_i32, %c0_i32_0 : i32, i32
  }
  func.func @transform_7(%arg0: i32) -> (i32, i32) {
    %c0_i32 = arith.constant 0 : i32
    %c0_i32_0 = arith.constant 0 : i32
    %c0_i32_1 = arith.constant 0 : i32
    return %c0_i32, %c0_i32_0 : i32, i32
  }
  func.func @transform_8(%arg0: i32) -> (i32, i32) {
    %c0_i32 = arith.constant 0 : i32
    %c0_i32_0 = arith.constant 0 : i32
    %c0_i32_1 = arith.constant 0 : i32
    return %c0_i32, %c0_i32_0 : i32, i32
  }
  func.func @transform_9(%arg0: i32) -> (i32, i32) {
    %c0_i32 = arith.constant 0 : i32
    %c0_i32_0 = arith.constant 0 : i32
    %c0_i32_1 = arith.constant 0 : i32
    return %c0_i32, %c0_i32_0 : i32, i32
  }
  func.func @transform_10(%arg0: i32) -> (i32, i32) {
    %c0_i32 = arith.constant 0 : i32
    %c0_i32_0 = arith.constant 0 : i32
    %c0_i32_1 = arith.constant 0 : i32
    return %c0_i32, %c0_i32_0 : i32, i32
  }
  func.func @transform_11(%arg0: i32) -> (i32, i32) {
    %c0_i32 = arith.constant 0 : i32
    %c0_i32_0 = arith.constant 0 : i32
    %c0_i32_1 = arith.constant 0 : i32
    return %c0_i32, %c0_i32_0 : i32, i32
  }
  func.func @transform_12(%arg0: i32) -> (i32, i32) {
    %c0_i32 = arith.constant 0 : i32
    %c0_i32_0 = arith.constant 0 : i32
    %c0_i32_1 = arith.constant 0 : i32
    return %c0_i32, %c0_i32_0 : i32, i32
  }
  func.func @transform_13(%arg0: i32) -> (i32, i32) {
    %c0_i32 = arith.constant 0 : i32
    %c0_i32_0 = arith.constant 0 : i32
    %c0_i32_1 = arith.constant 0 : i32
    return %c0_i32, %c0_i32_0 : i32, i32
  }
  func.func @transform_14(%arg0: i32) -> (i32, i32) {
    %c0_i32 = arith.constant 0 : i32
    %c0_i32_0 = arith.constant 0 : i32
    %c0_i32_1 = arith.constant 0 : i32
    return %c0_i32, %c0_i32_0 : i32, i32
  }
  func.func @transform_15(%arg0: i32) -> (i32, i32) {
    %c0_i32 = arith.constant 0 : i32
    %c0_i32_0 = arith.constant 0 : i32
    %c0_i32_1 = arith.constant 0 : i32
    return %c0_i32, %c0_i32_0 : i32, i32
  }
  func.func @transform_16(%arg0: i32) -> (i32, i32) {
    %c0_i32 = arith.constant 0 : i32
    %c0_i32_0 = arith.constant 0 : i32
    %c0_i32_1 = arith.constant 0 : i32
    return %c0_i32, %c0_i32_0 : i32, i32
  }
  func.func @transform_17(%arg0: i32) -> (i32, i32) {
    %c0_i32 = arith.constant 0 : i32
    %c0_i32_0 = arith.constant 0 : i32
    %c0_i32_1 = arith.constant 0 : i32
    return %c0_i32, %c0_i32_0 : i32, i32
  }
  func.func @transform_18(%arg0: i32) -> (i32, i32) {
    %c0_i32 = arith.constant 0 : i32
    %c0_i32_0 = arith.constant 0 : i32
    %c0_i32_1 = arith.constant 0 : i32
    return %c0_i32, %c0_i32_0 : i32, i32
  }
  func.func @transform_19(%arg0: i32) -> (i32, i32, i32) {
    %c0_i32 = arith.constant 0 : i32
    %c0_i32_0 = arith.constant 0 : i32
    %c0_i32_1 = arith.constant 0 : i32
    return %arg0, %c0_i32, %c0_i32_0 : i32, i32, i32
  }
}

</mosaic_0001>

<bundles_post_ra>
// kernel: mafm_forward.1
= control target key start
LH: loop header
LB: loop body
LE: loop exit
PB: predicated region body
PF: predicated region fallthrough
CT: control target
= control target key end

     0   :  { %s8228_s0 = inlined_call_operand.vmem [shape: f32[2,32,128], index: 0, kind: input, shape index: {}]   ;;  %s8229_s1 = inlined_call_operand.vmem [shape: f32[2,32,128], index: 1, kind: input, shape index: {}]   ;;  %s8230_s2 = inlined_call_operand.vmem [shape: f32[2,32,128], index: 2, kind: input, shape index: {}]   ;;  %s8231_s3 = inlined_call_operand.vmem [shape: f32[32,128], index: 3, kind: input, shape index: {}]   ;;  %s8232_s4 = inlined_call_operand.vmem [shape: f32[32,128], index: 4, kind: input, shape index: {}]   ;;  %s8233_s5 = inlined_call_operand.vmem [shape: f32[32,128], index: 5, kind: input, shape index: {}]   ;;  %s8234_s6 = inlined_call_operand.vmem [shape: f32[32,128], index: 6, kind: input, shape index: {}]   ;;  %s8235_s7 = inlined_call_operand.vmem [shape: f32[32,128], index: 7, kind: input, shape index: {}]   ;;  %s8236_s8 = inlined_call_operand.vmem [shape: f32[32,128], index: 8, kind: input, shape index: {}]   ;;  %s8237_s9 = inlined_call_operand.vmem [shape: f32[32,128], index: 9, kind: input, shape index: {}]   ;;  %s8238_s10 = inlined_call_operand.vmem [shape: f32[192,32], index: 10, kind: input, shape index: {}]   ;;  %s8239_s11 = inlined_call_operand.vmem [shape: f32[64,32], index: 11, kind: input, shape index: {}]   ;;  %s8240_s12 = inlined_call_operand.vmem [shape: f32[64,32], index: 12, kind: input, shape index: {}]   ;;  %s8241_s13 = inlined_call_operand.vmem [shape: f32[32,32], index: 13, kind: input, shape index: {}]   ;;  %s8242_s14 = inlined_call_operand.vmem [shape: f32[32,1], index: 14, kind: input, shape index: {}]   ;;  %s8243_s15 = inlined_call_operand.vmem [shape: f32[128,32], index: 15, kind: input, shape index: {}]   ;;  %s8244_s16 = inlined_call_operand.vmem [shape: f32[128,1], index: 16, kind: input, shape index: {}]   ;;  %s8245_s17 = inlined_call_operand.vmem [shape: f32[32,128], index: 17, kind: input, shape index: {}]   ;;  %s8246_s18 = inlined_call_operand.vmem [shape: f32[32,1], index: 18, kind: input, shape index: {}]   ;;  %s8247_s19 = inlined_call_operand.hbm [shape: f32[2,32,128], index: 19, kind: output, shape index: {}]  }
   0x1   :  { %8273 = sst [smem:[#allocation33_spill]] %s8228_s0 }
   0x2   :  { %8274 = sst [smem:[#allocation34_spill]] %s8229_s1 }
   0x3   :  { %8275 = sst [smem:[#allocation35_spill]] %s8230_s2 }
   0x4   :  { %8276 = sst [smem:[#allocation36_spill]] %s8231_s3 }
   0x5   :  { %8277 = sst [smem:[#allocation37_spill]] %s8232_s4 }
   0x6   :  { %8278 = sst [smem:[#allocation38_spill]] %s8235_s7 }
   0x7   :  { %24 = vsyncpa [#allocation3], 0 }
   0x8   :  { %26 = vsyncpa [#allocation3 + $0x1], 0  ;;  %s5772_s0 = smov 0   ;;  %s5774_s30 = smov 0  }
   0x9   :  { %s5776_s20 = smov 0   ;;  %s5778_s21 = smov 0  }
   0xa LB: > { %8279 = sst [smem:[#allocation5_spill]] %s5654_s0  ;;  %s5793_s1 = sadd.s32 4294967295, %s5666_s21   ;;  %s5666_s21 = sphi %s5778_s21, %s8342_s21   ;;  %s5662_s20 = sphi %s5776_s20, %s8344_s20   ;;  %s5658_s30 = sphi %s5774_s30, %s8346_s30   ;;  %s5654_s0 = sphi %s5772_s0, %s8345_s0  }
   0xb   : > { %8280 = sst [smem:[#allocation6_spill]] %s5662_s20  ;;  %s4728_s22 = sadd.s32 4294967294, %s5666_s21  }
   0xc   : > { %8281 = sst [smem:[#allocation7_spill]] %s5666_s21  ;;  %s5797_s2 = sadd.s32 1, %s5666_s21  }
   0xd   : > { %8282 = sst [smem:[#allocation8_spill]] %s5797_s2  ;;  %s453_s23 = sadd.s32 1, %s5662_s20 }
   0xe   : > { %s450_s24 = ssub.s32 %s5666_s21, %s5797_s2  ;;  %p463_p0 = scmp.ne.s32.totalorder %s5662_s20, %s5658_s30 }
   0xf   : > { %p451_p1 = scmp.eq.s32.totalorder %s450_s24, 0  ;;  %p464_p2 = scmp.eq.s32.totalorder %s5793_s1, 1 }
  0x10   : > { %p469_p3 = scmp.ne.s32.totalorder %s5658_s30, %s5654_s0  ;;  %p470_p4 = scmp.eq.s32.totalorder %s4728_s22, 1 }
  0x11   : > { %s5808_s25 = scalar_select %p451_p1, %s5662_s20, %s453_s23  }
  0x12   : > { %p5810_p5 = por %p464_p2, %p463_p0  ;;  %p5814_p6 = por %p470_p4, %p469_p3 }
  0x13   : > { %8283 = sst [smem:[#allocation9_spill]] %s5808_s25  ;;  %p4731_p7 = scmp.ge.s32.totalorder %s5666_s21, 1 }
  0x14   : > { %s8285_s26 = scalar_select %p5814_p6, 1, 0 }
  0x15   : > { %p560_p8 = scmp.lt.s32.totalorder %s5666_s21, 3 }
  0x16   : > { %8286 = sst [smem:[#allocation10_spill]] %s8285_s26 }
  0x17   : > { %p561_p9 = pnand %p4731_p7, %p560_p8 }
  0x19   : > { %564 = sbr.rel (%p561_p9) target bundleno = 4648 (0x1228), region = 96 }
  0x20   : > { %p626_p10 = scmp.lt.s32.totalorder %s5793_s1, 1  ;;  %s8287_s23 = sld [smem:[#allocation33_spill]]  ;;  %vm899_vm0 = vcmask 261120   ;;  %vm1481_vm1 = vcmask 1043456   ;;  %vm1456_vm2 = vcmask 64512  }
  0x21   : > { %s8288_s2 = sld [smem:[#allocation34_spill]]  ;;  %s8289_s25 = sld [smem:[#allocation35_spill]] }
  0x22   : > { %s627_s27 = scalar_select %p626_p10, %s5793_s1, 1 }
  0x23   : > { %s8290_s29 = sld [smem:[#allocation36_spill]]  ;;  %s8291_s4 = sld [smem:[#allocation37_spill]] }
  0x24   : > { %s4810_s28 = sshll.u32 %s627_s27, 5  ;;  %s8292_s7 = sld [smem:[#allocation38_spill]] }
  0x26   : > { %s5825_s24 = scalar_lea.vmem %s8287_s23, %s4810_s28 }
  0x27   : > { %v642_v0 = vld [vmem:[%s5825_s24] sm:$0xff]  ;;  %v644_v1 = vld [vmem:[%s5825_s24 + $0x10] sm:$0xff]  ;;  %v643_v2 = vld [vmem:[%s5825_s24 + $0x8] sm:$0xff]  ;;  %s5834_s26 = scalar_lea.vmem %s8288_s2, %s4810_s28  ;;  %s5853_s27 = scalar_lea.vmem %s8289_s25, %s4810_s28 }
  0x28   : > { %662 = vadd.xlane.f32.xlu0 %v642_v0  ;;  %666 = vadd.xlane.f32.xlu1 %v644_v1  ;;  %v645_v3 = vld [vmem:[%s5825_s24 + $0x18] sm:$0xff]  ;;  %v5837_v4 = vld [vmem:[%s5834_s26] sm:$0xff]  ;;  %v5840_v5 = vld [vmem:[%s5834_s26 + $0x8] sm:$0xff]  ;;  %s623_s25 = sand.u32 1, %s5658_s30  }
  0x29   : > { %v5845_v6 = vld [vmem:[%s5834_s26 + $0x10] sm:$0xff]  ;;  %v5848_v7 = vld [vmem:[%s5834_s26 + $0x18] sm:$0xff]  ;;  %v5858_v8 = vld [vmem:[%s5853_s27] sm:$0xff]  ;;  %s4732_s0 = sshll.u32 %s623_s25, 5 }
  0x2a   : > { %v5861_v9 = vld [vmem:[%s5853_s27 + $0x8] sm:$0xff]  ;;  %v5866_v10 = vld [vmem:[%s5853_s27 + $0x10] sm:$0xff]  ;;  %v5869_v11 = vld [vmem:[%s5853_s27 + $0x18] sm:$0xff]  ;;  %s625_s28 = scalar_lea.vmem [#allocation2], %s4732_s0 }
  0x2b   : > { %s4642_s22 = sshll.u32 %s625_s28, 4  ;;  %s8178_s22 = int_to_ptr.vmem [resolvable:$true] %s4642_s22 }
  0x2c   : > { %664 = vadd.xlane.f32.xlu0 %v643_v2  ;;  %668 = vadd.xlane.f32.xlu1 %v645_v3 }
  0x30   : > { %721 = vadd.xlane.f32.xlu0 %v5837_v4  ;;  %723 = vadd.xlane.f32.xlu1 %v5840_v5 }
  0x34   : > { %725 = vadd.xlane.f32.xlu0 %v5845_v6  ;;  %727 = vadd.xlane.f32.xlu1 %v5848_v7 }
  0x38   : > { %779 = vadd.xlane.f32.xlu0 %v5858_v8  ;;  %781 = vadd.xlane.f32.xlu1 %v5861_v9 }
  0x3c   : > { %783 = vadd.xlane.f32.xlu0 %v5866_v10  ;;  %785 = vadd.xlane.f32.xlu1 %v5869_v11 }
  0xb5   : > { %v663_v12 = vpop.xlane.xlu0 %662  ;;  %v667_v13 = vpop.xlane.xlu1 %666 }
  0xb9   : > { %v665_v14 = vpop.xlane.xlu0 %664  ;;  %v669_v15 = vpop.xlane.xlu1 %668 }
  0xba   : > { %v670_v16 = vadd.f32 %v665_v14, %v663_v12 }
  0xbc   : > { %v671_v17 = vadd.f32 %v670_v16, %v667_v13  ;;  %v862_v16 = vld [vmem:[%s8238_s10 + $0x8] sm:$0xff] }
  0xbd   : > { %v722_v18 = vpop.xlane.xlu0 %721  ;;  %v724_v19 = vpop.xlane.xlu1 %723 }
  0xbe   : > { %v672_v20 = vadd.f32 %v671_v17, %v669_v15  ;;  %v729_v21 = vadd.f32 %v724_v19, %v722_v18  ;;  %v1065_v17 = vld [vmem:[%s8239_s11] sm:$0xff]  ;;  %v1066_v18 = vld [vmem:[%s8239_s11 + $0x8] sm:$0xff] }
  0xbf   : > { %v1073_v19 = vpack.c.bf16 %v1066_v18, %v1065_v17 }
  0xc0   : > { %v673_v22 = vrot.slane %v672_v20, 4 }
  0xc1   : > { %v726_v23 = vpop.xlane.xlu0 %725  ;;  %v728_v24 = vpop.xlane.xlu1 %727  ;;  %4896 = vmatprep.mubr.msk.bf16.mxu1 %vm899_vm0, %v1073_v19 }
  0xc2   : > { %v674_v25 = vadd.f32 %v673_v22, %v672_v20  ;;  %v730_v26 = vadd.f32 %v729_v21, %v726_v23 }
  0xc4   : > { %v675_v27 = vrot.slane %v674_v25, 2  ;;  %v731_v28 = vadd.f32 %v730_v26, %v728_v24 }
  0xc5   : > { %v780_v29 = vpop.xlane.xlu0 %779  ;;  %v782_v30 = vpop.xlane.xlu1 %781 }
  0xc6   : > { %v676_v31 = vadd.f32 %v675_v27, %v674_v25  ;;  %v732_v32 = vrot.slane %v731_v28, 4  ;;  %v787_v33 = vadd.f32 %v782_v30, %v780_v29 }
  0xc8   : > { %v677_v34 = vrot.slane %v676_v31, 1  ;;  %v733_v35 = vadd.f32 %v732_v32, %v731_v28 }
  0xc9   : > { %v784_v36 = vpop.xlane.xlu0 %783  ;;  %v786_v37 = vpop.xlane.xlu1 %785 }
  0xca   : > { %v678_v38 = vadd.f32 %v677_v34, %v676_v31  ;;  %v734_v39 = vrot.slane %v733_v35, 2  ;;  %v788_v40 = vadd.f32 %v787_v33, %v784_v36 }
  0xcc   : > { %v680_v41 = vmul.f32 0.00024414063, %v678_v38  ;;  %v735_v42 = vadd.f32 %v734_v39, %v733_v35  ;;  %v789_v43 = vadd.f32 %v788_v40, %v786_v37 }
  0xce   : > { %v736_v44 = vrot.slane %v735_v42, 1  ;;  %v790_v45 = vrot.slane %v789_v43, 4  ;;  %v5873_v46 = vsub.f32 %v643_v2, %v680_v41  ;;  %v5875_v47 = vsub.f32 %v642_v0, %v680_v41 }
  0xcf   : > { %v5877_v48 = vsub.f32 %v645_v3, %v680_v41  ;;  %v5879_v49 = vsub.f32 %v644_v1, %v680_v41 }
  0xd0   : > { %v737_v50 = vadd.f32 %v736_v44, %v735_v42  ;;  %v791_v51 = vadd.f32 %v790_v45, %v789_v43  ;;  %v686_v52 = vmul.f32 %v5873_v46, %v5873_v46  ;;  %v685_v53 = vmul.f32 %v5875_v47, %v5875_v47 }
  0xd1   : > { %v688_v56 = vmul.f32 %v5877_v48, %v5877_v48  ;;  %v687_v58 = vmul.f32 %v5879_v49, %v5879_v49 }
  0xd2   : > { %v738_v54 = vmul.f32 0.00024414063, %v737_v50  ;;  %v792_v55 = vrot.slane %v791_v51, 2  ;;  %691 = vadd.xlane.f32.xlu1 %v686_v52  ;;  %689 = vadd.xlane.f32.xlu0 %v685_v53 }
  0xd4   : > { %v793_v57 = vadd.f32 %v792_v55, %v791_v51  ;;  %v5890_v59 = vsub.f32 %v5837_v4, %v738_v54  ;;  %v5893_v60 = vsub.f32 %v5840_v5, %v738_v54  ;;  %v5896_v61 = vsub.f32 %v5845_v6, %v738_v54 }
  0xd5   : > { %v5903_v1 = vsub.f32 %v5848_v7, %v738_v54 }
  0xd6   : > { %v794_v62 = vrot.slane %v793_v57, 1  ;;  %695 = vadd.xlane.f32.xlu1 %v688_v56  ;;  %693 = vadd.xlane.f32.xlu0 %v687_v58  ;;  %v743_v63 = vmul.f32 %v5890_v59, %v5890_v59  ;;  %v744_v0 = vmul.f32 %v5893_v60, %v5893_v60  ;;  %v745_v4 = vmul.f32 %v5896_v61, %v5896_v61 }
  0xd7   : > { %v746_v5 = vmul.f32 %v5903_v1, %v5903_v1 }
  0xd8   : > { %v795_v2 = vadd.f32 %v794_v62, %v793_v57 }
  0xda   : > { %v796_v3 = vmul.f32 0.00024414063, %v795_v2  ;;  %747 = vadd.xlane.f32.xlu0 %v743_v63  ;;  %749 = vadd.xlane.f32.xlu1 %v744_v0 }
  0xdc   : > { %v5910_v6 = vsub.f32 %v5858_v8, %v796_v3  ;;  %v5913_v12 = vsub.f32 %v5861_v9, %v796_v3  ;;  %v5916_v13 = vsub.f32 %v5866_v10, %v796_v3  ;;  %v5923_v15 = vsub.f32 %v5869_v11, %v796_v3  ;;  %v861_v10 = vld [vmem:[%s8238_s10] sm:$0xff] }
  0xdd   : > { %v885_v11 = vpack.c.bf16 %v862_v16, %v861_v10  ;;  %v5956_v10 = vld [vmem:[%s8290_s29 + $0x10] sm:$0xff]  ;;  %v5961_v16 = vld [vmem:[%s8290_s29 + $0x18] sm:$0xff] }
  0xde   : > { %751 = vadd.xlane.f32.xlu0 %v745_v4  ;;  %753 = vadd.xlane.f32.xlu1 %v746_v5  ;;  %v801_v7 = vmul.f32 %v5910_v6, %v5910_v6  ;;  %v802_v14 = vmul.f32 %v5913_v12, %v5913_v12  ;;  %v803_v8 = vmul.f32 %v5916_v13, %v5916_v13 }
  0xdf   : > { %v804_v9 = vmul.f32 %v5923_v15, %v5923_v15  ;;  %4868 = vmatprep.mubr.msk.bf16.mxu0 %vm899_vm0, %v885_v11  ;;  %v5966_v11 = vld [vmem:[%s8291_s4] sm:$0xff] }
  0xe2   : > { %805 = vadd.xlane.f32.xlu0 %v801_v7  ;;  %807 = vadd.xlane.f32.xlu1 %v802_v14  ;;  %v5946_v7 = vld [vmem:[%s8290_s29] sm:$0xff] }
  0xe6   : > { %809 = vadd.xlane.f32.xlu0 %v803_v8  ;;  %811 = vadd.xlane.f32.xlu1 %v804_v9  ;;  %v5951_v9 = vld [vmem:[%s8290_s29 + $0x8] sm:$0xff] }
 0x15f   : > { %v692_v20 = vpop.xlane.xlu1 %691  ;;  %v690_v21 = vpop.xlane.xlu0 %689 }
 0x160   : > { %v697_v22 = vadd.f32 %v692_v20, %v690_v21 }
 0x163   : > { %v696_v23 = vpop.xlane.xlu1 %695  ;;  %v694_v24 = vpop.xlane.xlu0 %693 }
 0x164   : > { %v698_v25 = vadd.f32 %v697_v22, %v694_v24  ;;  %v5975_v22 = vld [vmem:[%s8291_s4 + $0x8] sm:$0xff] }
 0x166   : > { %v699_v26 = vadd.f32 %v698_v25, %v696_v23  ;;  %v5980_v23 = vld [vmem:[%s8291_s4 + $0x10] sm:$0xff] }
 0x167   : > { %v748_v27 = vpop.xlane.xlu0 %747  ;;  %v750_v28 = vpop.xlane.xlu1 %749 }
 0x168   : > { %v700_v29 = vrot.slane %v699_v26, 4  ;;  %v755_v30 = vadd.f32 %v750_v28, %v748_v27  ;;  %v838_v27 = vld [vmem:[%s8292_s7 + $0x8] sm:$0xff]  ;;  %v839_v28 = vld [vmem:[%s8292_s7 + $0x10] sm:$0xff] }
 0x16a   : > { %v701_v31 = vadd.f32 %v700_v29, %v699_v26  ;;  %v840_v29 = vld [vmem:[%s8292_s7 + $0x18] sm:$0xff] }
 0x16b   : > { %v752_v32 = vpop.xlane.xlu0 %751  ;;  %v754_v33 = vpop.xlane.xlu1 %753 }
 0x16c   : > { %v702_v34 = vrot.slane %v701_v31, 2  ;;  %v756_v35 = vadd.f32 %v755_v30, %v752_v32 }
 0x16e   : > { %v703_v36 = vadd.f32 %v702_v34, %v701_v31  ;;  %v757_v37 = vadd.f32 %v756_v35, %v754_v33 }
 0x16f   : > { %v806_v38 = vpop.xlane.xlu0 %805  ;;  %v808_v39 = vpop.xlane.xlu1 %807 }
 0x170   : > { %v704_v40 = vrot.slane %v703_v36, 1  ;;  %v758_v41 = vrot.slane %v757_v37, 4  ;;  %v813_v42 = vadd.f32 %v808_v39, %v806_v38 }
 0x172   : > { %v705_v43 = vadd.f32 %v704_v40, %v703_v36  ;;  %v759_v44 = vadd.f32 %v758_v41, %v757_v37 }
 0x173   : > { %v810_v45 = vpop.xlane.xlu0 %809  ;;  %v812_v50 = vpop.xlane.xlu1 %811 }
 0x174   : > { %v706_v51 = vmul.f32 0.00024414063, %v705_v43  ;;  %v760_v52 = vrot.slane %v759_v44, 2  ;;  %v814_v53 = vadd.f32 %v813_v42, %v810_v45 }
 0x176   : > { %v707_v54 = vadd.f32 1e-05, %v706_v51  ;;  %v761_v55 = vadd.f32 %v760_v52, %v759_v44  ;;  %v815_v56 = vadd.f32 %v814_v53, %v812_v50  ;;  %v845_v51 = vld [vmem:[%s8237_s9] sm:$0xff]  ;;  %v847_v53 = vld [vmem:[%s8237_s9 + $0x10] sm:$0xff] }
 0x178   : > { %5008 = vrsqrt.f32 %v707_v54  ;;  %v762_v57 = vrot.slane %v761_v55, 1  ;;  %v816_v58 = vrot.slane %v815_v56, 4 }
 0x17a   : > { %v763_v62 = vadd.f32 %v762_v57, %v761_v55  ;;  %v817_v63 = vadd.f32 %v816_v58, %v815_v56  ;;  %v848_v56 = vld [vmem:[%s8237_s9 + $0x18] sm:$0xff]  ;;  %v865_v57 = vld [vmem:[%s8238_s10 + $0x20] sm:$0xff]  ;;  %v866_v58 = vld [vmem:[%s8238_s10 + $0x28] sm:$0xff] }
 0x17c   : > { %v764_v0 = vmul.f32 0.00024414063, %v763_v62  ;;  %v818_v2 = vrot.slane %v817_v63, 2 }
 0x17e   : > { %v765_v3 = vadd.f32 1e-05, %v764_v0  ;;  %v819_v4 = vadd.f32 %v818_v2, %v817_v63 }
 0x180   : > { %5010 = vrsqrt.f32 %v765_v3  ;;  %v820_v5 = vrot.slane %v819_v4, 1 }
 0x182   : > { %v5009_v14 = vpop.eup %5008  ;;  %v821_v8 = vadd.f32 %v820_v5, %v819_v4 }
 0x183   : > { %v709_v17 = vmul.f32 %v5009_v14, %v5875_v47  ;;  %v710_v18 = vmul.f32 %v5009_v14, %v5873_v46  ;;  %v711_v19 = vmul.f32 %v5009_v14, %v5879_v49  ;;  %v712_v20 = vmul.f32 %v5009_v14, %v5877_v48  ;;  %v5985_v47 = vld [vmem:[%s8291_s4 + $0x18] sm:$0xff]  ;;  %v837_v49 = vld [vmem:[%s8292_s7] sm:$0xff]  ;;  %s4813_s7 = sshll.u32 %s5793_s1, 9  ;;  %s8187_s1 = scalar_lea.sflag [#allocation3], %s623_s25 }
 0x184   : > { %v822_v21 = vmul.f32 0.00024414063, %v821_v8  ;;  %v887_v8 = vpack.c.bf16 %v866_v58, %v865_v57  ;;  %v1159_v57 = vld [vmem:[%s8240_s12 + $0x18] sm:$0xff]  ;;  %v1160_v58 = vld [vmem:[%s8240_s12 + $0x20] sm:$0xff]  ;;  %s8185_s20 = scalar_lea.hbm %s8247_s19, %s4813_s7 }
 0x185   : > { %v713_v46 = vmul.f32 %v709_v17, %v5946_v7  ;;  %v714_v48 = vmul.f32 %v710_v18, %v5951_v9  ;;  %v715_v24 = vmul.f32 %v711_v19, %v5956_v10  ;;  %v716_v25 = vmul.f32 %v712_v20, %v5961_v16 }
 0x186   : > { %v823_v26 = vadd.f32 1e-05, %v822_v21 }
 0x187   : > { %v717_v30 = vadd.f32 %v713_v46, %v5966_v11  ;;  %v718_v31 = vadd.f32 %v714_v48, %v5975_v22  ;;  %v719_v32 = vadd.f32 %v715_v24, %v5980_v23  ;;  %v720_v33 = vadd.f32 %v716_v25, %v5985_v47  ;;  %v853_v46 = vld [vmem:[%s8236_s8] sm:$0xff]  ;;  %v868_v25 = vld [vmem:[%s8238_s10 + $0x38] sm:$0xff] }
 0x188   : > { %5012 = vrsqrt.f32 %v823_v26 }
 0x189   : > { %v841_v34 = vadd.f32 %v837_v49, %v717_v30  ;;  %v842_v35 = vadd.f32 %v838_v27, %v718_v31  ;;  %v843_v36 = vadd.f32 %v839_v28, %v719_v32  ;;  %v844_v37 = vadd.f32 %v840_v29, %v720_v33  ;;  %v867_v49 = vld [vmem:[%s8238_s10 + $0x30] sm:$0xff]  ;;  %v856_v29 = vld [vmem:[%s8236_s8 + $0x18] sm:$0xff]  ;;  %v869_v30 = vld [vmem:[%s8238_s10 + $0x40] sm:$0xff] }
 0x18a   : > { %v5011_v38 = vpop.eup %5010  ;;  %v870_v31 = vld [vmem:[%s8238_s10 + $0x48] sm:$0xff] }
 0x18b   : > { %v897_v39 = vpack.c.bf16 %v842_v35, %v841_v34  ;;  %v767_v40 = vmul.f32 %v5011_v38, %v5890_v59  ;;  %v768_v41 = vmul.f32 %v5011_v38, %v5893_v60  ;;  %v769_v42 = vmul.f32 %v5011_v38, %v5896_v61  ;;  %v846_v59 = vld [vmem:[%s8237_s9 + $0x8] sm:$0xff]  ;;  %v863_v60 = vld [vmem:[%s8238_s10 + $0x10] sm:$0xff]  ;;  %v864_v61 = vld [vmem:[%s8238_s10 + $0x18] sm:$0xff] }
 0x18c   : > { %v770_v43 = vmul.f32 %v5011_v38, %v5903_v1  ;;  %v898_v44 = vpack.c.bf16 %v844_v37, %v843_v36  ;;  %v886_v0 = vpack.c.bf16 %v864_v61, %v863_v60  ;;  %v889_v37 = vpack.c.bf16 %v870_v31, %v869_v30 }
 0x18d   : > { %4864 = vmatprep.subr.bf16.mxu0 %v897_v39  ;;  %v771_v45 = vmul.f32 %v767_v40, %v5946_v7  ;;  %v772_v50 = vmul.f32 %v768_v41, %v5951_v9  ;;  %v773_v1 = vmul.f32 %v769_v42, %v5956_v10  ;;  %v871_v40 = vld [vmem:[%s8238_s10 + $0x50] sm:$0xff]  ;;  %v872_v41 = vld [vmem:[%s8238_s10 + $0x58] sm:$0xff]  ;;  %v873_v42 = vld [vmem:[%s8238_s10 + $0x60] sm:$0xff] }
 0x18e   : > { %4865 = vmatpush3.bf16.msra.mxu0 %v897_v39  ;;  %v774_v52 = vmul.f32 %v770_v43, %v5961_v16  ;;  %v874_v43 = vld [vmem:[%s8238_s10 + $0x68] sm:$0xff] }
 0x18f   : > { %4866 = vmatprep.subr.bf16.mxu0 %v898_v44  ;;  %v775_v54 = vadd.f32 %v771_v45, %v5966_v11  ;;  %v776_v55 = vadd.f32 %v772_v50, %v5975_v22  ;;  %v777_v62 = vadd.f32 %v773_v1, %v5980_v23  ;;  %v1072_v45 = vld [vmem:[%s8239_s11 + $0x38] sm:$0xff]  ;;  %v1156_v50 = vld [vmem:[%s8240_s12] sm:$0xff]  ;;  %v891_v60 = vpack.c.bf16 %v874_v43, %v873_v42 }
 0x190   : > { %v778_v63 = vadd.f32 %v774_v52, %v5985_v47  ;;  %v875_v52 = vld [vmem:[%s8238_s10 + $0x70] sm:$0xff] }
 0x191   : > { %v849_v2 = vadd.f32 %v845_v51, %v775_v54  ;;  %v850_v3 = vadd.f32 %v846_v59, %v776_v55  ;;  %v851_v5 = vadd.f32 %v847_v53, %v777_v62  ;;  %v1157_v51 = vld [vmem:[%s8240_s12 + $0x8] sm:$0xff]  ;;  %v890_v59 = vpack.c.bf16 %v872_v41, %v871_v40  ;;  %v876_v53 = vld [vmem:[%s8238_s10 + $0x78] sm:$0xff]  ;;  %v877_v54 = vld [vmem:[%s8238_s10 + $0x80] sm:$0xff] }
 0x192   : > { %v5013_v4 = vpop.eup %5012  ;;  %4867 = vmatpush3.bf16.msra.mxu0 %v898_v44  ;;  %v852_v14 = vadd.f32 %v848_v56, %v778_v63  ;;  %v1071_v44 = vld [vmem:[%s8239_s11 + $0x30] sm:$0xff]  ;;  %v1164_v1 = vpack.c.bf16 %v1157_v51, %v1156_v50  ;;  %v878_v55 = vld [vmem:[%s8238_s10 + $0x88] sm:$0xff]  ;;  %v892_v63 = vpack.c.bf16 %v876_v53, %v875_v52 }
 0x193   : > { %v1077_v17 = vpack.c.bf16 %v850_v3, %v849_v2  ;;  %v825_v18 = vmul.f32 %v5013_v4, %v5910_v6  ;;  %v826_v19 = vmul.f32 %v5013_v4, %v5913_v12  ;;  %v827_v20 = vmul.f32 %v5013_v4, %v5916_v13  ;;  %v854_v13 = vld [vmem:[%s8236_s8 + $0x8] sm:$0xff]  ;;  %v1158_v56 = vld [vmem:[%s8240_s12 + $0x10] sm:$0xff] }
 0x194   : > { %v1078_v21 = vpack.c.bf16 %v852_v14, %v851_v5  ;;  %v828_v48 = vmul.f32 %v5013_v4, %v5923_v15  ;;  %v855_v15 = vld [vmem:[%s8236_s8 + $0x10] sm:$0xff]  ;;  %v1076_v61 = vpack.c.bf16 %v1072_v45, %v1071_v44  ;;  %v1161_v62 = vld [vmem:[%s8240_s12 + $0x28] sm:$0xff]  ;;  %v1165_v2 = vpack.c.bf16 %v1159_v57, %v1158_v56  ;;  %v880_v5 = vld [vmem:[%s8238_s10 + $0x98] sm:$0xff] }
 0x195   : > { %4869 = vmatmul.mubr.msk.bf16.vlgmr.msra.gmra.mrb[0].mxu0 %vm899_vm0, %v886_v0  ;;  %4892 = vmatprep.subr.bf16.mxu1 %v1077_v17  ;;  %v829_v6 = vmul.f32 %v825_v18, %v5946_v7  ;;  %v830_v12 = vmul.f32 %v826_v19, %v5951_v9  ;;  %v831_v24 = vmul.f32 %v827_v20, %v5956_v10  ;;  %v1067_v7 = vld [vmem:[%s8239_s11 + $0x10] sm:$0xff]  ;;  %v1068_v9 = vld [vmem:[%s8239_s11 + $0x18] sm:$0xff]  ;;  %v881_v14 = vld [vmem:[%s8238_s10 + $0xa0] sm:$0xff] }
 0x196   : > { %4893 = vmatpush3.bf16.msra.mxu1 %v1077_v17  ;;  %4872 = vmatprep.mubr.msk.bf16.mxu0 %vm899_vm0, %v887_v8  ;;  %v832_v10 = vmul.f32 %v828_v48, %v5961_v16  ;;  %v1074_v34 = vpack.c.bf16 %v1068_v9, %v1067_v7  ;;  %v893_v0 = vpack.c.bf16 %v878_v55, %v877_v54  ;;  %v879_v4 = vld [vmem:[%s8238_s10 + $0x90] sm:$0xff]  ;;  %v882_v8 = vld [vmem:[%s8238_s10 + $0xa8] sm:$0xff]  ;;  %v1163_v18 = vld [vmem:[%s8240_s12 + $0x38] sm:$0xff] }
 0x197   : > { %4894 = vmatprep.subr.bf16.mxu1 %v1078_v21  ;;  %v833_v26 = vadd.f32 %v829_v6, %v5966_v11  ;;  %v834_v27 = vadd.f32 %v830_v12, %v5975_v22  ;;  %v835_v28 = vadd.f32 %v831_v24, %v5980_v23  ;;  %v1069_v11 = vld [vmem:[%s8239_s11 + $0x20] sm:$0xff]  ;;  %v1070_v22 = vld [vmem:[%s8239_s11 + $0x28] sm:$0xff]  ;;  %v888_v23 = vpack.c.bf16 %v868_v25, %v867_v49  ;;  %v1162_v17 = vld [vmem:[%s8240_s12 + $0x30] sm:$0xff] }
 0x198   : > { %v836_v16 = vadd.f32 %v832_v10, %v5985_v47  ;;  %v1075_v39 = vpack.c.bf16 %v1070_v22, %v1069_v11  ;;  %v1166_v3 = vpack.c.bf16 %v1161_v62, %v1160_v58  ;;  %v894_v19 = vpack.c.bf16 %v880_v5, %v879_v4  ;;  %v884_v48 = vld [vmem:[%s8238_s10 + $0xb8] sm:$0xff] }
 0x199   : > { %v857_v32 = vadd.f32 %v853_v46, %v833_v26  ;;  %v858_v33 = vadd.f32 %v854_v13, %v834_v27  ;;  %v859_v35 = vadd.f32 %v855_v15, %v835_v28  ;;  %v895_v20 = vpack.c.bf16 %v882_v8, %v881_v14  ;;  %v883_v46 = vld [vmem:[%s8238_s10 + $0xb0] sm:$0xff] }
 0x19a   : > { %4895 = vmatpush3.bf16.msra.mxu1 %v1078_v21  ;;  %v860_v36 = vadd.f32 %v856_v29, %v836_v16  ;;  %v1167_v21 = vpack.c.bf16 %v1163_v18, %v1162_v17  ;;  %v896_v49 = vpack.c.bf16 %v884_v48, %v883_v46 }
 0x19b   : > { %v1168_v38 = vpack.c.bf16 %v858_v33, %v857_v32 }
 0x19c   : > { %v1169_v47 = vpack.c.bf16 %v860_v36, %v859_v35 }
 0x19d   : > { %4873 = vmatmul.mubr.msk.bf16.gmra.mrb[4].mxu0 %vm899_vm0, %v888_v23  ;;  %4904 = vmatprep.subr.bf16.mxu1 %v1168_v38 }
 0x19e   : > { %4897 = vmatmul.mubr.msk.bf16.vlgmr.msra.gmra.mrb[0].mxu1 %vm899_vm0, %v1074_v34  ;;  %4876 = vmatprep.mubr.msk.bf16.mxu0 %vm899_vm0, %v889_v37 }
 0x19f   : > { %4905 = vmatpush3.bf16.msra.mxu1 %v1168_v38  ;;  %4900 = vmatprep.mubr.msk.bf16.mxu1 %vm899_vm0, %v1075_v39 }
 0x1a0   : > { %4906 = vmatprep.subr.bf16.mxu1 %v1169_v47 }
 0x1a3   : > { %4907 = vmatpush3.bf16.msra.mxu1 %v1169_v47 }
 0x1a5   : > { %4877 = vmatmul.mubr.msk.bf16.gmra.mrb[8].mxu0 %vm899_vm0, %v890_v59 }
 0x1a6   : > { %4880 = vmatprep.mubr.msk.bf16.mxu0 %vm899_vm0, %v891_v60  ;;  %4901 = vmatmul.mubr.msk.bf16.gmra.mrb[4].mxu1 %vm899_vm0, %v1076_v61 }
 0x1a7   : > { %4908 = vmatprep.mubr.msk.bf16.mxu1 %vm899_vm0, %v1164_v1 }
 0x1ad   : > { %4881 = vmatmul.mubr.msk.bf16.gmra.mrb[12].mxu0 %vm899_vm0, %v892_v63 }
 0x1ae   : > { %4884 = vmatprep.mubr.msk.bf16.mxu0 %vm899_vm0, %v893_v0  ;;  %4909 = vmatmul.mubr.msk.bf16.vlgmr.msra.gmra.mrb[8].mxu1 %vm899_vm0, %v1165_v2 }
 0x1af   : > { %4912 = vmatprep.mubr.msk.bf16.mxu1 %vm899_vm0, %v1166_v3 }
 0x1b5   : > { %4885 = vmatmul.mubr.msk.bf16.gmra.mrb[16].mxu0 %vm899_vm0, %v894_v19 }
 0x1b6   : > { %4888 = vmatprep.mubr.msk.bf16.mxu0 %vm899_vm0, %v895_v20  ;;  %4913 = vmatmul.mubr.msk.bf16.gmra.mrb[12].mxu1 %vm899_vm0, %v1167_v21 }
 0x1bd   : > { %4889 = vmatmul.mubr.msk.bf16.gmra.mrb[20].mxu0 %vm899_vm0, %v896_v49 }
 0x268   : > { %v6181_v6 = vpop.f32.mrb[0].mxu0 }
 0x269   : > { %v2631_v12 = vrot.slane %v6181_v6, 4  ;;  %v6184_v13 = vpop.f32.mrb[1].mxu0 }
 0x26a   : > { %8293 = vst [vmem:[#allocation11_spill] sm:$0xff] %v6184_v13  ;;  %v1265_v24 = vrot.slane %v6184_v13, 4  ;;  %v6187_v15 = vpop.f32.mrb[2].mxu0 }
 0x26b   : > { %v2632_v25 = vmax.f32 %v6181_v6, %v2631_v12  ;;  %v3313_v7 = vrot.slane %v6187_v15, 4  ;;  %v6191_v9 = vpop.f32.mrb[3].mxu0 }
 0x26c   : > { %8294 = vst [vmem:[#allocation12_spill] sm:$0xff] %v6191_v9  ;;  %v1266_v10 = vmax.f32 %v6184_v13, %v1265_v24  ;;  %v1949_v26 = vrot.slane %v6191_v9, 4 }
 0x26d   : > { %v2633_v27 = vrot.slane %v2632_v25, 2  ;;  %v3314_v28 = vmax.f32 %v6187_v15, %v3313_v7 }
 0x26e   : > { %v1267_v29 = vrot.slane %v1266_v10, 2  ;;  %v1950_v30 = vmax.f32 %v6191_v9, %v1949_v26 }
 0x26f   : > { %v2634_v31 = vmax.f32 %v2632_v25, %v2633_v27  ;;  %v3315_v16 = vrot.slane %v3314_v28, 2 }
 0x270   : > { %v1268_v11 = vmax.f32 %v1266_v10, %v1267_v29  ;;  %v1951_v22 = vrot.slane %v1950_v30, 2  ;;  %v6197_v23 = vpop.f32.mrb[4].mxu0 }
 0x271   : > { %v2635_v32 = vrot.slane %v2634_v31, 1  ;;  %v3316_v33 = vmax.f32 %v3314_v28, %v3315_v16  ;;  %v2613_v34 = vrot.slane %v6197_v23, 4  ;;  %v6200_v35 = vpop.f32.mrb[5].mxu0  ;;  %v6202_v36 = vpop.f32.mrb[0].mxu1 }
 0x272   : > { %8295 = vst [vmem:[#allocation13_spill] sm:$0xff] %v6200_v35  ;;  %v1269_v37 = vrot.slane %v1268_v11, 1  ;;  %v1952_v38 = vmax.f32 %v1950_v30, %v1951_v22  ;;  %v1247_v39 = vrot.slane %v6200_v35, 4  ;;  %v6205_v47 = vpop.f32.mrb[6].mxu0  ;;  %v6207_v40 = vpop.f32.mrb[1].mxu1  ;;  %v2745_v17 = vrot.slane %v6202_v36, 4 }
 0x273   : > { %v2636_v41 = vmax.f32 %v2634_v31, %v2635_v32  ;;  %v3317_v42 = vrot.slane %v3316_v33, 1  ;;  %v2614_v43 = vmax.f32 %v6197_v23, %v2613_v34  ;;  %v3295_v44 = vrot.slane %v6205_v47, 4  ;;  %v6211_v45 = vpop.f32.mrb[7].mxu0  ;;  %v6213_v50 = vpop.f32.mrb[2].mxu1 }
 0x274   : > { %8296 = vst [vmem:[#allocation14_spill] sm:$0xff] %v6211_v45  ;;  %v1270_v51 = vmax.f32 %v1268_v11, %v1269_v37  ;;  %v1953_v59 = vrot.slane %v1952_v38, 1  ;;  %v1248_v60 = vmax.f32 %v6200_v35, %v1247_v39  ;;  %v1931_v61 = vrot.slane %v6211_v45, 4  ;;  %v6217_v1 = vpop.f32.mrb[3].mxu1 }
 0x275   : > { %v2637_v52 = vsub.f32 %v6181_v6, %v2636_v41  ;;  %v3318_v53 = vmax.f32 %v3316_v33, %v3317_v42  ;;  %v2615_v54 = vrot.slane %v2614_v43, 2  ;;  %v3296_v55 = vmax.f32 %v6205_v47, %v3295_v44 }
 0x276   : > { %v1271_v56 = vsub.f32 %v6184_v13, %v1270_v51  ;;  %v1954_v57 = vmax.f32 %v1952_v38, %v1953_v59  ;;  %v1249_v58 = vrot.slane %v1248_v60, 2  ;;  %v1932_v62 = vmax.f32 %v6211_v45, %v1931_v61 }
 0x277   : > { %v2638_v63 = vmul.f32 1.442695, %v2637_v52  ;;  %v3319_v0 = vsub.f32 %v6187_v15, %v3318_v53  ;;  %v2616_v2 = vmax.f32 %v2614_v43, %v2615_v54  ;;  %v3297_v3 = vrot.slane %v3296_v55, 2 }
 0x278   : > { %v1955_v4 = vsub.f32 %v6191_v9, %v1954_v57  ;;  %v1250_v5 = vmax.f32 %v1248_v60, %v1249_v58  ;;  %v1933_v14 = vrot.slane %v1932_v62, 2  ;;  %v6225_v8 = vpop.f32.mrb[8].mxu0  ;;  %v1272_v48 = vmul.f32 1.442695, %v1271_v56 }
 0x279   : > { %8297 = vst [vmem:[#allocation15_spill] sm:$0xff] %v6225_v8  ;;  %5014 = vpow2.f32 %v2638_v63  ;;  %v3320_v18 = vmul.f32 1.442695, %v3319_v0  ;;  %v2617_v19 = vrot.slane %v2616_v2, 1  ;;  %v3298_v20 = vmax.f32 %v3296_v55, %v3297_v3  ;;  %v6228_v21 = vpop.f32.mrb[9].mxu0  ;;  %v6230_v46 = vpop.f32.mrb[4].mxu1 }
 0x27a   : > { %8298 = vst [vmem:[#allocation16_spill] sm:$0xff] %v6228_v21  ;;  %8299 = vst [vmem:[#allocation17_spill] sm:$0xff] %v6230_v46  ;;  %v1251_v49 = vrot.slane %v1250_v5, 1  ;;  %v1934_v12 = vmax.f32 %v1932_v62, %v1933_v14  ;;  %v6232_v24 = vpop.f32.mrb[10].mxu0  ;;  %v6234_v25 = vpop.f32.mrb[5].mxu1  ;;  %v2669_v26 = vrot.slane %v6225_v8, 4  ;;  %v2746_v16 = vmax.f32 %v6202_v36, %v2745_v17 }
 0x27b   : > { %8300 = vst [vmem:[#allocation18_spill] sm:$0xff] %v6232_v24  ;;  %5016 = vpow2.f32 %v3320_v18  ;;  %v2618_v7 = vmax.f32 %v2616_v2, %v2617_v19  ;;  %v3299_v10 = vrot.slane %v3298_v20, 1  ;;  %v6237_v27 = vpop.f32.mrb[11].mxu0  ;;  %v6239_v28 = vpop.f32.mrb[6].mxu1  ;;  %v1956_v29 = vmul.f32 1.442695, %v1955_v4 }
 0x27c   : > { %8301 = vst [vmem:[#allocation19_spill] sm:$0xff] %v6237_v27  ;;  %8302 = vst [vmem:[#allocation20_spill] sm:$0xff] %v6239_v28  ;;  %v1252_v30 = vmax.f32 %v1250_v5, %v1251_v49  ;;  %v1935_v31 = vrot.slane %v1934_v12, 1  ;;  %v6242_v11 = vpop.f32.mrb[7].mxu1  ;;  %v2670_v33 = vmax.f32 %v6225_v8, %v2669_v26  ;;  %v1303_v34 = vrot.slane %v6228_v21, 4 }
 0x27d   : > { %8303 = vst [vmem:[#allocation21_spill] sm:$0xff] %v6242_v11  ;;  %v2619_v22 = vsub.f32 %v6197_v23, %v2618_v7  ;;  %v3300_v32 = vmax.f32 %v3298_v20, %v3299_v10  ;;  %v2747_v39 = vrot.slane %v2746_v16, 2  ;;  %v1379_v41 = vrot.slane %v6207_v40, 4 }
 0x27e   : > { %v1253_v37 = vsub.f32 %v6200_v35, %v1252_v30  ;;  %v1936_v38 = vmax.f32 %v1934_v12, %v1935_v31  ;;  %v2671_v44 = vrot.slane %v2670_v33, 2  ;;  %v1304_v51 = vmax.f32 %v6228_v21, %v1303_v34 }
 0x27f   : > { %v2620_v42 = vmul.f32 1.442695, %v2619_v22  ;;  %v3301_v43 = vsub.f32 %v6205_v47, %v3300_v32  ;;  %5018 = vpow2.f32 %v1272_v48  ;;  %v2748_v60 = vmax.f32 %v2746_v16, %v2747_v39 }
 0x280   : > { %v1937_v59 = vsub.f32 %v6211_v45, %v1936_v38  ;;  %v1380_v61 = vmax.f32 %v6207_v40, %v1379_v41  ;;  %v6253_v52 = vpop.f32.mrb[12].mxu0  ;;  %v2672_v54 = vmax.f32 %v2670_v33, %v2671_v44  ;;  %v1305_v55 = vrot.slane %v1304_v51, 2 }
 0x281   : > { %5020 = vpow2.f32 %v2620_v42  ;;  %v3302_v53 = vmul.f32 1.442695, %v3301_v43  ;;  %v6255_v56 = vpop.f32.mrb[13].mxu0  ;;  %v6257_v57 = vpop.f32.mrb[8].mxu1  ;;  %v1254_v58 = vmul.f32 1.442695, %v1253_v37 }
 0x282   : > { %5022 = vpow2.f32 %v1956_v29  ;;  %v2749_v62 = vrot.slane %v2748_v60, 1  ;;  %v1381_v63 = vrot.slane %v1380_v61, 2  ;;  %v6259_v0 = vpop.f32.mrb[14].mxu0  ;;  %v6261_v2 = vpop.f32.mrb[9].mxu1  ;;  %v2673_v4 = vrot.slane %v2672_v54, 1 }
 0x283   : > { %v6263_v3 = vpop.eup %5014  ;;  %5024 = vpow2.f32 %v3302_v53  ;;  %v1306_v5 = vmax.f32 %v1304_v51, %v1305_v55  ;;  %v3351_v14 = vrot.slane %v6232_v24, 4  ;;  %v6266_v17 = vpop.f32.mrb[15].mxu0  ;;  %v1938_v20 = vmul.f32 1.442695, %v1937_v59 }
 0x284   : > { %8304 = vst [vmem:[#allocation22_spill] sm:$0xff] %v6266_v17  ;;  %v6268_v18 = vpop.f32.mrb[10].mxu1  ;;  %v2640_v19 = vrot.slane %v6263_v3, 4  ;;  %v2750_v48 = vmax.f32 %v2748_v60, %v2749_v62  ;;  %v1382_v49 = vmax.f32 %v1380_v61, %v1381_v63  ;;  %v2674_v10 = vmax.f32 %v2672_v54, %v2673_v4 }
 0x285   : > { %v6271_v12 = vpop.f32.mrb[11].mxu1  ;;  %v6273_v7 = vpop.eup %5016  ;;  %v1307_v26 = vrot.slane %v1306_v5, 1  ;;  %v3352_v29 = vmax.f32 %v6232_v24, %v3351_v14  ;;  %v3427_v30 = vrot.slane %v6213_v50, 4  ;;  %5026 = vpow2.f32 %v1254_v58 }
 0x286   : > { %v2641_v31 = vadd.f32 %v6263_v3, %v2640_v19  ;;  %v3322_v16 = vrot.slane %v6273_v7, 4  ;;  %v2751_v22 = vsub.f32 %v6202_v36, %v2750_v48  ;;  %v1383_v32 = vrot.slane %v1382_v49, 1 }
 0x287   : > { %v2675_v33 = vsub.f32 %v6225_v8, %v2674_v10  ;;  %v1308_v34 = vmax.f32 %v1306_v5, %v1307_v26  ;;  %v3353_v37 = vrot.slane %v3352_v29, 2  ;;  %v3428_v38 = vmax.f32 %v6213_v50, %v3427_v30 }
 0x288   : > { %v2642_v39 = vrot.slane %v2641_v31, 2  ;;  %v3323_v41 = vadd.f32 %v6273_v7, %v3322_v16  ;;  %v2752_v42 = vmul.f32 1.442695, %v2751_v22  ;;  %v1384_v43 = vmax.f32 %v1382_v49, %v1383_v32  ;;  %v6283_v44 = vpop.f32.mrb[16].mxu0 }
 0x289   : > { %v1309_v51 = vsub.f32 %v6228_v21, %v1308_v34  ;;  %v3354_v59 = vmax.f32 %v3352_v29, %v3353_v37  ;;  %v3429_v60 = vrot.slane %v3428_v38, 2  ;;  %v6286_v61 = vpop.f32.mrb[17].mxu0  ;;  %v6288_v53 = vpop.f32.mrb[12].mxu1  ;;  %5028 = vpow2.f32 %v1938_v20 }
 0x28a   : > { %v6290_v54 = vpop.eup %5018  ;;  %v2643_v55 = vadd.f32 %v2642_v39, %v2641_v31  ;;  %v3324_v62 = vrot.slane %v3323_v41, 2  ;;  %v6292_v63 = vpop.f32.mrb[18].mxu0  ;;  %v2676_v58 = vmul.f32 1.442695, %v2675_v33  ;;  %v1385_v14 = vsub.f32 %v6207_v40, %v1384_v43 }
 0x28b   : > { %8305 = vst [vmem:[#allocation23_spill] sm:$0xff] %v6290_v54  ;;  %v6294_v4 = vpop.f32.mrb[13].mxu1  ;;  %v6296_v5 = vpop.eup %5020  ;;  %v3355_v19 = vrot.slane %v3354_v59, 1  ;;  %v3430_v48 = vmax.f32 %v3428_v38, %v3429_v60  ;;  %5030 = vpow2.f32 %v2752_v42  ;;  %v1310_v22 = vmul.f32 1.442695, %v1309_v51 }
 0x28c   : > { %v6299_v49 = vpop.f32.mrb[19].mxu0  ;;  %v6301_v10 = vpop.f32.mrb[14].mxu1  ;;  %v2622_v29 = vrot.slane %v6296_v5, 4  ;;  %v2644_v20 = vrot.slane %v2643_v55, 1  ;;  %v3325_v30 = vadd.f32 %v3324_v62, %v3323_v41  ;;  %v1987_v34 = vrot.slane %v6237_v27, 4 }
 0x28d   : > { %v6303_v26 = vpop.eup %5022  ;;  %v6306_v31 = vpop.f32.mrb[15].mxu1  ;;  %v3356_v32 = vmax.f32 %v3354_v59, %v3355_v19  ;;  %v3431_v33 = vrot.slane %v3430_v48, 1  ;;  %5032 = vpow2.f32 %v2676_v58  ;;  %v1386_v60 = vmul.f32 1.442695, %v1385_v14 }
 0x28e   : > { %8306 = vst [vmem:[#allocation24_spill] sm:$0xff] %v6303_v26  ;;  %8307 = vst [vmem:[#allocation25_spill] sm:$0xff] %v6306_v31  ;;  %v6308_v16 = vpop.eup %5024  ;;  %v2623_v37 = vadd.f32 %v6296_v5, %v2622_v29  ;;  %v2645_v38 = vadd.f32 %v2644_v20, %v2643_v55  ;;  %v3326_v43 = vrot.slane %v3325_v30, 1  ;;  %v1988_v42 = vmax.f32 %v6237_v27, %v1987_v34 }
 0x28f   : > { %v3304_v39 = vrot.slane %v6308_v16, 4  ;;  %v3357_v41 = vsub.f32 %v6232_v24, %v3356_v32  ;;  %v3432_v8 = vmax.f32 %v3430_v48, %v3431_v33  ;;  %v2063_v55 = vrot.slane %v6217_v1, 4 }
 0x290   : > { %v2624_v62 = vrot.slane %v2623_v37, 2  ;;  %5034 = vrcp.f32 %v2645_v38  ;;  %v3327_v59 = vadd.f32 %v3326_v43, %v3325_v30  ;;  %v6316_v19 = vpop.f32.mrb[20].mxu0  ;;  %v1989_v29 = vrot.slane %v1988_v42, 2  ;;  %v6324_v38 = vpop.eup %5026 }
 0x291   : > { %v3305_v51 = vadd.f32 %v6308_v16, %v3304_v39  ;;  %5036 = vpow2.f32 %v1310_v22  ;;  %v6319_v20 = vpop.f32.mrb[21].mxu0  ;;  %v2707_v32 = vrot.slane %v6253_v52, 4  ;;  %8308 = vst [vmem:[#allocation26_spill] sm:$0xff] %v6324_v38  ;;  %v3358_v30 = vmul.f32 1.442695, %v3357_v41 }
 0x292   : > { %v2625_v58 = vadd.f32 %v2624_v62, %v2623_v37  ;;  %5038 = vrcp.f32 %v3327_v59  ;;  %v6322_v34 = vpop.f32.mrb[22].mxu0  ;;  %v1990_v39 = vmax.f32 %v1988_v42, %v1989_v29  ;;  %v2064_v22 = vmax.f32 %v6217_v1, %v2063_v55 }
 0x293   : > { %v3306_v14 = vrot.slane %v3305_v51, 2  ;;  %5040 = vpow2.f32 %v1386_v60  ;;  %v6327_v48 = vpop.f32.mrb[23].mxu0  ;;  %v6329_v33 = vpop.eup %5028  ;;  %v2708_v37 = vmax.f32 %v6253_v52, %v2707_v32  ;;  %v2783_v62 = vrot.slane %v6230_v46, 4 }
 0x294   : > { %8309 = vst [vmem:[#allocation27_spill] sm:$0xff] %v6327_v48  ;;  %8310 = vst [vmem:[#allocation28_spill] sm:$0xff] %v6329_v33  ;;  %v2626_v43 = vrot.slane %v2625_v58, 1  ;;  %v3433_v59 = vsub.f32 %v6213_v50, %v3432_v8  ;;  %v1991_v45 = vrot.slane %v1990_v39, 1  ;;  %v2065_v9 = vrot.slane %v2064_v22, 2 }
 0x295   : > { %v3307_v24 = vadd.f32 %v3306_v14, %v3305_v51  ;;  %v1341_v60 = vrot.slane %v6255_v56, 4  ;;  %v6335_v41 = vpop.eup %5030  ;;  %v2709_v55 = vrot.slane %v2708_v37, 2  ;;  %v2784_v21 = vmax.f32 %v6230_v46, %v2783_v62 }
 0x296   : > { %v2627_v42 = vadd.f32 %v2626_v43, %v2625_v58  ;;  %v1992_v35 = vmax.f32 %v1990_v39, %v1991_v45  ;;  %v2066_v13 = vmax.f32 %v2064_v22, %v2065_v9  ;;  %v1417_v14 = vrot.slane %v6234_v25, 4 }
 0x297   : > { %v3308_v29 = vrot.slane %v3307_v24, 1  ;;  %v1342_v51 = vmax.f32 %v6255_v56, %v1341_v60  ;;  %v2710_v8 = vmax.f32 %v2708_v37, %v2709_v55  ;;  %v2785_v26 = vrot.slane %v2784_v21, 2  ;;  %v6340_v33 = vpop.eup %5032 }
 0x298   : > { %5042 = vrcp.f32 %v2627_v42  ;;  %v1993_v54 = vsub.f32 %v6237_v27, %v1992_v35  ;;  %v2067_v38 = vrot.slane %v2066_v13, 1  ;;  %v1418_v43 = vmax.f32 %v6234_v25, %v1417_v14 }
 0x299   : > { %v3309_v32 = vadd.f32 %v3308_v29, %v3307_v24  ;;  %v1343_v58 = vrot.slane %v1342_v51, 2  ;;  %v2711_v45 = vrot.slane %v2710_v8, 1  ;;  %v2786_v9 = vmax.f32 %v2784_v21, %v2785_v26 }
 0x29a   : > { %v5035_v31 = vpop.eup %5034  ;;  %v3389_v39 = vrot.slane %v6259_v0, 4  ;;  %v3434_v37 = vmul.f32 1.442695, %v3433_v59  ;;  %v2068_v62 = vmax.f32 %v2066_v13, %v2067_v38  ;;  %v1419_v55 = vrot.slane %v1418_v43, 2 }
 0x29b   : > { %5044 = vrcp.f32 %v3309_v32  ;;  %v6345_v22 = vpop.eup %5036  ;;  %v2647_v24 = vmul.f32 %v5035_v31, %v6263_v3  ;;  %v1344_v60 = vmax.f32 %v1342_v51, %v1343_v58  ;;  %v2712_v29 = vmax.f32 %v2710_v8, %v2711_v45 }
 0x29c   : > { %v5039_v42 = vpop.eup %5038  ;;  %v2787_v35 = vrot.slane %v2786_v9, 1  ;;  %v3390_v27 = vmax.f32 %v6259_v0, %v3389_v39  ;;  %v1994_v26 = vmul.f32 1.442695, %v1993_v54  ;;  %v2069_v48 = vsub.f32 %v6217_v1, %v2068_v62 }
 0x29d   : > { %v6349_v14 = vpop.eup %5040  ;;  %v2648_v32 = vmul.f32 %v6197_v23, %v2647_v24  ;;  %v3329_v21 = vmul.f32 %v5039_v42, %v6273_v7  ;;  %v2713_v3 = vsub.f32 %v6253_v52, %v2712_v29  ;;  %v1345_v13 = vrot.slane %v1344_v60, 1 }
 0x29e   : > { %v2788_v31 = vmax.f32 %v2786_v9, %v2787_v35  ;;  %v1420_v38 = vmax.f32 %v1418_v43, %v1419_v55  ;;  %5046 = vpow2.f32 %v3358_v30  ;;  %v3391_v51 = vrot.slane %v3390_v27, 2 }
 0x29f   : > { %v3330_v59 = vmul.f32 %v6205_v47, %v3329_v21  ;;  %v3465_v8 = vrot.slane %v6239_v28, 4  ;;  %v2070_v58 = vmul.f32 1.442695, %v2069_v48  ;;  %v1346_v23 = vmax.f32 %v1344_v60, %v1345_v13 }
 0x2a0   : > { %v2789_v45 = vsub.f32 %v6230_v46, %v2788_v31  ;;  %v1421_v39 = vrot.slane %v1420_v38, 1  ;;  %5048 = vpow2.f32 %v3434_v37  ;;  %v3392_v7 = vmax.f32 %v3390_v27, %v3391_v51 }
 0x2a1   : > { %v3466_v54 = vmax.f32 %v6239_v28, %v3465_v8  ;;  %v2025_v24 = vrot.slane %v6266_v17, 4  ;;  %5050 = vpow2.f32 %v1994_v26  ;;  %v2714_v43 = vmul.f32 1.442695, %v2713_v3 }
 0x2a2   : > { %v5043_v9 = vpop.eup %5042  ;;  %v1422_v62 = vmax.f32 %v1420_v38, %v1421_v39  ;;  %v3393_v30 = vrot.slane %v3392_v7, 1  ;;  %5052 = vpow2.f32 %v2070_v58  ;;  %v2790_v60 = vmul.f32 1.442695, %v2789_v45 }
 0x2a3   : > { %v2629_v47 = vmul.f32 %v5043_v9, %v6296_v5  ;;  %v3467_v42 = vrot.slane %v3466_v54, 2  ;;  %v2026_v48 = vmax.f32 %v6266_v17, %v2025_v24  ;;  %v1347_v37 = vsub.f32 %v6255_v56, %v1346_v23 }
 0x2a4   : > { %v2101_v27 = vrot.slane %v6242_v11, 4  ;;  %v3394_v21 = vmax.f32 %v3392_v7, %v3393_v30  ;;  %5054 = vpow2.f32 %v2714_v43  ;;  %v1423_v5 = vsub.f32 %v6234_v25, %v1422_v62 }
 0x2a5   : > { %v5045_v29 = vpop.eup %5044  ;;  %v2630_v35 = vmul.f32 %v6181_v6, %v2629_v47  ;;  %v3468_v26 = vmax.f32 %v3466_v54, %v3467_v42  ;;  %v2027_v3 = vrot.slane %v2026_v48, 2  ;;  %5056 = vpow2.f32 %v2790_v60 }
 0x2a6   : > { %v3311_v55 = vmul.f32 %v5045_v29, %v6308_v16  ;;  %v2102_v31 = vmax.f32 %v6242_v11, %v2101_v27  ;;  %v3395_v51 = vsub.f32 %v6259_v0, %v3394_v21  ;;  %v2651_v16 = vrot.slane %v6283_v44, 4 }
 0x2a7   : > { %v6368_v13 = vadd.f32 %v2648_v32, %v2630_v35  ;;  %v3469_v8 = vrot.slane %v3468_v26, 1  ;;  %v2028_v58 = vmax.f32 %v2026_v48, %v2027_v3  ;;  %v1348_v39 = vmul.f32 1.442695, %v1347_v37 }
 0x2a8   : > { %v3312_v38 = vmul.f32 %v6187_v15, %v3311_v55  ;;  %v2103_v6 = vrot.slane %v2102_v31, 2  ;;  %v6373_v45 = vpop.eup %5046  ;;  %v2678_v54 = vrot.slane %v6340_v33, 4  ;;  %v2652_v15 = vmax.f32 %v6283_v44, %v2651_v16 }
 0x2a9   : > { %8311 = vst [vmem:[#allocation29_spill] sm:$0xff] %v6368_v13  ;;  %v3470_v7 = vmax.f32 %v3468_v26, %v3469_v8  ;;  %v2029_v32 = vrot.slane %v2028_v58, 1  ;;  %v2727_v9 = vrot.slane %v6257_v57, 4  ;;  %v1424_v62 = vmul.f32 1.442695, %v1423_v5 }
 0x2aa   : > { %v6375_v23 = vadd.f32 %v3330_v59, %v3312_v38  ;;  %v2104_v24 = vmax.f32 %v2102_v31, %v2103_v6  ;;  %v6380_v43 = vpop.eup %5048  ;;  %v3396_v47 = vmul.f32 1.442695, %v3395_v51  ;;  %v2679_v30 = vadd.f32 %v6340_v33, %v2678_v54 }
 0x2ab   : > { %v2754_v42 = vrot.slane %v6335_v41, 4  ;;  %v6384_v59 = vpop.eup %5050  ;;  %v2030_v48 = vmax.f32 %v2028_v58, %v2029_v32  ;;  %v2653_v60 = vrot.slane %v2652_v15, 2  ;;  %v2728_v37 = vmax.f32 %v6257_v57, %v2727_v9 }
 0x2ac   : > { %8312 = vst [vmem:[#allocation30_spill] sm:$0xff] %v6375_v23  ;;  %v2105_v29 = vrot.slane %v2104_v24, 1  ;;  %5058 = vpow2.f32 %v1348_v39  ;;  %v2680_v27 = vrot.slane %v2679_v30, 2  ;;  %v1285_v55 = vrot.slane %v6286_v61, 4  ;;  %v6389_v21 = vpop.eup %5052 }
 0x2ad   : > { %v2755_v35 = vadd.f32 %v6335_v41, %v2754_v42  ;;  %v3471_v26 = vsub.f32 %v6239_v28, %v3470_v7  ;;  %v2654_v3 = vmax.f32 %v2652_v15, %v2653_v60  ;;  %v2729_v31 = vrot.slane %v2728_v37, 2 }
 0x2ae   : > { %v2106_v5 = vmax.f32 %v2104_v24, %v2105_v29  ;;  %5060 = vpow2.f32 %v1424_v62  ;;  %v2681_v38 = vadd.f32 %v2680_v27, %v2679_v30  ;;  %v1286_v8 = vmax.f32 %v6286_v61, %v1285_v55  ;;  %v6393_v58 = vpop.eup %5054 }
 0x2af   : > { %v2756_v51 = vrot.slane %v2755_v35, 2  ;;  %5062 = vpow2.f32 %v3396_v47  ;;  %v2031_v6 = vsub.f32 %v6266_v17, %v2030_v48  ;;  %v2655_v16 = vrot.slane %v2654_v3, 1  ;;  %v6397_v24 = vpop.eup %5056 }
 0x2b0   : > { %v2730_v39 = vmax.f32 %v2728_v37, %v2729_v31  ;;  %v2682_v54 = vrot.slane %v2681_v38, 1  ;;  %v1287_v9 = vrot.slane %v1286_v8, 2  ;;  %v1312_v7 = vrot.slane %v6345_v22, 4 }
 0x2b1   : > { %v2757_v32 = vadd.f32 %v2756_v51, %v2755_v35  ;;  %v3472_v15 = vmul.f32 1.442695, %v3471_v26  ;;  %v2107_v62 = vsub.f32 %v6242_v11, %v2106_v5  ;;  %v2656_v30 = vmax.f32 %v2654_v3, %v2655_v16 }
 0x2b2   : > { %v2731_v42 = vrot.slane %v2730_v39, 1  ;;  %v2683_v29 = vadd.f32 %v2682_v54, %v2681_v38  ;;  %v1288_v27 = vmax.f32 %v1286_v8, %v1287_v9  ;;  %v1313_v47 = vadd.f32 %v6345_v22, %v1312_v7 }
 0x2b3   : > { %v2758_v60 = vrot.slane %v2757_v32, 1  ;;  %v2032_v48 = vmul.f32 1.442695, %v2031_v6  ;;  %v2657_v37 = vsub.f32 %v6283_v44, %v2656_v30  ;;  %v1361_v35 = vrot.slane %v6261_v2, 4 }
 0x2b4   : > { %v2732_v55 = vmax.f32 %v2730_v39, %v2731_v42  ;;  %5064 = vrcp.f32 %v2683_v29  ;;  %v1289_v51 = vrot.slane %v1288_v27, 1  ;;  %v1314_v23 = vrot.slane %v1313_v47, 2 }
 0x2b5   : > { %v2759_v31 = vadd.f32 %v2758_v60, %v2757_v32  ;;  %5066 = vpow2.f32 %v3472_v15  ;;  %v1362_v5 = vmax.f32 %v6261_v2, %v1361_v35  ;;  %v1388_v3 = vrot.slane %v6349_v14, 4 }
 0x2b6   : > { %v2733_v26 = vsub.f32 %v6257_v57, %v2732_v55  ;;  %v6406_v38 = vpop.eup %5058  ;;  %v2108_v8 = vmul.f32 1.442695, %v2107_v62  ;;  %v1315_v6 = vadd.f32 %v1314_v23, %v1313_v47  ;;  %v2658_v9 = vmul.f32 1.442695, %v2657_v37 }
 0x2b7   : > { %5068 = vrcp.f32 %v2759_v31  ;;  %v1363_v39 = vrot.slane %v1362_v5, 2  ;;  %v1389_v54 = vadd.f32 %v6349_v14, %v1388_v3  ;;  %v1290_v7 = vmax.f32 %v1288_v27, %v1289_v51 }
 0x2b8   : > { %5070 = vpow2.f32 %v2032_v48  ;;  %v2734_v16 = vmul.f32 1.442695, %v2733_v26  ;;  %v6409_v32 = vpop.eup %5060  ;;  %v1316_v15 = vrot.slane %v1315_v6, 1  ;;  %v3360_v30 = vrot.slane %v6373_v45, 4 }
 0x2b9   : > { %v6412_v42 = vpop.eup %5062  ;;  %v1364_v29 = vmax.f32 %v1362_v5, %v1363_v39  ;;  %v1390_v60 = vrot.slane %v1389_v54, 2  ;;  %v3409_v62 = vrot.slane %v6268_v18, 4  ;;  %v3333_v47 = vrot.slane %v6292_v63, 4 }
 0x2ba   : > { %5072 = vpow2.f32 %v2734_v16  ;;  %v1317_v23 = vadd.f32 %v1316_v15, %v1315_v6  ;;  %v3361_v48 = vadd.f32 %v6373_v45, %v3360_v30  ;;  %v3436_v37 = vrot.slane %v6380_v43, 4 }
 0x2bb   : > { %5074 = vpow2.f32 %v2108_v8  ;;  %v1365_v55 = vrot.slane %v1364_v29, 1  ;;  %v1391_v35 = vadd.f32 %v1390_v60, %v1389_v54  ;;  %v3410_v27 = vmax.f32 %v6268_v18, %v3409_v62 }
 0x2bc   : > { %5076 = vpow2.f32 %v2658_v9  ;;  %v1291_v31 = vsub.f32 %v6286_v61, %v1290_v7  ;;  %v3362_v51 = vrot.slane %v3361_v48, 2  ;;  %v1969_v26 = vrot.slane %v6299_v49, 4 }
 0x2bd   : > { %5078 = vrcp.f32 %v1317_v23  ;;  %v1366_v5 = vmax.f32 %v1364_v29, %v1365_v55  ;;  %v1392_v3 = vrot.slane %v1391_v35, 1  ;;  %v3411_v8 = vrot.slane %v3410_v27, 2 }
 0x2be   : > { %v5065_v6 = vpop.eup %5064  ;;  %v3334_v16 = vmax.f32 %v6292_v63, %v3333_v47  ;;  %v3363_v39 = vadd.f32 %v3362_v51, %v3361_v48  ;;  %v3437_v54 = vadd.f32 %v6380_v43, %v3436_v37  ;;  %v1970_v15 = vmax.f32 %v6299_v49, %v1969_v26 }
 0x2bf   : > { %v6424_v30 = vpop.eup %5066  ;;  %v2685_v9 = vmul.f32 %v5065_v6, %v6340_v33  ;;  %v1367_v7 = vsub.f32 %v6261_v2, %v1366_v5  ;;  %v1393_v60 = vadd.f32 %v1392_v3, %v1391_v35  ;;  %v3412_v62 = vmax.f32 %v3410_v27, %v3411_v8 }
 0x2c0   : > { %v1292_v29 = vmul.f32 1.442695, %v1291_v31  ;;  %v3364_v55 = vrot.slane %v3363_v39, 1  ;;  %v3438_v13 = vrot.slane %v3437_v54, 2  ;;  %v1971_v28 = vrot.slane %v1970_v15, 2 }
 0x2c1   : > { %v5069_v23 = vpop.eup %5068  ;;  %v6431_v47 = vmul.f32 %v6283_v44, %v2685_v9  ;;  %v1368_v37 = vmul.f32 1.442695, %v1367_v7  ;;  %5080 = vrcp.f32 %v1393_v60  ;;  %v3335_v51 = vrot.slane %v3334_v16, 2 }
 0x2c2   : > { %v6428_v46 = vpop.eup %5070  ;;  %v2761_v48 = vmul.f32 %v5069_v23, %v6335_v41  ;;  %v3365_v33 = vadd.f32 %v3364_v55, %v3363_v39  ;;  %v3413_v26 = vrot.slane %v3412_v62, 1  ;;  %v3439_v5 = vadd.f32 %v3438_v13, %v3437_v54 }
 0x2c3   : > { %8313 = vst [vmem:[#allocation31_spill] sm:$0xff] %v6431_v47  ;;  %5082 = vpow2.f32 %v1368_v37  ;;  %v1972_v31 = vmax.f32 %v1970_v15, %v1971_v28  ;;  %v1996_v3 = vrot.slane %v6384_v59, 4  ;;  %v2045_v13 = vrot.slane %v6271_v12, 4 }
 0x2c4   : > { %v6434_v35 = vpop.eup %5072  ;;  %v6437_v27 = vmul.f32 %v6257_v57, %v2761_v48  ;;  %5084 = vrcp.f32 %v3365_v33  ;;  %v3414_v41 = vmax.f32 %v3412_v62, %v3413_v26  ;;  %v3440_v6 = vrot.slane %v3439_v5, 1 }
 0x2c5   : > { %v6440_v8 = vpop.eup %5074  ;;  %v2736_v44 = vrot.slane %v6434_v35, 4  ;;  %v1973_v9 = vrot.slane %v1972_v31, 1  ;;  %v1997_v39 = vadd.f32 %v6384_v59, %v1996_v3  ;;  %5086 = vpow2.f32 %v1292_v29 }
 0x2c6   : > { %v6445_v54 = vpop.eup %5076  ;;  %v3415_v28 = vsub.f32 %v6268_v18, %v3414_v41  ;;  %v2072_v15 = vrot.slane %v6389_v21, 4  ;;  %v6450_v60 = vmax.f32 %v3334_v16, %v3335_v51  ;;  %v3441_v23 = vadd.f32 %v3440_v6, %v3439_v5 }
 0x2c7   : > { %v2737_v57 = vadd.f32 %v6434_v35, %v2736_v44  ;;  %v5079_v7 = vpop.eup %5078  ;;  %v1998_v62 = vrot.slane %v1997_v39, 2  ;;  %v2046_v55 = vmax.f32 %v6271_v12, %v2045_v13  ;;  %v6455_v3 = vmax.f32 %v1972_v31, %v1973_v9 }
 0x2c8   : > { %v1319_v37 = vmul.f32 %v5079_v7, %v6345_v22  ;;  %v3416_v33 = vmul.f32 1.442695, %v3415_v28  ;;  %v2073_v26 = vadd.f32 %v6389_v21, %v2072_v15  ;;  %5088 = vrcp.f32 %v3441_v23 }
 0x2c9   : > { %v2738_v48 = vrot.slane %v2737_v57, 2  ;;  %v1999_v29 = vadd.f32 %v1998_v62, %v1997_v39  ;;  %v2047_v44 = vrot.slane %v2046_v55, 2  ;;  %v2689_v22 = vrot.slane %v6316_v19, 4 }
 0x2ca   : > { %v6458_v47 = vmul.f32 %v1319_v37, %v6286_v61  ;;  %5090 = vpow2.f32 %v3416_v33  ;;  %v2074_v16 = vrot.slane %v2073_v26, 2  ;;  %v2716_v9 = vrot.slane %v6393_v58, 4 }
 0x2cb   : > { %v2739_v41 = vadd.f32 %v2738_v48, %v2737_v57  ;;  %v5081_v51 = vpop.eup %5080  ;;  %v2000_v6 = vrot.slane %v1999_v29, 1  ;;  %v2048_v13 = vmax.f32 %v2046_v55, %v2047_v44  ;;  %v2690_v23 = vmax.f32 %v6316_v19, %v2689_v22 }
 0x2cc   : > { %v1395_v15 = vmul.f32 %v5081_v51, %v6349_v14  ;;  %v2075_v31 = vadd.f32 %v2074_v16, %v2073_v26 }
 0x2cd   : > { %v2740_v28 = vrot.slane %v2739_v41, 1  ;;  %v6464_v39 = vpop.eup %5082  ;;  %v2001_v57 = vadd.f32 %v2000_v6, %v1999_v29  ;;  %v2049_v7 = vrot.slane %v2048_v13, 1  ;;  %v2691_v44 = vrot.slane %v2690_v23, 2 }
 0x2ce   : > { %v5085_v62 = vpop.eup %5084  ;;  %v1370_v55 = vrot.slane %v6464_v39, 4  ;;  %v6471_v37 = vmul.f32 %v1395_v15, %v6261_v2  ;;  %v2076_v14 = vrot.slane %v2075_v31, 1  ;;  %v2717_v6 = vadd.f32 %v6393_v58, %v2716_v9 }
 0x2cf   : > { %v2741_v48 = vadd.f32 %v2740_v28, %v2739_v41  ;;  %v3367_v33 = vmul.f32 %v5085_v62, %v6373_v45  ;;  %5092 = vrcp.f32 %v2001_v57  ;;  %v2050_v26 = vmax.f32 %v2048_v13, %v2049_v7  ;;  %v6474_v16 = vpop.eup %5086 }
 0x2d0   : > { %v1371_v29 = vadd.f32 %v6464_v39, %v1370_v55  ;;  %v2077_v51 = vadd.f32 %v2076_v14, %v2075_v31  ;;  %v2692_v22 = vmax.f32 %v2690_v23, %v2691_v44  ;;  %v2765_v28 = vrot.slane %v6288_v53, 4 }
 0x2d1   : > { %5094 = vrcp.f32 %v2741_v48  ;;  %v6479_v41 = vmul.f32 %v6292_v63, %v3367_v33  ;;  %v2051_v2 = vsub.f32 %v6271_v12, %v2050_v26  ;;  %v2718_v13 = vrot.slane %v2717_v6, 2 }
 0x2d2   : > { %v1372_v45 = vrot.slane %v1371_v29, 2  ;;  %5096 = vrcp.f32 %v2077_v51  ;;  %v2792_v15 = vrot.slane %v6397_v24, 4  ;;  %v5089_v57 = vpop.eup %5088  ;;  %v2693_v62 = vrot.slane %v2692_v22, 1 }
 0x2d3   : > { %8314 = vst [vmem:[#allocation32_spill] sm:$0xff] %v6479_v41  ;;  %v2052_v7 = vmul.f32 1.442695, %v2051_v2  ;;  %v2766_v31 = vmax.f32 %v6288_v53, %v2765_v28  ;;  %v1323_v9 = vrot.slane %v6319_v20, 4  ;;  %v3443_v14 = vmul.f32 %v5089_v57, %v6380_v43 }
 0x2d4   : > { %v6486_v48 = vpop.eup %5090  ;;  %v1373_v55 = vadd.f32 %v1372_v45, %v1371_v29  ;;  %v2719_v23 = vadd.f32 %v2718_v13, %v2717_v6  ;;  %v2793_v33 = vadd.f32 %v6397_v24, %v2792_v15  ;;  %v2694_v44 = vmax.f32 %v2692_v22, %v2693_v62 }
 0x2d5   : > { %v3418_v26 = vrot.slane %v6486_v48, 4  ;;  %5098 = vpow2.f32 %v2052_v7  ;;  %v2767_v51 = vrot.slane %v2766_v31, 2  ;;  %v6492_v2 = vmul.f32 %v6268_v18, %v3443_v14 }
 0x2d6   : > { %v1374_v5 = vrot.slane %v1373_v55, 1  ;;  %v2720_v28 = vrot.slane %v2719_v23, 1  ;;  %v2794_v61 = vrot.slane %v2793_v33, 2  ;;  %v2695_v29 = vsub.f32 %v6316_v19, %v2694_v44 }
 0x2d7   : > { %v3419_v41 = vadd.f32 %v6486_v48, %v3418_v26  ;;  %v2768_v45 = vmax.f32 %v2766_v31, %v2767_v51  ;;  %v1324_v43 = vmax.f32 %v6319_v20, %v1323_v9  ;;  %v1350_v57 = vrot.slane %v6406_v38, 4 }
 0x2d8   : > { %v1375_v6 = vadd.f32 %v1374_v5, %v1373_v55  ;;  %v2721_v13 = vadd.f32 %v2720_v28, %v2719_v23  ;;  %v2795_v15 = vadd.f32 %v2794_v61, %v2793_v33  ;;  %v2696_v62 = vmul.f32 1.442695, %v2695_v29 }
 0x2d9   : > { %v5093_v22 = vpop.eup %5092  ;;  %v3420_v7 = vrot.slane %v3419_v41, 2  ;;  %v2769_v11 = vrot.slane %v2768_v45, 1  ;;  %v1325_v18 = vrot.slane %v1324_v43, 2  ;;  %v1351_v44 = vadd.f32 %v6406_v38, %v1350_v57 }
 0x2da   : > { %5100 = vrcp.f32 %v1375_v6  ;;  %v2003_v17 = vmul.f32 %v5093_v22, %v6384_v59  ;;  %v2796_v26 = vrot.slane %v2795_v15, 1  ;;  %v8315_v5 = vsub.f32 %v6299_v49, %v6455_v3 }
 0x2db   : > { %v5095_v14 = vpop.eup %5094  ;;  %v3421_v9 = vadd.f32 %v3420_v7, %v3419_v41  ;;  %5102 = vpow2.f32 %v2696_v62  ;;  %v1326_v51 = vmax.f32 %v1324_v43, %v1325_v18  ;;  %v6509_v6 = vmax.f32 %v2768_v45, %v2769_v11 }
 0x2dc   : > { %v2743_v31 = vmul.f32 %v5095_v14, %v6434_v35  ;;  %v1976_v61 = vmul.f32 1.442695, %v8315_v5  ;;  %v5097_v55 = vpop.eup %5096  ;;  %v6505_v23 = vmul.f32 %v2003_v17, %v6299_v49  ;;  %5104 = vrcp.f32 %v2721_v13 }
 0x2dd   : > { %v2797_v33 = vadd.f32 %v2796_v26, %v2795_v15  ;;  %v3422_v28 = vrot.slane %v3421_v9, 1  ;;  %v2079_v29 = vmul.f32 %v5097_v55, %v6389_v21  ;;  %v1327_v35 = vrot.slane %v1326_v51, 1 }
 0x2de   : > { %v2744_v59 = vmul.f32 %v6202_v36, %v2743_v31  ;;  %v1352_v41 = vrot.slane %v1351_v44, 2  ;;  %v1399_v3 = vrot.slane %v6294_v4, 4  ;;  %v1426_v13 = vrot.slane %v6409_v32, 4 }
 0x2df   : > { %5106 = vrcp.f32 %v2797_v33  ;;  %v6512_v57 = vpop.eup %5098  ;;  %v3423_v49 = vadd.f32 %v3422_v28, %v3421_v9  ;;  %v6518_v43 = vmul.f32 %v2079_v29, %v6271_v12  ;;  %v1328_v21 = vmax.f32 %v1326_v51, %v1327_v35 }
 0x2e0   : > { %v6515_v17 = vadd.f32 %v6437_v27, %v2744_v59  ;;  %5108 = vpow2.f32 %v1976_v61  ;;  %v2054_v36 = vrot.slane %v6512_v57, 4  ;;  %v1353_v11 = vadd.f32 %v1352_v41, %v1351_v44 }
 0x2e1   : > { %v1400_v45 = vmax.f32 %v6294_v4, %v1399_v3  ;;  %5110 = vrcp.f32 %v3423_v49  ;;  %v3371_v15 = vrot.slane %v6322_v34, 4  ;;  %v3398_v22 = vrot.slane %v6412_v42, 4 }
 0x2e2   : > { %v2055_v27 = vadd.f32 %v6512_v57, %v2054_v36  ;;  %v2771_v7 = vsub.f32 %v6288_v53, %v6509_v6  ;;  %v1329_v12 = vsub.f32 %v6319_v20, %v1328_v21  ;;  %v1354_v62 = vrot.slane %v1353_v11, 1 }
 0x2e3   : > { %v1401_v18 = vrot.slane %v1400_v45, 2  ;;  %v1427_v14 = vadd.f32 %v6409_v32, %v1426_v13  ;;  %v3372_v26 = vmax.f32 %v6322_v34, %v3371_v15  ;;  %v3399_v44 = vadd.f32 %v6412_v42, %v3398_v22 }
 0x2e4   : > { %v5101_v31 = vpop.eup %5100  ;;  %v2056_v9 = vrot.slane %v2055_v27, 2  ;;  %v1330_v5 = vmul.f32 1.442695, %v1329_v12  ;;  %v1355_v61 = vadd.f32 %v1354_v62, %v1353_v11  ;;  %v3447_v55 = vrot.slane %v6301_v10, 4 }
 0x2e5   : > { %v6533_v33 = vpop.eup %5102  ;;  %v1377_v51 = vmul.f32 %v5101_v31, %v6464_v39  ;;  %v1402_v59 = vmax.f32 %v1400_v45, %v1401_v18  ;;  %v1428_v28 = vrot.slane %v1427_v14, 2  ;;  %v3373_v29 = vrot.slane %v3372_v26, 2 }
 0x2e6   : > { %v5105_v6 = vpop.eup %5104  ;;  %v2057_v35 = vadd.f32 %v2056_v9, %v2055_v27  ;;  %v2698_v41 = vrot.slane %v6533_v33, 4  ;;  %5112 = vpow2.f32 %v1330_v5  ;;  %v3400_v3 = vrot.slane %v3399_v44, 2 }
 0x2e7   : > { %v1378_v49 = vmul.f32 %v1377_v51, %v6207_v40  ;;  %v2723_v36 = vmul.f32 %v5105_v6, %v6393_v58  ;;  %5114 = vrcp.f32 %v1355_v61  ;;  %v1403_v21 = vrot.slane %v1402_v59, 1 }
 0x2e8   : > { %v2058_v13 = vrot.slane %v2057_v35, 1  ;;  %v2699_v15 = vadd.f32 %v6533_v33, %v2698_v41  ;;  %v1429_v39 = vadd.f32 %v1428_v28, %v1427_v14  ;;  %v3374_v45 = vmax.f32 %v3372_v26, %v3373_v29 }
 0x2e9   : > { %v5107_v11 = vpop.eup %5106  ;;  %v6543_v27 = vadd.f32 %v6471_v37, %v1378_v49  ;;  %v6546_v12 = vmul.f32 %v6316_v19, %v2723_v36  ;;  %v1404_v62 = vmax.f32 %v1402_v59, %v1403_v21  ;;  %v3401_v26 = vadd.f32 %v3400_v3, %v3399_v44 }
 0x2ea   : > { %v6540_v22 = vpop.eup %5108  ;;  %v2799_v40 = vmul.f32 %v5107_v11, %v6397_v24  ;;  %v2059_v58 = vadd.f32 %v2058_v13, %v2057_v35  ;;  %v2700_v18 = vrot.slane %v2699_v15, 2  ;;  %v1430_v31 = vrot.slane %v1429_v39, 1  ;;  %v8316_v11 = vld [vmem:[#allocation27_spill] sm:$0xff] }
 0x2eb   : > { %v3375_v9 = vrot.slane %v3374_v45, 1  ;;  %v5111_v5 = vpop.eup %5110  ;;  %v1405_v14 = vsub.f32 %v6294_v4, %v1404_v62  ;;  %v3448_v37 = vmax.f32 %v6301_v10, %v3447_v55  ;;  %v2772_v24 = vmul.f32 1.442695, %v2771_v7 }
 0x2ec   : > { %v6550_v61 = vmul.f32 %v6288_v53, %v2799_v40  ;;  %v3425_v51 = vmul.f32 %v5111_v5, %v6486_v48  ;;  %5116 = vrcp.f32 %v2059_v58  ;;  %v2701_v19 = vadd.f32 %v2700_v18, %v2699_v15 }
 0x2ed   : > { %v1431_v28 = vadd.f32 %v1430_v31, %v1429_v39  ;;  %v3376_v59 = vmax.f32 %v3374_v45, %v3375_v9  ;;  %v3402_v29 = vrot.slane %v3401_v26, 1  ;;  %v3449_v6 = vrot.slane %v3448_v37, 2 }
 0x2ee   : > { %v3426_v35 = vmul.f32 %v6213_v50, %v3425_v51  ;;  %v2702_v41 = vrot.slane %v2701_v19, 1  ;;  %v3474_v53 = vrot.slane %v6424_v30, 4  ;;  %v1406_v49 = vmul.f32 1.442695, %v1405_v14 }
 0x2ef   : > { %5118 = vrcp.f32 %v1431_v28  ;;  %v3377_v44 = vsub.f32 %v6322_v34, %v3376_v59  ;;  %v3403_v3 = vadd.f32 %v3402_v29, %v3401_v26  ;;  %v3450_v55 = vmax.f32 %v3448_v37, %v3449_v6  ;;  %v8317_v26 = vld [vmem:[#allocation25_spill] sm:$0xff] }
 0x2f0   : > { %v6558_v36 = vpop.eup %5112  ;;  %v6561_v48 = vadd.f32 %v6492_v2, %v3426_v35  ;;  %v2703_v7 = vadd.f32 %v2702_v41, %v2701_v19  ;;  %v3475_v21 = vadd.f32 %v6424_v30, %v3474_v53  ;;  %v2007_v13 = vrot.slane %v8316_v11, 4 }
 0x2f1   : > { %v5115_v50 = vpop.eup %5114  ;;  %v1332_v15 = vrot.slane %v6558_v36, 4  ;;  %v3378_v39 = vmul.f32 1.442695, %v3377_v44  ;;  %5120 = vrcp.f32 %v3403_v3  ;;  %v3451_v45 = vrot.slane %v3450_v55, 1 }
 0x2f2   : > { %5122 = vrcp.f32 %v2703_v7  ;;  %v1357_v40 = vmul.f32 %v5115_v50, %v6406_v38  ;;  %v3476_v62 = vrot.slane %v3475_v21, 2  ;;  %v2008_v58 = vmax.f32 %v8316_v11, %v2007_v13  ;;  %v8318_v50 = vld [vmem:[#allocation26_spill] sm:$0xff] }
 0x2f3   : > { %v1333_v2 = vadd.f32 %v6558_v36, %v1332_v15  ;;  %5124 = vpow2.f32 %v3378_v39  ;;  %v6569_v18 = vmax.f32 %v3450_v55, %v3451_v45  ;;  %v2034_v31 = vrot.slane %v6428_v46, 4 }
 0x2f4   : > { %v6573_v9 = vmul.f32 %v1357_v40, %v6319_v20  ;;  %v3477_v5 = vadd.f32 %v3476_v62, %v3475_v21  ;;  %v2009_v14 = vrot.slane %v2008_v58, 2  ;;  %v2083_v37 = vrot.slane %v8317_v26, 4 }
 0x2f5   : > { %5126 = vpow2.f32 %v2772_v24  ;;  %v1334_v51 = vrot.slane %v1333_v2, 2  ;;  %v2035_v38 = vadd.f32 %v6428_v46, %v2034_v31  ;;  %v2110_v19 = vrot.slane %v6440_v8, 4 }
 0x2f6   : > { %v5117_v28 = vpop.eup %5116  ;;  %5128 = vpow2.f32 %v1406_v49  ;;  %v3478_v59 = vrot.slane %v3477_v5, 1  ;;  %v2010_v29 = vmax.f32 %v2008_v58, %v2009_v14  ;;  %v2084_v6 = vmax.f32 %v8317_v26, %v2083_v37 }
 0x2f7   : > { %v2061_v35 = vmul.f32 %v5117_v28, %v6512_v57  ;;  %v1335_v20 = vadd.f32 %v1334_v51, %v1333_v2  ;;  %v3453_v41 = vsub.f32 %v6301_v10, %v6569_v18  ;;  %v2036_v53 = vrot.slane %v2035_v38, 2 }
 0x2f8   : > { %v3479_v24 = vadd.f32 %v3478_v59, %v3477_v5  ;;  %v2011_v3 = vrot.slane %v2010_v29, 1  ;;  %v2085_v55 = vrot.slane %v2084_v6, 2  ;;  %v2111_v7 = vadd.f32 %v6440_v8, %v2110_v19 }
 0x2f9   : > { %v5119_v44 = vpop.eup %5118  ;;  %v2062_v21 = vmul.f32 %v2061_v35, %v6217_v1  ;;  %v1336_v49 = vrot.slane %v1335_v20, 1  ;;  %v1256_v15 = vrot.slane %v8318_v50, 4  ;;  %v2037_v39 = vadd.f32 %v2036_v53, %v2035_v38 }
 0x2fa   : > { %v1433_v13 = vmul.f32 %v5119_v44, %v6409_v32  ;;  %5130 = vrcp.f32 %v3479_v24  ;;  %v2012_v57 = vmax.f32 %v2010_v29, %v2011_v3  ;;  %v2086_v45 = vmax.f32 %v2084_v6, %v2085_v55  ;;  %v8319_v44 = vld [vmem:[#allocation23_spill] sm:$0xff] }
 0x2fb   : > { %v5121_v40 = vpop.eup %5120  ;;  %v6587_v62 = vadd.f32 %v6518_v43, %v2062_v21  ;;  %v1337_v58 = vadd.f32 %v1336_v49, %v1335_v20  ;;  %v2112_v18 = vrot.slane %v2111_v7, 2  ;;  %v2038_v5 = vrot.slane %v2037_v39, 1 }
 0x2fc   : > { %v6590_v2 = vmul.f32 %v1433_v13, %v6294_v4  ;;  %v5123_v31 = vpop.eup %5122  ;;  %v3405_v1 = vmul.f32 %v5121_v40, %v6412_v42  ;;  %v2013_v32 = vsub.f32 %v8316_v11, %v2012_v57  ;;  %v2087_v14 = vrot.slane %v2086_v45, 1 }
 0x2fd   : > { %v6594_v37 = vpop.eup %5124  ;;  %v2705_v51 = vmul.f32 %v5123_v31, %v6533_v33  ;;  %5132 = vrcp.f32 %v1337_v58  ;;  %v2113_v38 = vadd.f32 %v2112_v18, %v2111_v7  ;;  %v1257_v43 = vadd.f32 %v8318_v50, %v1256_v15 }
 0x2fe   : > { %v3380_v19 = vrot.slane %v6594_v37, 4  ;;  %v6600_v4 = vmul.f32 %v6322_v34, %v3405_v1  ;;  %v2014_v28 = vmul.f32 1.442695, %v2013_v32  ;;  %v2039_v59 = vadd.f32 %v2038_v5, %v2037_v39 }
 0x2ff   : > { %v6602_v42 = vpop.eup %5126  ;;  %v2706_v29 = vmul.f32 %v6253_v52, %v2705_v51  ;;  %v2088_v6 = vmax.f32 %v2086_v45, %v2087_v14  ;;  %v2114_v35 = vrot.slane %v2113_v38, 1  ;;  %v1258_v20 = vrot.slane %v1257_v43, 2 }
 0x300   : > { %v6605_v53 = vpop.eup %5128  ;;  %v3381_v33 = vadd.f32 %v6594_v37, %v3380_v19  ;;  %5134 = vpow2.f32 %v2014_v28  ;;  %v1274_v24 = vrot.slane %v8319_v44, 4  ;;  %v1398_v3 = vmul.f32 0.5, %v6543_v27 }
 0x301   : > { %v6611_v34 = vadd.f32 %v6546_v12, %v2706_v29  ;;  %5136 = vrcp.f32 %v2039_v59  ;;  %v2089_v55 = vsub.f32 %v8317_v26, %v2088_v6  ;;  %v2115_v7 = vadd.f32 %v2114_v35, %v2113_v38  ;;  %v8321_v6 = vld [vmem:[#allocation28_spill] sm:$0xff] }
 0x302   : > { %v3382_v52 = vrot.slane %v3381_v33, 2  ;;  %v1259_v21 = vadd.f32 %v1258_v20, %v1257_v43  ;;  %v1275_v49 = vadd.f32 %v8319_v44, %v1274_v24  ;;  %v1439_v13 = vpack.c.bf16 %v1398_v3, %v1398_v3  ;;  %v8322_v20 = vld [vmem:[#allocation24_spill] sm:$0xff] }
 0x303   : > { %v3454_v15 = vmul.f32 1.442695, %v3453_v41  ;;  %v2090_v57 = vmul.f32 1.442695, %v2089_v55  ;;  %5138 = vrcp.f32 %v2115_v7  ;;  %v1294_v12 = vrot.slane %v6474_v16, 4 }
 0x304   : > { %v5131_v39 = vpop.eup %5130  ;;  %v3383_v45 = vadd.f32 %v3382_v52, %v3381_v33  ;;  %v1260_v40 = vrot.slane %v1259_v21, 1  ;;  %v1276_v27 = vrot.slane %v1275_v49, 2  ;;  %4759 = vmatprep.subr.msk.bf16.mxu1 %vm1481_vm1, %v1439_v13  ;;  %v8320_v58 = vrot.slane %v6450_v60, 1 }
 0x305   : > { %v3481_v31 = vmul.f32 %v5131_v39, %v6424_v30  ;;  %5140 = vpow2.f32 %v2090_v57  ;;  %v1408_v41 = vrot.slane %v6605_v53, 4  ;;  %v1295_v14 = vadd.f32 %v6474_v16, %v1294_v12 }
 0x306   : > { %v3338_v18 = vmax.f32 %v6450_v60, %v8320_v58  ;;  %v3384_v1 = vrot.slane %v3383_v45, 1  ;;  %v1261_v32 = vadd.f32 %v1260_v40, %v1259_v21  ;;  %v1277_v5 = vadd.f32 %v1276_v27, %v1275_v49 }
 0x307   : > { %v5133_v51 = vpop.eup %5132  ;;  %5142 = vpow2.f32 %v3454_v15  ;;  %v6624_v38 = vmul.f32 %v6301_v10, %v3481_v31  ;;  %v1409_v43 = vadd.f32 %v6605_v53, %v1408_v41  ;;  %v5668_v28 = vmov 0  }
 0x308   : > { %v1339_v19 = vmul.f32 %v5133_v51, %v6558_v36  ;;  %v3385_v60 = vadd.f32 %v3384_v1, %v3383_v45  ;;  %5144 = vrcp.f32 %v1261_v32  ;;  %v1278_v30 = vrot.slane %v1277_v5, 1  ;;  %1520 = vmatprep.mubr.bf16.mxu1 %v5668_v28 }
 0x309   : > { %v1296_v59 = vrot.slane %v1295_v14, 2  ;;  %v1410_v29 = vrot.slane %v1409_v43, 2  ;;  %v1940_v35 = vrot.slane %v8321_v6, 4  ;;  %v1958_v33 = vrot.slane %v8322_v20, 4 }
 0x30a   : > { %v6631_v24 = vpop.eup %5134  ;;  %v3339_v10 = vsub.f32 %v6292_v63, %v3338_v18  ;;  %v1340_v3 = vmul.f32 %v1339_v19, %v6255_v56  ;;  %5146 = vrcp.f32 %v3385_v60  ;;  %v1279_v36 = vadd.f32 %v1278_v30, %v1277_v5 }
 0x30b   : > { %v5137_v55 = vpop.eup %5136  ;;  %v2016_v7 = vrot.slane %v6631_v24, 4  ;;  %v1297_v52 = vadd.f32 %v1296_v59, %v1295_v14  ;;  %v1411_v21 = vadd.f32 %v1410_v29, %v1409_v43  ;;  %v1941_v49 = vadd.f32 %v8321_v6, %v1940_v35 }
 0x30c   : > { %v6638_v13 = vadd.f32 %v6573_v9, %v1340_v3  ;;  %v2041_v15 = vmul.f32 %v5137_v55, %v6428_v46  ;;  %5148 = vrcp.f32 %v1279_v36  ;;  %v1959_v57 = vadd.f32 %v8322_v20, %v1958_v33 }
 0x30d   : > { %v5139_v63 = vpop.eup %5138  ;;  %v2017_v56 = vadd.f32 %v6631_v24, %v2016_v7  ;;  %v1298_v39 = vrot.slane %v1297_v52, 1  ;;  %v1412_v45 = vrot.slane %v1411_v21, 1  ;;  %v1942_v40 = vrot.slane %v1941_v49, 2 }
 0x30e   : > { %v6644_v27 = vmul.f32 %v2041_v15, %v8316_v11  ;;  %v2117_v12 = vmul.f32 %v5139_v63, %v6440_v8  ;;  %v1960_v58 = vrot.slane %v1959_v57, 2  ;;  %v3340_v1 = vmul.f32 1.442695, %v3339_v10 }
 0x30f   : > { %v6647_v18 = vpop.eup %5140  ;;  %v2018_v9 = vrot.slane %v2017_v56, 2  ;;  %v1299_v31 = vadd.f32 %v1298_v39, %v1297_v52  ;;  %v1413_v46 = vadd.f32 %v1412_v45, %v1411_v21  ;;  %v1943_v41 = vadd.f32 %v1942_v40, %v1941_v49  ;;  %v8323_v52 = vld [vmem:[#allocation11_spill] sm:$0xff] }
 0x310   : > { %v6650_v32 = vmul.f32 %v2117_v12, %v8317_v26  ;;  %v2092_v5 = vrot.slane %v6647_v18, 4  ;;  %v1961_v14 = vadd.f32 %v1960_v58, %v1959_v57  ;;  %v1978_v30 = vrot.slane %v6540_v22, 4  ;;  %v8324_v12 = vld [vmem:[#allocation13_spill] sm:$0xff] }
 0x311   : > { %v6653_v51 = vpop.eup %5142  ;;  %v2019_v11 = vadd.f32 %v2018_v9, %v2017_v56  ;;  %5150 = vrcp.f32 %v1299_v31  ;;  %v1944_v43 = vrot.slane %v1943_v41, 1  ;;  %v2774_v35 = vrot.slane %v6602_v42, 4 }
 0x312   : > { %v5145_v8 = vpop.eup %5144  ;;  %5152 = vrcp.f32 %v1413_v46  ;;  %v2093_v19 = vadd.f32 %v6647_v18, %v2092_v5  ;;  %v1962_v60 = vrot.slane %v1961_v14, 1  ;;  %v1979_v36 = vadd.f32 %v6540_v22, %v1978_v30 }
 0x313   : > { %v2020_v59 = vrot.slane %v2019_v11, 1  ;;  %v1263_v29 = vmul.f32 %v5145_v8, %v8318_v50  ;;  %v1945_v26 = vadd.f32 %v1944_v43, %v1943_v41  ;;  %5154 = vpow2.f32 %v3340_v1 }
 0x314   : > { %v5147_v33 = vpop.eup %5146  ;;  %v2094_v10 = vrot.slane %v2093_v19, 2  ;;  %v1963_v3 = vadd.f32 %v1962_v60, %v1961_v14  ;;  %v1980_v57 = vrot.slane %v1979_v36, 2  ;;  %v2775_v50 = vadd.f32 %v6602_v42, %v2774_v35 }
 0x315   : > { %v3387_v55 = vmul.f32 %v5147_v33, %v6594_v37  ;;  %v2021_v7 = vadd.f32 %v2020_v59, %v2019_v11  ;;  %v1264_v21 = vmul.f32 %v1263_v29, %v8323_v52  ;;  %5156 = vrcp.f32 %v1945_v26  ;;  %v8325_v29 = vld [vmem:[#allocation16_spill] sm:$0xff] }
 0x316   : > { %v5149_v49 = vpop.eup %5148  ;;  %v2095_v15 = vadd.f32 %v2094_v10, %v2093_v19  ;;  %5158 = vrcp.f32 %v1963_v3  ;;  %v1981_v45 = vadd.f32 %v1980_v57, %v1979_v36  ;;  %v2776_v40 = vrot.slane %v2775_v50, 2 }
 0x317   : > { %v3388_v63 = vmul.f32 %v6259_v0, %v3387_v55  ;;  %5160 = vrcp.f32 %v2021_v7  ;;  %v1281_v56 = vmul.f32 %v5149_v49, %v8319_v44  ;;  %v2660_v9 = vrot.slane %v6445_v54, 4 }
 0x318   : > { %v2096_v39 = vrot.slane %v2095_v15, 1  ;;  %v3456_v31 = vrot.slane %v6653_v51, 4  ;;  %v1982_v41 = vrot.slane %v1981_v45, 1  ;;  %v2777_v1 = vadd.f32 %v2776_v40, %v2775_v50  ;;  %v8327_v40 = vld [vmem:[#allocation14_spill] sm:$0xff] }
 0x319   : > { %v6666_v37 = vadd.f32 %v6600_v4, %v3388_v63  ;;  %v1282_v58 = vmul.f32 %v1281_v56, %v8324_v12  ;;  %v2661_v14 = vadd.f32 %v6445_v54, %v2660_v9  ;;  %v8326_v56 = vld [vmem:[#allocation12_spill] sm:$0xff] }
 0x31a   : > { %v2097_v46 = vadd.f32 %v2096_v39, %v2095_v15  ;;  %v3457_v44 = vadd.f32 %v6653_v51, %v3456_v31  ;;  %v1983_v4 = vadd.f32 %v1982_v41, %v1981_v45  ;;  %v2778_v8 = vrot.slane %v2777_v1, 1 }
 0x31b   : > { %v5151_v5 = vpop.eup %5150  ;;  %v1283_v0 = vadd.f32 %v1282_v58, %v1264_v21  ;;  %v2662_v30 = vrot.slane %v2661_v14, 2 }
 0x31c   : > { %v5153_v11 = vpop.eup %5152  ;;  %v1301_v43 = vmul.f32 %v5151_v5, %v6474_v16  ;;  %5162 = vrcp.f32 %v2097_v46  ;;  %v2779_v35 = vadd.f32 %v2778_v8, %v2777_v1  ;;  %v3458_v33 = vrot.slane %v3457_v44, 2 }
 0x31d   : > { %v1284_v19 = vmul.f32 0.5, %v1283_v0  ;;  %v1415_v60 = vmul.f32 %v5153_v11, %v6605_v53  ;;  %v6675_v59 = vpop.eup %5154  ;;  %5164 = vrcp.f32 %v1983_v4  ;;  %v2663_v55 = vadd.f32 %v2662_v30, %v2661_v14  ;;  %v8329_v11 = vld [vmem:[#allocation21_spill] sm:$0xff] }
 0x31e   : > { %v1302_v26 = vmul.f32 %v1301_v43, %v8325_v29  ;;  %5166 = vrcp.f32 %v2779_v35  ;;  %v3459_v53 = vadd.f32 %v3458_v33, %v3457_v44  ;;  %v3342_v46 = vrot.slane %v6675_v59, 4  ;;  %v8331_v33 = vld [vmem:[#allocation17_spill] sm:$0xff] }
 0x31f   : > { %v5157_v10 = vpop.eup %5156  ;;  %v1437_v3 = vpack.c.bf16 %v1284_v19, %v1284_v19  ;;  %v1416_v36 = vmul.f32 %v1415_v60, %v6234_v25  ;;  %v2664_v57 = vrot.slane %v2663_v55, 1  ;;  %v8330_v60 = vld [vmem:[#allocation19_spill] sm:$0xff] }
 0x320   : > { %v5159_v16 = vpop.eup %5158  ;;  %v1321_v7 = vadd.f32 %v6458_v47, %v1302_v26  ;;  %v1947_v52 = vmul.f32 %v5157_v10, %v8321_v6  ;;  %v3460_v39 = vrot.slane %v3459_v53, 1  ;;  %v8328_v6 = vld [vmem:[#allocation22_spill] sm:$0xff]  ;;  %v3343_v5 = vadd.f32 %v6675_v59, %v3342_v46 }
 0x321   : > { %v5161_v21 = vpop.eup %5160  ;;  %1440 = vxpose.xlu0.c.b16.start.end [1/1] (short) %v1437_v3, 128  ;;  %v1435_v49 = vadd.f32 %v6590_v2, %v1416_v36  ;;  %v1965_v15 = vmul.f32 %v5159_v16, %v8322_v20  ;;  %v2665_v12 = vadd.f32 %v2664_v57, %v2663_v55  ;;  %v8332_v16 = vld [vmem:[#allocation15_spill] sm:$0xff] }
 0x322   : > { %v2023_v50 = vmul.f32 %v5161_v21, %v6631_v24  ;;  %v1322_v63 = vmul.f32 0.5, %v1321_v7  ;;  %v1948_v25 = vmul.f32 %v1947_v52, %v8326_v56  ;;  %v3461_v31 = vadd.f32 %v3460_v39, %v3459_v53  ;;  %v8334_v53 = vld [vmem:[#allocation31_spill] sm:$0xff] }
 0x323   : > { %v1436_v45 = vmul.f32 0.5, %v1435_v49  ;;  %v1966_v47 = vmul.f32 %v1965_v15, %v8327_v40  ;;  %5168 = vrcp.f32 %v2665_v12  ;;  %v3344_v44 = vrot.slane %v3343_v5, 2  ;;  %v8335_v15 = vld [vmem:[#allocation18_spill] sm:$0xff] }
 0x324   : > { %v2024_v58 = vmul.f32 %v2023_v50, %v8328_v6  ;;  %v1438_v9 = vpack.c.bf16 %v1322_v63, %v1322_v63  ;;  %5170 = vrcp.f32 %v3461_v31  ;;  %v8336_v50 = vld [vmem:[#allocation32_spill] sm:$0xff] }
 0x325   : > { %v1874_v2 = vpack.c.bf16 %v1436_v45, %v1436_v45  ;;  %v6688_v41 = vadd.f32 %v1966_v47, %v1948_v25  ;;  %v3345_v19 = vadd.f32 %v3344_v44, %v3343_v5 }
 0x326   : > { %v5163_v20 = vpop.eup %5162  ;;  %v6691_v24 = vadd.f32 %v6644_v27, %v2024_v58  ;;  %v1483_v1 = vsel %vm1481_vm1, %v1438_v9, 0 }
 0x327   : > { %1489 = vmatpush1.bf16.msra.mxu1 %v1483_v1  ;;  %1923 = vmatprep.mubr.bf16.mxu0 %v1874_v2  ;;  %v2099_v0 = vmul.f32 %v5163_v20, %v6647_v18  ;;  %v5165_v14 = vpop.eup %5164  ;;  %v3346_v26 = vrot.slane %v3345_v19, 1 }
 0x328   : > { %v1985_v4 = vmul.f32 %v5165_v14, %v6540_v22  ;;  %v5167_v8 = vpop.eup %5166 }
 0x329   : > { %v2100_v43 = vmul.f32 %v2099_v0, %v8329_v11  ;;  %v2781_v29 = vmul.f32 %v5167_v8, %v6602_v42  ;;  %v3347_v10 = vadd.f32 %v3346_v26, %v3345_v19  ;;  %v8333_v42 = vld [vmem:[#allocation20_spill] sm:$0xff] }
 0x32a   : > { %v1986_v30 = vmul.f32 %v1985_v4, %v8330_v60 }
 0x32b   : > { %v2119_v27 = vadd.f32 %v6650_v32, %v2100_v43  ;;  %v2782_v18 = vmul.f32 %v8331_v33, %v2781_v29  ;;  %5172 = vrcp.f32 %v3347_v10 }
 0x32c   : > { %v6702_v35 = vadd.f32 %v6505_v23, %v1986_v30 }
 0x32d   : > { %v5169_v3 = vpop.eup %5168  ;;  %v6706_v36 = vadd.f32 %v6550_v61, %v2782_v18  ;;  %v2120_v45 = vmul.f32 0.5, %v2119_v27 }
 0x32e   : > { %v5171_v22 = vpop.eup %5170  ;;  %v2667_v55 = vmul.f32 %v5169_v3, %v6445_v54 }
 0x32f   : > { %v3463_v32 = vmul.f32 %v5171_v22, %v6653_v51  ;;  %v2556_v47 = vpack.c.bf16 %v2120_v45, %v2120_v45 }
 0x330   : > { %v2668_v7 = vmul.f32 %v8332_v16, %v2667_v55 }
 0x331   : > { %v3464_v52 = vmul.f32 %v8333_v42, %v3463_v32 }
 0x332   : > { %v6713_v23 = vadd.f32 %v8334_v53, %v2668_v7 }
 0x333   : > { %v6716_v21 = vadd.f32 %v6624_v38, %v3464_v52 }
 0x335   : > { %v5173_v49 = vpop.eup %5172 }
 0x336   : > { %v3349_v61 = vmul.f32 %v5173_v49, %v6675_v59 }
 0x338   : > { %v3350_v57 = vmul.f32 %v8335_v15, %v3349_v61 }
 0x33a   : > { %v6721_v54 = vadd.f32 %v8336_v50, %v3350_v57 }
 0x387   : > { %v1448_v51 = vpop.trf.xlu0 }
 0x388   : > { %4760 = vmatmul.mubr.msk.bf16.vlgmr.msra.gmra.mrb[16].mxu1 %vm1456_vm2, %v1448_v51 }
 0x389   : > { %1530 = vmatprep.mubr.bf16.mxu1 %v5668_v28 }
 0x38b   : > { %v1449_v63 = vpop.trf.xlu0 }
 0x38f   : > { %v1450_v38 = vpop.trf.xlu0 }
 0x390   : > { %4761 = vmatmul.mubr.msk.bf16.gmra.mrb[20].mxu1 %vm1456_vm2, %v1449_v63 }
 0x391   : > { %1540 = vmatprep.mubr.bf16.mxu1 %v5668_v28 }
 0x393   : > { %v1451_v59 = vpop.trf.xlu0 }
 0x397   : > { %v1452_v56 = vpop.trf.xlu0 }
 0x398   : > { %4762 = vmatmul.mubr.msk.bf16.gmra.mrb[24].mxu1 %vm1456_vm2, %v1450_v38 }
 0x399   : > { %1550 = vmatprep.mubr.bf16.mxu1 %v5668_v28 }
 0x39b   : > { %v1453_v25 = vpop.trf.xlu0 }
 0x39f   : > { %v1454_v39 = vpop.trf.xlu0 }
 0x3a0   : > { %4763 = vmatmul.mubr.msk.bf16.gmra.mrb[28].mxu1 %vm1456_vm2, %v1451_v59 }
 0x3a1   : > { %1560 = vmatprep.mubr.bf16.mxu1 %v5668_v28 }
 0x3a3   : > { %v1455_v40 = vpop.trf.xlu0 }
 0x3a8   : > { %4764 = vmatmul.mubr.msk.bf16.gmra.mrb[32].mxu1 %vm1456_vm2, %v1452_v56 }
 0x3a9   : > { %1570 = vmatprep.mubr.bf16.mxu1 %v5668_v28 }
 0x3b0   : > { %4765 = vmatmul.mubr.msk.bf16.gmra.mrb[36].mxu1 %vm1456_vm2, %v1453_v25 }
 0x3b1   : > { %1580 = vmatprep.mubr.bf16.mxu1 %v5668_v28 }
 0x3b8   : > { %4766 = vmatmul.mubr.msk.bf16.gmra.mrb[40].mxu1 %vm1456_vm2, %v1454_v39 }
 0x3b9   : > { %1590 = vmatprep.mubr.bf16.mxu1 %v5668_v28 }
 0x3c0   : > { %4767 = vmatmul.mubr.msk.bf16.gmra.mrb[44].mxu1 %vm1456_vm2, %v1455_v40 }
 0x3c1   : > { %2605 = vmatprep.mubr.bf16.mxu1 %v2556_v47 }
 0x45b   : > { %v1522_v12 = vpop.f32.mrb[16].mxu1 }
 0x45c   : > { %v6738_v6 = vmul.f32 0.35355338, %v1522_v12  ;;  %v1524_v58 = vpop.f32.mrb[17].mxu1 }
 0x45d   : > { %v6740_v9 = vmul.f32 0.35355338, %v1524_v58  ;;  %v1526_v31 = vpop.f32.mrb[18].mxu1 }
 0x45e   : > { %v1528_v46 = vpop.f32.mrb[19].mxu1  ;;  %v6742_v2 = vmul.f32 0.35355338, %v1526_v31 }
 0x45f   : > { %v6744_v20 = vmul.f32 0.35355338, %v1528_v46  ;;  %v1633_v1 = vmax.f32 %v6738_v6, %v6740_v9 }
 0x461   : > { %1634 = vmax.xlane.f32.xlu1 %v1633_v1  ;;  %v1636_v0 = vmax.f32 %v6742_v2, %v6744_v20 }
 0x463   : > { %v1532_v5 = vpop.f32.mrb[20].mxu1 }
 0x464   : > { %v6750_v14 = vmul.f32 0.35355338, %v1532_v5  ;;  %v1534_v44 = vpop.f32.mrb[21].mxu1 }
 0x465   : > { %v6752_v11 = vmul.f32 0.35355338, %v1534_v44  ;;  %1637 = vmax.xlane.f32.xlu1 %v1636_v0  ;;  %v1536_v43 = vpop.f32.mrb[22].mxu1 }
 0x466   : > { %v1538_v4 = vpop.f32.mrb[23].mxu1  ;;  %v6754_v8 = vmul.f32 0.35355338, %v1536_v43 }
 0x467   : > { %v6756_v19 = vmul.f32 0.35355338, %v1538_v4  ;;  %v1639_v27 = vmax.f32 %v6750_v14, %v6752_v11 }
 0x469   : > { %1640 = vmax.xlane.f32.xlu1 %v1639_v27  ;;  %v1642_v30 = vmax.f32 %v6754_v8, %v6756_v19 }
 0x46b   : > { %v1542_v60 = vpop.f32.mrb[24].mxu1 }
 0x46c   : > { %v6762_v29 = vmul.f32 0.35355338, %v1542_v60  ;;  %v1544_v26 = vpop.f32.mrb[25].mxu1 }
 0x46d   : > { %v6764_v33 = vmul.f32 0.35355338, %v1544_v26  ;;  %1643 = vmax.xlane.f32.xlu1 %v1642_v30  ;;  %v1546_v18 = vpop.f32.mrb[26].mxu1 }
 0x46e   : > { %v1548_v10 = vpop.f32.mrb[27].mxu1  ;;  %v6766_v3 = vmul.f32 0.35355338, %v1546_v18 }
 0x46f   : > { %v6768_v22 = vmul.f32 0.35355338, %v1548_v10  ;;  %v1645_v55 = vmax.f32 %v6762_v29, %v6764_v33 }
 0x471   : > { %1646 = vmax.xlane.f32.xlu1 %v1645_v55  ;;  %v1648_v16 = vmax.f32 %v6766_v3, %v6768_v22 }
 0x473   : > { %v1552_v32 = vpop.f32.mrb[28].mxu1 }
 0x474   : > { %v6774_v7 = vmul.f32 0.35355338, %v1552_v32  ;;  %v1554_v42 = vpop.f32.mrb[29].mxu1 }
 0x475   : > { %v6776_v52 = vmul.f32 0.35355338, %v1554_v42  ;;  %1649 = vmax.xlane.f32.xlu1 %v1648_v16  ;;  %v1556_v53 = vpop.f32.mrb[30].mxu1 }
 0x476   : > { %v1558_v49 = vpop.f32.mrb[31].mxu1  ;;  %v6778_v61 = vmul.f32 0.35355338, %v1556_v53 }
 0x477   : > { %v6780_v15 = vmul.f32 0.35355338, %v1558_v49  ;;  %v1651_v57 = vmax.f32 %v6774_v7, %v6776_v52 }
 0x479   : > { %1652 = vmax.xlane.f32.xlu1 %v1651_v57  ;;  %v1654_v51 = vmax.f32 %v6778_v61, %v6780_v15 }
 0x47b   : > { %v1562_v50 = vpop.f32.mrb[32].mxu1 }
 0x47c   : > { %v6786_v63 = vmul.f32 0.35355338, %v1562_v50  ;;  %v1564_v38 = vpop.f32.mrb[33].mxu1 }
 0x47d   : > { %v6788_v59 = vmul.f32 0.35355338, %v1564_v38  ;;  %1655 = vmax.xlane.f32.xlu1 %v1654_v51  ;;  %v1566_v56 = vpop.f32.mrb[34].mxu1 }
 0x47e   : > { %v1568_v25 = vpop.f32.mrb[35].mxu1  ;;  %v6790_v39 = vmul.f32 0.35355338, %v1566_v56 }
 0x47f   : > { %v6792_v45 = vmul.f32 0.35355338, %v1568_v25  ;;  %v1657_v40 = vmax.f32 %v6786_v63, %v6788_v59 }
 0x481   : > { %1658 = vmax.xlane.f32.xlu1 %v1657_v40  ;;  %v1660_v12 = vmax.f32 %v6790_v39, %v6792_v45 }
 0x483   : > { %v1572_v47 = vpop.f32.mrb[36].mxu1 }
 0x484   : > { %v6798_v58 = vmul.f32 0.35355338, %v1572_v47  ;;  %v1574_v31 = vpop.f32.mrb[37].mxu1 }
 0x485   : > { %v6800_v46 = vmul.f32 0.35355338, %v1574_v31  ;;  %1661 = vmax.xlane.f32.xlu1 %v1660_v12  ;;  %v1576_v1 = vpop.f32.mrb[38].mxu1 }
 0x486   : > { %v1578_v5 = vpop.f32.mrb[39].mxu1  ;;  %v6802_v0 = vmul.f32 0.35355338, %v1576_v1 }
 0x487   : > { %v6804_v44 = vmul.f32 0.35355338, %v1578_v5  ;;  %v1663_v43 = vmax.f32 %v6798_v58, %v6800_v46 }
 0x489   : > { %1664 = vmax.xlane.f32.xlu1 %v1663_v43  ;;  %v1666_v27 = vmax.f32 %v6802_v0, %v6804_v44 }
 0x48b   : > { %v1582_v4 = vpop.f32.mrb[40].mxu1 }
 0x48c   : > { %v6810_v60 = vmul.f32 0.35355338, %v1582_v4  ;;  %v1584_v30 = vpop.f32.mrb[41].mxu1 }
 0x48d   : > { %v6812_v26 = vmul.f32 0.35355338, %v1584_v30  ;;  %1667 = vmax.xlane.f32.xlu1 %v1666_v27  ;;  %v1586_v18 = vpop.f32.mrb[42].mxu1 }
 0x48e   : > { %v6814_v10 = vmul.f32 0.35355338, %v1586_v18  ;;  %v1588_v55 = vpop.f32.mrb[43].mxu1 }
 0x48f   : > { %v6816_v32 = vmul.f32 0.35355338, %v1588_v55  ;;  %v1669_v16 = vmax.f32 %v6810_v60, %v6812_v26 }
 0x491   : > { %1670 = vmax.xlane.f32.xlu0 %v1669_v16  ;;  %v1672_v42 = vmax.f32 %v6814_v10, %v6816_v32 }
 0x493   : > { %1673 = vmax.xlane.f32.xlu1 %v1672_v42  ;;  %v1592_v53 = vpop.f32.mrb[44].mxu1 }
 0x494   : > { %v6822_v49 = vmul.f32 0.35355338, %v1592_v53  ;;  %v1594_v57 = vpop.f32.mrb[45].mxu1 }
 0x495   : > { %v6824_v50 = vmul.f32 0.35355338, %v1594_v57  ;;  %v1596_v51 = vpop.f32.mrb[46].mxu1 }
 0x496   : > { %v1598_v38 = vpop.f32.mrb[47].mxu1  ;;  %v6826_v56 = vmul.f32 0.35355338, %v1596_v51 }
 0x497   : > { %v6828_v25 = vmul.f32 0.35355338, %v1598_v38  ;;  %v1675_v40 = vmax.f32 %v6822_v49, %v6824_v50 }
 0x499   : > { %1676 = vmax.xlane.f32.xlu1 %v1675_v40  ;;  %v1678_v47 = vmax.f32 %v6826_v56, %v6828_v25 }
 0x49d   : > { %1679 = vmax.xlane.f32.xlu1 %v1678_v47 }
 0x4ee   : > { %v1635_v12 = vpop.xlane.xlu1 %1634 }
 0x4ef   : > { %v1681_v31 = vsub.f32 %v6738_v6, %v1635_v12  ;;  %v1682_v1 = vsub.f32 %v6740_v9, %v1635_v12 }
 0x4f1   : > { %v1713_v5 = vmul.f32 1.442695, %v1681_v31  ;;  %v1715_v43 = vmul.f32 1.442695, %v1682_v1 }
 0x4f2   : > { %v1638_v4 = vpop.xlane.xlu1 %1637 }
 0x4f3   : > { %5174 = vpow2.f32 %v1713_v5  ;;  %v1683_v27 = vsub.f32 %v6742_v2, %v1638_v4  ;;  %v1684_v30 = vsub.f32 %v6744_v20, %v1638_v4 }
 0x4f4   : > { %5176 = vpow2.f32 %v1715_v43 }
 0x4f5   : > { %v1717_v18 = vmul.f32 1.442695, %v1683_v27  ;;  %v1719_v55 = vmul.f32 1.442695, %v1684_v30 }
 0x4f6   : > { %v1641_v16 = vpop.xlane.xlu1 %1640 }
 0x4f7   : > { %5178 = vpow2.f32 %v1717_v18  ;;  %v1685_v42 = vsub.f32 %v6750_v14, %v1641_v16  ;;  %v1686_v53 = vsub.f32 %v6752_v11, %v1641_v16 }
 0x4f8   : > { %5180 = vpow2.f32 %v1719_v55 }
 0x4f9   : > { %v1721_v6 = vmul.f32 1.442695, %v1685_v42  ;;  %v1723_v9 = vmul.f32 1.442695, %v1686_v53 }
 0x4fa   : > { %v1644_v57 = vpop.xlane.xlu1 %1643 }
 0x4fb   : > { %5182 = vpow2.f32 %v1721_v6  ;;  %v1687_v51 = vsub.f32 %v6754_v8, %v1644_v57  ;;  %v1688_v2 = vsub.f32 %v6756_v19, %v1644_v57 }
 0x4fc   : > { %5184 = vpow2.f32 %v1723_v9 }
 0x4fd   : > { %v6842_v20 = vpop.eup %5174  ;;  %v1725_v38 = vmul.f32 1.442695, %v1687_v51  ;;  %v1727_v40 = vmul.f32 1.442695, %v1688_v2 }
 0x4fe   : > { %v6844_v47 = vpop.eup %5176  ;;  %v1647_v12 = vpop.xlane.xlu1 %1646 }
 0x4ff   : > { %5186 = vpow2.f32 %v1725_v38  ;;  %v1689_v14 = vsub.f32 %v6762_v29, %v1647_v12  ;;  %v1690_v11 = vsub.f32 %v6764_v33, %v1647_v12  ;;  %v1777_v31 = vadd.f32 %v6844_v47, %v6842_v20 }
 0x500   : > { %5188 = vpow2.f32 %v1727_v40 }
 0x501   : > { %v6850_v8 = vpop.eup %5178  ;;  %v1729_v19 = vmul.f32 1.442695, %v1689_v14  ;;  %v1731_v1 = vmul.f32 1.442695, %v1690_v11  ;;  %1778 = vadd.xlane.f32.xlu1 %v1777_v31 }
 0x502   : > { %v6852_v5 = vpop.eup %5180  ;;  %v1650_v43 = vpop.xlane.xlu1 %1649 }
 0x503   : > { %5190 = vpow2.f32 %v1729_v19  ;;  %v1691_v4 = vsub.f32 %v6766_v3, %v1650_v43  ;;  %v1692_v27 = vsub.f32 %v6768_v22, %v1650_v43  ;;  %v1780_v29 = vadd.f32 %v6852_v5, %v6850_v8 }
 0x504   : > { %5192 = vpow2.f32 %v1731_v1 }
 0x505   : > { %v6858_v33 = vpop.eup %5182  ;;  %v1733_v30 = vmul.f32 1.442695, %v1691_v4  ;;  %v1735_v18 = vmul.f32 1.442695, %v1692_v27  ;;  %1781 = vadd.xlane.f32.xlu1 %v1780_v29 }
 0x506   : > { %v6860_v55 = vpop.eup %5184  ;;  %v1653_v16 = vpop.xlane.xlu1 %1652 }
 0x507   : > { %5194 = vpow2.f32 %v1733_v30  ;;  %v1693_v42 = vsub.f32 %v6774_v7, %v1653_v16  ;;  %v1694_v53 = vsub.f32 %v6776_v52, %v1653_v16  ;;  %v1783_v3 = vadd.f32 %v6860_v55, %v6858_v33 }
 0x508   : > { %5196 = vpow2.f32 %v1735_v18 }
 0x509   : > { %v6866_v22 = vpop.eup %5186  ;;  %v1737_v6 = vmul.f32 1.442695, %v1693_v42  ;;  %v1739_v9 = vmul.f32 1.442695, %v1694_v53  ;;  %1784 = vadd.xlane.f32.xlu1 %v1783_v3 }
 0x50a   : > { %v6868_v57 = vpop.eup %5188  ;;  %v1656_v51 = vpop.xlane.xlu1 %1655 }
 0x50b   : > { %5198 = vpow2.f32 %v1737_v6  ;;  %v1695_v2 = vsub.f32 %v6778_v61, %v1656_v51  ;;  %v1696_v38 = vsub.f32 %v6780_v15, %v1656_v51  ;;  %v1786_v7 = vadd.f32 %v6868_v57, %v6866_v22 }
 0x50c   : > { %5200 = vpow2.f32 %v1739_v9 }
 0x50d   : > { %v6874_v52 = vpop.eup %5190  ;;  %v1741_v40 = vmul.f32 1.442695, %v1695_v2  ;;  %v1743_v12 = vmul.f32 1.442695, %v1696_v38  ;;  %1787 = vadd.xlane.f32.xlu1 %v1786_v7 }
 0x50e   : > { %v6876_v14 = vpop.eup %5192  ;;  %v1659_v11 = vpop.xlane.xlu1 %1658 }
 0x50f   : > { %5202 = vpow2.f32 %v1741_v40  ;;  %v1697_v31 = vsub.f32 %v6786_v63, %v1659_v11  ;;  %v1698_v19 = vsub.f32 %v6788_v59, %v1659_v11  ;;  %v1789_v61 = vadd.f32 %v6876_v14, %v6874_v52 }
 0x510   : > { %5204 = vpow2.f32 %v1743_v12 }
 0x511   : > { %v6882_v15 = vpop.eup %5194  ;;  %v1745_v1 = vmul.f32 1.442695, %v1697_v31  ;;  %v1747_v43 = vmul.f32 1.442695, %v1698_v19  ;;  %1790 = vadd.xlane.f32.xlu1 %v1789_v61 }
 0x512   : > { %v6884_v4 = vpop.eup %5196  ;;  %v1662_v27 = vpop.xlane.xlu1 %1661 }
 0x513   : > { %5206 = vpow2.f32 %v1745_v1  ;;  %v1699_v29 = vsub.f32 %v6790_v39, %v1662_v27  ;;  %v1700_v30 = vsub.f32 %v6792_v45, %v1662_v27  ;;  %v1792_v63 = vadd.f32 %v6884_v4, %v6882_v15 }
 0x514   : > { %5208 = vpow2.f32 %v1747_v43 }
 0x515   : > { %v6890_v59 = vpop.eup %5198  ;;  %v1749_v18 = vmul.f32 1.442695, %v1699_v29  ;;  %v1751_v16 = vmul.f32 1.442695, %v1700_v30  ;;  %1793 = vadd.xlane.f32.xlu1 %v1792_v63 }
 0x516   : > { %v6892_v42 = vpop.eup %5200  ;;  %v1665_v53 = vpop.xlane.xlu1 %1664 }
 0x517   : > { %5210 = vpow2.f32 %v1749_v18  ;;  %v1701_v3 = vsub.f32 %v6798_v58, %v1665_v53  ;;  %v1702_v6 = vsub.f32 %v6800_v46, %v1665_v53  ;;  %v1795_v39 = vadd.f32 %v6892_v42, %v6890_v59 }
 0x518   : > { %5212 = vpow2.f32 %v1751_v16 }
 0x519   : > { %v6898_v45 = vpop.eup %5202  ;;  %v1753_v9 = vmul.f32 1.442695, %v1701_v3  ;;  %v1755_v51 = vmul.f32 1.442695, %v1702_v6  ;;  %1796 = vadd.xlane.f32.xlu1 %v1795_v39 }
 0x51a   : > { %v6900_v2 = vpop.eup %5204  ;;  %v1668_v38 = vpop.xlane.xlu1 %1667 }
 0x51b   : > { %5214 = vpow2.f32 %v1753_v9  ;;  %v1703_v7 = vsub.f32 %v6802_v0, %v1668_v38  ;;  %v1704_v40 = vsub.f32 %v6804_v44, %v1668_v38  ;;  %v1798_v58 = vadd.f32 %v6900_v2, %v6898_v45 }
 0x51c   : > { %5216 = vpow2.f32 %v1755_v51 }
 0x51d   : > { %v6906_v46 = vpop.eup %5206  ;;  %v1757_v12 = vmul.f32 1.442695, %v1703_v7  ;;  %v1759_v11 = vmul.f32 1.442695, %v1704_v40  ;;  %1799 = vadd.xlane.f32.xlu0 %v1798_v58 }
 0x51e   : > { %v6908_v31 = vpop.eup %5208  ;;  %v1671_v19 = vpop.xlane.xlu0 %1670 }
 0x51f   : > { %5218 = vpow2.f32 %v1757_v12  ;;  %v1705_v61 = vsub.f32 %v6810_v60, %v1671_v19  ;;  %v1706_v1 = vsub.f32 %v6812_v26, %v1671_v19  ;;  %v1801_v0 = vadd.f32 %v6908_v31, %v6906_v46 }
 0x520   : > { %5220 = vpow2.f32 %v1759_v11  ;;  %v1674_v44 = vpop.xlane.xlu1 %1673 }
 0x521   : > { %v6914_v43 = vpop.eup %5210  ;;  %v1761_v27 = vmul.f32 1.442695, %v1705_v61  ;;  %v1763_v29 = vmul.f32 1.442695, %v1706_v1  ;;  %v1707_v30 = vsub.f32 %v6814_v10, %v1674_v44  ;;  %v1708_v63 = vsub.f32 %v6816_v32, %v1674_v44  ;;  %1802 = vadd.xlane.f32.xlu1 %v1801_v0 }
 0x522   : > { %v6918_v18 = vpop.eup %5212 }
 0x523   : > { %5222 = vpow2.f32 %v1761_v27  ;;  %v1765_v60 = vmul.f32 1.442695, %v1707_v30  ;;  %v1767_v16 = vmul.f32 1.442695, %v1708_v63  ;;  %v1804_v26 = vadd.f32 %v6918_v18, %v6914_v43 }
 0x524   : > { %5224 = vpow2.f32 %v1763_v29 }
 0x525   : > { %v6922_v53 = vpop.eup %5214  ;;  %5226 = vpow2.f32 %v1765_v60  ;;  %1805 = vadd.xlane.f32.xlu0 %v1804_v26 }
 0x526   : > { %v6924_v3 = vpop.eup %5216  ;;  %5228 = vpow2.f32 %v1767_v16  ;;  %v1677_v10 = vpop.xlane.xlu1 %1676  ;;  %v1968_v16 = vmul.f32 0.5, %v6688_v41 }
 0x527   : > { %v1709_v32 = vsub.f32 %v6822_v49, %v1677_v10  ;;  %v1710_v6 = vsub.f32 %v6824_v50, %v1677_v10  ;;  %v1807_v39 = vadd.f32 %v6924_v3, %v6922_v53 }
 0x528   : > { %v2121_v26 = vpack.c.bf16 %v1968_v16, %v1968_v16 }
 0x529   : > { %v6930_v9 = vpop.eup %5218  ;;  %v1769_v51 = vmul.f32 1.442695, %v1709_v32  ;;  %v1771_v38 = vmul.f32 1.442695, %v1710_v6  ;;  %1808 = vadd.xlane.f32.xlu1 %v1807_v39 }
 0x52a   : > { %v6932_v7 = vpop.eup %5220  ;;  %v1680_v40 = vpop.xlane.xlu1 %1679 }
 0x52b   : > { %5230 = vpow2.f32 %v1769_v51  ;;  %v1711_v58 = vsub.f32 %v6826_v56, %v1680_v40  ;;  %v1712_v12 = vsub.f32 %v6828_v25, %v1680_v40  ;;  %v1810_v49 = vadd.f32 %v6932_v7, %v6930_v9 }
 0x52c   : > { %5232 = vpow2.f32 %v1771_v38 }
 0x52d   : > { %v6938_v50 = vpop.eup %5222  ;;  %v1773_v11 = vmul.f32 1.442695, %v1711_v58  ;;  %v1775_v19 = vmul.f32 1.442695, %v1712_v12  ;;  %1811 = vadd.xlane.f32.xlu0 %v1810_v49 }
 0x52e   : > { %v6940_v61 = vpop.eup %5224 }
 0x52f   : > { %v6942_v1 = vpop.eup %5226  ;;  %5234 = vpow2.f32 %v1773_v11  ;;  %v1813_v0 = vadd.f32 %v6940_v61, %v6938_v50 }
 0x530   : > { %v6946_v56 = vpop.eup %5228  ;;  %5236 = vpow2.f32 %v1775_v19 }
 0x531   : > { %1814 = vadd.xlane.f32.xlu1 %v1813_v0  ;;  %v1816_v25 = vadd.f32 %v6946_v56, %v6942_v1 }
 0x533   : > { %1817 = vadd.xlane.f32.xlu0 %v1816_v25 }
 0x535   : > { %v6950_v44 = vpop.eup %5230 }
 0x536   : > { %v6952_v27 = vpop.eup %5232 }
 0x537   : > { %v1819_v29 = vadd.f32 %v6952_v27, %v6950_v44 }
 0x539   : > { %v6956_v30 = vpop.eup %5234  ;;  %1820 = vadd.xlane.f32.xlu1 %v1819_v29 }
 0x53a   : > { %v6958_v63 = vpop.eup %5236 }
 0x53b   : > { %v1822_v60 = vadd.f32 %v6958_v63, %v6956_v30 }
 0x53d   : > { %1823 = vadd.xlane.f32.xlu0 %v1822_v60 }
 0x566   : > { %2124 = vxpose.xlu1.c.b16.start.end [1/1] (short) %v2121_v26, 128 }
 0x58e   : > { %v1779_v10 = vpop.xlane.xlu1 %1778 }
 0x58f   : > { %5238 = vrcp.f32 %v1779_v10 }
 0x592   : > { %v1782_v32 = vpop.xlane.xlu1 %1781 }
 0x593   : > { %5240 = vrcp.f32 %v1782_v32 }
 0x596   : > { %v1785_v6 = vpop.xlane.xlu1 %1784 }
 0x597   : > { %5242 = vrcp.f32 %v1785_v6 }
 0x599   : > { %v5239_v51 = vpop.eup %5238 }
 0x59a   : > { %v1788_v39 = vpop.xlane.xlu1 %1787  ;;  %v1827_v58 = vmul.f32 %v5239_v51, %v6844_v47  ;;  %v1826_v49 = vmul.f32 %v5239_v51, %v6842_v20 }
 0x59b   : > { %5244 = vrcp.f32 %v1788_v39 }
 0x59d   : > { %v5241_v38 = vpop.eup %5240 }
 0x59e   : > { %v1791_v40 = vpop.xlane.xlu1 %1790  ;;  %v1830_v12 = vmul.f32 %v5241_v38, %v6852_v5  ;;  %v1829_v41 = vmul.f32 %v5241_v38, %v6850_v8 }
 0x59f   : > { %5246 = vrcp.f32 %v1791_v40 }
 0x5a0   : > { %v1876_v11 = vpack.c.bf16 %v1830_v12, %v1827_v58  ;;  %v1875_v19 = vpack.c.bf16 %v1829_v41, %v1826_v49 }
 0x5a1   : > { %v5243_v25 = vpop.eup %5242 }
 0x5a2   : > { %1891 = vmatprep.subr.bf16.mxu0 %v1876_v11  ;;  %v1794_v0 = vpop.xlane.xlu1 %1793  ;;  %v1833_v16 = vmul.f32 %v5243_v25, %v6860_v55  ;;  %v1832_v5 = vmul.f32 %v5243_v25, %v6858_v33 }
 0x5a3   : > { %5248 = vrcp.f32 %v1794_v0  ;;  %1892 = vmatpush1.bf16.xpose.msra.mxu0 %v1875_v19 }
 0x5a5   : > { %v5245_v29 = vpop.eup %5244 }
 0x5a6   : > { %v1797_v60 = vpop.xlane.xlu1 %1796  ;;  %v1836_v47 = vmul.f32 %v5245_v29, %v6868_v57  ;;  %v1835_v20 = vmul.f32 %v5245_v29, %v6866_v22 }
 0x5a7   : > { %5250 = vrcp.f32 %v1797_v60 }
 0x5a8   : > { %v1878_v26 = vpack.c.bf16 %v1836_v47, %v1833_v16  ;;  %v1877_v8 = vpack.c.bf16 %v1835_v20, %v1832_v5 }
 0x5a9   : > { %v5247_v32 = vpop.eup %5246 }
 0x5aa   : > { %1893 = vmatprep.subr.bf16.mxu0 %v1878_v26  ;;  %v1800_v10 = vpop.xlane.xlu0 %1799  ;;  %v1839_v51 = vmul.f32 %v5247_v32, %v6876_v14  ;;  %v1838_v57 = vmul.f32 %v5247_v32, %v6874_v52 }
 0x5ab   : > { %5252 = vrcp.f32 %v1800_v10  ;;  %1894 = vmatpush1.bf16.xpose.msra.mxu0 %v1877_v8 }
 0x5ad   : > { %v5249_v6 = vpop.eup %5248 }
 0x5ae   : > { %v1803_v39 = vpop.xlane.xlu1 %1802  ;;  %v1842_v55 = vmul.f32 %v5249_v6, %v6884_v4  ;;  %v1841_v33 = vmul.f32 %v5249_v6, %v6882_v15 }
 0x5af   : > { %5254 = vrcp.f32 %v1803_v39 }
 0x5b0   : > { %v1880_v38 = vpack.c.bf16 %v1842_v55, %v1839_v51  ;;  %v1879_v22 = vpack.c.bf16 %v1841_v33, %v1838_v57 }
 0x5b1   : > { %v5251_v58 = vpop.eup %5250 }
 0x5b2   : > { %1895 = vmatprep.subr.bf16.mxu0 %v1880_v38  ;;  %v1806_v40 = vpop.xlane.xlu0 %1805  ;;  %v1845_v41 = vmul.f32 %v5251_v58, %v6892_v42  ;;  %v1844_v4 = vmul.f32 %v5251_v58, %v6890_v59  ;;  %v2082_v38 = vmul.f32 0.5, %v6587_v62 }
 0x5b3   : > { %5256 = vrcp.f32 %v1806_v40  ;;  %1896 = vmatpush1.bf16.xpose.msra.mxu0 %v1879_v22 }
 0x5b5   : > { %v5253_v12 = vpop.eup %5252 }
 0x5b6   : > { %v1809_v49 = vpop.xlane.xlu1 %1808  ;;  %v1848_v14 = vmul.f32 %v5253_v12, %v6900_v2  ;;  %v1847_v52 = vmul.f32 %v5253_v12, %v6898_v45  ;;  %v2123_v12 = vpack.c.bf16 %v2082_v38, %v2082_v38 }
 0x5b7   : > { %5258 = vrcp.f32 %v1809_v49  ;;  %v1360_v49 = vmul.f32 0.5, %v6638_v13 }
 0x5b8   : > { %v1882_v11 = vpack.c.bf16 %v1848_v14, %v1845_v41  ;;  %v1881_v15 = vpack.c.bf16 %v1847_v52, %v1844_v4  ;;  %v2802_v52 = vmul.f32 0.5, %v6706_v36 }
 0x5b9   : > { %v5255_v0 = vpop.eup %5254  ;;  %v1873_v41 = vpack.c.bf16 %v1360_v49, %v1360_v49 }
 0x5ba   : > { %1897 = vmatprep.subr.bf16.mxu0 %v1882_v11  ;;  %v1812_v19 = vpop.xlane.xlu0 %1811  ;;  %v1851_v60 = vmul.f32 %v5255_v0, %v6908_v31  ;;  %v1850_v2 = vmul.f32 %v5255_v0, %v6906_v46 }
 0x5bb   : > { %5260 = vrcp.f32 %v1812_v19  ;;  %1898 = vmatpush1.bf16.xpose.msra.mxu0 %v1881_v15  ;;  %v3238_v15 = vpack.c.bf16 %v2802_v52, %v2802_v52 }
 0x5bd   : > { %v5257_v25 = vpop.eup %5256 }
 0x5be   : > { %v1815_v29 = vpop.xlane.xlu1 %1814  ;;  %v1854_v42 = vmul.f32 %v5257_v25, %v6918_v18  ;;  %v1853_v59 = vmul.f32 %v5257_v25, %v6914_v43 }
 0x5bf   : > { %5262 = vrcp.f32 %v1815_v29 }
 0x5c0   : > { %v1818_v45 = vpop.xlane.xlu0 %1817  ;;  %v1884_v16 = vpack.c.bf16 %v1854_v42, %v1851_v60  ;;  %v1883_v47 = vpack.c.bf16 %v1853_v59, %v1850_v2 }
 0x5c1   : > { %5264 = vrcp.f32 %v1818_v45  ;;  %v5259_v5 = vpop.eup %5258 }
 0x5c2   : > { %1899 = vmatprep.subr.bf16.mxu0 %v1884_v16  ;;  %v1857_v8 = vmul.f32 %v5259_v5, %v6924_v3  ;;  %v1856_v18 = vmul.f32 %v5259_v5, %v6922_v53 }
 0x5c3   : > { %1900 = vmatpush1.bf16.xpose.msra.mxu0 %v1883_v47 }
 0x5c5   : > { %v5261_v20 = vpop.eup %5260 }
 0x5c6   : > { %v1821_v26 = vpop.xlane.xlu1 %1820  ;;  %v1860_v31 = vmul.f32 %v5261_v20, %v6932_v7  ;;  %v1859_v46 = vmul.f32 %v5261_v20, %v6930_v9 }
 0x5c7   : > { %5266 = vrcp.f32 %v1821_v26 }
 0x5c8   : > { %v1886_v10 = vpack.c.bf16 %v1860_v31, %v1857_v8  ;;  %v1885_v43 = vpack.c.bf16 %v1859_v46, %v1856_v18 }
 0x5c9   : > { %v5263_v32 = vpop.eup %5262 }
 0x5ca   : > { %1901 = vmatprep.subr.bf16.mxu0 %v1886_v10  ;;  %v1824_v6 = vpop.xlane.xlu0 %1823  ;;  %v1863_v51 = vmul.f32 %v5263_v32, %v6940_v61  ;;  %v1862_v53 = vmul.f32 %v5263_v32, %v6938_v50  ;;  %v2006_v50 = vmul.f32 0.5, %v6702_v35 }
 0x5cb   : > { %v5265_v39 = vpop.eup %5264  ;;  %5268 = vrcp.f32 %v1824_v6  ;;  %1902 = vmatpush1.bf16.xpose.msra.mxu0 %v1885_v43 }
 0x5cc   : > { %v1866_v55 = vmul.f32 %v5265_v39, %v6946_v56  ;;  %v1865_v3 = vmul.f32 %v5265_v39, %v6942_v1  ;;  %v2122_v62 = vpack.c.bf16 %v2006_v50, %v2006_v50 }
 0x5ce   : > { %v1888_v7 = vpack.c.bf16 %v1866_v55, %v1863_v51  ;;  %v1887_v9 = vpack.c.bf16 %v1865_v3, %v1862_v53 }
 0x5d0   : > { %1903 = vmatprep.subr.bf16.mxu0 %v1888_v7 }
 0x5d1   : > { %v5267_v57 = vpop.eup %5266 }
 0x5d2   : > { %v1869_v22 = vmul.f32 %v5267_v57, %v6952_v27  ;;  %v1868_v61 = vmul.f32 %v5267_v57, %v6950_v44  ;;  %v2165_v27 = vsel %vm1481_vm1, %v2122_v62, 0  ;;  %v2132_v44 = vpop.trf.xlu1 }
 0x5d3   : > { %1904 = vmatpush1.bf16.xpose.msra.mxu0 %v1887_v9 }
 0x5d5   : > { %v5269_v33 = vpop.eup %5268 }
 0x5d6   : > { %v1872_v40 = vmul.f32 %v5269_v33, %v6958_v63  ;;  %v1871_v56 = vmul.f32 %v5269_v33, %v6956_v30  ;;  %v2133_v30 = vpop.trf.xlu1 }
 0x5d8   : > { %v1890_v58 = vpack.c.bf16 %v1872_v40, %v1869_v22  ;;  %v1889_v1 = vpack.c.bf16 %v1871_v56, %v1868_v61 }
 0x5da   : > { %1905 = vmatprep.subr.bf16.mxu0 %v1890_v58  ;;  %v2134_v13 = vpop.trf.xlu1 }
 0x5db   : > { %1906 = vmatpush1.bf16.xpose.msra.mxu0 %v1889_v1 }
 0x5dc   : > { %4768 = vmatprep.subr.msk.bf16.mxu0 %vm1481_vm1, %v2123_v12 }
 0x5de   : > { %v2135_v35 = vpop.trf.xlu1 }
 0x5e2   : > { %1924 = vmatmul.mubr.bf16.vlgmr.msra.gmra.mrb[24].mxu0 %v1873_v41  ;;  %v2136_v63 = vpop.trf.xlu1 }
 0x5e3   : > { %2171 = vmatpush1.bf16.msra.mxu0 %v2165_v27  ;;  %2202 = vmatprep.mubr.bf16.mxu0 %v5668_v28 }
 0x5e6   : > { %v2137_v14 = vpop.trf.xlu1 }
 0x5ea   : > { %4769 = vmatmul.mubr.msk.bf16.vlgmr.msra.gmra.mrb[28].mxu0 %vm1456_vm2, %v2132_v44  ;;  %v2138_v4 = vpop.trf.xlu1 }
 0x5eb   : > { %2212 = vmatprep.mubr.bf16.mxu0 %v5668_v28 }
 0x5ee   : > { %v2139_v11 = vpop.trf.xlu1 }
 0x5f2   : > { %4770 = vmatmul.mubr.msk.bf16.gmra.mrb[32].mxu0 %vm1456_vm2, %v2133_v30 }
 0x5f3   : > { %2222 = vmatprep.mubr.bf16.mxu0 %v5668_v28 }
 0x5fa   : > { %4771 = vmatmul.mubr.msk.bf16.gmra.mrb[36].mxu0 %vm1456_vm2, %v2134_v13 }
 0x5fb   : > { %2232 = vmatprep.mubr.bf16.mxu0 %v5668_v28 }
 0x602   : > { %4772 = vmatmul.mubr.msk.bf16.gmra.mrb[40].mxu0 %vm1456_vm2, %v2135_v35 }
 0x603   : > { %2242 = vmatprep.mubr.bf16.mxu0 %v5668_v28 }
 0x60a   : > { %4773 = vmatmul.mubr.msk.bf16.gmra.mrb[44].mxu0 %vm1456_vm2, %v2136_v63 }
 0x60b   : > { %2252 = vmatprep.mubr.bf16.mxu0 %v5668_v28 }
 0x612   : > { %4774 = vmatmul.mubr.msk.bf16.gmra.mrb[48].mxu0 %vm1456_vm2, %v2137_v14 }
 0x613   : > { %2262 = vmatprep.mubr.bf16.mxu0 %v5668_v28 }
 0x61a   : > { %4775 = vmatmul.mubr.msk.bf16.gmra.mrb[52].mxu0 %vm1456_vm2, %v2138_v4 }
 0x61b   : > { %2272 = vmatprep.mubr.bf16.mxu0 %v5668_v28 }
 0x622   : > { %4776 = vmatmul.mubr.msk.bf16.gmra.mrb[56].mxu0 %vm1456_vm2, %v2139_v11 }
 0x623   : > { %3287 = vmatprep.mubr.bf16.mxu0 %v3238_v15 }
 0x6b5   : > { %v7017_v19 = vpop.f32.mrb[24].mxu0 }
 0x6b6   : > { %v1927_v0 = vpop.f32.mrb[25].mxu0 }
 0x6b7   : > { %v1928_v25 = vpop.f32.mrb[26].mxu0 }
 0x6b8   : > { %v1929_v29 = vpop.f32.mrb[27].mxu0 }
 0x6bd   : > { %v2204_v60 = vpop.f32.mrb[28].mxu0 }
 0x6be   : > { %v7019_v42 = vmul.f32 0.35355338, %v2204_v60  ;;  %v2206_v2 = vpop.f32.mrb[29].mxu0 }
 0x6bf   : > { %v7021_v59 = vmul.f32 0.35355338, %v2206_v2  ;;  %v2208_v45 = vpop.f32.mrb[30].mxu0 }
 0x6c0   : > { %v2210_v16 = vpop.f32.mrb[31].mxu0  ;;  %v7023_v47 = vmul.f32 0.35355338, %v2208_v45 }
 0x6c1   : > { %v7025_v36 = vmul.f32 0.35355338, %v2210_v16  ;;  %v2315_v5 = vmax.f32 %v7019_v42, %v7021_v59 }
 0x6c3   : > { %2316 = vmax.xlane.f32.xlu0 %v2315_v5  ;;  %v2318_v26 = vmax.f32 %v7023_v47, %v7025_v36 }
 0x6c5   : > { %v2214_v20 = vpop.f32.mrb[32].mxu0 }
 0x6c6   : > { %v7031_v8 = vmul.f32 0.35355338, %v2214_v20  ;;  %v2216_v31 = vpop.f32.mrb[33].mxu0 }
 0x6c7   : > { %v7033_v18 = vmul.f32 0.35355338, %v2216_v31  ;;  %2319 = vmax.xlane.f32.xlu0 %v2318_v26  ;;  %v2218_v46 = vpop.f32.mrb[34].mxu0 }
 0x6c8   : > { %v2220_v10 = vpop.f32.mrb[35].mxu0  ;;  %v7035_v43 = vmul.f32 0.35355338, %v2218_v46 }
 0x6c9   : > { %v7037_v32 = vmul.f32 0.35355338, %v2220_v10  ;;  %v2321_v6 = vmax.f32 %v7031_v8, %v7033_v18 }
 0x6cb   : > { %2322 = vmax.xlane.f32.xlu0 %v2321_v6  ;;  %v2324_v51 = vmax.f32 %v7035_v43, %v7037_v32 }
 0x6cd   : > { %v2224_v39 = vpop.f32.mrb[36].mxu0 }
 0x6ce   : > { %v7043_v55 = vmul.f32 0.35355338, %v2224_v39  ;;  %v2226_v3 = vpop.f32.mrb[37].mxu0 }
 0x6cf   : > { %v7045_v7 = vmul.f32 0.35355338, %v2226_v3  ;;  %2325 = vmax.xlane.f32.xlu0 %v2324_v51  ;;  %v2228_v53 = vpop.f32.mrb[38].mxu0 }
 0x6d0   : > { %v2230_v9 = vpop.f32.mrb[39].mxu0  ;;  %v7047_v57 = vmul.f32 0.35355338, %v2228_v53 }
 0x6d1   : > { %v7049_v33 = vmul.f32 0.35355338, %v2230_v9  ;;  %v2327_v38 = vmax.f32 %v7043_v55, %v7045_v7 }
 0x6d3   : > { %2328 = vmax.xlane.f32.xlu0 %v2327_v38  ;;  %v2330_v40 = vmax.f32 %v7047_v57, %v7049_v33 }
 0x6d5   : > { %v2234_v22 = vpop.f32.mrb[40].mxu0 }
 0x6d6   : > { %v7055_v61 = vmul.f32 0.35355338, %v2234_v22  ;;  %v2236_v56 = vpop.f32.mrb[41].mxu0 }
 0x6d7   : > { %v7057_v58 = vmul.f32 0.35355338, %v2236_v56  ;;  %2331 = vmax.xlane.f32.xlu0 %v2330_v40  ;;  %v2238_v1 = vpop.f32.mrb[42].mxu0 }
 0x6d8   : > { %v2240_v12 = vpop.f32.mrb[43].mxu0  ;;  %v7059_v50 = vmul.f32 0.35355338, %v2238_v1 }
 0x6d9   : > { %v7061_v49 = vmul.f32 0.35355338, %v2240_v12  ;;  %v2333_v62 = vmax.f32 %v7055_v61, %v7057_v58 }
 0x6db   : > { %2334 = vmax.xlane.f32.xlu0 %v2333_v62  ;;  %v2336_v27 = vmax.f32 %v7059_v50, %v7061_v49 }
 0x6dd   : > { %v2244_v41 = vpop.f32.mrb[44].mxu0 }
 0x6de   : > { %v7067_v44 = vmul.f32 0.35355338, %v2244_v41  ;;  %v2246_v30 = vpop.f32.mrb[45].mxu0 }
 0x6df   : > { %v7069_v13 = vmul.f32 0.35355338, %v2246_v30  ;;  %2337 = vmax.xlane.f32.xlu0 %v2336_v27  ;;  %v2248_v35 = vpop.f32.mrb[46].mxu0 }
 0x6e0   : > { %v2250_v63 = vpop.f32.mrb[47].mxu0  ;;  %v7071_v14 = vmul.f32 0.35355338, %v2248_v35 }
 0x6e1   : > { %v7073_v4 = vmul.f32 0.35355338, %v2250_v63  ;;  %v2339_v52 = vmax.f32 %v7067_v44, %v7069_v13 }
 0x6e3   : > { %2340 = vmax.xlane.f32.xlu0 %v2339_v52  ;;  %v2342_v15 = vmax.f32 %v7071_v14, %v7073_v4 }
 0x6e5   : > { %v2254_v11 = vpop.f32.mrb[48].mxu0 }
 0x6e6   : > { %v7079_v0 = vmul.f32 0.35355338, %v2254_v11  ;;  %v2256_v25 = vpop.f32.mrb[49].mxu0 }
 0x6e7   : > { %v7081_v29 = vmul.f32 0.35355338, %v2256_v25  ;;  %2343 = vmax.xlane.f32.xlu0 %v2342_v15  ;;  %v2258_v60 = vpop.f32.mrb[50].mxu0 }
 0x6e8   : > { %v7083_v2 = vmul.f32 0.35355338, %v2258_v60  ;;  %v2260_v45 = vpop.f32.mrb[51].mxu0 }
 0x6e9   : > { %v7085_v16 = vmul.f32 0.35355338, %v2260_v45  ;;  %v2345_v5 = vmax.f32 %v7079_v0, %v7081_v29 }
 0x6eb   : > { %2346 = vmax.xlane.f32.xlu0 %v2345_v5  ;;  %v2348_v20 = vmax.f32 %v7083_v2, %v7085_v16 }
 0x6ed   : > { %2349 = vmax.xlane.f32.xlu1 %v2348_v20  ;;  %v2264_v26 = vpop.f32.mrb[52].mxu0 }
 0x6ee   : > { %v7091_v31 = vmul.f32 0.35355338, %v2264_v26  ;;  %v2266_v46 = vpop.f32.mrb[53].mxu0 }
 0x6ef   : > { %v7093_v10 = vmul.f32 0.35355338, %v2266_v46  ;;  %v2268_v6 = vpop.f32.mrb[54].mxu0 }
 0x6f0   : > { %v2270_v39 = vpop.f32.mrb[55].mxu0  ;;  %v7095_v51 = vmul.f32 0.35355338, %v2268_v6 }
 0x6f1   : > { %v7097_v3 = vmul.f32 0.35355338, %v2270_v39  ;;  %v2351_v53 = vmax.f32 %v7091_v31, %v7093_v10 }
 0x6f3   : > { %2352 = vmax.xlane.f32.xlu0 %v2351_v53  ;;  %v2354_v38 = vmax.f32 %v7095_v51, %v7097_v3 }
 0x6f5   : > { %v2274_v9 = vpop.f32.mrb[56].mxu0 }
 0x6f6   : > { %v7103_v22 = vmul.f32 0.35355338, %v2274_v9  ;;  %v2276_v40 = vpop.f32.mrb[57].mxu0 }
 0x6f7   : > { %v7105_v56 = vmul.f32 0.35355338, %v2276_v40  ;;  %2355 = vmax.xlane.f32.xlu0 %v2354_v38  ;;  %v2278_v1 = vpop.f32.mrb[58].mxu0 }
 0x6f8   : > { %v2280_v12 = vpop.f32.mrb[59].mxu0  ;;  %v7107_v62 = vmul.f32 0.35355338, %v2278_v1 }
 0x6f9   : > { %v7109_v41 = vmul.f32 0.35355338, %v2280_v12  ;;  %v2357_v27 = vmax.f32 %v7103_v22, %v7105_v56 }
 0x6fb   : > { %2358 = vmax.xlane.f32.xlu0 %v2357_v27  ;;  %v2360_v30 = vmax.f32 %v7107_v62, %v7109_v41 }
 0x6ff   : > { %2361 = vmax.xlane.f32.xlu0 %v2360_v30 }
 0x750   : > { %v2317_v35 = vpop.xlane.xlu0 %2316 }
 0x751   : > { %v2363_v63 = vsub.f32 %v7019_v42, %v2317_v35  ;;  %v2364_v52 = vsub.f32 %v7021_v59, %v2317_v35 }
 0x753   : > { %v2395_v11 = vmul.f32 1.442695, %v2363_v63  ;;  %v2397_v15 = vmul.f32 1.442695, %v2364_v52 }
 0x754   : > { %v2320_v25 = vpop.xlane.xlu0 %2319 }
 0x755   : > { %5270 = vpow2.f32 %v2395_v11  ;;  %v2365_v60 = vsub.f32 %v7023_v47, %v2320_v25  ;;  %v2366_v45 = vsub.f32 %v7025_v36, %v2320_v25 }
 0x756   : > { %5272 = vpow2.f32 %v2397_v15 }
 0x757   : > { %v2399_v5 = vmul.f32 1.442695, %v2365_v60  ;;  %v2401_v20 = vmul.f32 1.442695, %v2366_v45 }
 0x758   : > { %v2323_v26 = vpop.xlane.xlu0 %2322 }
 0x759   : > { %5274 = vpow2.f32 %v2399_v5  ;;  %v2367_v46 = vsub.f32 %v7031_v8, %v2323_v26  ;;  %v2368_v6 = vsub.f32 %v7033_v18, %v2323_v26 }
 0x75a   : > { %5276 = vpow2.f32 %v2401_v20 }
 0x75b   : > { %v2403_v42 = vmul.f32 1.442695, %v2367_v46  ;;  %v2405_v59 = vmul.f32 1.442695, %v2368_v6 }
 0x75c   : > { %v2326_v39 = vpop.xlane.xlu0 %2325 }
 0x75d   : > { %5278 = vpow2.f32 %v2403_v42  ;;  %v2369_v53 = vsub.f32 %v7035_v43, %v2326_v39  ;;  %v2370_v47 = vsub.f32 %v7037_v32, %v2326_v39 }
 0x75e   : > { %5280 = vpow2.f32 %v2405_v59 }
 0x75f   : > { %v7123_v36 = vpop.eup %5270  ;;  %v2407_v9 = vmul.f32 1.442695, %v2369_v53  ;;  %v2409_v38 = vmul.f32 1.442695, %v2370_v47 }
 0x760   : > { %v7125_v40 = vpop.eup %5272  ;;  %v2329_v1 = vpop.xlane.xlu0 %2328 }
 0x761   : > { %5282 = vpow2.f32 %v2407_v9  ;;  %v2371_v8 = vsub.f32 %v7043_v55, %v2329_v1  ;;  %v2372_v18 = vsub.f32 %v7045_v7, %v2329_v1  ;;  %v2459_v12 = vadd.f32 %v7125_v40, %v7123_v36 }
 0x762   : > { %5284 = vpow2.f32 %v2409_v38 }
 0x763   : > { %v7131_v43 = vpop.eup %5274  ;;  %v2411_v32 = vmul.f32 1.442695, %v2371_v8  ;;  %v2413_v27 = vmul.f32 1.442695, %v2372_v18  ;;  %2460 = vadd.xlane.f32.xlu0 %v2459_v12 }
 0x764   : > { %v7133_v30 = vpop.eup %5276  ;;  %v2332_v35 = vpop.xlane.xlu0 %2331 }
 0x765   : > { %5286 = vpow2.f32 %v2411_v32  ;;  %v2373_v63 = vsub.f32 %v7047_v57, %v2332_v35  ;;  %v2374_v52 = vsub.f32 %v7049_v33, %v2332_v35  ;;  %v2462_v55 = vadd.f32 %v7133_v30, %v7131_v43 }
 0x766   : > { %5288 = vpow2.f32 %v2413_v27 }
 0x767   : > { %v7139_v7 = vpop.eup %5278  ;;  %v2415_v11 = vmul.f32 1.442695, %v2373_v63  ;;  %v2417_v15 = vmul.f32 1.442695, %v2374_v52  ;;  %2463 = vadd.xlane.f32.xlu0 %v2462_v55 }
 0x768   : > { %v7141_v25 = vpop.eup %5280  ;;  %v2335_v60 = vpop.xlane.xlu0 %2334 }
 0x769   : > { %5290 = vpow2.f32 %v2415_v11  ;;  %v2375_v45 = vsub.f32 %v7055_v61, %v2335_v60  ;;  %v2376_v5 = vsub.f32 %v7057_v58, %v2335_v60  ;;  %v2465_v57 = vadd.f32 %v7141_v25, %v7139_v7 }
 0x76a   : > { %5292 = vpow2.f32 %v2417_v15 }
 0x76b   : > { %v7147_v33 = vpop.eup %5282  ;;  %v2419_v20 = vmul.f32 1.442695, %v2375_v45  ;;  %v2421_v26 = vmul.f32 1.442695, %v2376_v5  ;;  %2466 = vadd.xlane.f32.xlu0 %v2465_v57 }
 0x76c   : > { %v7149_v46 = vpop.eup %5284  ;;  %v2338_v6 = vpop.xlane.xlu0 %2337 }
 0x76d   : > { %5294 = vpow2.f32 %v2419_v20  ;;  %v2377_v42 = vsub.f32 %v7059_v50, %v2338_v6  ;;  %v2378_v59 = vsub.f32 %v7061_v49, %v2338_v6  ;;  %v2468_v61 = vadd.f32 %v7149_v46, %v7147_v33 }
 0x76e   : > { %5296 = vpow2.f32 %v2421_v26 }
 0x76f   : > { %v7155_v58 = vpop.eup %5286  ;;  %v2423_v39 = vmul.f32 1.442695, %v2377_v42  ;;  %v2425_v53 = vmul.f32 1.442695, %v2378_v59  ;;  %2469 = vadd.xlane.f32.xlu0 %v2468_v61 }
 0x770   : > { %v7157_v47 = vpop.eup %5288  ;;  %v2341_v9 = vpop.xlane.xlu0 %2340 }
 0x771   : > { %5298 = vpow2.f32 %v2423_v39  ;;  %v2379_v38 = vsub.f32 %v7067_v44, %v2341_v9  ;;  %v2380_v1 = vsub.f32 %v7069_v13, %v2341_v9  ;;  %v2471_v50 = vadd.f32 %v7157_v47, %v7155_v58 }
 0x772   : > { %5300 = vpow2.f32 %v2425_v53 }
 0x773   : > { %v7163_v49 = vpop.eup %5290  ;;  %v2427_v8 = vmul.f32 1.442695, %v2379_v38  ;;  %v2429_v18 = vmul.f32 1.442695, %v2380_v1  ;;  %2472 = vadd.xlane.f32.xlu0 %v2471_v50 }
 0x774   : > { %v7165_v12 = vpop.eup %5292  ;;  %v2344_v32 = vpop.xlane.xlu0 %2343 }
 0x775   : > { %5302 = vpow2.f32 %v2427_v8  ;;  %v2381_v27 = vsub.f32 %v7071_v14, %v2344_v32  ;;  %v2382_v35 = vsub.f32 %v7073_v4, %v2344_v32  ;;  %v2474_v44 = vadd.f32 %v7165_v12, %v7163_v49 }
 0x776   : > { %5304 = vpow2.f32 %v2429_v18 }
 0x777   : > { %v7171_v13 = vpop.eup %5294  ;;  %v2431_v63 = vmul.f32 1.442695, %v2381_v27  ;;  %v2433_v52 = vmul.f32 1.442695, %v2382_v35  ;;  %2475 = vadd.xlane.f32.xlu0 %v2474_v44 }
 0x778   : > { %v7173_v55 = vpop.eup %5296  ;;  %v2347_v11 = vpop.xlane.xlu0 %2346 }
 0x779   : > { %5306 = vpow2.f32 %v2431_v63  ;;  %v2383_v15 = vsub.f32 %v7079_v0, %v2347_v11  ;;  %v2384_v60 = vsub.f32 %v7081_v29, %v2347_v11  ;;  %v2477_v14 = vadd.f32 %v7173_v55, %v7171_v13 }
 0x77a   : > { %5308 = vpow2.f32 %v2433_v52  ;;  %v2350_v4 = vpop.xlane.xlu1 %2349 }
 0x77b   : > { %v7179_v45 = vpop.eup %5298  ;;  %v2435_v5 = vmul.f32 1.442695, %v2383_v15  ;;  %v2437_v57 = vmul.f32 1.442695, %v2384_v60  ;;  %v2385_v20 = vsub.f32 %v7083_v2, %v2350_v4  ;;  %v2386_v26 = vsub.f32 %v7085_v16, %v2350_v4  ;;  %2478 = vadd.xlane.f32.xlu0 %v2477_v14 }
 0x77c   : > { %v7183_v6 = vpop.eup %5300 }
 0x77d   : > { %5310 = vpow2.f32 %v2435_v5  ;;  %v2439_v0 = vmul.f32 1.442695, %v2385_v20  ;;  %v2441_v42 = vmul.f32 1.442695, %v2386_v26  ;;  %v2480_v29 = vadd.f32 %v7183_v6, %v7179_v45 }
 0x77e   : > { %5312 = vpow2.f32 %v2437_v57 }
 0x77f   : > { %v7187_v59 = vpop.eup %5302  ;;  %5314 = vpow2.f32 %v2439_v0  ;;  %2481 = vadd.xlane.f32.xlu1 %v2480_v29 }
 0x780   : > { %v7189_v61 = vpop.eup %5304  ;;  %5316 = vpow2.f32 %v2441_v42  ;;  %v2353_v2 = vpop.xlane.xlu0 %2352 }
 0x781   : > { %v2387_v16 = vsub.f32 %v7091_v31, %v2353_v2  ;;  %v2388_v39 = vsub.f32 %v7093_v10, %v2353_v2  ;;  %v2483_v53 = vadd.f32 %v7189_v61, %v7187_v59 }
 0x783   : > { %v7195_v9 = vpop.eup %5306  ;;  %v2443_v38 = vmul.f32 1.442695, %v2387_v16  ;;  %v2445_v1 = vmul.f32 1.442695, %v2388_v39  ;;  %2484 = vadd.xlane.f32.xlu0 %v2483_v53 }
 0x784   : > { %v7197_v50 = vpop.eup %5308  ;;  %v2356_v8 = vpop.xlane.xlu0 %2355 }
 0x785   : > { %5318 = vpow2.f32 %v2443_v38  ;;  %v2389_v18 = vsub.f32 %v7095_v51, %v2356_v8  ;;  %v2390_v32 = vsub.f32 %v7097_v3, %v2356_v8  ;;  %v2486_v31 = vadd.f32 %v7197_v50, %v7195_v9  ;;  %v8337_v8 = vld [vmem:[#allocation29_spill] sm:$0xff] }
 0x786   : > { %5320 = vpow2.f32 %v2445_v1 }
 0x787   : > { %v7203_v10 = vpop.eup %5310  ;;  %v2447_v27 = vmul.f32 1.442695, %v2389_v18  ;;  %v2449_v35 = vmul.f32 1.442695, %v2390_v32  ;;  %2487 = vadd.xlane.f32.xlu1 %v2486_v31  ;;  %v2650_v18 = vmul.f32 0.5, %v8337_v8 }
 0x788   : > { %v7205_v44 = vpop.eup %5312  ;;  %v2359_v63 = vpop.xlane.xlu0 %2358 }
 0x789   : > { %v7207_v52 = vpop.eup %5314  ;;  %5322 = vpow2.f32 %v2447_v27  ;;  %v2391_v11 = vsub.f32 %v7103_v22, %v2359_v63  ;;  %v2392_v51 = vsub.f32 %v7105_v56, %v2359_v63  ;;  %v2489_v3 = vadd.f32 %v7205_v44, %v7203_v10 }
 0x78a   : > { %v7213_v15 = vpop.eup %5316  ;;  %5324 = vpow2.f32 %v2449_v35  ;;  %v2803_v32 = vpack.c.bf16 %v2650_v18, %v2650_v18 }
 0x78b   : > { %v2451_v60 = vmul.f32 1.442695, %v2391_v11  ;;  %v2453_v14 = vmul.f32 1.442695, %v2392_v51  ;;  %2490 = vadd.xlane.f32.xlu0 %v2489_v3  ;;  %v2492_v4 = vadd.f32 %v7213_v15, %v7207_v52 }
 0x78c   : > { %v2362_v5 = vpop.xlane.xlu0 %2361 }
 0x78d   : > { %5326 = vpow2.f32 %v2451_v60  ;;  %2493 = vadd.xlane.f32.xlu1 %v2492_v4  ;;  %v2393_v57 = vsub.f32 %v7107_v62, %v2362_v5  ;;  %v2394_v22 = vsub.f32 %v7109_v41, %v2362_v5 }
 0x78e   : > { %5328 = vpow2.f32 %v2453_v14 }
 0x78f   : > { %v7219_v56 = vpop.eup %5318  ;;  %v2455_v20 = vmul.f32 1.442695, %v2393_v57  ;;  %v2457_v26 = vmul.f32 1.442695, %v2394_v22 }
 0x790   : > { %v7221_v0 = vpop.eup %5320 }
 0x791   : > { %5330 = vpow2.f32 %v2455_v20  ;;  %v2495_v42 = vadd.f32 %v7221_v0, %v7219_v56 }
 0x792   : > { %5332 = vpow2.f32 %v2457_v26 }
 0x793   : > { %v7225_v29 = vpop.eup %5322  ;;  %2496 = vadd.xlane.f32.xlu0 %v2495_v42 }
 0x794   : > { %v7227_v2 = vpop.eup %5324 }
 0x795   : > { %v2498_v62 = vadd.f32 %v7227_v2, %v7225_v29 }
 0x797   : > { %v7231_v41 = vpop.eup %5326  ;;  %2499 = vadd.xlane.f32.xlu1 %v2498_v62 }
 0x798   : > { %v7233_v16 = vpop.eup %5328 }
 0x799   : > { %v2501_v39 = vadd.f32 %v7233_v16, %v7231_v41 }
 0x79b   : > { %v7237_v53 = vpop.eup %5330  ;;  %2502 = vadd.xlane.f32.xlu0 %v2501_v39 }
 0x79c   : > { %v7239_v38 = vpop.eup %5332 }
 0x79d   : > { %v2504_v1 = vadd.f32 %v7239_v38, %v7237_v53 }
 0x79f   : > { %2505 = vadd.xlane.f32.xlu1 %v2504_v1 }
 0x7c8   : > { %2806 = vxpose.xlu0.c.b16.start.end [1/1] (short) %v2803_v32, 128 }
 0x7d1   : > { %5006 = vset.pattern.permute.xlu0 %v5668_v28 }
 0x7f0   : > { %v2461_v31 = vpop.xlane.xlu0 %2460 }
 0x7f1   : > { %5334 = vrcp.f32 %v2461_v31 }
 0x7f4   : > { %v2464_v27 = vpop.xlane.xlu0 %2463 }
 0x7f5   : > { %5336 = vrcp.f32 %v2464_v27 }
 0x7f8   : > { %v2467_v35 = vpop.xlane.xlu0 %2466 }
 0x7f9   : > { %5338 = vrcp.f32 %v2467_v35 }
 0x7fb   : > { %v5335_v11 = vpop.eup %5334 }
 0x7fc   : > { %v2470_v63 = vpop.xlane.xlu0 %2469  ;;  %v2509_v60 = vmul.f32 %v5335_v11, %v7125_v40  ;;  %v2508_v4 = vmul.f32 %v5335_v11, %v7123_v36 }
 0x7fd   : > { %5340 = vrcp.f32 %v2470_v63 }
 0x7ff   : > { %v5337_v51 = vpop.eup %5336 }
 0x800   : > { %v2473_v3 = vpop.xlane.xlu0 %2472  ;;  %v2512_v14 = vmul.f32 %v5337_v51, %v7133_v30  ;;  %v2511_v5 = vmul.f32 %v5337_v51, %v7131_v43 }
 0x801   : > { %5342 = vrcp.f32 %v2473_v3 }
 0x802   : > { %v2558_v57 = vpack.c.bf16 %v2512_v14, %v2509_v60  ;;  %v2557_v22 = vpack.c.bf16 %v2511_v5, %v2508_v4 }
 0x803   : > { %v5339_v26 = vpop.eup %5338 }
 0x804   : > { %2573 = vmatprep.subr.bf16.mxu1 %v2558_v57  ;;  %v2476_v20 = vpop.xlane.xlu0 %2475  ;;  %v2515_v39 = vmul.f32 %v5339_v26, %v7141_v25  ;;  %v2514_v30 = vmul.f32 %v5339_v26, %v7139_v7 }
 0x805   : > { %5344 = vrcp.f32 %v2476_v20  ;;  %2574 = vmatpush1.bf16.xpose.msra.mxu1 %v2557_v22 }
 0x807   : > { %v5341_v42 = vpop.eup %5340 }
 0x808   : > { %v2479_v62 = vpop.xlane.xlu0 %2478  ;;  %v2518_v40 = vmul.f32 %v5341_v42, %v7149_v46  ;;  %v2517_v36 = vmul.f32 %v5341_v42, %v7147_v33 }
 0x809   : > { %5346 = vrcp.f32 %v2479_v62 }
 0x80a   : > { %v2560_v1 = vpack.c.bf16 %v2518_v40, %v2515_v39  ;;  %v2559_v43 = vpack.c.bf16 %v2517_v36, %v2514_v30 }
 0x80b   : > { %v5343_v18 = vpop.eup %5342 }
 0x80c   : > { %v2482_v8 = vpop.xlane.xlu1 %2481  ;;  %2575 = vmatprep.subr.bf16.mxu1 %v2560_v1  ;;  %v2521_v27 = vmul.f32 %v5343_v18, %v7157_v47  ;;  %v2520_v46 = vmul.f32 %v5343_v18, %v7155_v58 }
 0x80d   : > { %5348 = vrcp.f32 %v2482_v8  ;;  %2576 = vmatpush1.bf16.xpose.msra.mxu1 %v2559_v43 }
 0x80f   : > { %v5345_v32 = vpop.eup %5344 }
 0x810   : > { %v2485_v31 = vpop.xlane.xlu0 %2484  ;;  %v2524_v25 = vmul.f32 %v5345_v32, %v7165_v12  ;;  %v2523_v7 = vmul.f32 %v5345_v32, %v7163_v49 }
 0x811   : > { %5350 = vrcp.f32 %v2485_v31 }
 0x812   : > { %v2562_v35 = vpack.c.bf16 %v2524_v25, %v2521_v27  ;;  %v2561_v33 = vpack.c.bf16 %v2523_v7, %v2520_v46  ;;  %v2764_v25 = vmul.f32 0.5, %v6515_v17 }
 0x813   : > { %v5347_v11 = vpop.eup %5346 }
 0x814   : > { %v2488_v63 = vpop.xlane.xlu1 %2487  ;;  %2577 = vmatprep.subr.bf16.mxu1 %v2562_v35  ;;  %v2527_v60 = vmul.f32 %v5347_v11, %v7173_v55  ;;  %v2526_v12 = vmul.f32 %v5347_v11, %v7171_v13 }
 0x815   : > { %5352 = vrcp.f32 %v2488_v63  ;;  %2578 = vmatpush1.bf16.xpose.msra.mxu1 %v2561_v33  ;;  %v2688_v33 = vmul.f32 0.5, %v6713_v23  ;;  %v2044_v63 = vmul.f32 0.5, %v6691_v24 }
 0x817   : > { %v5349_v51 = vpop.eup %5348  ;;  %v2804_v17 = vpack.c.bf16 %v2688_v33, %v2688_v33  ;;  %v2555_v11 = vpack.c.bf16 %v2044_v63, %v2044_v63 }
 0x818   : > { %v2491_v3 = vpop.xlane.xlu0 %2490  ;;  %v2530_v47 = vmul.f32 %v5349_v51, %v7183_v6  ;;  %v2529_v58 = vmul.f32 %v5349_v51, %v7179_v45 }
 0x819   : > { %5354 = vrcp.f32 %v2491_v3 }
 0x81a   : > { %v2494_v49 = vpop.xlane.xlu1 %2493  ;;  %v2564_v14 = vpack.c.bf16 %v2530_v47, %v2527_v60  ;;  %v2563_v4 = vpack.c.bf16 %v2529_v58, %v2526_v12  ;;  %v3484_v60 = vmul.f32 0.5, %v6716_v21 }
 0x81b   : > { %5356 = vrcp.f32 %v2494_v49  ;;  %v5351_v5 = vpop.eup %5350 }
 0x81c   : > { %2579 = vmatprep.subr.bf16.mxu1 %v2564_v14  ;;  %v2533_v20 = vmul.f32 %v5351_v5, %v7189_v61  ;;  %v2532_v6 = vmul.f32 %v5351_v5, %v7187_v59  ;;  %v3920_v12 = vpack.c.bf16 %v3484_v60, %v3484_v60 }
 0x81d   : > { %2580 = vmatpush1.bf16.xpose.msra.mxu1 %v2563_v4 }
 0x81f   : > { %v5353_v57 = vpop.eup %5352 }
 0x820   : > { %v2497_v22 = vpop.xlane.xlu0 %2496  ;;  %v2536_v55 = vmul.f32 %v5353_v57, %v7197_v50  ;;  %v2535_v13 = vmul.f32 %v5353_v57, %v7195_v9 }
 0x821   : > { %5358 = vrcp.f32 %v2497_v22 }
 0x822   : > { %v2566_v26 = vpack.c.bf16 %v2536_v55, %v2533_v20  ;;  %v2565_v45 = vpack.c.bf16 %v2535_v13, %v2532_v6 }
 0x823   : > { %v5355_v42 = vpop.eup %5354 }
 0x824   : > { %v2500_v62 = vpop.xlane.xlu1 %2499  ;;  %2581 = vmatprep.subr.bf16.mxu1 %v2566_v26  ;;  %v2539_v40 = vmul.f32 %v5355_v42, %v7205_v44  ;;  %v2538_v59 = vmul.f32 %v5355_v42, %v7203_v10 }
 0x825   : > { %v5357_v39 = vpop.eup %5356  ;;  %5360 = vrcp.f32 %v2500_v62  ;;  %2582 = vmatpush1.bf16.xpose.msra.mxu1 %v2565_v45 }
 0x826   : > { %v2542_v30 = vmul.f32 %v5357_v39, %v7213_v15  ;;  %v2541_v61 = vmul.f32 %v5357_v39, %v7207_v52 }
 0x828   : > { %v2503_v50 = vpop.xlane.xlu0 %2502  ;;  %v2568_v36 = vpack.c.bf16 %v2542_v30, %v2539_v40  ;;  %v2567_v9 = vpack.c.bf16 %v2541_v61, %v2538_v59 }
 0x829   : > { %5362 = vrcp.f32 %v2503_v50 }
 0x82a   : > { %2583 = vmatprep.subr.bf16.mxu1 %v2568_v36 }
 0x82b   : > { %v5359_v43 = vpop.eup %5358 }
 0x82c   : > { %v2506_v1 = vpop.xlane.xlu1 %2505  ;;  %v2545_v18 = vmul.f32 %v5359_v43, %v7221_v0  ;;  %v2544_v15 = vmul.f32 %v5359_v43, %v7219_v56 }
 0x82d   : > { %5364 = vrcp.f32 %v2506_v1  ;;  %2584 = vmatpush1.bf16.xpose.msra.mxu1 %v2567_v9 }
 0x82f   : > { %v5361_v8 = vpop.eup %5360 }
 0x830   : > { %v2548_v44 = vmul.f32 %v5361_v8, %v7227_v2  ;;  %v2547_v52 = vmul.f32 %v5361_v8, %v7225_v29  ;;  %v2805_v29 = vpack.c.bf16 %v2764_v25, %v2764_v25 }
 0x832   : > { %v2570_v32 = vpack.c.bf16 %v2548_v44, %v2545_v18  ;;  %v2569_v31 = vpack.c.bf16 %v2547_v52, %v2544_v15 }
 0x833   : > { %v5363_v10 = vpop.eup %5362 }
 0x834   : > { %2585 = vmatprep.subr.bf16.mxu1 %v2570_v32  ;;  %v2551_v46 = vmul.f32 %v5363_v10, %v7233_v16  ;;  %v2550_v0 = vmul.f32 %v5363_v10, %v7231_v41  ;;  %v2847_v16 = vsel %vm1481_vm1, %v2804_v17, 0  ;;  %v2814_v41 = vpop.trf.xlu0 }
 0x835   : > { %2586 = vmatpush1.bf16.xpose.msra.mxu1 %v2569_v31 }
 0x837   : > { %v5365_v27 = vpop.eup %5364 }
 0x838   : > { %v2554_v7 = vmul.f32 %v5365_v27, %v7239_v38  ;;  %v2553_v2 = vmul.f32 %v5365_v27, %v7237_v53  ;;  %v2815_v53 = vpop.trf.xlu0 }
 0x83a   : > { %v2572_v35 = vpack.c.bf16 %v2554_v7, %v2551_v46  ;;  %v2571_v56 = vpack.c.bf16 %v2553_v2, %v2550_v0 }
 0x83c   : > { %2587 = vmatprep.subr.bf16.mxu1 %v2572_v35  ;;  %v2816_v24 = vpop.trf.xlu0 }
 0x83d   : > { %2588 = vmatpush1.bf16.xpose.msra.mxu1 %v2571_v56 }
 0x83e   : > { %4777 = vmatprep.subr.msk.bf16.mxu1 %vm1481_vm1, %v2805_v29 }
 0x840   : > { %v2817_v23 = vpop.trf.xlu0 }
 0x844   : > { %2606 = vmatmul.mubr.bf16.vlgmr.msra.gmra.mrb[48].mxu1 %v2555_v11  ;;  %v2818_v38 = vpop.trf.xlu0 }
 0x845   : > { %2853 = vmatpush1.bf16.msra.mxu1 %v2847_v16  ;;  %2884 = vmatprep.mubr.bf16.mxu1 %v5668_v28 }
 0x848   : > { %v2819_v51 = vpop.trf.xlu0 }
 0x84c   : > { %4778 = vmatmul.mubr.msk.bf16.vlgmr.msra.gmra.mrb[52].mxu1 %vm1456_vm2, %v2814_v41  ;;  %v2820_v3 = vpop.trf.xlu0 }
 0x84d   : > { %2894 = vmatprep.mubr.bf16.mxu1 %v5668_v28 }
 0x850   : > { %v2821_v47 = vpop.trf.xlu0 }
 0x854   : > { %4779 = vmatmul.mubr.msk.bf16.gmra.mrb[56].mxu1 %vm1456_vm2, %v2815_v53 }
 0x855   : > { %2904 = vmatprep.mubr.bf16.mxu1 %v5668_v28 }
 0x85c   : > { %4780 = vmatmul.mubr.msk.bf16.gmra.mrb[60].mxu1 %vm1456_vm2, %v2816_v24 }
 0x85d   : > { %2914 = vmatprep.mubr.bf16.mxu1 %v5668_v28 }
 0x864   : > { %4781 = vmatmul.mubr.msk.bf16.gmra.mrb[64].mxu1 %vm1456_vm2, %v2817_v23 }
 0x865   : > { %2924 = vmatprep.mubr.bf16.mxu1 %v5668_v28 }
 0x86c   : > { %4782 = vmatmul.mubr.msk.bf16.gmra.mrb[68].mxu1 %vm1456_vm2, %v2818_v38 }
 0x86d   : > { %2934 = vmatprep.mubr.bf16.mxu1 %v5668_v28 }
 0x874   : > { %4783 = vmatmul.mubr.msk.bf16.gmra.mrb[72].mxu1 %vm1456_vm2, %v2819_v51 }
 0x875   : > { %2944 = vmatprep.mubr.bf16.mxu1 %v5668_v28 }
 0x87c   : > { %4784 = vmatmul.mubr.msk.bf16.gmra.mrb[76].mxu1 %vm1456_vm2, %v2820_v3 }
 0x87d   : > { %2954 = vmatprep.mubr.bf16.mxu1 %v5668_v28 }
 0x884   : > { %4785 = vmatmul.mubr.msk.bf16.gmra.mrb[80].mxu1 %vm1456_vm2, %v2821_v47 }
 0x885   : > { %3969 = vmatprep.mubr.bf16.mxu1 %v3920_v12 }
 0x917   : > { %v2607_v58 = vpop.f32.mrb[48].mxu1 }
 0x918   : > { %v7300_v49 = vpack.c.bf16 %v2607_v58, %v7017_v19  ;;  %v2609_v14 = vpop.f32.mrb[49].mxu1 }
 0x919   : > { %v2610_v4 = vpop.f32.mrb[50].mxu1 }
 0x91a   : > { %v2611_v5 = vpop.f32.mrb[51].mxu1 }
 0x91f   : > { %v2886_v57 = vpop.f32.mrb[52].mxu1 }
 0x920   : > { %v7302_v22 = vmul.f32 0.35355338, %v2886_v57  ;;  %v2888_v20 = vpop.f32.mrb[53].mxu1 }
 0x921   : > { %v7304_v55 = vmul.f32 0.35355338, %v2888_v20  ;;  %v2890_v6 = vpop.f32.mrb[54].mxu1 }
 0x922   : > { %v2892_v21 = vpop.f32.mrb[55].mxu1  ;;  %v7308_v26 = vmul.f32 0.35355338, %v2890_v6 }
 0x923   : > { %v2997_v13 = vmax.f32 %v7302_v22, %v7304_v55  ;;  %v7310_v45 = vmul.f32 0.35355338, %v2892_v21 }
 0x925   : > { %2998 = vmax.xlane.f32.xlu1 %v2997_v13  ;;  %v3000_v19 = vmax.f32 %v7308_v26, %v7310_v45 }
 0x927   : > { %v2896_v42 = vpop.f32.mrb[56].mxu1 }
 0x928   : > { %v7314_v62 = vmul.f32 0.35355338, %v2896_v42  ;;  %v2898_v39 = vpop.f32.mrb[57].mxu1 }
 0x929   : > { %v7316_v40 = vmul.f32 0.35355338, %v2898_v39  ;;  %3001 = vmax.xlane.f32.xlu1 %v3000_v19  ;;  %v2900_v30 = vpop.f32.mrb[58].mxu1 }
 0x92a   : > { %v2902_v61 = vpop.f32.mrb[59].mxu1  ;;  %v7320_v36 = vmul.f32 0.35355338, %v2900_v30 }
 0x92b   : > { %v3003_v50 = vmax.f32 %v7314_v62, %v7316_v40  ;;  %v7322_v59 = vmul.f32 0.35355338, %v2902_v61 }
 0x92d   : > { %3004 = vmax.xlane.f32.xlu1 %v3003_v50  ;;  %v3006_v9 = vmax.f32 %v7320_v36, %v7322_v59 }
 0x92f   : > { %v2906_v1 = vpop.f32.mrb[60].mxu1 }
 0x930   : > { %v7326_v43 = vmul.f32 0.35355338, %v2906_v1  ;;  %v2908_v8 = vpop.f32.mrb[61].mxu1 }
 0x931   : > { %v7328_v18 = vmul.f32 0.35355338, %v2908_v8  ;;  %3007 = vmax.xlane.f32.xlu1 %v3006_v9  ;;  %v2910_v44 = vpop.f32.mrb[62].mxu1 }
 0x932   : > { %v2912_v15 = vpop.f32.mrb[63].mxu1  ;;  %v7332_v32 = vmul.f32 0.35355338, %v2910_v44 }
 0x933   : > { %v3009_v52 = vmax.f32 %v7326_v43, %v7328_v18  ;;  %v7334_v31 = vmul.f32 0.35355338, %v2912_v15 }
 0x935   : > { %3010 = vmax.xlane.f32.xlu1 %v3009_v52  ;;  %v3012_v10 = vmax.f32 %v7332_v32, %v7334_v31 }
 0x937   : > { %v2916_v27 = vpop.f32.mrb[64].mxu1 }
 0x938   : > { %v7338_v25 = vmul.f32 0.35355338, %v2916_v27  ;;  %v2918_v46 = vpop.f32.mrb[65].mxu1 }
 0x939   : > { %v7340_v7 = vmul.f32 0.35355338, %v2918_v46  ;;  %3013 = vmax.xlane.f32.xlu1 %v3012_v10  ;;  %v2920_v0 = vpop.f32.mrb[66].mxu1 }
 0x93a   : > { %v2922_v2 = vpop.f32.mrb[67].mxu1  ;;  %v7344_v56 = vmul.f32 0.35355338, %v2920_v0 }
 0x93b   : > { %v3015_v35 = vmax.f32 %v7338_v25, %v7340_v7  ;;  %v7346_v29 = vmul.f32 0.35355338, %v2922_v2 }
 0x93d   : > { %3016 = vmax.xlane.f32.xlu1 %v3015_v35  ;;  %v3018_v33 = vmax.f32 %v7344_v56, %v7346_v29 }
 0x93f   : > { %v2926_v63 = vpop.f32.mrb[68].mxu1 }
 0x940   : > { %v7350_v17 = vmul.f32 0.35355338, %v2926_v63  ;;  %v2928_v11 = vpop.f32.mrb[69].mxu1 }
 0x941   : > { %v7352_v16 = vmul.f32 0.35355338, %v2928_v11  ;;  %3019 = vmax.xlane.f32.xlu1 %v3018_v33  ;;  %v2930_v41 = vpop.f32.mrb[70].mxu1 }
 0x942   : > { %v2932_v53 = vpop.f32.mrb[71].mxu1  ;;  %v7356_v23 = vmul.f32 0.35355338, %v2930_v41 }
 0x943   : > { %v3021_v24 = vmax.f32 %v7350_v17, %v7352_v16  ;;  %v7358_v38 = vmul.f32 0.35355338, %v2932_v53 }
 0x945   : > { %3022 = vmax.xlane.f32.xlu1 %v3021_v24  ;;  %v3024_v51 = vmax.f32 %v7356_v23, %v7358_v38 }
 0x947   : > { %v2936_v3 = vpop.f32.mrb[72].mxu1 }
 0x948   : > { %v7362_v60 = vmul.f32 0.35355338, %v2936_v3  ;;  %v2938_v47 = vpop.f32.mrb[73].mxu1 }
 0x949   : > { %v7364_v12 = vmul.f32 0.35355338, %v2938_v47  ;;  %3025 = vmax.xlane.f32.xlu1 %v3024_v51  ;;  %v2940_v58 = vpop.f32.mrb[74].mxu1 }
 0x94a   : > { %v2942_v14 = vpop.f32.mrb[75].mxu1  ;;  %v7368_v5 = vmul.f32 0.35355338, %v2940_v58 }
 0x94b   : > { %v3027_v4 = vmax.f32 %v7362_v60, %v7364_v12  ;;  %v7370_v57 = vmul.f32 0.35355338, %v2942_v14 }
 0x94d   : > { %3028 = vmax.xlane.f32.xlu1 %v3027_v4  ;;  %v3030_v20 = vmax.f32 %v7368_v5, %v7370_v57 }
 0x94f   : > { %v2946_v6 = vpop.f32.mrb[76].mxu1 }
 0x950   : > { %v7374_v21 = vmul.f32 0.35355338, %v2946_v6  ;;  %v2948_v13 = vpop.f32.mrb[77].mxu1 }
 0x951   : > { %v7376_v19 = vmul.f32 0.35355338, %v2948_v13  ;;  %3031 = vmax.xlane.f32.xlu1 %v3030_v20  ;;  %v2950_v42 = vpop.f32.mrb[78].mxu1 }
 0x952   : > { %v7378_v39 = vmul.f32 0.35355338, %v2950_v42  ;;  %v2952_v30 = vpop.f32.mrb[79].mxu1 }
 0x953   : > { %v3033_v61 = vmax.f32 %v7374_v21, %v7376_v19  ;;  %v7382_v50 = vmul.f32 0.35355338, %v2952_v30 }
 0x955   : > { %v3036_v9 = vmax.f32 %v7378_v39, %v7382_v50  ;;  %3034 = vmax.xlane.f32.xlu0 %v3033_v61 }
 0x957   : > { %3037 = vmax.xlane.f32.xlu1 %v3036_v9  ;;  %v2956_v1 = vpop.f32.mrb[80].mxu1 }
 0x958   : > { %v7386_v8 = vmul.f32 0.35355338, %v2956_v1  ;;  %v2958_v44 = vpop.f32.mrb[81].mxu1 }
 0x959   : > { %v7388_v15 = vmul.f32 0.35355338, %v2958_v44  ;;  %v2960_v52 = vpop.f32.mrb[82].mxu1 }
 0x95a   : > { %v2962_v10 = vpop.f32.mrb[83].mxu1  ;;  %v7392_v46 = vmul.f32 0.35355338, %v2960_v52 }
 0x95b   : > { %v3039_v27 = vmax.f32 %v7386_v8, %v7388_v15  ;;  %v7394_v0 = vmul.f32 0.35355338, %v2962_v10 }
 0x95d   : > { %3040 = vmax.xlane.f32.xlu1 %v3039_v27  ;;  %v3042_v2 = vmax.f32 %v7392_v46, %v7394_v0 }
 0x961   : > { %3043 = vmax.xlane.f32.xlu1 %v3042_v2 }
 0x9b2   : > { %v2999_v35 = vpop.xlane.xlu1 %2998 }
 0x9b3   : > { %v3045_v33 = vsub.f32 %v7302_v22, %v2999_v35  ;;  %v3046_v63 = vsub.f32 %v7304_v55, %v2999_v35 }
 0x9b5   : > { %v3077_v11 = vmul.f32 1.442695, %v3045_v33  ;;  %v3079_v41 = vmul.f32 1.442695, %v3046_v63 }
 0x9b6   : > { %v3002_v53 = vpop.xlane.xlu1 %3001 }
 0x9b7   : > { %5366 = vpow2.f32 %v3077_v11  ;;  %v3047_v24 = vsub.f32 %v7308_v26, %v3002_v53  ;;  %v3048_v51 = vsub.f32 %v7310_v45, %v3002_v53 }
 0x9b8   : > { %5368 = vpow2.f32 %v3079_v41 }
 0x9b9   : > { %v3081_v3 = vmul.f32 1.442695, %v3047_v24  ;;  %v3083_v47 = vmul.f32 1.442695, %v3048_v51 }
 0x9ba   : > { %v3005_v58 = vpop.xlane.xlu1 %3004 }
 0x9bb   : > { %5370 = vpow2.f32 %v3081_v3  ;;  %v3049_v14 = vsub.f32 %v7314_v62, %v3005_v58  ;;  %v3050_v4 = vsub.f32 %v7316_v40, %v3005_v58 }
 0x9bc   : > { %5372 = vpow2.f32 %v3083_v47 }
 0x9bd   : > { %v3085_v22 = vmul.f32 1.442695, %v3049_v14  ;;  %v3087_v55 = vmul.f32 1.442695, %v3050_v4 }
 0x9be   : > { %v3008_v20 = vpop.xlane.xlu1 %3007 }
 0x9bf   : > { %5374 = vpow2.f32 %v3085_v22  ;;  %v3051_v6 = vsub.f32 %v7320_v36, %v3008_v20  ;;  %v3052_v26 = vsub.f32 %v7322_v59, %v3008_v20 }
 0x9c0   : > { %5376 = vpow2.f32 %v3087_v55 }
 0x9c1   : > { %v7406_v45 = vpop.eup %5366  ;;  %v3089_v13 = vmul.f32 1.442695, %v3051_v6  ;;  %v3091_v42 = vmul.f32 1.442695, %v3052_v26 }
 0x9c2   : > { %v7408_v30 = vpop.eup %5368  ;;  %v3011_v61 = vpop.xlane.xlu1 %3010 }
 0x9c3   : > { %5378 = vpow2.f32 %v3089_v13  ;;  %v3053_v62 = vsub.f32 %v7326_v43, %v3011_v61  ;;  %v3054_v40 = vsub.f32 %v7328_v18, %v3011_v61  ;;  %v3141_v9 = vadd.f32 %v7408_v30, %v7406_v45 }
 0x9c4   : > { %5380 = vpow2.f32 %v3091_v42 }
 0x9c5   : > { %v7414_v36 = vpop.eup %5370  ;;  %v3093_v59 = vmul.f32 1.442695, %v3053_v62  ;;  %v3095_v1 = vmul.f32 1.442695, %v3054_v40  ;;  %3142 = vadd.xlane.f32.xlu1 %v3141_v9 }
 0x9c6   : > { %v7416_v44 = vpop.eup %5372  ;;  %v3014_v52 = vpop.xlane.xlu1 %3013 }
 0x9c7   : > { %5382 = vpow2.f32 %v3093_v59  ;;  %v3055_v10 = vsub.f32 %v7332_v32, %v3014_v52  ;;  %v3056_v27 = vsub.f32 %v7334_v31, %v3014_v52  ;;  %v3144_v43 = vadd.f32 %v7416_v44, %v7414_v36 }
 0x9c8   : > { %5384 = vpow2.f32 %v3095_v1 }
 0x9c9   : > { %v7422_v18 = vpop.eup %5374  ;;  %v3097_v2 = vmul.f32 1.442695, %v3055_v10  ;;  %v3099_v35 = vmul.f32 1.442695, %v3056_v27  ;;  %3145 = vadd.xlane.f32.xlu1 %v3144_v43 }
 0x9ca   : > { %v7424_v33 = vpop.eup %5376  ;;  %v3017_v63 = vpop.xlane.xlu1 %3016 }
 0x9cb   : > { %5386 = vpow2.f32 %v3097_v2  ;;  %v3057_v11 = vsub.f32 %v7338_v25, %v3017_v63  ;;  %v3058_v41 = vsub.f32 %v7340_v7, %v3017_v63  ;;  %v3147_v32 = vadd.f32 %v7424_v33, %v7422_v18 }
 0x9cc   : > { %5388 = vpow2.f32 %v3099_v35 }
 0x9cd   : > { %v7430_v31 = vpop.eup %5378  ;;  %v3101_v53 = vmul.f32 1.442695, %v3057_v11  ;;  %v3103_v24 = vmul.f32 1.442695, %v3058_v41  ;;  %3148 = vadd.xlane.f32.xlu1 %v3147_v32 }
 0x9ce   : > { %v7432_v51 = vpop.eup %5380  ;;  %v3020_v3 = vpop.xlane.xlu1 %3019 }
 0x9cf   : > { %5390 = vpow2.f32 %v3101_v53  ;;  %v3059_v47 = vsub.f32 %v7344_v56, %v3020_v3  ;;  %v3060_v58 = vsub.f32 %v7346_v29, %v3020_v3  ;;  %v3150_v25 = vadd.f32 %v7432_v51, %v7430_v31 }
 0x9d0   : > { %5392 = vpow2.f32 %v3103_v24 }
 0x9d1   : > { %v7438_v7 = vpop.eup %5382  ;;  %v3105_v14 = vmul.f32 1.442695, %v3059_v47  ;;  %v3107_v4 = vmul.f32 1.442695, %v3060_v58  ;;  %3151 = vadd.xlane.f32.xlu1 %v3150_v25 }
 0x9d2   : > { %v7440_v22 = vpop.eup %5384  ;;  %v3023_v55 = vpop.xlane.xlu1 %3022 }
 0x9d3   : > { %5394 = vpow2.f32 %v3105_v14  ;;  %v3061_v20 = vsub.f32 %v7350_v17, %v3023_v55  ;;  %v3062_v6 = vsub.f32 %v7352_v16, %v3023_v55  ;;  %v3153_v56 = vadd.f32 %v7440_v22, %v7438_v7 }
 0x9d4   : > { %5396 = vpow2.f32 %v3107_v4 }
 0x9d5   : > { %v7446_v29 = vpop.eup %5386  ;;  %v3109_v26 = vmul.f32 1.442695, %v3061_v20  ;;  %v3111_v13 = vmul.f32 1.442695, %v3062_v6  ;;  %3154 = vadd.xlane.f32.xlu1 %v3153_v56 }
 0x9d6   : > { %v7448_v42 = vpop.eup %5388  ;;  %v3026_v61 = vpop.xlane.xlu1 %3025 }
 0x9d7   : > { %5398 = vpow2.f32 %v3109_v26  ;;  %v3063_v62 = vsub.f32 %v7356_v23, %v3026_v61  ;;  %v3064_v40 = vsub.f32 %v7358_v38, %v3026_v61  ;;  %v3156_v17 = vadd.f32 %v7448_v42, %v7446_v29 }
 0x9d8   : > { %5400 = vpow2.f32 %v3111_v13 }
 0x9d9   : > { %v7454_v16 = vpop.eup %5390  ;;  %v3113_v9 = vmul.f32 1.442695, %v3063_v62  ;;  %v3115_v59 = vmul.f32 1.442695, %v3064_v40  ;;  %3157 = vadd.xlane.f32.xlu1 %v3156_v17 }
 0x9da   : > { %v7456_v1 = vpop.eup %5392  ;;  %v3029_v52 = vpop.xlane.xlu1 %3028 }
 0x9db   : > { %5402 = vpow2.f32 %v3113_v9  ;;  %v3065_v10 = vsub.f32 %v7362_v60, %v3029_v52  ;;  %v3066_v27 = vsub.f32 %v7364_v12, %v3029_v52  ;;  %v3159_v23 = vadd.f32 %v7456_v1, %v7454_v16 }
 0x9dc   : > { %5404 = vpow2.f32 %v3115_v59 }
 0x9dd   : > { %v7462_v38 = vpop.eup %5394  ;;  %v3117_v43 = vmul.f32 1.442695, %v3065_v10  ;;  %v3119_v2 = vmul.f32 1.442695, %v3066_v27  ;;  %3160 = vadd.xlane.f32.xlu1 %v3159_v23 }
 0x9de   : > { %v7464_v35 = vpop.eup %5396  ;;  %v3032_v63 = vpop.xlane.xlu1 %3031 }
 0x9df   : > { %5406 = vpow2.f32 %v3117_v43  ;;  %v3067_v11 = vsub.f32 %v7368_v5, %v3032_v63  ;;  %v3068_v41 = vsub.f32 %v7370_v57, %v3032_v63  ;;  %v3162_v60 = vadd.f32 %v7464_v35, %v7462_v38 }
 0x9e0   : > { %5408 = vpow2.f32 %v3119_v2 }
 0x9e1   : > { %v7470_v12 = vpop.eup %5398  ;;  %v3121_v32 = vmul.f32 1.442695, %v3067_v11  ;;  %v3123_v53 = vmul.f32 1.442695, %v3068_v41  ;;  %3163 = vadd.xlane.f32.xlu0 %v3162_v60 }
 0x9e2   : > { %v7472_v24 = vpop.eup %5400  ;;  %v3035_v3 = vpop.xlane.xlu0 %3034 }
 0x9e3   : > { %5410 = vpow2.f32 %v3121_v32  ;;  %v3069_v47 = vsub.f32 %v7374_v21, %v3035_v3  ;;  %v3070_v58 = vsub.f32 %v7376_v19, %v3035_v3  ;;  %v3165_v5 = vadd.f32 %v7472_v24, %v7470_v12 }
 0x9e4   : > { %5412 = vpow2.f32 %v3123_v53  ;;  %v3038_v57 = vpop.xlane.xlu1 %3037 }
 0x9e5   : > { %v7478_v25 = vpop.eup %5402  ;;  %v3125_v14 = vmul.f32 1.442695, %v3069_v47  ;;  %v3127_v4 = vmul.f32 1.442695, %v3070_v58  ;;  %v3071_v55 = vsub.f32 %v7378_v39, %v3038_v57  ;;  %v3072_v20 = vsub.f32 %v7382_v50, %v3038_v57  ;;  %3166 = vadd.xlane.f32.xlu1 %v3165_v5  ;;  %v8338_v58 = vld [vmem:[#allocation30_spill] sm:$0xff] }
 0x9e6   : > { %v7482_v6 = vpop.eup %5404  ;;  %v3332_v5 = vmul.f32 0.5, %v8338_v58 }
 0x9e7   : > { %5414 = vpow2.f32 %v3125_v14  ;;  %v3129_v21 = vmul.f32 1.442695, %v3071_v55  ;;  %v3131_v56 = vmul.f32 1.442695, %v3072_v20  ;;  %v3168_v19 = vadd.f32 %v7482_v6, %v7478_v25 }
 0x9e8   : > { %5416 = vpow2.f32 %v3127_v4  ;;  %v3485_v57 = vpack.c.bf16 %v3332_v5, %v3332_v5 }
 0x9e9   : > { %v7486_v26 = vpop.eup %5406  ;;  %5418 = vpow2.f32 %v3129_v21  ;;  %3169 = vadd.xlane.f32.xlu0 %v3168_v19 }
 0x9ea   : > { %v7488_v13 = vpop.eup %5408  ;;  %5420 = vpow2.f32 %v3131_v56  ;;  %v3041_v39 = vpop.xlane.xlu1 %3040 }
 0x9eb   : > { %v3073_v50 = vsub.f32 %v7386_v8, %v3041_v39  ;;  %v3074_v61 = vsub.f32 %v7388_v15, %v3041_v39  ;;  %v3171_v62 = vadd.f32 %v7488_v13, %v7486_v26 }
 0x9ed   : > { %v7494_v40 = vpop.eup %5410  ;;  %v3133_v17 = vmul.f32 1.442695, %v3073_v50  ;;  %v3135_v9 = vmul.f32 1.442695, %v3074_v61  ;;  %3172 = vadd.xlane.f32.xlu1 %v3171_v62 }
 0x9ee   : > { %v7496_v59 = vpop.eup %5412  ;;  %v3044_v52 = vpop.xlane.xlu1 %3043 }
 0x9ef   : > { %5422 = vpow2.f32 %v3133_v17  ;;  %v3075_v10 = vsub.f32 %v7392_v46, %v3044_v52  ;;  %v3076_v27 = vsub.f32 %v7394_v0, %v3044_v52  ;;  %v3174_v8 = vadd.f32 %v7496_v59, %v7494_v40 }
 0x9f0   : > { %5424 = vpow2.f32 %v3135_v9 }
 0x9f1   : > { %v7502_v15 = vpop.eup %5414  ;;  %v3137_v23 = vmul.f32 1.442695, %v3075_v10  ;;  %v3139_v43 = vmul.f32 1.442695, %v3076_v27  ;;  %3175 = vadd.xlane.f32.xlu0 %v3174_v8 }
 0x9f2   : > { %v7504_v2 = vpop.eup %5416 }
 0x9f3   : > { %v7506_v63 = vpop.eup %5418  ;;  %5426 = vpow2.f32 %v3137_v23  ;;  %v3177_v11 = vadd.f32 %v7504_v2, %v7502_v15 }
 0x9f4   : > { %v7510_v46 = vpop.eup %5420  ;;  %5428 = vpow2.f32 %v3139_v43 }
 0x9f5   : > { %3178 = vadd.xlane.f32.xlu1 %v3177_v11  ;;  %v3180_v0 = vadd.f32 %v7510_v46, %v7506_v63 }
 0x9f7   : > { %3181 = vadd.xlane.f32.xlu0 %v3180_v0 }
 0x9f9   : > { %v7514_v41 = vpop.eup %5422 }
 0x9fa   : > { %v7516_v60 = vpop.eup %5424 }
 0x9fb   : > { %v3183_v32 = vadd.f32 %v7516_v60, %v7514_v41 }
 0x9fd   : > { %v7520_v53 = vpop.eup %5426  ;;  %3184 = vadd.xlane.f32.xlu1 %v3183_v32 }
 0x9fe   : > { %v7522_v3 = vpop.eup %5428 }
 0x9ff   : > { %v3186_v47 = vadd.f32 %v7522_v3, %v7520_v53 }
 0xa01   : > { %3187 = vadd.xlane.f32.xlu0 %v3186_v47 }
 0xa2a   : > { %3488 = vxpose.xlu1.c.b16.start.end [1/1] (short) %v3485_v57, 128 }
 0xa2e   : > { %5007 = vset.pattern.permute.xlu1 %v5668_v28 }
 0xa52   : > { %v3143_v14 = vpop.xlane.xlu1 %3142 }
 0xa53   : > { %5430 = vrcp.f32 %v3143_v14 }
 0xa56   : > { %v3146_v4 = vpop.xlane.xlu1 %3145 }
 0xa57   : > { %5432 = vrcp.f32 %v3146_v4 }
 0xa5a   : > { %v3149_v55 = vpop.xlane.xlu1 %3148 }
 0xa5b   : > { %5434 = vrcp.f32 %v3149_v55 }
 0xa5d   : > { %v5431_v21 = vpop.eup %5430 }
 0xa5e   : > { %v3152_v20 = vpop.xlane.xlu1 %3151  ;;  %v3191_v39 = vmul.f32 %v5431_v21, %v7408_v30  ;;  %v3190_v61 = vmul.f32 %v5431_v21, %v7406_v45 }
 0xa5f   : > { %5436 = vrcp.f32 %v3152_v20 }
 0xa61   : > { %v5433_v56 = vpop.eup %5432 }
 0xa62   : > { %v3155_v19 = vpop.xlane.xlu1 %3154  ;;  %v3194_v50 = vmul.f32 %v5433_v56, %v7416_v44  ;;  %v3193_v62 = vmul.f32 %v5433_v56, %v7414_v36 }
 0xa63   : > { %5438 = vrcp.f32 %v3155_v19 }
 0xa64   : > { %v3240_v17 = vpack.c.bf16 %v3194_v50, %v3191_v39  ;;  %v3239_v9 = vpack.c.bf16 %v3193_v62, %v3190_v61 }
 0xa65   : > { %v5435_v10 = vpop.eup %5434 }
 0xa66   : > { %3255 = vmatprep.subr.bf16.mxu0 %v3240_v17  ;;  %v3158_v52 = vpop.xlane.xlu1 %3157  ;;  %v3197_v23 = vmul.f32 %v5435_v10, %v7424_v33  ;;  %v3196_v44 = vmul.f32 %v5435_v10, %v7422_v18 }
 0xa67   : > { %5440 = vrcp.f32 %v3158_v52  ;;  %3256 = vmatpush1.bf16.xpose.msra.mxu0 %v3239_v9 }
 0xa69   : > { %v5437_v27 = vpop.eup %5436 }
 0xa6a   : > { %v3161_v8 = vpop.xlane.xlu1 %3160  ;;  %v3200_v30 = vmul.f32 %v5437_v27, %v7432_v51  ;;  %v3199_v45 = vmul.f32 %v5437_v27, %v7430_v31 }
 0xa6b   : > { %5442 = vrcp.f32 %v3161_v8 }
 0xa6c   : > { %v3242_v43 = vpack.c.bf16 %v3200_v30, %v3197_v23  ;;  %v3241_v36 = vpack.c.bf16 %v3199_v45, %v3196_v44 }
 0xa6d   : > { %v5439_v0 = vpop.eup %5438 }
 0xa6e   : > { %3257 = vmatprep.subr.bf16.mxu0 %v3242_v43  ;;  %v3164_v11 = vpop.xlane.xlu0 %3163  ;;  %v3203_v58 = vmul.f32 %v5439_v0, %v7440_v22  ;;  %v3202_v51 = vmul.f32 %v5439_v0, %v7438_v7  ;;  %v3446_v0 = vmul.f32 0.5, %v6561_v48 }
 0xa6f   : > { %5444 = vrcp.f32 %v3164_v11  ;;  %3258 = vmatpush1.bf16.xpose.msra.mxu0 %v3241_v36 }
 0xa71   : > { %v5441_v32 = vpop.eup %5440 }
 0xa72   : > { %v3167_v47 = vpop.xlane.xlu1 %3166  ;;  %v3206_v33 = vmul.f32 %v5441_v32, %v7448_v42  ;;  %v3205_v18 = vmul.f32 %v5441_v32, %v7446_v29 }
 0xa73   : > { %5446 = vrcp.f32 %v3167_v47 }
 0xa74   : > { %v3244_v5 = vpack.c.bf16 %v3206_v33, %v3203_v58  ;;  %v3243_v31 = vpack.c.bf16 %v3205_v18, %v3202_v51  ;;  %v3487_v33 = vpack.c.bf16 %v3446_v0, %v3446_v0  ;;  %v2726_v51 = vmul.f32 0.5, %v6611_v34 }
 0xa75   : > { %v5443_v14 = vpop.eup %5442 }
 0xa76   : > { %3259 = vmatprep.subr.bf16.mxu0 %v3244_v5  ;;  %v3170_v57 = vpop.xlane.xlu0 %3169  ;;  %v3209_v20 = vmul.f32 %v5443_v14, %v7456_v1  ;;  %v3208_v42 = vmul.f32 %v5443_v14, %v7454_v16  ;;  %v3237_v18 = vpack.c.bf16 %v2726_v51, %v2726_v51 }
 0xa77   : > { %5448 = vrcp.f32 %v3170_v57  ;;  %3260 = vmatpush1.bf16.xpose.msra.mxu0 %v3243_v31 }
 0xa79   : > { %v5445_v4 = vpop.eup %5444 }
 0xa7a   : > { %v3173_v55 = vpop.xlane.xlu1 %3172  ;;  %v3212_v22 = vmul.f32 %v5445_v4, %v7464_v35  ;;  %v3211_v7 = vmul.f32 %v5445_v4, %v7462_v38 }
 0xa7b   : > { %5450 = vrcp.f32 %v3173_v55 }
 0xa7c   : > { %v3246_v21 = vpack.c.bf16 %v3212_v22, %v3209_v20  ;;  %v3245_v29 = vpack.c.bf16 %v3211_v7, %v3208_v42 }
 0xa7d   : > { %v5447_v19 = vpop.eup %5446 }
 0xa7e   : > { %3261 = vmatprep.subr.bf16.mxu0 %v3246_v21  ;;  %v3176_v56 = vpop.xlane.xlu0 %3175  ;;  %v3215_v61 = vmul.f32 %v5447_v19, %v7472_v24  ;;  %v3214_v35 = vmul.f32 %v5447_v19, %v7470_v12 }
 0xa7f   : > { %5452 = vrcp.f32 %v3176_v56  ;;  %3262 = vmatpush1.bf16.xpose.msra.mxu0 %v3245_v29 }
 0xa81   : > { %v5449_v39 = vpop.eup %5448 }
 0xa82   : > { %v3179_v50 = vpop.xlane.xlu1 %3178  ;;  %v3218_v1 = vmul.f32 %v5449_v39, %v7482_v6  ;;  %v3217_v16 = vmul.f32 %v5449_v39, %v7478_v25 }
 0xa83   : > { %5454 = vrcp.f32 %v3179_v50 }
 0xa84   : > { %v3182_v38 = vpop.xlane.xlu0 %3181  ;;  %v3248_v62 = vpack.c.bf16 %v3218_v1, %v3215_v61  ;;  %v3247_v17 = vpack.c.bf16 %v3217_v16, %v3214_v35 }
 0xa85   : > { %5456 = vrcp.f32 %v3182_v38  ;;  %v5451_v9 = vpop.eup %5450 }
 0xa86   : > { %3263 = vmatprep.subr.bf16.mxu0 %v3248_v62  ;;  %v3221_v27 = vmul.f32 %v5451_v9, %v7488_v13  ;;  %v3220_v6 = vmul.f32 %v5451_v9, %v7486_v26 }
 0xa87   : > { %3264 = vmatpush1.bf16.xpose.msra.mxu0 %v3247_v17 }
 0xa89   : > { %v5453_v52 = vpop.eup %5452 }
 0xa8a   : > { %v3185_v10 = vpop.xlane.xlu1 %3184  ;;  %v3224_v24 = vmul.f32 %v5453_v52, %v7496_v59  ;;  %v3223_v12 = vmul.f32 %v5453_v52, %v7494_v40 }
 0xa8b   : > { %5458 = vrcp.f32 %v3185_v10 }
 0xa8c   : > { %v3250_v8 = vpack.c.bf16 %v3224_v24, %v3221_v27  ;;  %v3249_v25 = vpack.c.bf16 %v3223_v12, %v3220_v6 }
 0xa8d   : > { %v5455_v23 = vpop.eup %5454 }
 0xa8e   : > { %3265 = vmatprep.subr.bf16.mxu0 %v3250_v8  ;;  %v3188_v30 = vpop.xlane.xlu0 %3187  ;;  %v3227_v45 = vmul.f32 %v5455_v23, %v7504_v2  ;;  %v3226_v26 = vmul.f32 %v5455_v23, %v7502_v15  ;;  %v3370_v15 = vmul.f32 0.5, %v6721_v54 }
 0xa8f   : > { %v5457_v44 = vpop.eup %5456  ;;  %5460 = vrcp.f32 %v3188_v30  ;;  %3266 = vmatpush1.bf16.xpose.msra.mxu0 %v3249_v25 }
 0xa90   : > { %v3230_v43 = vmul.f32 %v5457_v44, %v7510_v46  ;;  %v3229_v13 = vmul.f32 %v5457_v44, %v7506_v63  ;;  %v3486_v48 = vpack.c.bf16 %v3370_v15, %v3370_v15 }
 0xa92   : > { %v3252_v59 = vpack.c.bf16 %v3230_v43, %v3227_v45  ;;  %v3251_v40 = vpack.c.bf16 %v3229_v13, %v3226_v26 }
 0xa94   : > { %3267 = vmatprep.subr.bf16.mxu0 %v3252_v59 }
 0xa95   : > { %v5459_v36 = vpop.eup %5458 }
 0xa96   : > { %v3233_v32 = vmul.f32 %v5459_v36, %v7516_v60  ;;  %v3232_v2 = vmul.f32 %v5459_v36, %v7514_v41  ;;  %v3529_v60 = vsel %vm1481_vm1, %v3486_v48, 0  ;;  %v3496_v41 = vpop.trf.xlu1 }
 0xa97   : > { %3268 = vmatpush1.bf16.xpose.msra.mxu0 %v3251_v40 }
 0xa99   : > { %v5461_v11 = vpop.eup %5460 }
 0xa9a   : > { %v3236_v47 = vmul.f32 %v5461_v11, %v7522_v3  ;;  %v3235_v46 = vmul.f32 %v5461_v11, %v7520_v53  ;;  %v3497_v53 = vpop.trf.xlu1 }
 0xa9c   : > { %v3254_v58 = vpack.c.bf16 %v3236_v47, %v3233_v32  ;;  %v3253_v63 = vpack.c.bf16 %v3235_v46, %v3232_v2 }
 0xa9e   : > { %3269 = vmatprep.subr.bf16.mxu0 %v3254_v58  ;;  %v3498_v34 = vpop.trf.xlu1 }
 0xa9f   : > { %3270 = vmatpush1.bf16.xpose.msra.mxu0 %v3253_v63 }
 0xaa0   : > { %4786 = vmatprep.subr.msk.bf16.mxu0 %vm1481_vm1, %v3487_v33 }
 0xaa2   : > { %v3499_v54 = vpop.trf.xlu1 }
 0xaa6   : > { %3288 = vmatmul.mubr.bf16.vlgmr.msra.gmra.mrb[60].mxu0 %v3237_v18  ;;  %v3500_v3 = vpop.trf.xlu1 }
 0xaa7   : > { %3535 = vmatpush1.bf16.msra.mxu0 %v3529_v60  ;;  %3566 = vmatprep.mubr.bf16.mxu0 %v5668_v28 }
 0xaaa   : > { %v3501_v5 = vpop.trf.xlu1 }
 0xaae   : > { %4787 = vmatmul.mubr.msk.bf16.vlgmr.msra.gmra.mrb[64].mxu0 %vm1456_vm2, %v3496_v41  ;;  %v3502_v31 = vpop.trf.xlu1 }
 0xaaf   : > { %3576 = vmatprep.mubr.bf16.mxu0 %v5668_v28 }
 0xab2   : > { %v3503_v57 = vpop.trf.xlu1 }
 0xab6   : > { %4788 = vmatmul.mubr.msk.bf16.gmra.mrb[68].mxu0 %vm1456_vm2, %v3497_v53 }
 0xab7   : > { %3586 = vmatprep.mubr.bf16.mxu0 %v5668_v28 }
 0xabe   : > { %4789 = vmatmul.mubr.msk.bf16.gmra.mrb[72].mxu0 %vm1456_vm2, %v3498_v34 }
 0xabf   : > { %3596 = vmatprep.mubr.bf16.mxu0 %v5668_v28 }
 0xac6   : > { %4790 = vmatmul.mubr.msk.bf16.gmra.mrb[76].mxu0 %vm1456_vm2, %v3499_v54 }
 0xac7   : > { %3606 = vmatprep.mubr.bf16.mxu0 %v5668_v28 }
 0xace   : > { %4791 = vmatmul.mubr.msk.bf16.gmra.mrb[80].mxu0 %vm1456_vm2, %v3500_v3 }
 0xacf   : > { %3616 = vmatprep.mubr.bf16.mxu0 %v5668_v28 }
 0xad6   : > { %4792 = vmatmul.mubr.msk.bf16.gmra.mrb[84].mxu0 %vm1456_vm2, %v3501_v5 }
 0xad7   : > { %3626 = vmatprep.mubr.bf16.mxu0 %v5668_v28 }
 0xade   : > { %4793 = vmatmul.mubr.msk.bf16.gmra.mrb[88].mxu0 %vm1456_vm2, %v3502_v31 }
 0xadf   : > { %3636 = vmatprep.mubr.bf16.mxu0 %v5668_v28 }
 0xae6   : > { %4794 = vmatmul.mubr.msk.bf16.gmra.mrb[92].mxu0 %vm1456_vm2, %v3503_v57 }
 0xb79   : > { %v7581_v14 = vpop.f32.mrb[60].mxu0 }
 0xb7a   : > { %v3291_v4 = vpop.f32.mrb[61].mxu0 }
 0xb7b   : > { %v3292_v55 = vpop.f32.mrb[62].mxu0 }
 0xb7c   : > { %v3293_v20 = vpop.f32.mrb[63].mxu0 }
 0xb81   : > { %v3568_v22 = vpop.f32.mrb[64].mxu0 }
 0xb82   : > { %v7583_v42 = vmul.f32 0.35355338, %v3568_v22  ;;  %v3570_v7 = vpop.f32.mrb[65].mxu0 }
 0xb83   : > { %v7585_v21 = vmul.f32 0.35355338, %v3570_v7  ;;  %v3572_v29 = vpop.f32.mrb[66].mxu0 }
 0xb84   : > { %v3574_v56 = vpop.f32.mrb[67].mxu0  ;;  %v7589_v28 = vmul.f32 0.35355338, %v3572_v29 }
 0xb85   : > { %v3679_v19 = vmax.f32 %v7583_v42, %v7585_v21  ;;  %v7591_v39 = vmul.f32 0.35355338, %v3574_v56 }
 0xb87   : > { %3680 = vmax.xlane.f32.xlu0 %v3679_v19  ;;  %v3682_v50 = vmax.f32 %v7589_v28, %v7591_v39 }
 0xb89   : > { %v3578_v61 = vpop.f32.mrb[68].mxu0 }
 0xb8a   : > { %v7595_v1 = vmul.f32 0.35355338, %v3578_v61  ;;  %v3580_v35 = vpop.f32.mrb[69].mxu0 }
 0xb8b   : > { %v7597_v16 = vmul.f32 0.35355338, %v3580_v35  ;;  %3683 = vmax.xlane.f32.xlu0 %v3682_v50  ;;  %v3582_v38 = vpop.f32.mrb[70].mxu0 }
 0xb8c   : > { %v3584_v62 = vpop.f32.mrb[71].mxu0  ;;  %v7601_v9 = vmul.f32 0.35355338, %v3582_v38 }
 0xb8d   : > { %v3685_v17 = vmax.f32 %v7595_v1, %v7597_v16  ;;  %v7603_v52 = vmul.f32 0.35355338, %v3584_v62 }
 0xb8f   : > { %3686 = vmax.xlane.f32.xlu0 %v3685_v17  ;;  %v3688_v10 = vmax.f32 %v7601_v9, %v7603_v52 }
 0xb91   : > { %v3588_v27 = vpop.f32.mrb[72].mxu0 }
 0xb92   : > { %v7607_v24 = vmul.f32 0.35355338, %v3588_v27  ;;  %v3590_v6 = vpop.f32.mrb[73].mxu0 }
 0xb93   : > { %v7609_v12 = vmul.f32 0.35355338, %v3590_v6  ;;  %3689 = vmax.xlane.f32.xlu0 %v3688_v10  ;;  %v3592_v8 = vpop.f32.mrb[74].mxu0 }
 0xb94   : > { %v3594_v25 = vpop.f32.mrb[75].mxu0  ;;  %v7613_v30 = vmul.f32 0.35355338, %v3592_v8 }
 0xb95   : > { %v3691_v23 = vmax.f32 %v7607_v24, %v7609_v12  ;;  %v7615_v44 = vmul.f32 0.35355338, %v3594_v25 }
 0xb97   : > { %3692 = vmax.xlane.f32.xlu0 %v3691_v23  ;;  %v3694_v45 = vmax.f32 %v7613_v30, %v7615_v44 }
 0xb99   : > { %v3598_v43 = vpop.f32.mrb[76].mxu0 }
 0xb9a   : > { %v7619_v13 = vmul.f32 0.35355338, %v3598_v43  ;;  %v3600_v59 = vpop.f32.mrb[77].mxu0 }
 0xb9b   : > { %v7621_v26 = vmul.f32 0.35355338, %v3600_v59  ;;  %3695 = vmax.xlane.f32.xlu0 %v3694_v45  ;;  %v3602_v40 = vpop.f32.mrb[78].mxu0 }
 0xb9c   : > { %v3604_v36 = vpop.f32.mrb[79].mxu0  ;;  %v7625_v0 = vmul.f32 0.35355338, %v3602_v40 }
 0xb9d   : > { %v3697_v11 = vmax.f32 %v7619_v13, %v7621_v26  ;;  %v7627_v32 = vmul.f32 0.35355338, %v3604_v36 }
 0xb9f   : > { %3698 = vmax.xlane.f32.xlu0 %v3697_v11  ;;  %v3700_v47 = vmax.f32 %v7625_v0, %v7627_v32 }
 0xba1   : > { %v3608_v2 = vpop.f32.mrb[80].mxu0 }
 0xba2   : > { %v7631_v46 = vmul.f32 0.35355338, %v3608_v2  ;;  %v3610_v58 = vpop.f32.mrb[81].mxu0 }
 0xba3   : > { %v7633_v63 = vmul.f32 0.35355338, %v3610_v58  ;;  %3701 = vmax.xlane.f32.xlu0 %v3700_v47  ;;  %v3612_v33 = vpop.f32.mrb[82].mxu0 }
 0xba4   : > { %v3614_v15 = vpop.f32.mrb[83].mxu0  ;;  %v7637_v48 = vmul.f32 0.35355338, %v3612_v33 }
 0xba5   : > { %v3703_v51 = vmax.f32 %v7631_v46, %v7633_v63  ;;  %v7639_v18 = vmul.f32 0.35355338, %v3614_v15 }
 0xba7   : > { %3704 = vmax.xlane.f32.xlu0 %v3703_v51  ;;  %v3706_v60 = vmax.f32 %v7637_v48, %v7639_v18 }
 0xba9   : > { %v3618_v41 = vpop.f32.mrb[84].mxu0 }
 0xbaa   : > { %v7643_v53 = vmul.f32 0.35355338, %v3618_v41  ;;  %v3620_v34 = vpop.f32.mrb[85].mxu0 }
 0xbab   : > { %v7645_v54 = vmul.f32 0.35355338, %v3620_v34  ;;  %3707 = vmax.xlane.f32.xlu0 %v3706_v60  ;;  %v3622_v3 = vpop.f32.mrb[86].mxu0 }
 0xbac   : > { %v7647_v5 = vmul.f32 0.35355338, %v3622_v3  ;;  %v3624_v31 = vpop.f32.mrb[87].mxu0 }
 0xbad   : > { %v3709_v57 = vmax.f32 %v7643_v53, %v7645_v54  ;;  %v7651_v4 = vmul.f32 0.35355338, %v3624_v31 }
 0xbaf   : > { %v3712_v55 = vmax.f32 %v7647_v5, %v7651_v4  ;;  %3710 = vmax.xlane.f32.xlu0 %v3709_v57 }
 0xbb1   : > { %3713 = vmax.xlane.f32.xlu1 %v3712_v55  ;;  %v3628_v20 = vpop.f32.mrb[88].mxu0 }
 0xbb2   : > { %v7655_v22 = vmul.f32 0.35355338, %v3628_v20  ;;  %v3630_v7 = vpop.f32.mrb[89].mxu0 }
 0xbb3   : > { %v7657_v29 = vmul.f32 0.35355338, %v3630_v7  ;;  %v3632_v56 = vpop.f32.mrb[90].mxu0 }
 0xbb4   : > { %v3634_v19 = vpop.f32.mrb[91].mxu0  ;;  %v7661_v61 = vmul.f32 0.35355338, %v3632_v56 }
 0xbb5   : > { %v3715_v50 = vmax.f32 %v7655_v22, %v7657_v29  ;;  %v7663_v35 = vmul.f32 0.35355338, %v3634_v19 }
 0xbb7   : > { %3716 = vmax.xlane.f32.xlu0 %v3715_v50  ;;  %v3718_v38 = vmax.f32 %v7661_v61, %v7663_v35 }
 0xbb9   : > { %v3638_v62 = vpop.f32.mrb[92].mxu0 }
 0xbba   : > { %v7667_v17 = vmul.f32 0.35355338, %v3638_v62  ;;  %v3640_v10 = vpop.f32.mrb[93].mxu0 }
 0xbbb   : > { %v7669_v27 = vmul.f32 0.35355338, %v3640_v10  ;;  %3719 = vmax.xlane.f32.xlu0 %v3718_v38  ;;  %v3642_v6 = vpop.f32.mrb[94].mxu0 }
 0xbbc   : > { %v3644_v8 = vpop.f32.mrb[95].mxu0  ;;  %v7673_v23 = vmul.f32 0.35355338, %v3642_v6 }
 0xbbd   : > { %v3721_v25 = vmax.f32 %v7667_v17, %v7669_v27  ;;  %v7675_v45 = vmul.f32 0.35355338, %v3644_v8 }
 0xbbf   : > { %3722 = vmax.xlane.f32.xlu0 %v3721_v25  ;;  %v3724_v43 = vmax.f32 %v7673_v23, %v7675_v45 }
 0xbc3   : > { %3725 = vmax.xlane.f32.xlu0 %v3724_v43 }
 0xc14   : > { %v3681_v59 = vpop.xlane.xlu0 %3680 }
 0xc15   : > { %v3727_v40 = vsub.f32 %v7583_v42, %v3681_v59  ;;  %v3728_v36 = vsub.f32 %v7585_v21, %v3681_v59 }
 0xc17   : > { %v3759_v11 = vmul.f32 1.442695, %v3727_v40  ;;  %v3761_v47 = vmul.f32 1.442695, %v3728_v36 }
 0xc18   : > { %v3684_v2 = vpop.xlane.xlu0 %3683 }
 0xc19   : > { %5462 = vpow2.f32 %v3759_v11  ;;  %v3729_v58 = vsub.f32 %v7589_v28, %v3684_v2  ;;  %v3730_v33 = vsub.f32 %v7591_v39, %v3684_v2 }
 0xc1a   : > { %5464 = vpow2.f32 %v3761_v47 }
 0xc1b   : > { %v3763_v15 = vmul.f32 1.442695, %v3729_v58  ;;  %v3765_v51 = vmul.f32 1.442695, %v3730_v33 }
 0xc1c   : > { %v3687_v60 = vpop.xlane.xlu0 %3686 }
 0xc1d   : > { %5466 = vpow2.f32 %v3763_v15  ;;  %v3731_v41 = vsub.f32 %v7595_v1, %v3687_v60  ;;  %v3732_v34 = vsub.f32 %v7597_v16, %v3687_v60 }
 0xc1e   : > { %5468 = vpow2.f32 %v3765_v51 }
 0xc1f   : > { %v3767_v42 = vmul.f32 1.442695, %v3731_v41  ;;  %v3769_v21 = vmul.f32 1.442695, %v3732_v34 }
 0xc20   : > { %v3690_v3 = vpop.xlane.xlu0 %3689 }
 0xc21   : > { %5470 = vpow2.f32 %v3767_v42  ;;  %v3733_v31 = vsub.f32 %v7601_v9, %v3690_v3  ;;  %v3734_v28 = vsub.f32 %v7603_v52, %v3690_v3 }
 0xc22   : > { %5472 = vpow2.f32 %v3769_v21 }
 0xc23   : > { %v7687_v39 = vpop.eup %5462  ;;  %v3771_v57 = vmul.f32 1.442695, %v3733_v31  ;;  %v3773_v55 = vmul.f32 1.442695, %v3734_v28 }
 0xc24   : > { %v7689_v20 = vpop.eup %5464  ;;  %v3693_v7 = vpop.xlane.xlu0 %3692 }
 0xc25   : > { %5474 = vpow2.f32 %v3771_v57  ;;  %v3735_v1 = vsub.f32 %v7607_v24, %v3693_v7  ;;  %v3736_v16 = vsub.f32 %v7609_v12, %v3693_v7  ;;  %v3823_v56 = vadd.f32 %v7689_v20, %v7687_v39 }
 0xc26   : > { %5476 = vpow2.f32 %v3773_v55 }
 0xc27   : > { %v7695_v9 = vpop.eup %5466  ;;  %v3775_v52 = vmul.f32 1.442695, %v3735_v1  ;;  %v3777_v19 = vmul.f32 1.442695, %v3736_v16  ;;  %3824 = vadd.xlane.f32.xlu0 %v3823_v56 }
 0xc28   : > { %v7697_v50 = vpop.eup %5468  ;;  %v3696_v38 = vpop.xlane.xlu0 %3695 }
 0xc29   : > { %5478 = vpow2.f32 %v3775_v52  ;;  %v3737_v62 = vsub.f32 %v7613_v30, %v3696_v38  ;;  %v3738_v10 = vsub.f32 %v7615_v44, %v3696_v38  ;;  %v3826_v24 = vadd.f32 %v7697_v50, %v7695_v9 }
 0xc2a   : > { %5480 = vpow2.f32 %v3777_v19 }
 0xc2b   : > { %v7703_v12 = vpop.eup %5470  ;;  %v3779_v6 = vmul.f32 1.442695, %v3737_v62  ;;  %v3781_v8 = vmul.f32 1.442695, %v3738_v10  ;;  %3827 = vadd.xlane.f32.xlu0 %v3826_v24 }
 0xc2c   : > { %v7705_v25 = vpop.eup %5472  ;;  %v3699_v43 = vpop.xlane.xlu0 %3698 }
 0xc2d   : > { %5482 = vpow2.f32 %v3779_v6  ;;  %v3739_v59 = vsub.f32 %v7619_v13, %v3699_v43  ;;  %v3740_v40 = vsub.f32 %v7621_v26, %v3699_v43  ;;  %v3829_v30 = vadd.f32 %v7705_v25, %v7703_v12 }
 0xc2e   : > { %5484 = vpow2.f32 %v3781_v8 }
 0xc2f   : > { %v7711_v44 = vpop.eup %5474  ;;  %v3783_v36 = vmul.f32 1.442695, %v3739_v59  ;;  %v3785_v11 = vmul.f32 1.442695, %v3740_v40  ;;  %3830 = vadd.xlane.f32.xlu0 %v3829_v30 }
 0xc30   : > { %v7713_v47 = vpop.eup %5476  ;;  %v3702_v2 = vpop.xlane.xlu0 %3701 }
 0xc31   : > { %5486 = vpow2.f32 %v3783_v36  ;;  %v3741_v58 = vsub.f32 %v7625_v0, %v3702_v2  ;;  %v3742_v33 = vsub.f32 %v7627_v32, %v3702_v2  ;;  %v3832_v13 = vadd.f32 %v7713_v47, %v7711_v44 }
 0xc32   : > { %5488 = vpow2.f32 %v3785_v11 }
 0xc33   : > { %v7719_v26 = vpop.eup %5478  ;;  %v3787_v15 = vmul.f32 1.442695, %v3741_v58  ;;  %v3789_v51 = vmul.f32 1.442695, %v3742_v33  ;;  %3833 = vadd.xlane.f32.xlu0 %v3832_v13 }
 0xc34   : > { %v7721_v60 = vpop.eup %5480  ;;  %v3705_v41 = vpop.xlane.xlu0 %3704 }
 0xc35   : > { %5490 = vpow2.f32 %v3787_v15  ;;  %v3743_v34 = vsub.f32 %v7631_v46, %v3705_v41  ;;  %v3744_v42 = vsub.f32 %v7633_v63, %v3705_v41  ;;  %v3835_v0 = vadd.f32 %v7721_v60, %v7719_v26 }
 0xc36   : > { %5492 = vpow2.f32 %v3789_v51 }
 0xc37   : > { %v7727_v32 = vpop.eup %5482  ;;  %v3791_v21 = vmul.f32 1.442695, %v3743_v34  ;;  %v3793_v3 = vmul.f32 1.442695, %v3744_v42  ;;  %3836 = vadd.xlane.f32.xlu0 %v3835_v0 }
 0xc38   : > { %v7729_v31 = vpop.eup %5484  ;;  %v3708_v28 = vpop.xlane.xlu0 %3707 }
 0xc39   : > { %5494 = vpow2.f32 %v3791_v21  ;;  %v3745_v57 = vsub.f32 %v7637_v48, %v3708_v28  ;;  %v3746_v55 = vsub.f32 %v7639_v18, %v3708_v28  ;;  %v3838_v46 = vadd.f32 %v7729_v31, %v7727_v32 }
 0xc3a   : > { %5496 = vpow2.f32 %v3793_v3 }
 0xc3b   : > { %v7735_v63 = vpop.eup %5486  ;;  %v3795_v7 = vmul.f32 1.442695, %v3745_v57  ;;  %v3797_v1 = vmul.f32 1.442695, %v3746_v55  ;;  %3839 = vadd.xlane.f32.xlu0 %v3838_v46 }
 0xc3c   : > { %v7737_v16 = vpop.eup %5488  ;;  %v3711_v56 = vpop.xlane.xlu0 %3710 }
 0xc3d   : > { %5498 = vpow2.f32 %v3795_v7  ;;  %v3747_v52 = vsub.f32 %v7643_v53, %v3711_v56  ;;  %v3748_v19 = vsub.f32 %v7645_v54, %v3711_v56  ;;  %v3841_v48 = vadd.f32 %v7737_v16, %v7735_v63 }
 0xc3e   : > { %5500 = vpow2.f32 %v3797_v1  ;;  %v3714_v18 = vpop.xlane.xlu1 %3713 }
 0xc3f   : > { %v7743_v38 = vpop.eup %5490  ;;  %v3799_v62 = vmul.f32 1.442695, %v3747_v52  ;;  %v3801_v10 = vmul.f32 1.442695, %v3748_v19  ;;  %v3749_v24 = vsub.f32 %v7647_v5, %v3714_v18  ;;  %v3750_v6 = vsub.f32 %v7651_v4, %v3714_v18  ;;  %3842 = vadd.xlane.f32.xlu0 %v3841_v48 }
 0xc40   : > { %v7747_v8 = vpop.eup %5492 }
 0xc41   : > { %5502 = vpow2.f32 %v3799_v62  ;;  %v3803_v53 = vmul.f32 1.442695, %v3749_v24  ;;  %v3805_v43 = vmul.f32 1.442695, %v3750_v6  ;;  %v3844_v54 = vadd.f32 %v7747_v8, %v7743_v38 }
 0xc42   : > { %5504 = vpow2.f32 %v3801_v10 }
 0xc43   : > { %v7751_v59 = vpop.eup %5494  ;;  %5506 = vpow2.f32 %v3803_v53  ;;  %3845 = vadd.xlane.f32.xlu1 %v3844_v54 }
 0xc44   : > { %v7753_v40 = vpop.eup %5496  ;;  %5508 = vpow2.f32 %v3805_v43  ;;  %v3717_v5 = vpop.xlane.xlu0 %3716 }
 0xc45   : > { %v3751_v4 = vsub.f32 %v7655_v22, %v3717_v5  ;;  %v3752_v30 = vsub.f32 %v7657_v29, %v3717_v5  ;;  %v3847_v36 = vadd.f32 %v7753_v40, %v7751_v59 }
 0xc47   : > { %v7759_v11 = vpop.eup %5498  ;;  %v3807_v2 = vmul.f32 1.442695, %v3751_v4  ;;  %v3809_v58 = vmul.f32 1.442695, %v3752_v30  ;;  %3848 = vadd.xlane.f32.xlu0 %v3847_v36 }
 0xc48   : > { %v7761_v33 = vpop.eup %5500  ;;  %v3720_v13 = vpop.xlane.xlu0 %3719 }
 0xc49   : > { %5510 = vpow2.f32 %v3807_v2  ;;  %v3753_v15 = vsub.f32 %v7661_v61, %v3720_v13  ;;  %v3754_v51 = vsub.f32 %v7663_v35, %v3720_v13  ;;  %v3850_v22 = vadd.f32 %v7761_v33, %v7759_v11 }
 0xc4a   : > { %5512 = vpow2.f32 %v3809_v58 }
 0xc4b   : > { %v7767_v29 = vpop.eup %5502  ;;  %v3811_v41 = vmul.f32 1.442695, %v3753_v15  ;;  %v3813_v34 = vmul.f32 1.442695, %v3754_v51  ;;  %3851 = vadd.xlane.f32.xlu1 %v3850_v22 }
 0xc4c   : > { %v7769_v42 = vpop.eup %5504  ;;  %v3723_v0 = vpop.xlane.xlu0 %3722 }
 0xc4d   : > { %v7771_v21 = vpop.eup %5506  ;;  %5514 = vpow2.f32 %v3811_v41  ;;  %v3755_v3 = vsub.f32 %v7667_v17, %v3723_v0  ;;  %v3756_v61 = vsub.f32 %v7669_v27, %v3723_v0  ;;  %v3853_v35 = vadd.f32 %v7769_v42, %v7767_v29 }
 0xc4e   : > { %v7777_v28 = vpop.eup %5508  ;;  %5516 = vpow2.f32 %v3813_v34 }
 0xc4f   : > { %v3815_v57 = vmul.f32 1.442695, %v3755_v3  ;;  %v3817_v55 = vmul.f32 1.442695, %v3756_v61  ;;  %3854 = vadd.xlane.f32.xlu0 %v3853_v35  ;;  %v3856_v46 = vadd.f32 %v7777_v28, %v7771_v21 }
 0xc50   : > { %v3726_v7 = vpop.xlane.xlu0 %3725 }
 0xc51   : > { %5518 = vpow2.f32 %v3815_v57  ;;  %3857 = vadd.xlane.f32.xlu1 %v3856_v46  ;;  %v3757_v1 = vsub.f32 %v7673_v23, %v3726_v7  ;;  %v3758_v17 = vsub.f32 %v7675_v45, %v3726_v7 }
 0xc52   : > { %5520 = vpow2.f32 %v3817_v55 }
 0xc53   : > { %v7783_v27 = vpop.eup %5510  ;;  %v3819_v56 = vmul.f32 1.442695, %v3757_v1  ;;  %v3821_v52 = vmul.f32 1.442695, %v3758_v17 }
 0xc54   : > { %v7785_v19 = vpop.eup %5512 }
 0xc55   : > { %5522 = vpow2.f32 %v3819_v56  ;;  %v3859_v48 = vadd.f32 %v7785_v19, %v7783_v27 }
 0xc56   : > { %5524 = vpow2.f32 %v3821_v52 }
 0xc57   : > { %v7789_v18 = vpop.eup %5514  ;;  %3860 = vadd.xlane.f32.xlu0 %v3859_v48 }
 0xc58   : > { %v7791_v62 = vpop.eup %5516 }
 0xc59   : > { %v3862_v23 = vadd.f32 %v7791_v62, %v7789_v18 }
 0xc5b   : > { %v7795_v45 = vpop.eup %5518  ;;  %3863 = vadd.xlane.f32.xlu1 %v3862_v23 }
 0xc5c   : > { %v7797_v10 = vpop.eup %5520 }
 0xc5d   : > { %v3865_v24 = vadd.f32 %v7797_v10, %v7795_v45 }
 0xc5f   : > { %v7801_v6 = vpop.eup %5522  ;;  %3866 = vadd.xlane.f32.xlu0 %v3865_v24 }
 0xc60   : > { %v7803_v53 = vpop.eup %5524 }
 0xc61   : > { %v3868_v43 = vadd.f32 %v7803_v53, %v7801_v6 }
 0xc63   : > { %3869 = vadd.xlane.f32.xlu1 %v3868_v43 }
 0xcb4   : > { %v3825_v54 = vpop.xlane.xlu0 %3824 }
 0xcb5   : > { %5526 = vrcp.f32 %v3825_v54 }
 0xcb8   : > { %v3828_v5 = vpop.xlane.xlu0 %3827 }
 0xcb9   : > { %5528 = vrcp.f32 %v3828_v5 }
 0xcbc   : > { %v3831_v4 = vpop.xlane.xlu0 %3830 }
 0xcbd   : > { %5530 = vrcp.f32 %v3831_v4 }
 0xcbf   : > { %v5527_v36 = vpop.eup %5526 }
 0xcc0   : > { %v3834_v30 = vpop.xlane.xlu0 %3833  ;;  %v3873_v13 = vmul.f32 %v5527_v36, %v7689_v20  ;;  %v3872_v51 = vmul.f32 %v5527_v36, %v7687_v39 }
 0xcc1   : > { %5532 = vrcp.f32 %v3834_v30 }
 0xcc3   : > { %v5529_v2 = vpop.eup %5528 }
 0xcc4   : > { %v3837_v58 = vpop.xlane.xlu0 %3836  ;;  %v3876_v15 = vmul.f32 %v5529_v2, %v7697_v50  ;;  %v3875_v22 = vmul.f32 %v5529_v2, %v7695_v9 }
 0xcc5   : > { %5534 = vrcp.f32 %v3837_v58 }
 0xcc6   : > { %v3922_v41 = vpack.c.bf16 %v3876_v15, %v3873_v13  ;;  %v3921_v34 = vpack.c.bf16 %v3875_v22, %v3872_v51 }
 0xcc7   : > { %v5531_v3 = vpop.eup %5530 }
 0xcc8   : > { %3937 = vmatprep.subr.bf16.mxu1 %v3922_v41  ;;  %v3840_v0 = vpop.xlane.xlu0 %3839  ;;  %v3879_v57 = vmul.f32 %v5531_v3, %v7705_v25  ;;  %v3878_v50 = vmul.f32 %v5531_v3, %v7703_v12 }
 0xcc9   : > { %5536 = vrcp.f32 %v3840_v0  ;;  %3938 = vmatpush1.bf16.xpose.msra.mxu1 %v3921_v34 }
 0xccb   : > { %v5533_v61 = vpop.eup %5532 }
 0xccc   : > { %v3843_v35 = vpop.xlane.xlu0 %3842  ;;  %v3882_v20 = vmul.f32 %v5533_v61, %v7713_v47  ;;  %v3881_v39 = vmul.f32 %v5533_v61, %v7711_v44 }
 0xccd   : > { %5538 = vrcp.f32 %v3843_v35 }
 0xcce   : > { %v3924_v55 = vpack.c.bf16 %v3882_v20, %v3879_v57  ;;  %v3923_v9 = vpack.c.bf16 %v3881_v39, %v3878_v50 }
 0xccf   : > { %v5535_v7 = vpop.eup %5534 }
 0xcd0   : > { %v3846_v46 = vpop.xlane.xlu1 %3845  ;;  %3939 = vmatprep.subr.bf16.mxu1 %v3924_v55  ;;  %v3885_v56 = vmul.f32 %v5535_v7, %v7721_v60  ;;  %v3884_v47 = vmul.f32 %v5535_v7, %v7719_v26 }
 0xcd1   : > { %5540 = vrcp.f32 %v3846_v46  ;;  %3940 = vmatpush1.bf16.xpose.msra.mxu1 %v3923_v9 }
 0xcd3   : > { %v5537_v1 = vpop.eup %5536 }
 0xcd4   : > { %v3849_v17 = vpop.xlane.xlu0 %3848  ;;  %v3888_v25 = vmul.f32 %v5537_v1, %v7729_v31  ;;  %v3887_v12 = vmul.f32 %v5537_v1, %v7727_v32  ;;  %v3988_v1 = vld [vmem:[%s8242_s14 + $0x18] sm:$0xff] }
 0xcd5   : > { %5542 = vrcp.f32 %v3849_v17 }
 0xcd6   : > { %v3926_v52 = vpack.c.bf16 %v3888_v25, %v3885_v56  ;;  %v3925_v44 = vpack.c.bf16 %v3887_v12, %v3884_v47  ;;  %v3979_v56 = vld [vmem:[%s8241_s13 + $0x10] sm:$0xff]  ;;  %v3980_v25 = vld [vmem:[%s8241_s13 + $0x18] sm:$0xff] }
 0xcd7   : > { %v5539_v23 = vpop.eup %5538 }
 0xcd8   : > { %v3852_v48 = vpop.xlane.xlu1 %3851  ;;  %3941 = vmatprep.subr.bf16.mxu1 %v3926_v52  ;;  %v3891_v54 = vmul.f32 %v5539_v23, %v7737_v16  ;;  %v3890_v31 = vmul.f32 %v5539_v23, %v7735_v63  ;;  %v5592_v23 = vld [vmem:[%s5825_s24] sm:$0xff] }
 0xcd9   : > { %5544 = vrcp.f32 %v3852_v48  ;;  %3942 = vmatpush1.bf16.xpose.msra.mxu1 %v3925_v44  ;;  %v3982_v48 = vpack.c.bf16 %v3980_v25, %v3979_v56 }
 0xcdb   : > { %v5541_v24 = vpop.eup %5540 }
 0xcdc   : > { %v3855_v43 = vpop.xlane.xlu0 %3854  ;;  %v3894_v60 = vmul.f32 %v5541_v24, %v7747_v8  ;;  %v3893_v26 = vmul.f32 %v5541_v24, %v7743_v38  ;;  %v5593_v24 = vld [vmem:[%s5834_s26] sm:$0xff] }
 0xcdd   : > { %5546 = vrcp.f32 %v3855_v43  ;;  %v4064_v43 = vadd.f32 %v5593_v24, %v5592_v23  ;;  %v4175_v23 = vld [vmem:[%s8244_s16 + $0x18] sm:$0xff]  ;;  %v4174_v24 = vld [vmem:[%s8244_s16 + $0x10] sm:$0xff] }
 0xcde   : > { %v3858_v32 = vpop.xlane.xlu1 %3857  ;;  %v3928_v5 = vpack.c.bf16 %v3894_v60, %v3891_v54  ;;  %v3927_v4 = vpack.c.bf16 %v3893_v26, %v3890_v31  ;;  %v5594_v60 = vld [vmem:[%s5825_s24 + $0x8] sm:$0xff]  ;;  %v5596_v26 = vld [vmem:[%s5825_s24 + $0x10] sm:$0xff] }
 0xcdf   : > { %5548 = vrcp.f32 %v3858_v32  ;;  %v5543_v30 = vpop.eup %5542  ;;  %v5597_v32 = vld [vmem:[%s5834_s26 + $0x10] sm:$0xff] }
 0xce0   : > { %3943 = vmatprep.subr.bf16.mxu1 %v3928_v5  ;;  %v3897_v58 = vmul.f32 %v5543_v30, %v7753_v40  ;;  %v3896_v8 = vmul.f32 %v5543_v30, %v7751_v59  ;;  %v4066_v5 = vadd.f32 %v5597_v32, %v5596_v26  ;;  %v4180_v26 = vld [vmem:[%s8244_s16 + $0x40] sm:$0xff]  ;;  %v4183_v32 = vld [vmem:[%s8244_s16 + $0x58] sm:$0xff] }
 0xce1   : > { %3944 = vmatpush1.bf16.xpose.msra.mxu1 %v3927_v4  ;;  %v5598_v4 = vld [vmem:[%s5853_s27] sm:$0xff] }
 0xce2   : > { %v4068_v30 = vadd.f32 %v5598_v4, %v4064_v43  ;;  %v4177_v43 = vld [vmem:[%s8244_s16 + $0x28] sm:$0xff] }
 0xce3   : > { %v5545_v36 = vpop.eup %5544  ;;  %v4185_v4 = vld [vmem:[%s8244_s16 + $0x68] sm:$0xff] }
 0xce4   : > { %v3861_v2 = vpop.xlane.xlu0 %3860  ;;  %v3900_v16 = vmul.f32 %v5545_v36, %v7761_v33  ;;  %v3899_v63 = vmul.f32 %v5545_v36, %v7759_v11  ;;  %v5599_v36 = vld [vmem:[%s5853_s27 + $0x8] sm:$0xff] }
 0xce5   : > { %5550 = vrcp.f32 %v3861_v2 }
 0xce6   : > { %v3930_v13 = vpack.c.bf16 %v3900_v16, %v3897_v58  ;;  %v3929_v38 = vpack.c.bf16 %v3899_v63, %v3896_v8  ;;  %v5600_v58 = vld [vmem:[%s5825_s24 + $0x18] sm:$0xff]  ;;  %s5669_s24 = smov [#allocation2]  }
 0xce7   : > { %v5547_v15 = vpop.eup %5546  ;;  %v5601_v16 = vld [vmem:[%s5834_s26 + $0x18] sm:$0xff] }
 0xce8   : > { %v3864_v51 = vpop.xlane.xlu1 %3863  ;;  %3945 = vmatprep.subr.bf16.mxu1 %v3930_v13  ;;  %v3903_v41 = vmul.f32 %v5547_v15, %v7769_v42  ;;  %v3902_v59 = vmul.f32 %v5547_v15, %v7767_v29  ;;  %v4067_v8 = vadd.f32 %v5601_v16, %v5600_v58  ;;  %v4548_v58 = vld [vmem:[%s8246_s18 + $0x8] sm:$0xff]  ;;  %v4547_v16 = vld [vmem:[%s8246_s18] sm:$0xff] }
 0xce9   : > { %v5549_v22 = vpop.eup %5548  ;;  %5552 = vrcp.f32 %v3864_v51  ;;  %3946 = vmatpush1.bf16.xpose.msra.mxu1 %v3929_v38  ;;  %v5602_v38 = vld [vmem:[%s5853_s27 + $0x10] sm:$0xff] }
 0xcea   : > { %v3906_v34 = vmul.f32 %v5549_v22, %v7777_v28  ;;  %v3905_v40 = vmul.f32 %v5549_v22, %v7771_v21  ;;  %v4070_v15 = vadd.f32 %v5602_v38, %v4066_v5  ;;  %v4072_v22 = vmul.f32 0.33333334, %v4068_v30  ;;  %v4182_v5 = vld [vmem:[%s8244_s16 + $0x50] sm:$0xff]  ;;  %v4184_v30 = vld [vmem:[%s8244_s16 + $0x60] sm:$0xff]  ;;  %v4147_v38 = vld [vmem:[%s8243_s15 + $0x8] sm:$0xff] }
 0xcec   : > { %v3867_v33 = vpop.xlane.xlu0 %3866  ;;  %v3932_v0 = vpack.c.bf16 %v3906_v34, %v3903_v41  ;;  %v3931_v11 = vpack.c.bf16 %v3905_v40, %v3902_v59 }
 0xced   : > { %5554 = vrcp.f32 %v3867_v33 }
 0xcee   : > { %3947 = vmatprep.subr.bf16.mxu1 %v3932_v0  ;;  %v5603_v0 = vld [vmem:[%s5853_s27 + $0x18] sm:$0xff]  ;;  %s5608_s27 = sshll.u32 %s5669_s24, 4  ;;  %s5609_s27 = int_to_ptr.vmem [resolvable:$false] %s5608_s27 }
 0xcef   : > { %v5551_v61 = vpop.eup %5550  ;;  %v4071_v59 = vadd.f32 %v5603_v0, %v4067_v8  ;;  %v4550_v8 = vld [vmem:[%s8246_s18 + $0x18] sm:$0xff]  ;;  %s5610_s2 = scalar_lea.vmem %s5609_s27, 1024  ;;  %p5611_p0 = scmp.lt.s32.totalorder %s8178_s22, %s5609_s27 }
 0xcf0   : > { %v3870_v3 = vpop.xlane.xlu1 %3869  ;;  %v3909_v57 = vmul.f32 %v5551_v61, %v7785_v19  ;;  %v3908_v28 = vmul.f32 %v5551_v61, %v7783_v27  ;;  %v3408_v27 = vmul.f32 0.5, %v6666_v37  ;;  %v3986_v37 = vld [vmem:[%s8242_s14 + $0x8] sm:$0xff]  ;;  %v4074_v61 = vmul.f32 0.33333334, %v4070_v15 }
 0xcf1   : > { %5556 = vrcp.f32 %v3870_v3  ;;  %3948 = vmatpush1.bf16.xpose.msra.mxu1 %v3931_v11  ;;  %3996 = vperm.xlu1 %5007, %v3986_v37  }
 0xcf3   : > { %v5553_v35 = vpop.eup %5552 }
 0xcf4   : > { %v3912_v42 = vmul.f32 %v5553_v35, %v7791_v62  ;;  %v3911_v21 = vmul.f32 %v5553_v35, %v7789_v18  ;;  %v3919_v18 = vpack.c.bf16 %v3408_v27, %v3408_v27 }
 0xcf6   : > { %v3934_v20 = vpack.c.bf16 %v3912_v42, %v3909_v57  ;;  %v3933_v50 = vpack.c.bf16 %v3911_v21, %v3908_v28 }
 0xcf7   : > { %v5555_v29 = vpop.eup %5554 }
 0xcf8   : > { %3949 = vmatprep.subr.bf16.mxu1 %v3934_v20  ;;  %v3915_v55 = vmul.f32 %v5555_v29, %v7797_v10  ;;  %v3914_v46 = vmul.f32 %v5555_v29, %v7795_v45  ;;  %v3977_v10 = vld [vmem:[%s8241_s13] sm:$0xff]  ;;  %v3978_v45 = vld [vmem:[%s8241_s13 + $0x8] sm:$0xff] }
 0xcf9   : > { %3950 = vmatpush1.bf16.xpose.msra.mxu1 %v3933_v50  ;;  %v4075_v50 = vmul.f32 0.33333334, %v4071_v59 }
 0xcfb   : > { %v5557_v39 = vpop.eup %5556 }
 0xcfc   : > { %v3918_v9 = vmul.f32 %v5557_v39, %v7803_v53  ;;  %v3917_v19 = vmul.f32 %v5557_v39, %v7801_v6  ;;  %v3981_v6 = vpack.c.bf16 %v3978_v45, %v3977_v10  ;;  %v3985_v53 = vld [vmem:[%s8242_s14] sm:$0xff] }
 0xcfd   : > { %3991 = vperm.xlu0 %5006, %v3985_v53  }
 0xcfe   : > { %v3936_v7 = vpack.c.bf16 %v3918_v9, %v3915_v55  ;;  %v3935_v62 = vpack.c.bf16 %v3917_v19, %v3914_v46 }
 0xd00   : > { %3951 = vmatprep.subr.bf16.mxu1 %v3936_v7 }
 0xd01   : > { %3952 = vmatpush1.bf16.xpose.msra.mxu1 %v3935_v62 }
 0xd02   : > { %4916 = vmatprep.subr.bf16.mxu1 %v7300_v49 }
 0xd08   : > { %3970 = vmatmul.mubr.bf16.vlgmr.msra.gmra.mrb[84].mxu1 %v3919_v18 }
 0xd09   : > { %4917 = vmatpush3.bf16.msra.mxu1 %v7300_v49  ;;  %4920 = vmatprep.mubr.msk.bf16.mxu1 %vm899_vm0, %v3981_v6  ;;  %v3987_v49 = vld [vmem:[%s8242_s14 + $0x10] sm:$0xff] }
 0xd0a   : > { %4001 = vperm.xlu1 %5007, %v3987_v49  }
 0xd0e   : > { %4006 = vperm.xlu1 %5007, %v3988_v1  }
 0xd70   : > { %v3997_v54 = vpop.permute.xlu1 %3996 }
 0xd7c   : > { %v3992_v13 = vpop.permute.xlu0 %3991 }
 0xd89   : > { %v4002_v63 = vpop.permute.xlu1 %4001 }
 0xd8d   : > { %v4007_v42 = vpop.permute.xlu1 %4006 }
 0xddb   : > { %v3971_v17 = vpop.f32.mrb[84].mxu1 }
 0xddc   : > { %v3984_v47 = vpack.c.bf16 %v3971_v17, %v7581_v14  ;;  %v3973_v12 = vpop.f32.mrb[85].mxu1  ;;  %v5595_v14 = vld [vmem:[%s5834_s26 + $0x8] sm:$0xff]  ;;  %s5604_s26 = scalar_lea.vmem %s8178_s22, 512 }
 0xddd   : > { %v3974_v52 = vpop.f32.mrb[86].mxu1  ;;  %v4065_v31 = vadd.f32 %v5595_v14, %v5594_v60  ;;  %v4179_v60 = vld [vmem:[%s8244_s16 + $0x38] sm:$0xff]  ;;  %v4178_v14 = vld [vmem:[%s8244_s16 + $0x30] sm:$0xff]  ;;  %p5605_p11 = scmp.ne.s32.totalorder %s8178_s22, %s5604_s26  ;;  %p5612_p1 = scmp.lt.s32.totalorder %s5610_s2, %s5604_s26 }
 0xdde   : > { %v3975_v44 = vpop.f32.mrb[87].mxu1  ;;  %4918 = vmatprep.subr.bf16.mxu1 %v3984_v47 }
 0xddf   : > { %4919 = vmatpush3.bf16.msra.mxu1 %v3984_v47  ;;  %v4069_v2 = vadd.f32 %v5599_v36, %v4065_v31  ;;  %v4172_v44 = vld [vmem:[%s8244_s16] sm:$0xff]  ;;  %v4181_v31 = vld [vmem:[%s8244_s16 + $0x48] sm:$0xff]  ;;  %v4187_v36 = vld [vmem:[%s8244_s16 + $0x78] sm:$0xff]  ;;  %p5606_p12 = pnand %p5605_p11, %p5810_p5  ;;  %p5613_p2 = por %p5612_p1, %p5611_p0 }
 0xde1   : > { %v4073_v33 = vmul.f32 0.33333334, %v4069_v2  ;;  %v4186_v2 = vld [vmem:[%s8244_s16 + $0x70] sm:$0xff]  ;;  %p5607_p13 = pneg %p5606_p12 }
 0xde2   : > { %4921 = vmatmul.mubr.msk.bf16.vlgmr.msra.gmra.mrb[88].mxu1 %vm899_vm0, %v3982_v48  ;;  %v4173_v48 = vld [vmem:[%s8244_s16 + $0x8] sm:$0xff] }
 0xde3   : > { %p5614_p3 = pnand %p5613_p2, %p5607_p13 }
 0xeb5   : > { %v4922_v51 = vpop.f32.mrb[88].mxu1 }
 0xeb6   : > { %v4049_v41 = vpop.f32.mrb[89].mxu1  ;;  %v4058_v3 = vadd.f32 %v4922_v51, %v4002_v63  ;;  %v4549_v63 = vld [vmem:[%s8246_s18 + $0x10] sm:$0xff] }
 0xeb7   : > { %v4050_v34 = vadd.f32 %v4049_v41, %v3992_v13  ;;  %v4923_v40 = vpop.f32.mrb[90].mxu1  ;;  %v4146_v13 = vld [vmem:[%s8243_s15] sm:$0xff] }
 0xeb8   : > { %v4052_v11 = vpop.f32.mrb[91].mxu1  ;;  %v7886_v21 = vadd.f32 %v4074_v61, %v4058_v3  ;;  %v4061_v20 = vadd.f32 %v4923_v40, %v4007_v42  ;;  %v4162_v15 = vpack.c.bf16 %v4147_v38, %v4146_v13  ;;  %v4161_v13 = vld [vmem:[%s8243_s15 + $0x78] sm:$0xff] }
 0xeb9   : > { %v7881_v35 = vadd.f32 %v4072_v22, %v4050_v34  ;;  %v4053_v57 = vadd.f32 %v4052_v11, %v3997_v54  ;;  %v4176_v54 = vld [vmem:[%s8244_s16 + $0x20] sm:$0xff] }
 0xeba   : > { %v7890_v29 = vadd.f32 %v4075_v50, %v4061_v20  ;;  %4928 = vmatprep.mubr.msk.bf16.mxu1 %vm899_vm0, %v4162_v15  ;;  %v4533_v15 = vld [vmem:[%s8245_s17] sm:$0xff] }
 0xebb   : > { %v7883_v28 = vadd.f32 %v4073_v33, %v4053_v57  ;;  %4088 = vadd.xlane.f32.xlu1 %v7881_v35 }
 0xebd   : > { %4090 = vadd.xlane.f32.xlu0 %v7883_v28 }
 0xebf   : > { %4092 = vadd.xlane.f32.xlu1 %v7886_v21 }
 0xec3   : > { %4094 = vadd.xlane.f32.xlu1 %v7890_v29 }
 0xf48   : > { %v4089_v39 = vpop.xlane.xlu1 %4088 }
 0xf4a   : > { %v4091_v55 = vpop.xlane.xlu0 %4090 }
 0xf4b   : > { %v4096_v9 = vadd.f32 %v4091_v55, %v4089_v39  ;;  %v4080_v39 = vld [vmem:[%s8233_s5] sm:$0xff] }
 0xf4c   : > { %v4093_v46 = vpop.xlane.xlu1 %4092 }
 0xf4d   : > { %v4097_v19 = vadd.f32 %v4096_v9, %v4093_v46  ;;  %v4081_v9 = vld [vmem:[%s8233_s5 + $0x8] sm:$0xff]  ;;  %v4082_v46 = vld [vmem:[%s8233_s5 + $0x10] sm:$0xff] }
 0xf50   : > { %v4095_v7 = vpop.xlane.xlu1 %4094 }
 0xf51   : > { %v4098_v62 = vadd.f32 %v4097_v19, %v4095_v7  ;;  %v4083_v19 = vld [vmem:[%s8233_s5 + $0x18] sm:$0xff]  ;;  %v4084_v7 = vld [vmem:[%s8234_s6] sm:$0xff] }
 0xf53   : > { %v4099_v27 = vrot.slane %v4098_v62, 4 }
 0xf55   : > { %v4100_v18 = vadd.f32 %v4099_v27, %v4098_v62 }
 0xf57   : > { %v4101_v10 = vrot.slane %v4100_v18, 2 }
 0xf59   : > { %v4102_v45 = vadd.f32 %v4101_v10, %v4100_v18 }
 0xf5b   : > { %v4103_v6 = vrot.slane %v4102_v45, 1 }
 0xf5d   : > { %v4104_v37 = vadd.f32 %v4103_v6, %v4102_v45  ;;  %v4085_v45 = vld [vmem:[%s8234_s6 + $0x8] sm:$0xff]  ;;  %v4086_v6 = vld [vmem:[%s8234_s6 + $0x10] sm:$0xff] }
 0xf5f   : > { %v4105_v53 = vmul.f32 0.00024414063, %v4104_v37  ;;  %v4087_v37 = vld [vmem:[%s8234_s6 + $0x18] sm:$0xff] }
 0xf61   : > { %v7894_v49 = vsub.f32 %v7886_v21, %v4105_v53  ;;  %v7897_v1 = vsub.f32 %v7881_v35, %v4105_v53  ;;  %v7904_v25 = vsub.f32 %v7883_v28, %v4105_v53  ;;  %v7909_v12 = vsub.f32 %v7890_v29, %v4105_v53 }
 0xf63   : > { %v4112_v17 = vmul.f32 %v7894_v49, %v7894_v49  ;;  %v4110_v56 = vmul.f32 %v7897_v1, %v7897_v1  ;;  %v4111_v47 = vmul.f32 %v7904_v25, %v7904_v25  ;;  %v4113_v52 = vmul.f32 %v7909_v12, %v7909_v12 }
 0xf65   : > { %4118 = vadd.xlane.f32.xlu0 %v4112_v17  ;;  %4114 = vadd.xlane.f32.xlu1 %v4110_v56 }
 0xf69   : > { %4116 = vadd.xlane.f32.xlu1 %v4111_v47 }
 0xf6d   : > { %4120 = vadd.xlane.f32.xlu1 %v4113_v52 }
 0xf7b   : > { %4190 = vperm.xlu0 %5006, %v4172_v44  }
 0xf7e   : > { %4195 = vperm.xlu1 %5007, %v4173_v48   ;;  %v4148_v48 = vld [vmem:[%s8243_s15 + $0x10] sm:$0xff] }
 0xf7f   : > { %4205 = vperm.xlu0 %5006, %v4175_v23   ;;  %v4149_v23 = vld [vmem:[%s8243_s15 + $0x18] sm:$0xff] }
 0xf82   : > { %4200 = vperm.xlu1 %5007, %v4174_v24   ;;  %v4150_v24 = vld [vmem:[%s8243_s15 + $0x20] sm:$0xff] }
 0xf83   : > { %4215 = vperm.xlu0 %5006, %v4177_v43   ;;  %v4151_v43 = vld [vmem:[%s8243_s15 + $0x28] sm:$0xff] }
 0xf86   : > { %4210 = vperm.xlu1 %5007, %v4176_v54   ;;  %v4163_v54 = vpack.c.bf16 %v4149_v23, %v4148_v48 }
 0xf87   : > { %4225 = vperm.xlu0 %5006, %v4179_v60   ;;  %v4164_v60 = vpack.c.bf16 %v4151_v43, %v4150_v24 }
 0xf8a   : > { %4220 = vperm.xlu1 %5007, %v4178_v14   ;;  %v4152_v14 = vld [vmem:[%s8243_s15 + $0x30] sm:$0xff] }
 0xf8b   : > { %4235 = vperm.xlu0 %5006, %v4181_v31   ;;  %v4153_v31 = vld [vmem:[%s8243_s15 + $0x38] sm:$0xff] }
 0xf8e   : > { %4230 = vperm.xlu1 %5007, %v4180_v26   ;;  %v4154_v26 = vld [vmem:[%s8243_s15 + $0x40] sm:$0xff] }
 0xf8f   : > { %4245 = vperm.xlu0 %5006, %v4183_v32   ;;  %v4155_v32 = vld [vmem:[%s8243_s15 + $0x48] sm:$0xff] }
 0xf92   : > { %4240 = vperm.xlu1 %5007, %v4182_v5   ;;  %v4165_v5 = vpack.c.bf16 %v4153_v31, %v4152_v14 }
 0xf93   : > { %4255 = vperm.xlu0 %5006, %v4185_v4   ;;  %v4166_v4 = vpack.c.bf16 %v4155_v32, %v4154_v26 }
 0xf96   : > { %4250 = vperm.xlu1 %5007, %v4184_v30   ;;  %v4156_v30 = vld [vmem:[%s8243_s15 + $0x50] sm:$0xff] }
 0xf97   : > { %4265 = vperm.xlu0 %5006, %v4187_v36   ;;  %v4157_v36 = vld [vmem:[%s8243_s15 + $0x58] sm:$0xff] }
 0xf9a   : > { %4260 = vperm.xlu1 %5007, %v4186_v2   ;;  %v4158_v2 = vld [vmem:[%s8243_s15 + $0x60] sm:$0xff] }
 0xf9b   : > { %4558 = vperm.xlu0 %5006, %v4548_v58   ;;  %v4159_v58 = vld [vmem:[%s8243_s15 + $0x68] sm:$0xff] }
 0xf9e   : > { %4553 = vperm.xlu1 %5007, %v4547_v16   ;;  %v4167_v16 = vpack.c.bf16 %v4157_v36, %v4156_v30 }
 0xf9f   : > { %4568 = vperm.xlu0 %5006, %v4550_v8   ;;  %v4168_v8 = vpack.c.bf16 %v4159_v58, %v4158_v2 }
 0xfa2   : > { %4563 = vperm.xlu1 %5007, %v4549_v63   ;;  %v4160_v63 = vld [vmem:[%s8243_s15 + $0x70] sm:$0xff] }
 0xfa3   : > { %v4169_v38 = vpack.c.bf16 %v4161_v13, %v4160_v63 }
 0xff2   : > { %v4115_v51 = vpop.xlane.xlu1 %4114  ;;  %v4119_v34 = vpop.xlane.xlu0 %4118 }
 0xff6   : > { %v4117_v22 = vpop.xlane.xlu1 %4116 }
 0xff7   : > { %v4122_v41 = vadd.f32 %v4117_v22, %v4115_v51  ;;  %v4534_v51 = vld [vmem:[%s8245_s17 + $0x8] sm:$0xff] }
 0xff8   : > { %v4537_v22 = vpack.c.bf16 %v4534_v51, %v4533_v15 }
 0xff9   : > { %v4123_v40 = vadd.f32 %v4122_v41, %v4119_v34 }
 0xffa   : > { %v4121_v33 = vpop.xlane.xlu1 %4120  ;;  %4960 = vmatprep.mubr.bf16.mxu0 %v4537_v22  ;;  %v4191_v34 = vpop.permute.xlu0 %4190 }
 0xffb   : > { %v4124_v0 = vadd.f32 %v4123_v40, %v4121_v33 }
 0xffd   : > { %v4125_v59 = vrot.slane %v4124_v0, 4 }
 0xffe   : > { %v4196_v41 = vpop.permute.xlu1 %4195  ;;  %v4206_v33 = vpop.permute.xlu0 %4205 }
 0xfff   : > { %v4126_v11 = vadd.f32 %v4125_v59, %v4124_v0 }
0x1001   : > { %v4127_v3 = vrot.slane %v4126_v11, 2 }
0x1002   : > { %v4201_v40 = vpop.permute.xlu1 %4200  ;;  %v4216_v59 = vpop.permute.xlu0 %4215 }
0x1003   : > { %v4128_v61 = vadd.f32 %v4127_v3, %v4126_v11 }
0x1005   : > { %v4129_v57 = vrot.slane %v4128_v61, 1 }
0x1006   : > { %v4211_v0 = vpop.permute.xlu1 %4210 }
0x1007   : > { %v4130_v42 = vadd.f32 %v4129_v57, %v4128_v61 }
0x1009   : > { %v4131_v20 = vmul.f32 0.00024414063, %v4130_v42  ;;  %v4226_v42 = vpop.permute.xlu0 %4225 }
0x100a   : > { %v4221_v11 = vpop.permute.xlu1 %4220 }
0x100b   : > { %v4132_v50 = vadd.f32 1e-05, %v4131_v20 }
0x100d   : > { %5558 = vrsqrt.f32 %v4132_v50 }
0x1017   : > { %v5559_v55 = vpop.eup %5558 }
0x1018   : > { %v4134_v62 = vmul.f32 %v5559_v55, %v7897_v1  ;;  %v4135_v27 = vmul.f32 %v5559_v55, %v7904_v25  ;;  %v4136_v18 = vmul.f32 %v5559_v55, %v7894_v49  ;;  %v4137_v10 = vmul.f32 %v5559_v55, %v7909_v12 }
0x101a   : > { %v4138_v53 = vmul.f32 %v4134_v62, %v4080_v39  ;;  %v4139_v1 = vmul.f32 %v4135_v27, %v4081_v9  ;;  %v4140_v17 = vmul.f32 %v4136_v18, %v4082_v46  ;;  %v4141_v56 = vmul.f32 %v4137_v10, %v4083_v19  ;;  %v4231_v27 = vpop.permute.xlu1 %4230 }
0x101c   : > { %v4142_v25 = vadd.f32 %v4138_v53, %v4084_v7  ;;  %v4143_v49 = vadd.f32 %v4139_v1, %v4085_v45  ;;  %v4144_v47 = vadd.f32 %v4140_v17, %v4086_v6  ;;  %v4145_v12 = vadd.f32 %v4141_v56, %v4087_v37  ;;  %v4236_v37 = vpop.permute.xlu0 %4235 }
0x101e   : > { %v4170_v52 = vpack.c.bf16 %v4143_v49, %v4142_v25  ;;  %v4171_v44 = vpack.c.bf16 %v4145_v12, %v4144_v47  ;;  %v4241_v14 = vpop.permute.xlu1 %4240 }
0x1020   : > { %4924 = vmatprep.subr.bf16.mxu1 %v4170_v52  ;;  %v4246_v2 = vpop.permute.xlu0 %4245 }
0x1021   : > { %4925 = vmatpush3.bf16.msra.mxu1 %v4170_v52 }
0x1022   : > { %4926 = vmatprep.subr.bf16.mxu1 %v4171_v44 }
0x1025   : > { %4927 = vmatpush3.bf16.msra.mxu1 %v4171_v44 }
0x1028   : > { %4929 = vmatmul.mubr.msk.bf16.vlgmr.msra.gmra.mrb[92].mxu1 %vm899_vm0, %v4163_v54 }
0x1029   : > { %4932 = vmatprep.mubr.msk.bf16.mxu1 %vm899_vm0, %v4164_v60 }
0x1030   : > { %4933 = vmatmul.mubr.msk.bf16.gmra.mrb[96].mxu1 %vm899_vm0, %v4165_v5 }
0x1031   : > { %4936 = vmatprep.mubr.msk.bf16.mxu1 %vm899_vm0, %v4166_v4 }
0x1038   : > { %4937 = vmatmul.mubr.msk.bf16.gmra.mrb[100].mxu1 %vm899_vm0, %v4167_v16 }
0x1039   : > { %4940 = vmatprep.mubr.msk.bf16.mxu1 %vm899_vm0, %v4168_v8 }
0x1040   : > { %4941 = vmatmul.mubr.msk.bf16.gmra.mrb[104].mxu1 %vm899_vm0, %v4169_v38 }
0x10fb   : > { %v4930_v3 = vpop.f32.mrb[92].mxu1 }
0x10fc   : > { %v4335_v61 = vadd.f32 %v4930_v3, %v4201_v40  ;;  %v4326_v57 = vpop.f32.mrb[93].mxu1 }
0x10fd   : > { %v8063_v20 = vadd.f32 %v4326_v57, %v4191_v34  ;;  %v4931_v50 = vpop.f32.mrb[94].mxu1 }
0x10fe   : > { %v4407_v39 = vmul.f32 0.044715, %v4335_v61  ;;  %v8065_v55 = vadd.f32 %v4931_v50, %v4206_v33  ;;  %v4329_v9 = vpop.f32.mrb[95].mxu1  ;;  %v4391_v40 = vmul.f32 0.5, %v4335_v61  ;;  %v4251_v33 = vpop.permute.xlu1 %4250 }
0x10ff   : > { %v4405_v46 = vmul.f32 0.044715, %v8063_v20  ;;  %v8068_v19 = vadd.f32 %v4329_v9, %v4196_v41  ;;  %v4389_v9 = vmul.f32 0.5, %v8063_v20 }
0x1100   : > { %v4423_v7 = vmul.f32 %v4407_v39, %v4335_v61  ;;  %v4408_v62 = vmul.f32 0.044715, %v8065_v55 }
0x1101   : > { %v4421_v18 = vmul.f32 %v4405_v46, %v8063_v20  ;;  %v4406_v10 = vmul.f32 0.044715, %v8068_v19 }
0x1102   : > { %v4439_v45 = vmul.f32 %v4423_v7, %v4335_v61  ;;  %v4424_v6 = vmul.f32 %v4408_v62, %v8065_v55 }
0x1103   : > { %v4437_v53 = vmul.f32 %v4421_v18, %v8063_v20  ;;  %v4422_v1 = vmul.f32 %v4406_v10, %v8068_v19  ;;  %v4934_v17 = vpop.f32.mrb[96].mxu1 }
0x1104   : > { %v4440_v56 = vmul.f32 %v4424_v6, %v8065_v55  ;;  %v8077_v25 = vadd.f32 %v4934_v17, %v4221_v11  ;;  %v4342_v49 = vpop.f32.mrb[97].mxu1  ;;  %v4455_v47 = vadd.f32 %v4439_v45, %v4335_v61  ;;  %v4256_v61 = vpop.permute.xlu0 %4255 }
0x1105   : > { %v4438_v12 = vmul.f32 %v4422_v1, %v8068_v19  ;;  %v8080_v52 = vadd.f32 %v4342_v49, %v4211_v0  ;;  %v4935_v44 = vpop.f32.mrb[98].mxu1  ;;  %v4453_v48 = vadd.f32 %v4437_v53, %v8063_v20 }
0x1106   : > { %v4411_v23 = vmul.f32 0.044715, %v8077_v25  ;;  %v8084_v24 = vadd.f32 %v4935_v44, %v4226_v42  ;;  %v4345_v43 = vpop.f32.mrb[99].mxu1  ;;  %v4456_v54 = vadd.f32 %v4440_v56, %v8065_v55  ;;  %v4471_v60 = vmul.f32 0.7978846, %v4455_v47  ;;  %v4261_v44 = vpop.permute.xlu1 %4260 }
0x1107   : > { %v4409_v31 = vmul.f32 0.044715, %v8080_v52  ;;  %v8088_v26 = vadd.f32 %v4345_v43, %v4216_v59  ;;  %v4454_v32 = vadd.f32 %v4438_v12, %v8068_v19  ;;  %v4469_v5 = vmul.f32 0.7978846, %v4453_v48 }
0x1108   : > { %v4427_v4 = vmul.f32 %v4411_v23, %v8077_v25  ;;  %v4412_v30 = vmul.f32 0.044715, %v8084_v24  ;;  %v4472_v36 = vmul.f32 0.7978846, %v4456_v54  ;;  %5560 = vtanh.f32 %v4471_v60 }
0x1109   : > { %v4425_v58 = vmul.f32 %v4409_v31, %v8080_v52  ;;  %v4410_v16 = vmul.f32 0.044715, %v8088_v26  ;;  %v4470_v8 = vmul.f32 0.7978846, %v4454_v32  ;;  %5562 = vtanh.f32 %v4469_v5 }
0x110a   : > { %v4443_v63 = vmul.f32 %v4427_v4, %v8077_v25  ;;  %v4428_v13 = vmul.f32 %v4412_v30, %v8084_v24  ;;  %5564 = vtanh.f32 %v4472_v36  ;;  %v4392_v47 = vmul.f32 0.5, %v8065_v55  ;;  %v4266_v55 = vpop.permute.xlu0 %4265 }
0x110b   : > { %v4441_v38 = vmul.f32 %v4425_v58, %v8080_v52  ;;  %v4426_v15 = vmul.f32 %v4410_v16, %v8088_v26  ;;  %v4938_v51 = vpop.f32.mrb[100].mxu1  ;;  %5566 = vtanh.f32 %v4470_v8  ;;  %v4393_v54 = vmul.f32 0.5, %v8080_v52 }
0x110c   : > { %v4444_v22 = vmul.f32 %v4428_v13, %v8084_v24  ;;  %v8100_v41 = vadd.f32 %v4938_v51, %v4241_v14  ;;  %v4358_v34 = vpop.f32.mrb[101].mxu1  ;;  %v4459_v57 = vadd.f32 %v4443_v63, %v8077_v25 }
0x110d   : > { %v4442_v0 = vmul.f32 %v4426_v15, %v8088_v26  ;;  %v8103_v59 = vadd.f32 %v4358_v34, %v4231_v27  ;;  %v4939_v11 = vpop.f32.mrb[102].mxu1  ;;  %v4457_v3 = vadd.f32 %v4441_v38, %v8080_v52 }
0x110e   : > { %v4415_v42 = vmul.f32 0.044715, %v8100_v41  ;;  %v8108_v50 = vadd.f32 %v4939_v11, %v4246_v2  ;;  %v4361_v39 = vpop.f32.mrb[103].mxu1  ;;  %v4460_v46 = vadd.f32 %v4444_v22, %v8084_v24  ;;  %v4475_v6 = vmul.f32 0.7978846, %v4459_v57 }
0x110f   : > { %v4413_v7 = vmul.f32 0.044715, %v8103_v59  ;;  %v8113_v62 = vadd.f32 %v4361_v39, %v4236_v37  ;;  %v4458_v27 = vadd.f32 %v4442_v0, %v8088_v26  ;;  %v4473_v18 = vmul.f32 0.7978846, %v4457_v3 }
0x1110   : > { %v4431_v10 = vmul.f32 %v4415_v42, %v8100_v41  ;;  %v4416_v45 = vmul.f32 0.044715, %v8108_v50  ;;  %v4476_v53 = vmul.f32 0.7978846, %v4460_v46  ;;  %v4390_v37 = vmul.f32 0.5, %v8068_v19 }
0x1111   : > { %v4429_v1 = vmul.f32 %v4413_v7, %v8103_v59  ;;  %v4414_v20 = vmul.f32 0.044715, %v8113_v62  ;;  %v4474_v17 = vmul.f32 0.7978846, %v4458_v27  ;;  %5568 = vtanh.f32 %v4473_v18 }
0x1112   : > { %v5561_v56 = vpop.eup %5560  ;;  %v4432_v49 = vmul.f32 %v4416_v45, %v8108_v50  ;;  %5570 = vtanh.f32 %v4475_v6  ;;  %v4447_v4 = vmul.f32 %v4431_v10, %v8100_v41  ;;  %v4395_v10 = vmul.f32 0.5, %v8077_v25 }
0x1113   : > { %v5563_v12 = vpop.eup %5562  ;;  %v4430_v48 = vmul.f32 %v4414_v20, %v8113_v62  ;;  %v4942_v23 = vpop.f32.mrb[104].mxu1  ;;  %v4503_v43 = vadd.f32 1.0, %v5561_v56  ;;  %5572 = vtanh.f32 %v4474_v17  ;;  %v4445_v14 = vmul.f32 %v4429_v1, %v8103_v59 }
0x1114   : > { %v5565_v60 = vpop.eup %5564  ;;  %v8126_v31 = vadd.f32 %v4942_v23, %v4261_v44  ;;  %v4374_v32 = vpop.f32.mrb[105].mxu1  ;;  %v4501_v5 = vadd.f32 1.0, %v5563_v12  ;;  %5574 = vtanh.f32 %v4476_v53  ;;  %v4448_v52 = vmul.f32 %v4432_v49, %v8108_v50 }
0x1115   : > { %v5567_v19 = vpop.eup %5566  ;;  %v4446_v30 = vmul.f32 %v4430_v48, %v8113_v62  ;;  %v8130_v36 = vadd.f32 %v4374_v32, %v4251_v33  ;;  %v4943_v2 = vpop.f32.mrb[106].mxu1  ;;  %v4504_v58 = vadd.f32 1.0, %v5565_v60  ;;  %v4519_v51 = vmul.f32 %v4503_v43, %v4391_v40 }
0x1116   : > { %v4419_v16 = vmul.f32 0.044715, %v8126_v31  ;;  %v8134_v8 = vadd.f32 %v4943_v2, %v4266_v55  ;;  %v4377_v63 = vpop.f32.mrb[107].mxu1  ;;  %v4502_v13 = vadd.f32 1.0, %v5567_v19  ;;  %v4517_v33 = vmul.f32 %v4501_v5, %v4389_v9 }
0x1117   : > { %v4417_v38 = vmul.f32 0.044715, %v8130_v36  ;;  %v8137_v15 = vadd.f32 %v4377_v63, %v4256_v61  ;;  %v4520_v22 = vmul.f32 %v4504_v58, %v4392_v47  ;;  %v4461_v11 = vadd.f32 %v4445_v14, %v8103_v59 }
0x1118   : > { %v4420_v34 = vmul.f32 0.044715, %v8134_v8  ;;  %v4518_v0 = vmul.f32 %v4502_v13, %v4390_v37  ;;  %v4462_v39 = vadd.f32 %v4446_v30, %v8113_v62  ;;  %v4435_v46 = vmul.f32 %v4419_v16, %v8126_v31 }
0x1119   : > { %v4433_v3 = vmul.f32 %v4417_v38, %v8130_v36  ;;  %v4418_v57 = vmul.f32 0.044715, %v8137_v15  ;;  %v4540_v42 = vpack.c.bf16 %v4520_v22, %v4519_v51  ;;  %v4394_v61 = vmul.f32 0.5, %v8088_v26 }
0x111a   : > { %v4539_v7 = vpack.c.bf16 %v4518_v0, %v4517_v33  ;;  %v4477_v40 = vmul.f32 0.7978846, %v4461_v11  ;;  %v4436_v18 = vmul.f32 %v4420_v34, %v8134_v8  ;;  %v4478_v45 = vmul.f32 0.7978846, %v4462_v39 }
0x111b   : > { %v5569_v27 = vpop.eup %5568  ;;  %v4434_v9 = vmul.f32 %v4418_v57, %v8137_v15  ;;  %v4449_v53 = vmul.f32 %v4433_v3, %v8130_v36  ;;  %v4463_v20 = vadd.f32 %v4447_v4, %v8100_v41  ;;  %v4464_v49 = vadd.f32 %v4448_v52, %v8108_v50 }
0x111c   : > { %v5571_v6 = vpop.eup %5570  ;;  %4944 = vmatprep.subr.bf16.mxu0 %v4539_v7  ;;  %v4505_v1 = vadd.f32 1.0, %v5569_v27  ;;  %5576 = vtanh.f32 %v4477_v40  ;;  %v4451_v25 = vmul.f32 %v4435_v46, %v8126_v31  ;;  %v4396_v12 = vmul.f32 0.5, %v8084_v24 }
0x111d   : > { %v5573_v17 = vpop.eup %5572  ;;  %v4450_v26 = vmul.f32 %v4434_v9, %v8137_v15  ;;  %4945 = vmatpush3.bf16.msra.mxu0 %v4539_v7  ;;  %v4507_v56 = vadd.f32 1.0, %v5571_v6  ;;  %5578 = vtanh.f32 %v4478_v45  ;;  %v4479_v44 = vmul.f32 0.7978846, %v4463_v20 }
0x111e   : > { %v5575_v37 = vpop.eup %5574  ;;  %4946 = vmatprep.subr.bf16.mxu0 %v4540_v42  ;;  %v4506_v47 = vadd.f32 1.0, %v5573_v17  ;;  %v4452_v48 = vmul.f32 %v4436_v18, %v8134_v8  ;;  %v4521_v23 = vmul.f32 %v4505_v1, %v4393_v54  ;;  %v4480_v60 = vmul.f32 0.7978846, %v4464_v49 }
0x111f   : > { %v4508_v43 = vadd.f32 1.0, %v5575_v37  ;;  %5580 = vtanh.f32 %v4479_v44  ;;  %v4465_v32 = vadd.f32 %v4449_v53, %v8130_v36  ;;  %v4466_v5 = vadd.f32 %v4450_v26, %v8137_v15 }
0x1120   : > { %v4522_v14 = vmul.f32 %v4506_v47, %v4394_v61  ;;  %v4523_v19 = vmul.f32 %v4507_v56, %v4395_v10  ;;  %5582 = vtanh.f32 %v4480_v60  ;;  %v4467_v24 = vadd.f32 %v4451_v25, %v8126_v31  ;;  %v4559_v47 = vpop.permute.xlu0 %4558 }
0x1121   : > { %4947 = vmatpush3.bf16.msra.mxu0 %v4540_v42  ;;  %v4524_v55 = vmul.f32 %v4508_v43, %v4396_v12  ;;  %v4481_v30 = vmul.f32 0.7978846, %v4465_v32  ;;  %v4482_v2 = vmul.f32 0.7978846, %v4466_v5  ;;  %v4468_v54 = vadd.f32 %v4452_v48, %v8134_v8 }
0x1122   : > { %v4541_v4 = vpack.c.bf16 %v4522_v14, %v4521_v23  ;;  %v4483_v52 = vmul.f32 0.7978846, %v4467_v24  ;;  %v4397_v51 = vmul.f32 0.5, %v8103_v59  ;;  %v4398_v22 = vmul.f32 0.5, %v8113_v62 }
0x1123   : > { %v4542_v58 = vpack.c.bf16 %v4524_v55, %v4523_v19  ;;  %5584 = vtanh.f32 %v4481_v30  ;;  %v4484_v16 = vmul.f32 0.7978846, %v4468_v54  ;;  %v4399_v39 = vmul.f32 0.5, %v8100_v41 }
0x1124   : > { %4948 = vmatprep.subr.bf16.mxu0 %v4541_v4  ;;  %5586 = vtanh.f32 %v4482_v2  ;;  %v4400_v46 = vmul.f32 0.5, %v8108_v50  ;;  %v4401_v10 = vmul.f32 0.5, %v8130_v36  ;;  %v4402_v45 = vmul.f32 0.5, %v8137_v15  ;;  %v4535_v15 = vld [vmem:[%s8245_s17 + $0x10] sm:$0xff]  ;;  %v4569_v43 = vpop.permute.xlu0 %4568 }
0x1125   : > { %4949 = vmatpush3.bf16.msra.mxu0 %v4541_v4  ;;  %5588 = vtanh.f32 %v4483_v52  ;;  %v4403_v41 = vmul.f32 0.5, %v8126_v31  ;;  %v4404_v17 = vmul.f32 0.5, %v8134_v8  ;;  %v4536_v31 = vld [vmem:[%s8245_s17 + $0x18] sm:$0xff]  ;;  %v4554_v8 = vpop.permute.xlu1 %4553 }
0x1126   : > { %v5577_v63 = vpop.eup %5576  ;;  %4950 = vmatprep.subr.bf16.mxu0 %v4542_v58  ;;  %5590 = vtanh.f32 %v4484_v16  ;;  %v4538_v25 = vpack.c.bf16 %v4536_v31, %v4535_v15 }
0x1127   : > { %v5579_v13 = vpop.eup %5578  ;;  %v4509_v38 = vadd.f32 1.0, %v5577_v63 }
0x1128   : > { %v4510_v34 = vadd.f32 1.0, %v5579_v13 }
0x1129   : > { %4951 = vmatpush3.bf16.msra.mxu0 %v4542_v58  ;;  %v5581_v33 = vpop.eup %5580  ;;  %v4525_v0 = vmul.f32 %v4509_v38, %v4397_v51  ;;  %v4564_v12 = vpop.permute.xlu1 %4563 }
0x112a   : > { %v4526_v11 = vmul.f32 %v4510_v34, %v4398_v22  ;;  %v5583_v3 = vpop.eup %5582  ;;  %v4511_v57 = vadd.f32 1.0, %v5581_v33 }
0x112b   : > { %v4512_v7 = vadd.f32 1.0, %v5583_v3 }
0x112c   : > { %v4543_v42 = vpack.c.bf16 %v4526_v11, %v4525_v0  ;;  %v4527_v40 = vmul.f32 %v4511_v57, %v4399_v39 }
0x112d   : > { %v5585_v61 = vpop.eup %5584  ;;  %v4528_v27 = vmul.f32 %v4512_v7, %v4400_v46 }
0x112e   : > { %4952 = vmatprep.subr.bf16.mxu0 %v4543_v42  ;;  %v5587_v59 = vpop.eup %5586  ;;  %v4513_v62 = vadd.f32 1.0, %v5585_v61 }
0x112f   : > { %4953 = vmatpush3.bf16.msra.mxu0 %v4543_v42  ;;  %v5589_v18 = vpop.eup %5588  ;;  %v4544_v9 = vpack.c.bf16 %v4528_v27, %v4527_v40  ;;  %v4514_v6 = vadd.f32 1.0, %v5587_v59 }
0x1130   : > { %v5591_v53 = vpop.eup %5590  ;;  %v4515_v1 = vadd.f32 1.0, %v5589_v18  ;;  %v4529_v50 = vmul.f32 %v4513_v62, %v4401_v10 }
0x1131   : > { %4954 = vmatprep.subr.bf16.mxu0 %v4544_v9  ;;  %v4530_v20 = vmul.f32 %v4514_v6, %v4402_v45  ;;  %v4516_v26 = vadd.f32 1.0, %v5591_v53 }
0x1132   : > { %v4531_v49 = vmul.f32 %v4515_v1, %v4403_v41 }
0x1133   : > { %4955 = vmatpush3.bf16.msra.mxu0 %v4544_v9  ;;  %v4545_v56 = vpack.c.bf16 %v4530_v20, %v4529_v50  ;;  %v4532_v37 = vmul.f32 %v4516_v26, %v4404_v17 }
0x1135   : > { %4956 = vmatprep.subr.bf16.mxu0 %v4545_v56  ;;  %v4546_v36 = vpack.c.bf16 %v4532_v37, %v4531_v49 }
0x1137   : > { %4957 = vmatpush3.bf16.msra.mxu0 %v4545_v56 }
0x1138   : > { %4958 = vmatprep.subr.bf16.mxu0 %v4546_v36 }
0x113b   : > { %4959 = vmatpush3.bf16.msra.mxu0 %v4546_v36 }
0x113e   : > { %4961 = vmatmul.mubr.bf16.vlgmr.msra.gmra.mrb[96].mxu0 %v4538_v25 }
0x1211   : > { %v4962_v44 = vpop.f32.mrb[96].mxu0 }
0x1212   : > { %v4614_v48 = vadd.f32 %v4962_v44, %v4564_v12  ;;  %v4605_v23 = vpop.f32.mrb[97].mxu0 }
0x1213   : > { %v4606_v60 = vadd.f32 %v4605_v23, %v4554_v8  ;;  %v4963_v14 = vpop.f32.mrb[98].mxu0 }
0x1214   : > { %v4622_v32 = vadd.f32 %v4614_v48, %v7886_v21  ;;  %v4617_v5 = vadd.f32 %v4963_v14, %v4569_v43  ;;  %v4608_v19 = vpop.f32.mrb[99].mxu0 }
0x1215   : > { %v4620_v55 = vadd.f32 %v4606_v60, %v7881_v35  ;;  %v4609_v4 = vadd.f32 %v4608_v19, %v4559_v47 }
0x1216   : > { %4626 = vst [vmem:[%s625_s28 + $0x10] sm:$0xff] %v4622_v32  ;;  %v4623_v30 = vadd.f32 %v4617_v5, %v7890_v29 }
0x1217   : > { %4624 = vst [vmem:[%s625_s28] sm:$0xff] %v4620_v55  ;;  %v4621_v2 = vadd.f32 %v4609_v4, %v7883_v28 }
0x1218   : > { %4627 = vst [vmem:[%s625_s28 + $0x18] sm:$0xff] %v4623_v30 }
0x1219   : > { %4625 = vst [vmem:[%s625_s28 + $0x8] sm:$0xff] %v4621_v2 }
0x121a   : > { %5617 = shalt.err (!%p5614_p3)
}
0x121b   : > { %s5618_s4 = scalar_lea.hbm %s8185_s20, 512  ;;  %s5622_s28 = scalar_lea.hbm %s8247_s19, 1024 }
0x121c   : > { %p5619_p4 = scmp.ne.s32.totalorder %s8185_s20, %s5618_s4  ;;  %p5623_p9 = scmp.lt.u32.totalorder %s8185_s20, %s8247_s19 }
0x121d   : > { %p5624_p10 = scmp.lt.u32.totalorder %s5622_s28, %s5618_s4  ;;  %p5626_p12 = scmp.lt.u32.totalorder %s5618_s4, %s8185_s20 }
0x121e   : > { %p5620_p7 = pnand %p5619_p4, %p5810_p5 }
0x121f   : > { %p5625_p11 = por %p5624_p10, %p5623_p9 }
0x1220   : > { %p5621_p8 = pneg %p5620_p7 }
0x1221   : > { %p5627_p13 = por %p5626_p12, %p5625_p11 }
0x1223   : > { %p5628_p0 = pnand %p5627_p13, %p5621_p8 }
0x1225   : > { %5631 = shalt.err (!%p5628_p0)
}
0x1226   : > { %s5670_s21 = smov 128   ;;  %s5671_s26 = smov 8  }
0x1227   : > { %4964 = dma.vmem_to_hbm [thread:$0]  (%p5810_p5), %s8178_s22, 512, %s8185_s20, %s8187_s1, %s5670_s21, %s5670_s21, %s5671_s26  }
0x1228 PF: > { %s8339_s24 = sld [smem:[#allocation7_spill]]  ;;  %s8340_s27 = sld [smem:[#allocation5_spill]] }
0x122e   : > { %p4970_p1 = scmp.ge.s32.totalorder %s8339_s24, 2  ;;  %s4657_s25 = sand.u32 1, %s8340_s27  }
0x122f   : > { %s4658_s4 = scalar_lea.sflag [#allocation3], %s4657_s25 }
0x1230   : > { %p4967_p2 = pnand %p4970_p1, %p5814_p6 }
0x1232   : > { %5649 = dma.done.wait (!%p4967_p2), %s4658_s4, 512  }
0x1233   : > { %5651 = vsyncadd (!%p4967_p2), %s4658_s4, 4294966784  ;;  %s8342_s21 = sld [smem:[#allocation8_spill]]  ;;  %s8343_s28 = sld [smem:[#allocation6_spill]] }
0x1234   : > { %s8344_s20 = sld [smem:[#allocation9_spill]]  ;;  %s8345_s0 = smov %s5658_s30 }
0x1239   : > { %p29_p3 = scmp.ge.s32.totalorder %s8342_s21, 4   ;;  %s8346_s30 = smov %s8343_s28 }
0x123b   :  { %31 = sbr.rel (!%p29_p3) target bundleno = 10 (0xa), region = 137 }
0x1242   :  { %4663 = vsyncpa [#allocation3], 1 }
0x1243   :  { %4665 = vsyncpa [#allocation3 + $0x1], 1 }

</bundles_post_ra>
